<compile_context>
chip_gen: v6e
topology: v6e:2x2x1
jax: 0.10.0
libtpu: 0.0.40
codegen_flags: <defaults>
</compile_context>

<pallas_src>
import functools
import math

import numpy as np

import jax
import jax.numpy as jnp
from jax.experimental import pallas as pl
from jax.experimental.pallas import tpu as pltpu


# Set to jnp.bfloat16 to feed the MXU at ~2x rate (perf-review suggestion for
# v5e/v6e/v7x; BN/ReLU epilogue math stays f32 either way).  Left at float32
# so the conv matches the PyTorch float32 reference closely — this workload
# is launch/latency-bound, not MXU-bound, so the bf16 gain is marginal here.
MXU_DTYPE = jnp.float32

_EPS = 1e-5
_LANE = 128


def _round_up(x, m):
    return (x + m - 1) // m * m


# ----------------------------------------------------------------------------
# Fused per-layer Pallas kernels (single pallas_call per layer)
# ----------------------------------------------------------------------------
def _conv_bn_relu_kernel(pat_ref, w_ref, o_ref, *, inv_m, eps):
    """y = pat @ w (MXU); train-mode BN (gamma=1, beta=0); ReLU."""
    y = jnp.dot(pat_ref[...], w_ref[...], preferred_element_type=jnp.float32)
    mean = jnp.sum(y, axis=0, keepdims=True) * inv_m
    ex2 = jnp.sum(y * y, axis=0, keepdims=True) * inv_m
    var = jnp.maximum(ex2 - mean * mean, 0.0)      # clamp tiny negative rounding
    inv_std = jax.lax.rsqrt(var + eps)
    o_ref[...] = jnp.maximum((y - mean) * inv_std, 0.0).astype(o_ref.dtype)


def _conv_bn_relu_pool_kernel(pat_ref, w_ref, pool_ref, o_ref, *, inv_m, eps):
    """Same as above plus AvgPool2d(2,2) applied as a pooling-matrix matmul."""
    y = jnp.dot(pat_ref[...], w_ref[...], preferred_element_type=jnp.float32)
    mean = jnp.sum(y, axis=0, keepdims=True) * inv_m
    ex2 = jnp.sum(y * y, axis=0, keepdims=True) * inv_m
    var = jnp.maximum(ex2 - mean * mean, 0.0)
    inv_std = jax.lax.rsqrt(var + eps)
    z = jnp.maximum((y - mean) * inv_std, 0.0)
    o_ref[...] = jnp.dot(pool_ref[...], z,
                         preferred_element_type=jnp.float32).astype(o_ref.dtype)


# ----------------------------------------------------------------------------
# Glue: im2col patch slab, constant pooling matrix, per-layer wrapper
# ----------------------------------------------------------------------------
def _im2col_3x3(x_nhwc, k_pad):
    """(N,H,W,Cin) -> (N*H*W, k_pad) patch slab for a 3x3 / s1 / p1 conv."""
    N, H, W, Cin = x_nhwc.shape
    xp = jnp.pad(x_nhwc, ((0, 0), (1, 1), (1, 1), (0, 0)))
    taps = [xp[:, dy:dy + H, dx:dx + W, :]
            for dy in range(3) for dx in range(3)]
    pat = jnp.concatenate(taps, axis=-1).reshape(N * H * W, 9 * Cin)
    if k_pad != 9 * Cin:
        pat = jnp.pad(pat, ((0, 0), (0, k_pad - 9 * Cin)))
    return pat.astype(MXU_DTYPE)


@functools.lru_cache(maxsize=None)
def _pool_matrix(n, h, w):
    """Constant (N*H/2*W/2, N*H*W) matrix implementing AvgPool2d(2,2) on
    row-major NHWC-flattened rows (built once per static shape)."""
    h2, w2 = h // 2, w // 2
    p = np.zeros((n * h2 * w2, n * h * w), np.float32)
    for b in range(n):
        for y in range(h2):
            for x in range(w2):
                o = (b * h2 + y) * w2 + x
                for dy in range(2):
                    for dx in range(2):
                        i = (b * h + 2 * y + dy) * w + 2 * x + dx
                        p[o, i] = 0.25
    return jnp.asarray(p)


def _fused_conv_bn_relu(x_nhwc, wmat, *, pool, tc_pref=256):
    """One fused pallas_call: conv(3x3) + BN(train) + ReLU (+ AvgPool2x2)."""
    N, H, W, Cin = x_nhwc.shape
    K_pad, Cout = wmat.shape
    M = N * H * W
    pat = _im2col_3x3(x_nhwc, K_pad)

    # One 256-wide (or full-width) output-channel block per grid step; blocks
    # are independent (BN is per-channel), so the axis is "parallel" and the
    # two v7x TensorCores can split layer3.  Tiles divide Cout exactly.
    tc = tc_pref if Cout % tc_pref == 0 else Cout
    grid = (Cout // tc,)

    # Whole-activation-resident design: fail loudly (instead of silently
    # blowing VMEM) if batch/resolution grows beyond the toy regime.
    vmem_est = 4 * (M * K_pad + 2 * K_pad * tc + 2 * M * tc + (M // 4) * M)
    assert vmem_est < 24 * 1024 * 1024, (
        "fused layer working set too large for VMEM; re-tile over M")

    cparams = pltpu.CompilerParams(dimension_semantics=("parallel",))

    if pool:
        P = _pool_matrix(N, H, W)
        M_out = P.shape[0]
        out = pl.pallas_call(
            functools.partial(_conv_bn_relu_pool_kernel,
                              inv_m=1.0 / M, eps=_EPS),
            out_shape=jax.ShapeDtypeStruct((M_out, Cout), jnp.float32),
            grid=grid,
            in_specs=[pl.BlockSpec((M, K_pad), lambda j: (0, 0)),
                      pl.BlockSpec((K_pad, tc), lambda j: (0, j)),
                      pl.BlockSpec((M_out, M), lambda j: (0, 0))],
            out_specs=pl.BlockSpec((M_out, tc), lambda j: (0, j)),
            compiler_params=cparams,
        )(pat, wmat, P)
        return out.reshape(N, H // 2, W // 2, Cout)

    out = pl.pallas_call(
        functools.partial(_conv_bn_relu_kernel, inv_m=1.0 / M, eps=_EPS),
        out_shape=jax.ShapeDtypeStruct((M, Cout), jnp.float32),
        grid=grid,
        in_specs=[pl.BlockSpec((M, K_pad), lambda j: (0, 0)),
                  pl.BlockSpec((K_pad, tc), lambda j: (0, j))],
        out_specs=pl.BlockSpec((M, tc), lambda j: (0, j)),
        compiler_params=cparams,
    )(pat, wmat)
    return out.reshape(N, H, W, Cout)


# ----------------------------------------------------------------------------
# Forward pass (layer4 exists in __init__ but is unused in forward())
# ----------------------------------------------------------------------------
def conv_et_al_forward(x_nchw, params, flatten=True):
    x = jnp.transpose(x_nchw, (0, 2, 3, 1))                 # NCHW -> NHWC
    h = _fused_conv_bn_relu(x, params["w1"], pool=True)      # layer1
    h = _fused_conv_bn_relu(h, params["w2"], pool=True)      # layer2
    h = _fused_conv_bn_relu(h, params["w3"], pool=False)     # layer3
    if flatten:
        h = jnp.transpose(h, (0, 3, 1, 2))                   # back to NCHW
        h = h.reshape(h.shape[0], -1)                        # nn.Flatten()
    return h


# ----------------------------------------------------------------------------
# Parameter init (matches the module's He-style init: N(0, sqrt(2/(k*k*Cout))),
# no conv bias, BN gamma=1 / beta=0) + one-time hoisted matmul-layout prep.
# ----------------------------------------------------------------------------
def init_params(key, input_channels):
    k1, k2, k3 = jax.random.split(key, 3)

    def conv_w(k, cout, cin):
        std = math.sqrt(2.0 / (3 * 3 * cout))
        return jax.random.normal(k, (cout, cin, 3, 3), jnp.float32) * std

    return {"w1": conv_w(k1, 128, input_channels),
            "w2": conv_w(k2, 256, 128),
            "w3": conv_w(k3, 512, 256)}


def prepare_params(params):
    """Hoisted one-time transform: OIHW -> (K_pad, Cout) matmul layout."""
    def prep(w):
        cout, cin = w.shape[0], w.shape[1]
        wmat = jnp.transpose(w, (2, 3, 1, 0)).reshape(9 * cin, cout)
        k_pad = _round_up(9 * cin, _LANE)
        if k_pad != 9 * cin:
            wmat = jnp.pad(wmat, ((0, k_pad - 9 * cin), (0, 0)))
        return wmat.astype(MXU_DTYPE)

    return {k: prep(v) for k, v in params.items()}


if __name__ == "__main__":
    key = jax.random.PRNGKey(0)
    kx, kp = jax.random.split(key)

    # Small input consistent with the module: batch=2, channels=4, 16x16.
    x = jax.random.normal(kx, (2, 4, 16, 16), jnp.float32)
    params = prepare_params(init_params(kp, input_channels=4))

    fwd = jax.jit(functools.partial(conv_et_al_forward, flatten=True))
    out = jax.block_until_ready(fwd(x, params))

    # 16x16 -> pool -> 8x8 -> pool -> 4x4 with 512 channels -> flatten 8192.
    assert out.shape == (2, 512 * 4 * 4), out.shape
    assert out.dtype == jnp.float32
    print("KERNEL_OK")
</pallas_src>

<mosaic_0001>
module attributes {stable_mosaic.version = 11 : i64} {
  func.func @_conv_bn_relu_pool_kernel(%arg0: i32, %arg1: memref<512x128xf32, #tpu.memory_space<vmem>>, %arg2: memref<128x128xf32, #tpu.memory_space<vmem>>, %arg3: memref<128x512xf32, #tpu.memory_space<vmem>>, %arg4: memref<128x128xf32, #tpu.memory_space<vmem>>) attributes {dimension_semantics = [#tpu.dimension_semantics<parallel>], iteration_bounds = array<i64: 1>, scalar_prefetch = 0 : i64, scratch_operands = 0 : i64, tpu.core_type = #tpu.core_type<tc>, window_params = [{pipeline_mode = #tpu.pipeline_mode<synchronous>, transform_indices = @transform_0, window_bounds = array<i64: 512, 128>}, {transform_indices = @transform_1, window_bounds = array<i64: 128, 128>}, {pipeline_mode = #tpu.pipeline_mode<synchronous>, transform_indices = @transform_2, window_bounds = array<i64: 128, 512>}, {transform_indices = @transform_3, window_bounds = array<i64: 128, 128>}]} {
    %c0 = arith.constant 0 : index
    %c0_0 = arith.constant 0 : index
    %0 = vector.load %arg1[%c0, %c0_0] : memref<512x128xf32, #tpu.memory_space<vmem>>, vector<512x128xf32>
    %c0_1 = arith.constant 0 : index
    %c0_2 = arith.constant 0 : index
    %1 = vector.load %arg2[%c0_1, %c0_2] : memref<128x128xf32, #tpu.memory_space<vmem>>, vector<128x128xf32>
    %cst = arith.constant dense<0.000000e+00> : vector<512x128xf32>
    %2 = tpu.matmul %0, %1, %cst {dimension_numbers = #tpu.dot_dimension_numbers<[1], [0], [0], [1], [0, 0, 1, 1], [], []>} : vector<512x128xf32>, vector<128x128xf32>, vector<512x128xf32> -> vector<512x128xf32>
    %cst_3 = arith.constant dense<0.000000e+00> : vector<128xf32>
    %3 = vector.multi_reduction <add>, %2, %cst_3 [0] : vector<512x128xf32> to vector<128xf32>
    %4 = vector.shape_cast %3 : vector<128xf32> to vector<1x128xf32>
    %cst_4 = arith.constant 0.001953125 : f32
    %5 = vector.broadcast %cst_4 : f32 to vector<1x128xf32>
    %6 = arith.mulf %4, %5 : vector<1x128xf32>
    %7 = arith.mulf %2, %2 : vector<512x128xf32>
    %cst_5 = arith.constant dense<0.000000e+00> : vector<128xf32>
    %8 = vector.multi_reduction <add>, %7, %cst_5 [0] : vector<512x128xf32> to vector<128xf32>
    %9 = vector.shape_cast %8 : vector<128xf32> to vector<1x128xf32>
    %cst_6 = arith.constant 0.001953125 : f32
    %10 = vector.broadcast %cst_6 : f32 to vector<1x128xf32>
    %11 = arith.mulf %9, %10 : vector<1x128xf32>
    %12 = arith.mulf %6, %6 : vector<1x128xf32>
    %13 = arith.subf %11, %12 : vector<1x128xf32>
    %cst_7 = arith.constant 0.000000e+00 : f32
    %14 = vector.broadcast %cst_7 : f32 to vector<1x128xf32>
    %15 = arith.maximumf %13, %14 : vector<1x128xf32>
    %cst_8 = arith.constant 9.99999974E-6 : f32
    %16 = vector.broadcast %cst_8 : f32 to vector<1x128xf32>
    %17 = arith.addf %15, %16 : vector<1x128xf32>
    %18 = math.rsqrt %17 : vector<1x128xf32>
    %19 = vector.broadcast %6 : vector<1x128xf32> to vector<512x128xf32>
    %20 = arith.subf %2, %19 : vector<512x128xf32>
    %21 = vector.broadcast %18 : vector<1x128xf32> to vector<512x128xf32>
    %22 = arith.mulf %20, %21 : vector<512x128xf32>
    %cst_9 = arith.constant 0.000000e+00 : f32
    %23 = vector.broadcast %cst_9 : f32 to vector<512x128xf32>
    %24 = arith.maximumf %22, %23 : vector<512x128xf32>
    %c0_10 = arith.constant 0 : index
    %c0_11 = arith.constant 0 : index
    %25 = vector.load %arg3[%c0_10, %c0_11] : memref<128x512xf32, #tpu.memory_space<vmem>>, vector<128x512xf32>
    %cst_12 = arith.constant dense<0.000000e+00> : vector<128x128xf32>
    %26 = tpu.matmul %25, %24, %cst_12 {dimension_numbers = #tpu.dot_dimension_numbers<[1], [0], [0], [1], [0, 0, 1, 1], [], []>} : vector<128x512xf32>, vector<512x128xf32>, vector<128x128xf32> -> vector<128x128xf32>
    %c0_13 = arith.constant 0 : index
    %c0_14 = arith.constant 0 : index
    %27 = vector.load %arg4[%c0_13, %c0_14] : memref<128x128xf32, #tpu.memory_space<vmem>>, vector<128x128xf32>
    tpu.vector_store %arg4[%c0_13, %c0_14], %26 {strides = array<i32>} : memref<128x128xf32, #tpu.memory_space<vmem>>, vector<128x128xf32>,
    return
  }
  func.func @transform_0(%arg0: i32) -> (i32, i32) {
    %c0_i32 = arith.constant 0 : i32
    %c0_i32_0 = arith.constant 0 : i32
    %c0_i32_1 = arith.constant 0 : i32
    return %c0_i32, %c0_i32_0 : i32, i32
  }
  func.func @transform_1(%arg0: i32) -> (i32, i32) {
    %c0_i32 = arith.constant 0 : i32
    %c0_i32_0 = arith.constant 0 : i32
    return %c0_i32, %arg0 : i32, i32
  }
  func.func @transform_2(%arg0: i32) -> (i32, i32) {
    %c0_i32 = arith.constant 0 : i32
    %c0_i32_0 = arith.constant 0 : i32
    %c0_i32_1 = arith.constant 0 : i32
    return %c0_i32, %c0_i32_0 : i32, i32
  }
  func.func @transform_3(%arg0: i32) -> (i32, i32) {
    %c0_i32 = arith.constant 0 : i32
    %c0_i32_0 = arith.constant 0 : i32
    return %c0_i32, %arg0 : i32, i32
  }
}

module attributes {stable_mosaic.version = 11 : i64} {
  func.func @_conv_bn_relu_pool_kernel(%arg0: i32, %arg1: memref<128x1152xf32, #tpu.memory_space<vmem>>, %arg2: memref<1152x256xf32, #tpu.memory_space<vmem>>, %arg3: memref<32x128xf32, #tpu.memory_space<vmem>>, %arg4: memref<32x256xf32, #tpu.memory_space<vmem>>) attributes {dimension_semantics = [#tpu.dimension_semantics<parallel>], iteration_bounds = array<i64: 1>, scalar_prefetch = 0 : i64, scratch_operands = 0 : i64, tpu.core_type = #tpu.core_type<tc>, window_params = [{pipeline_mode = #tpu.pipeline_mode<synchronous>, transform_indices = @transform_0, window_bounds = array<i64: 128, 1152>}, {transform_indices = @transform_1, window_bounds = array<i64: 1152, 256>}, {pipeline_mode = #tpu.pipeline_mode<synchronous>, transform_indices = @transform_2, window_bounds = array<i64: 32, 128>}, {transform_indices = @transform_3, window_bounds = array<i64: 32, 256>}]} {
    %c0 = arith.constant 0 : index
    %c0_0 = arith.constant 0 : index
    %0 = vector.load %arg1[%c0, %c0_0] : memref<128x1152xf32, #tpu.memory_space<vmem>>, vector<128x1152xf32>
    %c0_1 = arith.constant 0 : index
    %c0_2 = arith.constant 0 : index
    %1 = vector.load %arg2[%c0_1, %c0_2] : memref<1152x256xf32, #tpu.memory_space<vmem>>, vector<1152x256xf32>
    %cst = arith.constant dense<0.000000e+00> : vector<128x256xf32>
    %2 = tpu.matmul %0, %1, %cst {dimension_numbers = #tpu.dot_dimension_numbers<[1], [0], [0], [1], [0, 0, 1, 1], [], []>} : vector<128x1152xf32>, vector<1152x256xf32>, vector<128x256xf32> -> vector<128x256xf32>
    %cst_3 = arith.constant dense<0.000000e+00> : vector<256xf32>
    %3 = vector.multi_reduction <add>, %2, %cst_3 [0] : vector<128x256xf32> to vector<256xf32>
    %4 = vector.shape_cast %3 : vector<256xf32> to vector<1x256xf32>
    %cst_4 = arith.constant 7.812500e-03 : f32
    %5 = vector.broadcast %cst_4 : f32 to vector<1x256xf32>
    %6 = arith.mulf %4, %5 : vector<1x256xf32>
    %7 = arith.mulf %2, %2 : vector<128x256xf32>
    %cst_5 = arith.constant dense<0.000000e+00> : vector<256xf32>
    %8 = vector.multi_reduction <add>, %7, %cst_5 [0] : vector<128x256xf32> to vector<256xf32>
    %9 = vector.shape_cast %8 : vector<256xf32> to vector<1x256xf32>
    %cst_6 = arith.constant 7.812500e-03 : f32
    %10 = vector.broadcast %cst_6 : f32 to vector<1x256xf32>
    %11 = arith.mulf %9, %10 : vector<1x256xf32>
    %12 = arith.mulf %6, %6 : vector<1x256xf32>
    %13 = arith.subf %11, %12 : vector<1x256xf32>
    %cst_7 = arith.constant 0.000000e+00 : f32
    %14 = vector.broadcast %cst_7 : f32 to vector<1x256xf32>
    %15 = arith.maximumf %13, %14 : vector<1x256xf32>
    %cst_8 = arith.constant 9.99999974E-6 : f32
    %16 = vector.broadcast %cst_8 : f32 to vector<1x256xf32>
    %17 = arith.addf %15, %16 : vector<1x256xf32>
    %18 = math.rsqrt %17 : vector<1x256xf32>
    %19 = vector.broadcast %6 : vector<1x256xf32> to vector<128x256xf32>
    %20 = arith.subf %2, %19 : vector<128x256xf32>
    %21 = vector.broadcast %18 : vector<1x256xf32> to vector<128x256xf32>
    %22 = arith.mulf %20, %21 : vector<128x256xf32>
    %cst_9 = arith.constant 0.000000e+00 : f32
    %23 = vector.broadcast %cst_9 : f32 to vector<128x256xf32>
    %24 = arith.maximumf %22, %23 : vector<128x256xf32>
    %c0_10 = arith.constant 0 : index
    %c0_11 = arith.constant 0 : index
    %25 = vector.load %arg3[%c0_10, %c0_11] : memref<32x128xf32, #tpu.memory_space<vmem>>, vector<32x128xf32>
    %cst_12 = arith.constant dense<0.000000e+00> : vector<32x256xf32>
    %26 = tpu.matmul %25, %24, %cst_12 {dimension_numbers = #tpu.dot_dimension_numbers<[1], [0], [0], [1], [0, 0, 1, 1], [], []>} : vector<32x128xf32>, vector<128x256xf32>, vector<32x256xf32> -> vector<32x256xf32>
    %c0_13 = arith.constant 0 : index
    %c0_14 = arith.constant 0 : index
    %27 = vector.load %arg4[%c0_13, %c0_14] : memref<32x256xf32, #tpu.memory_space<vmem>>, vector<32x256xf32>
    tpu.vector_store %arg4[%c0_13, %c0_14], %26 {strides = array<i32>} : memref<32x256xf32, #tpu.memory_space<vmem>>, vector<32x256xf32>,
    return
  }
  func.func @transform_0(%arg0: i32) -> (i32, i32) {
    %c0_i32 = arith.constant 0 : i32
    %c0_i32_0 = arith.constant 0 : i32
    %c0_i32_1 = arith.constant 0 : i32
    return %c0_i32, %c0_i32_0 : i32, i32
  }
  func.func @transform_1(%arg0: i32) -> (i32, i32) {
    %c0_i32 = arith.constant 0 : i32
    %c0_i32_0 = arith.constant 0 : i32
    return %c0_i32, %arg0 : i32, i32
  }
  func.func @transform_2(%arg0: i32) -> (i32, i32) {
    %c0_i32 = arith.constant 0 : i32
    %c0_i32_0 = arith.constant 0 : i32
    %c0_i32_1 = arith.constant 0 : i32
    return %c0_i32, %c0_i32_0 : i32, i32
  }
  func.func @transform_3(%arg0: i32) -> (i32, i32) {
    %c0_i32 = arith.constant 0 : i32
    %c0_i32_0 = arith.constant 0 : i32
    return %c0_i32, %arg0 : i32, i32
  }
}

module attributes {stable_mosaic.version = 11 : i64} {
  func.func @_conv_bn_relu_kernel(%arg0: i32, %arg1: memref<32x2304xf32, #tpu.memory_space<vmem>>, %arg2: memref<2304x256xf32, #tpu.memory_space<vmem>>, %arg3: memref<32x256xf32, #tpu.memory_space<vmem>>) attributes {dimension_semantics = [#tpu.dimension_semantics<parallel>], iteration_bounds = array<i64: 2>, scalar_prefetch = 0 : i64, scratch_operands = 0 : i64, tpu.core_type = #tpu.core_type<tc>, window_params = [{pipeline_mode = #tpu.pipeline_mode<synchronous>, transform_indices = @transform_0, window_bounds = array<i64: 32, 2304>}, {transform_indices = @transform_1, window_bounds = array<i64: 2304, 256>}, {transform_indices = @transform_2, window_bounds = array<i64: 32, 256>}]} {
    %c0 = arith.constant 0 : index
    %c0_0 = arith.constant 0 : index
    %0 = vector.load %arg1[%c0, %c0_0] : memref<32x2304xf32, #tpu.memory_space<vmem>>, vector<32x2304xf32>
    %c0_1 = arith.constant 0 : index
    %c0_2 = arith.constant 0 : index
    %1 = vector.load %arg2[%c0_1, %c0_2] : memref<2304x256xf32, #tpu.memory_space<vmem>>, vector<2304x256xf32>
    %cst = arith.constant dense<0.000000e+00> : vector<32x256xf32>
    %2 = tpu.matmul %0, %1, %cst {dimension_numbers = #tpu.dot_dimension_numbers<[1], [0], [0], [1], [0, 0, 1, 1], [], []>} : vector<32x2304xf32>, vector<2304x256xf32>, vector<32x256xf32> -> vector<32x256xf32>
    %cst_3 = arith.constant dense<0.000000e+00> : vector<256xf32>
    %3 = vector.multi_reduction <add>, %2, %cst_3 [0] : vector<32x256xf32> to vector<256xf32>
    %4 = vector.shape_cast %3 : vector<256xf32> to vector<1x256xf32>
    %cst_4 = arith.constant 3.125000e-02 : f32
    %5 = vector.broadcast %cst_4 : f32 to vector<1x256xf32>
    %6 = arith.mulf %4, %5 : vector<1x256xf32>
    %7 = arith.mulf %2, %2 : vector<32x256xf32>
    %cst_5 = arith.constant dense<0.000000e+00> : vector<256xf32>
    %8 = vector.multi_reduction <add>, %7, %cst_5 [0] : vector<32x256xf32> to vector<256xf32>
    %9 = vector.shape_cast %8 : vector<256xf32> to vector<1x256xf32>
    %cst_6 = arith.constant 3.125000e-02 : f32
    %10 = vector.broadcast %cst_6 : f32 to vector<1x256xf32>
    %11 = arith.mulf %9, %10 : vector<1x256xf32>
    %12 = arith.mulf %6, %6 : vector<1x256xf32>
    %13 = arith.subf %11, %12 : vector<1x256xf32>
    %cst_7 = arith.constant 0.000000e+00 : f32
    %14 = vector.broadcast %cst_7 : f32 to vector<1x256xf32>
    %15 = arith.maximumf %13, %14 : vector<1x256xf32>
    %cst_8 = arith.constant 9.99999974E-6 : f32
    %16 = vector.broadcast %cst_8 : f32 to vector<1x256xf32>
    %17 = arith.addf %15, %16 : vector<1x256xf32>
    %18 = math.rsqrt %17 : vector<1x256xf32>
    %19 = vector.broadcast %6 : vector<1x256xf32> to vector<32x256xf32>
    %20 = arith.subf %2, %19 : vector<32x256xf32>
    %21 = vector.broadcast %18 : vector<1x256xf32> to vector<32x256xf32>
    %22 = arith.mulf %20, %21 : vector<32x256xf32>
    %cst_9 = arith.constant 0.000000e+00 : f32
    %23 = vector.broadcast %cst_9 : f32 to vector<32x256xf32>
    %24 = arith.maximumf %22, %23 : vector<32x256xf32>
    %c0_10 = arith.constant 0 : index
    %c0_11 = arith.constant 0 : index
    %25 = vector.load %arg3[%c0_10, %c0_11] : memref<32x256xf32, #tpu.memory_space<vmem>>, vector<32x256xf32>
    tpu.vector_store %arg3[%c0_10, %c0_11], %24 {strides = array<i32>} : memref<32x256xf32, #tpu.memory_space<vmem>>, vector<32x256xf32>,
    return
  }
  func.func @transform_0(%arg0: i32) -> (i32, i32) {
    %c0_i32 = arith.constant 0 : i32
    %c0_i32_0 = arith.constant 0 : i32
    %c0_i32_1 = arith.constant 0 : i32
    return %c0_i32, %c0_i32_0 : i32, i32
  }
  func.func @transform_1(%arg0: i32) -> (i32, i32) {
    %c0_i32 = arith.constant 0 : i32
    %c0_i32_0 = arith.constant 0 : i32
    return %c0_i32, %arg0 : i32, i32
  }
  func.func @transform_2(%arg0: i32) -> (i32, i32) {
    %c0_i32 = arith.constant 0 : i32
    %c0_i32_0 = arith.constant 0 : i32
    return %c0_i32, %arg0 : i32, i32
  }
}

</mosaic_0001>

<bundles_post_ra>
// kernel: conv_et_al_forward.3
= control target key start
LH: loop header
LB: loop body
LE: loop exit
PB: predicated region body
PF: predicated region fallthrough
CT: control target
= control target key end

     0   :  { %s2765_s1 = inlined_call_operand.vmem [shape: f32[128,128], index: 1, kind: input, shape index: {}]   ;;  %s2766_s0 = inlined_call_operand.vmem [shape: f32[512,128], index: 0, kind: input, shape index: {}]   ;;  %s2767_s2 = inlined_call_operand.vmem [shape: f32[128,512], index: 2, kind: input, shape index: {}]   ;;  %s2768_s3 = inlined_call_operand.vmem [shape: f32[128,128], index: 3, kind: output, shape index: {}]  }
   0x1   :  { %v93_v0 = vld [vmem:[%s2765_s1 + $0x78] sm:$0xff]  ;;  %v92_v1 = vld [vmem:[%s2765_s1 + $0x70] sm:$0xff]  ;;  %v91_v2 = vld [vmem:[%s2765_s1 + $0x68] sm:$0xff] }
   0x2   :  { %1494 = vmatprep.subr.mxu0 %v93_v0  ;;  %v90_v3 = vld [vmem:[%s2765_s1 + $0x60] sm:$0xff]  ;;  %v89_v5 = vld [vmem:[%s2765_s1 + $0x58] sm:$0xff]  ;;  %v88_v6 = vld [vmem:[%s2765_s1 + $0x50] sm:$0xff] }
   0x3   :  { %1495 = vmatpush3.msra.mxu0 %v93_v0  ;;  %v14_v4 = vld [vmem:[%s2766_s0] sm:$0xff]  ;;  %v87_v7 = vld [vmem:[%s2765_s1 + $0x48] sm:$0xff]  ;;  %v85_v9 = vld [vmem:[%s2765_s1 + $0x38] sm:$0xff] }
   0x4   :  { %1496 = vmatprep.subr.mxu0 %v92_v1  ;;  %1526 = vmatprep.mubr.f32.mxu0 %v14_v4  ;;  %v86_v8 = vld [vmem:[%s2765_s1 + $0x40] sm:$0xff]  ;;  %v84_v10 = vld [vmem:[%s2765_s1 + $0x30] sm:$0xff]  ;;  %v83_v11 = vld [vmem:[%s2765_s1 + $0x28] sm:$0xff] }
   0x5   :  { %1497 = vmatpush3.msra.mxu0 %v92_v1  ;;  %v82_v12 = vld [vmem:[%s2765_s1 + $0x20] sm:$0xff]  ;;  %v81_v13 = vld [vmem:[%s2765_s1 + $0x18] sm:$0xff]  ;;  %v80_v14 = vld [vmem:[%s2765_s1 + $0x10] sm:$0xff] }
   0x6   :  { %1498 = vmatprep.subr.mxu0 %v91_v2  ;;  %v79_v15 = vld [vmem:[%s2765_s1 + $0x8] sm:$0xff]  ;;  %v78_v16 = vld [vmem:[%s2765_s1] sm:$0xff]  ;;  %v16_v18 = vld [vmem:[%s2766_s0 + $0x10] sm:$0xff] }
   0x7   :  { %1499 = vmatpush3.msra.mxu0 %v91_v2  ;;  %v15_v17 = vld [vmem:[%s2766_s0 + $0x8] sm:$0xff]  ;;  %v17_v19 = vld [vmem:[%s2766_s0 + $0x18] sm:$0xff]  ;;  %v18_v20 = vld [vmem:[%s2766_s0 + $0x20] sm:$0xff] }
   0x8   :  { %1500 = vmatprep.subr.mxu0 %v90_v3  ;;  %v19_v21 = vld [vmem:[%s2766_s0 + $0x28] sm:$0xff]  ;;  %v20_v22 = vld [vmem:[%s2766_s0 + $0x30] sm:$0xff]  ;;  %v21_v23 = vld [vmem:[%s2766_s0 + $0x38] sm:$0xff] }
   0x9   :  { %1501 = vmatpush3.msra.mxu0 %v90_v3  ;;  %v22_v24 = vld [vmem:[%s2766_s0 + $0x40] sm:$0xff]  ;;  %v23_v25 = vld [vmem:[%s2766_s0 + $0x48] sm:$0xff]  ;;  %v24_v26 = vld [vmem:[%s2766_s0 + $0x50] sm:$0xff] }
   0xa   :  { %1502 = vmatprep.subr.mxu0 %v89_v5  ;;  %v25_v27 = vld [vmem:[%s2766_s0 + $0x58] sm:$0xff]  ;;  %v26_v28 = vld [vmem:[%s2766_s0 + $0x60] sm:$0xff]  ;;  %v27_v29 = vld [vmem:[%s2766_s0 + $0x68] sm:$0xff] }
   0xb   :  { %1503 = vmatpush3.msra.mxu0 %v89_v5  ;;  %v28_v30 = vld [vmem:[%s2766_s0 + $0x70] sm:$0xff]  ;;  %v29_v31 = vld [vmem:[%s2766_s0 + $0x78] sm:$0xff]  ;;  %v30_v32 = vld [vmem:[%s2766_s0 + $0x80] sm:$0xff] }
   0xc   :  { %1504 = vmatprep.subr.mxu0 %v88_v6  ;;  %v31_v33 = vld [vmem:[%s2766_s0 + $0x88] sm:$0xff]  ;;  %v32_v34 = vld [vmem:[%s2766_s0 + $0x90] sm:$0xff]  ;;  %v33_v35 = vld [vmem:[%s2766_s0 + $0x98] sm:$0xff] }
   0xd   :  { %1505 = vmatpush3.msra.mxu0 %v88_v6  ;;  %v34_v36 = vld [vmem:[%s2766_s0 + $0xa0] sm:$0xff]  ;;  %v35_v37 = vld [vmem:[%s2766_s0 + $0xa8] sm:$0xff]  ;;  %v36_v38 = vld [vmem:[%s2766_s0 + $0xb0] sm:$0xff] }
   0xe   :  { %1506 = vmatprep.subr.mxu0 %v87_v7  ;;  %v37_v39 = vld [vmem:[%s2766_s0 + $0xb8] sm:$0xff]  ;;  %v38_v40 = vld [vmem:[%s2766_s0 + $0xc0] sm:$0xff]  ;;  %v39_v41 = vld [vmem:[%s2766_s0 + $0xc8] sm:$0xff] }
   0xf   :  { %1507 = vmatpush3.msra.mxu0 %v87_v7  ;;  %v40_v42 = vld [vmem:[%s2766_s0 + $0xd0] sm:$0xff]  ;;  %v41_v43 = vld [vmem:[%s2766_s0 + $0xd8] sm:$0xff]  ;;  %v42_v44 = vld [vmem:[%s2766_s0 + $0xe0] sm:$0xff] }
  0x10   :  { %1508 = vmatprep.subr.mxu0 %v86_v8  ;;  %v43_v45 = vld [vmem:[%s2766_s0 + $0xe8] sm:$0xff]  ;;  %v44_v46 = vld [vmem:[%s2766_s0 + $0xf0] sm:$0xff]  ;;  %v45_v47 = vld [vmem:[%s2766_s0 + $0xf8] sm:$0xff] }
  0x11   :  { %1509 = vmatpush3.msra.mxu0 %v86_v8  ;;  %v46_v48 = vld [vmem:[%s2766_s0 + $0x100] sm:$0xff]  ;;  %v47_v49 = vld [vmem:[%s2766_s0 + $0x108] sm:$0xff]  ;;  %v48_v50 = vld [vmem:[%s2766_s0 + $0x110] sm:$0xff] }
  0x12   :  { %1510 = vmatprep.subr.mxu0 %v85_v9  ;;  %v49_v51 = vld [vmem:[%s2766_s0 + $0x118] sm:$0xff]  ;;  %v50_v52 = vld [vmem:[%s2766_s0 + $0x120] sm:$0xff]  ;;  %v51_v53 = vld [vmem:[%s2766_s0 + $0x128] sm:$0xff] }
  0x13   :  { %1511 = vmatpush3.msra.mxu0 %v85_v9  ;;  %v52_v54 = vld [vmem:[%s2766_s0 + $0x130] sm:$0xff]  ;;  %v53_v55 = vld [vmem:[%s2766_s0 + $0x138] sm:$0xff]  ;;  %v54_v56 = vld [vmem:[%s2766_s0 + $0x140] sm:$0xff] }
  0x14   :  { %1512 = vmatprep.subr.mxu0 %v84_v10  ;;  %v55_v57 = vld [vmem:[%s2766_s0 + $0x148] sm:$0xff]  ;;  %v56_v58 = vld [vmem:[%s2766_s0 + $0x150] sm:$0xff]  ;;  %v57_v59 = vld [vmem:[%s2766_s0 + $0x158] sm:$0xff] }
  0x15   :  { %1513 = vmatpush3.msra.mxu0 %v84_v10  ;;  %v58_v60 = vld [vmem:[%s2766_s0 + $0x160] sm:$0xff]  ;;  %v59_v61 = vld [vmem:[%s2766_s0 + $0x168] sm:$0xff]  ;;  %v60_v62 = vld [vmem:[%s2766_s0 + $0x170] sm:$0xff] }
  0x16   :  { %1514 = vmatprep.subr.mxu0 %v83_v11  ;;  %v61_v63 = vld [vmem:[%s2766_s0 + $0x178] sm:$0xff]  ;;  %v62_v0 = vld [vmem:[%s2766_s0 + $0x180] sm:$0xff]  ;;  %v63_v1 = vld [vmem:[%s2766_s0 + $0x188] sm:$0xff] }
  0x17   :  { %1515 = vmatpush3.msra.mxu0 %v83_v11  ;;  %v64_v2 = vld [vmem:[%s2766_s0 + $0x190] sm:$0xff]  ;;  %v65_v3 = vld [vmem:[%s2766_s0 + $0x198] sm:$0xff]  ;;  %v66_v4 = vld [vmem:[%s2766_s0 + $0x1a0] sm:$0xff] }
  0x18   :  { %1516 = vmatprep.subr.mxu0 %v82_v12  ;;  %v67_v5 = vld [vmem:[%s2766_s0 + $0x1a8] sm:$0xff]  ;;  %v68_v6 = vld [vmem:[%s2766_s0 + $0x1b0] sm:$0xff]  ;;  %v69_v7 = vld [vmem:[%s2766_s0 + $0x1b8] sm:$0xff] }
  0x19   :  { %1517 = vmatpush3.msra.mxu0 %v82_v12  ;;  %v70_v8 = vld [vmem:[%s2766_s0 + $0x1c0] sm:$0xff]  ;;  %v71_v9 = vld [vmem:[%s2766_s0 + $0x1c8] sm:$0xff]  ;;  %v72_v10 = vld [vmem:[%s2766_s0 + $0x1d0] sm:$0xff] }
  0x1a   :  { %1518 = vmatprep.subr.mxu0 %v81_v13  ;;  %v73_v11 = vld [vmem:[%s2766_s0 + $0x1d8] sm:$0xff]  ;;  %v74_v12 = vld [vmem:[%s2766_s0 + $0x1e0] sm:$0xff] }
  0x1b   :  { %1519 = vmatpush3.msra.mxu0 %v81_v13  ;;  %v75_v13 = vld [vmem:[%s2766_s0 + $0x1e8] sm:$0xff] }
  0x1c   :  { %1520 = vmatprep.subr.mxu0 %v80_v14 }
  0x1d   :  { %1521 = vmatpush3.msra.mxu0 %v80_v14  ;;  %v76_v14 = vld [vmem:[%s2766_s0 + $0x1f0] sm:$0xff] }
  0x1e   :  { %1522 = vmatprep.subr.mxu0 %v79_v15 }
  0x1f   :  { %1523 = vmatpush3.msra.mxu0 %v79_v15  ;;  %v77_v15 = vld [vmem:[%s2766_s0 + $0x1f8] sm:$0xff] }
  0x20   :  { %1524 = vmatprep.subr.mxu0 %v78_v16 }
  0x21   :  { %1525 = vmatpush3.msra.mxu0 %v78_v16 }
  0x22   :  { %1527 = vmatmul.mubr.f32.vlgmr.msra.gmra.mxu0 %v15_v17 }
  0x23   :  { %1529 = vmatprep.mubr.f32.mxu0 %v16_v18 }
  0x26   :  { %1530 = vmatmul.mubr.f32.gmra.mxu0 %v17_v19 }
  0x27   :  { %1532 = vmatprep.mubr.f32.mxu0 %v18_v20 }
  0x2a   :  { %1533 = vmatmul.mubr.f32.gmra.mxu0 %v19_v21 }
  0x2b   :  { %1535 = vmatprep.mubr.f32.mxu0 %v20_v22 }
  0x2e   :  { %1536 = vmatmul.mubr.f32.gmra.mxu0 %v21_v23 }
  0x2f   :  { %1538 = vmatprep.mubr.f32.mxu0 %v22_v24 }
  0x32   :  { %1539 = vmatmul.mubr.f32.gmra.mxu0 %v23_v25 }
  0x33   :  { %1541 = vmatprep.mubr.f32.mxu0 %v24_v26 }
  0x36   :  { %1542 = vmatmul.mubr.f32.gmra.mxu0 %v25_v27 }
  0x37   :  { %1544 = vmatprep.mubr.f32.mxu0 %v26_v28 }
  0x3a   :  { %1545 = vmatmul.mubr.f32.gmra.mxu0 %v27_v29 }
  0x3b   :  { %1547 = vmatprep.mubr.f32.mxu0 %v28_v30 }
  0x3e   :  { %1548 = vmatmul.mubr.f32.gmra.mxu0 %v29_v31 }
  0x3f   :  { %1550 = vmatprep.mubr.f32.mxu0 %v30_v32 }
  0x42   :  { %1551 = vmatmul.mubr.f32.gmra.mxu0 %v31_v33 }
  0x43   :  { %1553 = vmatprep.mubr.f32.mxu0 %v32_v34 }
  0x46   :  { %1554 = vmatmul.mubr.f32.gmra.mxu0 %v33_v35 }
  0x47   :  { %1556 = vmatprep.mubr.f32.mxu0 %v34_v36 }
  0x4a   :  { %1557 = vmatmul.mubr.f32.gmra.mxu0 %v35_v37 }
  0x4b   :  { %1559 = vmatprep.mubr.f32.mxu0 %v36_v38 }
  0x4e   :  { %1560 = vmatmul.mubr.f32.gmra.mxu0 %v37_v39 }
  0x4f   :  { %1562 = vmatprep.mubr.f32.mxu0 %v38_v40 }
  0x52   :  { %1563 = vmatmul.mubr.f32.gmra.mxu0 %v39_v41 }
  0x53   :  { %1565 = vmatprep.mubr.f32.mxu0 %v40_v42 }
  0x56   :  { %1566 = vmatmul.mubr.f32.gmra.mxu0 %v41_v43 }
  0x57   :  { %1568 = vmatprep.mubr.f32.mxu0 %v42_v44 }
  0x5a   :  { %1569 = vmatmul.mubr.f32.gmra.mxu0 %v43_v45 }
  0x5b   :  { %1571 = vmatprep.mubr.f32.mxu0 %v44_v46 }
  0x5e   :  { %1572 = vmatmul.mubr.f32.gmra.mxu0 %v45_v47 }
  0x5f   :  { %1574 = vmatprep.mubr.f32.mxu0 %v46_v48 }
  0x62   :  { %1575 = vmatmul.mubr.f32.gmra.mxu0 %v47_v49 }
  0x63   :  { %1577 = vmatprep.mubr.f32.mxu0 %v48_v50 }
  0x66   :  { %1578 = vmatmul.mubr.f32.gmra.mxu0 %v49_v51 }
  0x67   :  { %1580 = vmatprep.mubr.f32.mxu0 %v50_v52 }
  0x6a   :  { %1581 = vmatmul.mubr.f32.gmra.mxu0 %v51_v53 }
  0x6b   :  { %1583 = vmatprep.mubr.f32.mxu0 %v52_v54 }
  0x6e   :  { %1584 = vmatmul.mubr.f32.gmra.mxu0 %v53_v55 }
  0x6f   :  { %1586 = vmatprep.mubr.f32.mxu0 %v54_v56 }
  0x72   :  { %1587 = vmatmul.mubr.f32.gmra.mxu0 %v55_v57 }
  0x73   :  { %1589 = vmatprep.mubr.f32.mxu0 %v56_v58 }
  0x76   :  { %1590 = vmatmul.mubr.f32.gmra.mxu0 %v57_v59 }
  0x77   :  { %1592 = vmatprep.mubr.f32.mxu0 %v58_v60 }
  0x7a   :  { %1593 = vmatmul.mubr.f32.gmra.mxu0 %v59_v61 }
  0x7b   :  { %1595 = vmatprep.mubr.f32.mxu0 %v60_v62 }
  0x7e   :  { %1596 = vmatmul.mubr.f32.gmra.mxu0 %v61_v63 }
  0x7f   :  { %1598 = vmatprep.mubr.f32.mxu0 %v62_v0 }
  0x82   :  { %1599 = vmatmul.mubr.f32.gmra.mxu0 %v63_v1 }
  0x83   :  { %1601 = vmatprep.mubr.f32.mxu0 %v64_v2 }
  0x86   :  { %1602 = vmatmul.mubr.f32.gmra.mxu0 %v65_v3 }
  0x87   :  { %1604 = vmatprep.mubr.f32.mxu0 %v66_v4 }
  0x8a   :  { %1605 = vmatmul.mubr.f32.gmra.mxu0 %v67_v5 }
  0x8b   :  { %1607 = vmatprep.mubr.f32.mxu0 %v68_v6 }
  0x8e   :  { %1608 = vmatmul.mubr.f32.gmra.mxu0 %v69_v7 }
  0x8f   :  { %1610 = vmatprep.mubr.f32.mxu0 %v70_v8 }
  0x92   :  { %1611 = vmatmul.mubr.f32.gmra.mxu0 %v71_v9 }
  0x93   :  { %1613 = vmatprep.mubr.f32.mxu0 %v72_v10 }
  0x96   :  { %1614 = vmatmul.mubr.f32.gmra.mxu0 %v73_v11 }
  0x97   :  { %1616 = vmatprep.mubr.f32.mxu0 %v74_v12 }
  0x9a   :  { %1617 = vmatmul.mubr.f32.gmra.mxu0 %v75_v13 }
  0x9b   :  { %1619 = vmatprep.mubr.f32.mxu0 %v76_v14 }
  0x9e   :  { %1620 = vmatmul.mubr.f32.gmra.mxu0 %v77_v15 }
  0xe2   :  { %v1884_v16 = vpop.f32.mrf.mxu0 }
  0xe3   :  { %2790 = vst [vmem:[#allocation2_spill] sm:$0xff] %v1884_v16  ;;  %v550_v20 = vmul.f32 %v1884_v16, %v1884_v16 }
  0xe4   :  { %v1886_v17 = vpop.f32.mrf.mxu0 }
  0xe5   :  { %2791 = vst [vmem:[#allocation3_spill] sm:$0xff] %v1886_v17  ;;  %v549_v18 = vmul.f32 %v1886_v17, %v1886_v17  ;;  %v479_v21 = vadd.f32 %v1884_v16, %v1886_v17 }
  0xe6   :  { %v1890_v19 = vpop.f32.mrf.mxu0 }
  0xe7   :  { %2792 = vst [vmem:[#allocation4_spill] sm:$0xff] %v1890_v19  ;;  %v613_v23 = vadd.f32 %v550_v20, %v549_v18  ;;  %v552_v27 = vmul.f32 %v1890_v19, %v1890_v19 }
  0xe8   :  { %v1896_v22 = vpop.f32.mrf.mxu0 }
  0xe9   :  { %2793 = vst [vmem:[#allocation5_spill] sm:$0xff] %v1896_v22  ;;  %v480_v24 = vadd.f32 %v479_v21, %v1896_v22  ;;  %v551_v25 = vmul.f32 %v1896_v22, %v1896_v22 }
  0xea   :  { %v1901_v26 = vpop.f32.mrf.mxu0 }
  0xeb   :  { %2794 = vst [vmem:[#allocation6_spill] sm:$0xff] %v1901_v26  ;;  %v481_v28 = vadd.f32 %v1890_v19, %v480_v24  ;;  %v614_v29 = vadd.f32 %v613_v23, %v551_v25  ;;  %v554_v35 = vmul.f32 %v1901_v26, %v1901_v26 }
  0xec   :  { %v1906_v30 = vpop.f32.mrf.mxu0 }
  0xed   :  { %2795 = vst [vmem:[#allocation7_spill] sm:$0xff] %v1906_v30  ;;  %v615_v31 = vadd.f32 %v614_v29, %v552_v27  ;;  %v482_v32 = vadd.f32 %v481_v28, %v1906_v30  ;;  %v553_v33 = vmul.f32 %v1906_v30, %v1906_v30 }
  0xee   :  { %v1911_v34 = vpop.f32.mrf.mxu0 }
  0xef   :  { %v616_v36 = vadd.f32 %v615_v31, %v553_v33  ;;  %v483_v37 = vadd.f32 %v1901_v26, %v482_v32  ;;  %v556_v43 = vmul.f32 %v1911_v34, %v1911_v34 }
  0xf0   :  { %v1916_v38 = vpop.f32.mrf.mxu0 }
  0xf1   :  { %v484_v39 = vadd.f32 %v483_v37, %v1916_v38  ;;  %v555_v40 = vmul.f32 %v1916_v38, %v1916_v38  ;;  %v617_v41 = vadd.f32 %v616_v36, %v554_v35 }
  0xf2   :  { %v1921_v42 = vpop.f32.mrf.mxu0 }
  0xf3   :  { %v618_v44 = vadd.f32 %v617_v41, %v555_v40  ;;  %v485_v45 = vadd.f32 %v1911_v34, %v484_v39  ;;  %v558_v51 = vmul.f32 %v1921_v42, %v1921_v42 }
  0xf4   :  { %v1926_v46 = vpop.f32.mrf.mxu0 }
  0xf5   :  { %v486_v47 = vadd.f32 %v485_v45, %v1926_v46  ;;  %v557_v48 = vmul.f32 %v1926_v46, %v1926_v46  ;;  %v619_v49 = vadd.f32 %v618_v44, %v556_v43 }
  0xf6   :  { %v1931_v50 = vpop.f32.mrf.mxu0 }
  0xf7   :  { %v620_v52 = vadd.f32 %v619_v49, %v557_v48  ;;  %v487_v53 = vadd.f32 %v1921_v42, %v486_v47  ;;  %v560_v59 = vmul.f32 %v1931_v50, %v1931_v50 }
  0xf8   :  { %v1936_v54 = vpop.f32.mrf.mxu0 }
  0xf9   :  { %v488_v55 = vadd.f32 %v487_v53, %v1936_v54  ;;  %v559_v56 = vmul.f32 %v1936_v54, %v1936_v54  ;;  %v621_v57 = vadd.f32 %v620_v52, %v558_v51 }
  0xfa   :  { %v1941_v58 = vpop.f32.mrf.mxu0 }
  0xfb   :  { %v622_v60 = vadd.f32 %v621_v57, %v559_v56  ;;  %v489_v61 = vadd.f32 %v1931_v50, %v488_v55  ;;  %v562_v3 = vmul.f32 %v1941_v58, %v1941_v58 }
  0xfc   :  { %v1946_v62 = vpop.f32.mrf.mxu0 }
  0xfd   :  { %v490_v63 = vadd.f32 %v489_v61, %v1946_v62  ;;  %v561_v0 = vmul.f32 %v1946_v62, %v1946_v62  ;;  %v623_v1 = vadd.f32 %v622_v60, %v560_v59 }
  0xfe   :  { %v1951_v2 = vpop.f32.mrf.mxu0 }
  0xff   :  { %v624_v4 = vadd.f32 %v623_v1, %v561_v0  ;;  %v491_v5 = vadd.f32 %v1941_v58, %v490_v63  ;;  %v564_v11 = vmul.f32 %v1951_v2, %v1951_v2 }
 0x100   :  { %v1956_v6 = vpop.f32.mrf.mxu0 }
 0x101   :  { %v492_v7 = vadd.f32 %v491_v5, %v1956_v6  ;;  %v563_v8 = vmul.f32 %v1956_v6, %v1956_v6  ;;  %v625_v9 = vadd.f32 %v624_v4, %v562_v3 }
 0x102   :  { %v1961_v10 = vpop.f32.mrf.mxu0 }
 0x103   :  { %2796 = vst [vmem:[#allocation8_spill] sm:$0xff] %v1961_v10  ;;  %v626_v12 = vadd.f32 %v625_v9, %v563_v8  ;;  %v493_v13 = vadd.f32 %v1951_v2, %v492_v7  ;;  %v566_v23 = vmul.f32 %v1961_v10, %v1961_v10 }
 0x104   :  { %v1966_v14 = vpop.f32.mrf.mxu0 }
 0x105   :  { %2797 = vst [vmem:[#allocation9_spill] sm:$0xff] %v1966_v14  ;;  %v494_v15 = vadd.f32 %v493_v13, %v1966_v14  ;;  %v565_v18 = vmul.f32 %v1966_v14, %v1966_v14  ;;  %v627_v20 = vadd.f32 %v626_v12, %v564_v11 }
 0x106   :  { %v1971_v21 = vpop.f32.mrf.mxu0 }
 0x107   :  { %2798 = vst [vmem:[#allocation10_spill] sm:$0xff] %v1971_v21  ;;  %v628_v24 = vadd.f32 %v627_v20, %v565_v18  ;;  %v495_v25 = vadd.f32 %v1961_v10, %v494_v15  ;;  %v568_v33 = vmul.f32 %v1971_v21, %v1971_v21 }
 0x108   :  { %v1976_v27 = vpop.f32.mrf.mxu0 }
 0x109   :  { %2799 = vst [vmem:[#allocation11_spill] sm:$0xff] %v1976_v27  ;;  %v496_v28 = vadd.f32 %v495_v25, %v1976_v27  ;;  %v567_v29 = vmul.f32 %v1976_v27, %v1976_v27  ;;  %v629_v31 = vadd.f32 %v628_v24, %v566_v23 }
 0x10a   :  { %v1981_v32 = vpop.f32.mrf.mxu0 }
 0x10b   :  { %2800 = vst [vmem:[#allocation12_spill] sm:$0xff] %v1981_v32  ;;  %v630_v35 = vadd.f32 %v629_v31, %v567_v29  ;;  %v497_v36 = vadd.f32 %v1971_v21, %v496_v28  ;;  %v570_v44 = vmul.f32 %v1981_v32, %v1981_v32 }
 0x10c   :  { %v1986_v37 = vpop.f32.mrf.mxu0 }
 0x10d   :  { %2801 = vst [vmem:[#allocation13_spill] sm:$0xff] %v1986_v37  ;;  %v498_v39 = vadd.f32 %v497_v36, %v1986_v37  ;;  %v569_v40 = vmul.f32 %v1986_v37, %v1986_v37  ;;  %v631_v41 = vadd.f32 %v630_v35, %v568_v33 }
 0x10e   :  { %v1991_v43 = vpop.f32.mrf.mxu0 }
 0x10f   :  { %v632_v45 = vadd.f32 %v631_v41, %v569_v40  ;;  %v499_v47 = vadd.f32 %v1981_v32, %v498_v39  ;;  %v572_v55 = vmul.f32 %v1991_v43, %v1991_v43 }
 0x110   :  { %v1996_v48 = vpop.f32.mrf.mxu0 }
 0x111   :  { %v500_v49 = vadd.f32 %v499_v47, %v1996_v48  ;;  %v571_v51 = vmul.f32 %v1996_v48, %v1996_v48  ;;  %v633_v52 = vadd.f32 %v632_v45, %v570_v44 }
 0x112   :  { %v2001_v53 = vpop.f32.mrf.mxu0 }
 0x113   :  { %v634_v56 = vadd.f32 %v633_v52, %v571_v51  ;;  %v501_v57 = vadd.f32 %v1991_v43, %v500_v49  ;;  %v574_v1 = vmul.f32 %v2001_v53, %v2001_v53 }
 0x114   :  { %v2006_v59 = vpop.f32.mrf.mxu0 }
 0x115   :  { %v502_v60 = vadd.f32 %v501_v57, %v2006_v59  ;;  %v573_v61 = vmul.f32 %v2006_v59, %v2006_v59  ;;  %v635_v63 = vadd.f32 %v634_v56, %v572_v55 }
 0x116   :  { %v2011_v0 = vpop.f32.mrf.mxu0 }
 0x117   :  { %v636_v3 = vadd.f32 %v635_v63, %v573_v61  ;;  %v503_v4 = vadd.f32 %v2001_v53, %v502_v60  ;;  %v576_v12 = vmul.f32 %v2011_v0, %v2011_v0 }
 0x118   :  { %v2016_v5 = vpop.f32.mrf.mxu0 }
 0x119   :  { %v504_v7 = vadd.f32 %v503_v4, %v2016_v5  ;;  %v575_v8 = vmul.f32 %v2016_v5, %v2016_v5  ;;  %v637_v9 = vadd.f32 %v636_v3, %v574_v1 }
 0x11a   :  { %v2021_v11 = vpop.f32.mrf.mxu0 }
 0x11b   :  { %v638_v13 = vadd.f32 %v637_v9, %v575_v8  ;;  %v505_v15 = vadd.f32 %v2011_v0, %v504_v7  ;;  %v578_v28 = vmul.f32 %v2021_v11, %v2021_v11 }
 0x11c   :  { %v2026_v18 = vpop.f32.mrf.mxu0 }
 0x11d   :  { %v506_v20 = vadd.f32 %v505_v15, %v2026_v18  ;;  %v577_v23 = vmul.f32 %v2026_v18, %v2026_v18  ;;  %v639_v24 = vadd.f32 %v638_v13, %v576_v12 }
 0x11e   :  { %v2031_v25 = vpop.f32.mrf.mxu0 }
 0x11f   :  { %v640_v29 = vadd.f32 %v639_v24, %v577_v23  ;;  %v507_v31 = vadd.f32 %v2021_v11, %v506_v20  ;;  %v580_v41 = vmul.f32 %v2031_v25, %v2031_v25 }
 0x120   :  { %v2036_v33 = vpop.f32.mrf.mxu0 }
 0x121   :  { %v508_v35 = vadd.f32 %v507_v31, %v2036_v33  ;;  %v579_v36 = vmul.f32 %v2036_v33, %v2036_v33  ;;  %v641_v39 = vadd.f32 %v640_v29, %v578_v28 }
 0x122   :  { %v2041_v40 = vpop.f32.mrf.mxu0 }
 0x123   :  { %v642_v44 = vadd.f32 %v641_v39, %v579_v36  ;;  %v509_v45 = vadd.f32 %v2031_v25, %v508_v35  ;;  %v582_v56 = vmul.f32 %v2041_v40, %v2041_v40 }
 0x124   :  { %v2046_v47 = vpop.f32.mrf.mxu0 }
 0x125   :  { %v510_v49 = vadd.f32 %v509_v45, %v2046_v47  ;;  %v581_v51 = vmul.f32 %v2046_v47, %v2046_v47  ;;  %v643_v52 = vadd.f32 %v642_v44, %v580_v41 }
 0x126   :  { %v2051_v55 = vpop.f32.mrf.mxu0 }
 0x127   :  { %v644_v57 = vadd.f32 %v643_v52, %v581_v51  ;;  %v511_v60 = vadd.f32 %v2041_v40, %v510_v49  ;;  %v584_v7 = vmul.f32 %v2051_v55, %v2051_v55  ;;  %v881_v52 = vld [vmem:[%s2767_s2 + $0x8] sm:$0xff] }
 0x128   :  { %v2056_v61 = vpop.f32.mrf.mxu0  ;;  %1008 = vmatprep.mubr.f32.mxu1 %v881_v52 }
 0x129   :  { %v512_v63 = vadd.f32 %v511_v60, %v2056_v61  ;;  %v583_v1 = vmul.f32 %v2056_v61, %v2056_v61  ;;  %v645_v3 = vadd.f32 %v644_v57, %v582_v56 }
 0x12a   :  { %v2061_v4 = vpop.f32.mrf.mxu0 }
 0x12b   :  { %v646_v8 = vadd.f32 %v645_v3, %v583_v1  ;;  %v513_v9 = vadd.f32 %v2051_v55, %v512_v63  ;;  %v586_v24 = vmul.f32 %v2061_v4, %v2061_v4 }
 0x12c   :  { %v2066_v12 = vpop.f32.mrf.mxu0 }
 0x12d   :  { %v514_v13 = vadd.f32 %v513_v9, %v2066_v12  ;;  %v585_v15 = vmul.f32 %v2066_v12, %v2066_v12  ;;  %v647_v20 = vadd.f32 %v646_v8, %v584_v7 }
 0x12e   :  { %v2071_v23 = vpop.f32.mrf.mxu0 }
 0x12f   :  { %v648_v28 = vadd.f32 %v647_v20, %v585_v15  ;;  %v515_v29 = vadd.f32 %v2061_v4, %v514_v13  ;;  %v588_v44 = vmul.f32 %v2071_v23, %v2071_v23 }
 0x130   :  { %v2076_v31 = vpop.f32.mrf.mxu0 }
 0x131   :  { %v516_v35 = vadd.f32 %v515_v29, %v2076_v31  ;;  %v587_v36 = vmul.f32 %v2076_v31, %v2076_v31  ;;  %v649_v39 = vadd.f32 %v648_v28, %v586_v24 }
 0x132   :  { %v2081_v41 = vpop.f32.mrf.mxu0 }
 0x133   :  { %2802 = vst [vmem:[#allocation14_spill] sm:$0xff] %v2081_v41  ;;  %v650_v45 = vadd.f32 %v649_v39, %v587_v36  ;;  %v517_v49 = vadd.f32 %v2071_v23, %v516_v35  ;;  %v590_v1 = vmul.f32 %v2081_v41, %v2081_v41 }
 0x134   :  { %v2086_v51 = vpop.f32.mrf.mxu0 }
 0x135   :  { %v518_v56 = vadd.f32 %v517_v49, %v2086_v51  ;;  %v589_v57 = vmul.f32 %v2086_v51, %v2086_v51  ;;  %v651_v60 = vadd.f32 %v650_v45, %v588_v44 }
 0x136   :  { %v2094_v63 = vpop.f32.mrf.mxu0 }
 0x137   :  { %2803 = vst [vmem:[#allocation15_spill] sm:$0xff] %v2094_v63  ;;  %v652_v3 = vadd.f32 %v651_v60, %v589_v57  ;;  %v519_v7 = vadd.f32 %v2081_v41, %v518_v56  ;;  %v592_v24 = vmul.f32 %v2094_v63, %v2094_v63 }
 0x138   :  { %v2099_v8 = vpop.f32.mrf.mxu0 }
 0x139   :  { %2804 = vst [vmem:[#allocation16_spill] sm:$0xff] %v2099_v8  ;;  %v520_v9 = vadd.f32 %v519_v7, %v2099_v8  ;;  %v591_v13 = vmul.f32 %v2099_v8, %v2099_v8  ;;  %v653_v15 = vadd.f32 %v652_v3, %v590_v1 }
 0x13a   :  { %v2104_v20 = vpop.f32.mrf.mxu0 }
 0x13b   :  { %2805 = vst [vmem:[#allocation17_spill] sm:$0xff] %v2104_v20  ;;  %v654_v28 = vadd.f32 %v653_v15, %v591_v13  ;;  %v521_v29 = vadd.f32 %v2094_v63, %v520_v9  ;;  %v594_v49 = vmul.f32 %v2104_v20, %v2104_v20 }
 0x13c   :  { %v2109_v35 = vpop.f32.mrf.mxu0 }
 0x13d   :  { %2806 = vst [vmem:[#allocation18_spill] sm:$0xff] %v2109_v35  ;;  %v522_v36 = vadd.f32 %v521_v29, %v2109_v35  ;;  %v593_v39 = vmul.f32 %v2109_v35, %v2109_v35  ;;  %v655_v44 = vadd.f32 %v654_v28, %v592_v24 }
 0x13e   :  { %v2114_v45 = vpop.f32.mrf.mxu0 }
 0x13f   :  { %2807 = vst [vmem:[#allocation19_spill] sm:$0xff] %v2114_v45  ;;  %v656_v52 = vadd.f32 %v655_v44, %v593_v39  ;;  %v523_v56 = vadd.f32 %v2104_v20, %v522_v36  ;;  %v596_v9 = vmul.f32 %v2114_v45, %v2114_v45 }
 0x140   :  { %v2119_v57 = vpop.f32.mrf.mxu0 }
 0x141   :  { %2808 = vst [vmem:[#allocation20_spill] sm:$0xff] %v2119_v57  ;;  %v524_v60 = vadd.f32 %v523_v56, %v2119_v57  ;;  %v595_v1 = vmul.f32 %v2119_v57, %v2119_v57  ;;  %v657_v3 = vadd.f32 %v656_v52, %v594_v49 }
 0x142   :  { %v2124_v7 = vpop.f32.mrf.mxu0 }
 0x143   :  { %v658_v13 = vadd.f32 %v657_v3, %v595_v1  ;;  %v525_v15 = vadd.f32 %v2114_v45, %v524_v60  ;;  %v598_v44 = vmul.f32 %v2124_v7, %v2124_v7 }
 0x144   :  { %v2129_v24 = vpop.f32.mrf.mxu0 }
 0x145   :  { %v526_v28 = vadd.f32 %v525_v15, %v2129_v24  ;;  %v597_v29 = vmul.f32 %v2129_v24, %v2129_v24  ;;  %v659_v36 = vadd.f32 %v658_v13, %v596_v9 }
 0x146   :  { %v2134_v39 = vpop.f32.mrf.mxu0 }
 0x147   :  { %v660_v49 = vadd.f32 %v659_v36, %v597_v29  ;;  %v527_v52 = vadd.f32 %v2124_v7, %v526_v28  ;;  %v600_v9 = vmul.f32 %v2134_v39, %v2134_v39 }
 0x148   :  { %v2139_v56 = vpop.f32.mrf.mxu0 }
 0x149   :  { %v528_v60 = vadd.f32 %v527_v52, %v2139_v56  ;;  %v599_v1 = vmul.f32 %v2139_v56, %v2139_v56  ;;  %v661_v3 = vadd.f32 %v660_v49, %v598_v44 }
 0x14a   :  { %v2144_v15 = vpop.f32.mrf.mxu0 }
 0x14b   :  { %v662_v13 = vadd.f32 %v661_v3, %v599_v1  ;;  %v529_v41 = vadd.f32 %v2134_v39, %v528_v60  ;;  %v602_v44 = vmul.f32 %v2144_v15, %v2144_v15 }
 0x14c   :  { %v2149_v8 = vpop.f32.mrf.mxu0 }
 0x14d   :  { %v530_v28 = vadd.f32 %v529_v41, %v2149_v8  ;;  %v601_v29 = vmul.f32 %v2149_v8, %v2149_v8  ;;  %v663_v36 = vadd.f32 %v662_v13, %v600_v9 }
 0x14e   :  { %v2154_v52 = vpop.f32.mrf.mxu0 }
 0x14f   :  { %v664_v49 = vadd.f32 %v663_v36, %v601_v29  ;;  %v531_v63 = vadd.f32 %v2144_v15, %v530_v28  ;;  %v604_v9 = vmul.f32 %v2154_v52, %v2154_v52 }
 0x150   :  { %v2159_v35 = vpop.f32.mrf.mxu0 }
 0x151   :  { %v532_v60 = vadd.f32 %v531_v63, %v2159_v35  ;;  %v603_v1 = vmul.f32 %v2159_v35, %v2159_v35  ;;  %v665_v41 = vadd.f32 %v664_v49, %v602_v44 }
 0x152   :  { %v2164_v3 = vpop.f32.mrf.mxu0 }
 0x153   :  { %v666_v13 = vadd.f32 %v665_v41, %v603_v1  ;;  %v533_v20 = vadd.f32 %v2154_v52, %v532_v60  ;;  %v606_v44 = vmul.f32 %v2164_v3, %v2164_v3 }
 0x154   :  { %v2169_v57 = vpop.f32.mrf.mxu0 }
 0x155   :  { %v534_v28 = vadd.f32 %v533_v20, %v2169_v57  ;;  %v605_v29 = vmul.f32 %v2169_v57, %v2169_v57  ;;  %v667_v63 = vadd.f32 %v666_v13, %v604_v9 }
 0x156   :  { %v2174_v36 = vpop.f32.mrf.mxu0 }
 0x157   :  { %v668_v49 = vadd.f32 %v667_v63, %v605_v29  ;;  %v535_v45 = vadd.f32 %v2164_v3, %v534_v28  ;;  %v608_v9 = vmul.f32 %v2174_v36, %v2174_v36 }
 0x158   :  { %v2179_v17 = vpop.f32.mrf.mxu0 }
 0x159   :  { %v536_v60 = vadd.f32 %v535_v45, %v2179_v17  ;;  %v607_v1 = vmul.f32 %v2179_v17, %v2179_v17  ;;  %v669_v20 = vadd.f32 %v668_v49, %v606_v44 }
 0x15a   :  { %v2184_v41 = vpop.f32.mrf.mxu0 }
 0x15b   :  { %2809 = vst [vmem:[#allocation21_spill] sm:$0xff] %v2184_v41  ;;  %v670_v13 = vadd.f32 %v669_v20, %v607_v1  ;;  %v537_v14 = vadd.f32 %v2174_v36, %v536_v60  ;;  %v610_v44 = vmul.f32 %v2184_v41, %v2184_v41 }
 0x15c   :  { %v2189_v16 = vpop.f32.mrf.mxu0 }
 0x15d   :  { %v538_v28 = vadd.f32 %v537_v14, %v2189_v16  ;;  %v609_v29 = vmul.f32 %v2189_v16, %v2189_v16  ;;  %v671_v45 = vadd.f32 %v670_v13, %v608_v9 }
 0x15e   :  { %v2194_v63 = vpop.f32.mrf.mxu0 }
 0x15f   :  { %v672_v49 = vadd.f32 %v671_v45, %v609_v29  ;;  %v539_v10 = vadd.f32 %v2184_v41, %v538_v28  ;;  %v612_v20 = vmul.f32 %v2194_v63, %v2194_v63 }
 0x160   :  { %v2199_v27 = vpop.f32.mrf.mxu0 }
 0x161   :  { %2810 = vst [vmem:[#allocation22_spill] sm:$0xff] %v2199_v27  ;;  %v540_v60 = vadd.f32 %v539_v10, %v2199_v27  ;;  %v611_v1 = vmul.f32 %v2199_v27, %v2199_v27  ;;  %v673_v14 = vadd.f32 %v672_v49, %v610_v44 }
 0x163   :  { %v541_v9 = vadd.f32 %v2194_v63, %v540_v60  ;;  %v674_v13 = vadd.f32 %v673_v14, %v611_v1 }
 0x165   :  { %v542_v19 = vrot.slane %v541_v9, 4  ;;  %v675_v37 = vadd.f32 %v674_v13, %v612_v20 }
 0x167   :  { %v543_v21 = vadd.f32 %v542_v19, %v541_v9  ;;  %v676_v29 = vrot.slane %v675_v37, 4 }
 0x169   :  { %v544_v45 = vrot.slane %v543_v21, 2  ;;  %v677_v28 = vadd.f32 %v676_v29, %v675_v37 }
 0x16b   :  { %v545_v41 = vadd.f32 %v544_v45, %v543_v21  ;;  %v678_v30 = vrot.slane %v677_v28, 2 }
 0x16d   :  { %v546_v26 = vrot.slane %v545_v41, 1  ;;  %v679_v10 = vadd.f32 %v678_v30, %v677_v28 }
 0x16f   :  { %v547_v22 = vadd.f32 %v546_v26, %v545_v41  ;;  %v680_v32 = vrot.slane %v679_v10, 1 }
 0x171   :  { %v2207_v27 = vmul.f32 0.001953125, %v547_v22  ;;  %v681_v44 = vadd.f32 %v680_v32, %v679_v10 }
 0x173   :  { %v682_v49 = vmul.f32 0.001953125, %v681_v44  ;;  %v683_v60 = vmul.f32 %v2207_v27, %v2207_v27  ;;  %v736_v19 = vsub.f32 %v2129_v24, %v2207_v27  ;;  %v737_v21 = vsub.f32 %v2124_v7, %v2207_v27 }
 0x174   :  { %v738_v26 = vsub.f32 %v2139_v56, %v2207_v27  ;;  %v739_v22 = vsub.f32 %v2134_v39, %v2207_v27  ;;  %v740_v30 = vsub.f32 %v2149_v8, %v2207_v27  ;;  %v741_v32 = vsub.f32 %v2144_v15, %v2207_v27  ;;  %v2819_v56 = vld [vmem:[#allocation8_spill] sm:$0xff] }
 0x175   :  { %v684_v1 = vsub.f32 %v682_v49, %v683_v60  ;;  %v742_v37 = vsub.f32 %v2159_v35, %v2207_v27  ;;  %v743_v41 = vsub.f32 %v2154_v52, %v2207_v27  ;;  %v744_v9 = vsub.f32 %v2169_v57, %v2207_v27  ;;  %v2818_v57 = vld [vmem:[#allocation11_spill] sm:$0xff] }
 0x176   :  { %v748_v28 = vsub.f32 %v2189_v16, %v2207_v27  ;;  %v720_v10 = vsub.f32 %v2046_v47, %v2207_v27  ;;  %v721_v44 = vsub.f32 %v2041_v40, %v2207_v27  ;;  %v722_v49 = vsub.f32 %v2056_v61, %v2207_v27  ;;  %v889_v16 = vld [vmem:[%s2767_s2 + $0x48] sm:$0xff] }
 0x177   :  { %v685_v14 = vmax.f32 %v684_v1, 0.0  ;;  %v723_v60 = vsub.f32 %v2051_v55, %v2207_v27  ;;  %v719_v1 = vsub.f32 %v2031_v25, %v2207_v27  ;;  %v725_v47 = vsub.f32 %v2061_v4, %v2207_v27 }
 0x178   :  { %v726_v40 = vsub.f32 %v2076_v31, %v2207_v27  ;;  %v727_v61 = vsub.f32 %v2071_v23, %v2207_v27  ;;  %v728_v55 = vsub.f32 %v2086_v51, %v2207_v27 }
 0x179   :  { %v686_v20 = vadd.f32 1e-05, %v685_v14 }
 0x17b   :  { %1622 = vrsqrt.f32 %v686_v20  ;;  %v724_v20 = vsub.f32 %v2066_v12, %v2207_v27 }
 0x188   :  { %v2247_v14 = vpop.eup %1622 }
 0x189   :  { %v783_v13 = vmul.f32 %v2247_v14, %v719_v1  ;;  %v2261_v25 = vmul.f32 %v2247_v14, %v720_v10  ;;  %v2264_v29 = vmul.f32 %v2247_v14, %v721_v44  ;;  %v2267_v12 = vmul.f32 %v2247_v14, %v722_v49 }
 0x18a   :  { %v2270_v4 = vmul.f32 %v2247_v14, %v723_v60  ;;  %v2273_v31 = vmul.f32 %v2247_v14, %v724_v20  ;;  %v2276_v23 = vmul.f32 %v2247_v14, %v725_v47  ;;  %v2279_v51 = vmul.f32 %v2247_v14, %v726_v40 }
 0x18b   :  { %v2282_v10 = vmul.f32 %v2247_v14, %v727_v61  ;;  %v2285_v44 = vmul.f32 %v2247_v14, %v728_v55  ;;  %v847_v49 = vmax.f32 %v783_v13, 0.0  ;;  %v703_v60 = vsub.f32 %v1951_v2, %v2207_v27 }
 0x18c   :  { %v702_v1 = vsub.f32 %v1956_v6, %v2207_v27  ;;  %v717_v20 = vsub.f32 %v2021_v11, %v2207_v27  ;;  %v718_v47 = vsub.f32 %v2036_v33, %v2207_v27  ;;  %v701_v40 = vsub.f32 %v1941_v58, %v2207_v27 }
 0x18d   :  { %1334 = vmatprep.subr.mxu1 %v847_v49  ;;  %v767_v61 = vmul.f32 %v2247_v14, %v703_v60  ;;  %v716_v13 = vsub.f32 %v2026_v18, %v2207_v27  ;;  %v700_v11 = vsub.f32 %v1946_v62, %v2207_v27  ;;  %v715_v58 = vsub.f32 %v2011_v0, %v2207_v27 }
 0x18e   :  { %v782_v2 = vmul.f32 %v2247_v14, %v718_v47  ;;  %v766_v55 = vmul.f32 %v2247_v14, %v702_v1  ;;  %v781_v6 = vmul.f32 %v2247_v14, %v717_v20  ;;  %v765_v33 = vmul.f32 %v2247_v14, %v701_v40 }
 0x18f   :  { %v831_v49 = vmax.f32 %v767_v61, 0.0  ;;  %v780_v60 = vmul.f32 %v2247_v14, %v716_v13  ;;  %v699_v18 = vsub.f32 %v1931_v50, %v2207_v27  ;;  %v764_v1 = vmul.f32 %v2247_v14, %v700_v11 }
 0x190   :  { %v846_v45 = vmax.f32 %v782_v2, 0.0  ;;  %v830_v47 = vmax.f32 %v766_v55, 0.0  ;;  %v714_v20 = vsub.f32 %v2016_v5, %v2207_v27  ;;  %v845_v62 = vmax.f32 %v781_v6, 0.0 }
 0x191   :  { %1335 = vmatpush3.msra.mxu1 %v831_v49  ;;  %v779_v40 = vmul.f32 %v2247_v14, %v715_v58  ;;  %v698_v0 = vsub.f32 %v1936_v54, %v2207_v27  ;;  %v829_v61 = vmax.f32 %v765_v33, 0.0  ;;  %v763_v13 = vmul.f32 %v2247_v14, %v699_v18 }
 0x192   :  { %1336 = vmatprep.subr.mxu1 %v846_v45  ;;  %v713_v50 = vsub.f32 %v2001_v53, %v2207_v27  ;;  %v844_v2 = vmax.f32 %v780_v60, 0.0  ;;  %v778_v55 = vmul.f32 %v2247_v14, %v714_v20  ;;  %v697_v5 = vsub.f32 %v1921_v42, %v2207_v27 }
 0x193   :  { %1337 = vmatpush3.msra.mxu1 %v830_v47  ;;  %v828_v45 = vmax.f32 %v764_v1, 0.0  ;;  %v762_v6 = vmul.f32 %v2247_v14, %v698_v0  ;;  %v712_v54 = vsub.f32 %v2006_v59, %v2207_v27  ;;  %v843_v11 = vmax.f32 %v779_v40, 0.0  ;;  %v2811_v40 = vld [vmem:[#allocation12_spill] sm:$0xff] }
 0x194   :  { %1338 = vmatprep.subr.mxu1 %v845_v62  ;;  %v777_v49 = vmul.f32 %v2247_v14, %v713_v50  ;;  %v696_v53 = vsub.f32 %v1926_v46, %v2207_v27  ;;  %v827_v33 = vmax.f32 %v763_v13, 0.0  ;;  %v761_v58 = vmul.f32 %v2247_v14, %v697_v5  ;;  %v2812_v13 = vld [vmem:[#allocation5_spill] sm:$0xff] }
 0x195   :  { %1339 = vmatpush3.msra.mxu1 %v829_v61  ;;  %v711_v42 = vsub.f32 %v1991_v43, %v2207_v27  ;;  %v842_v60 = vmax.f32 %v778_v55, 0.0  ;;  %v776_v18 = vmul.f32 %v2247_v14, %v712_v54  ;;  %v695_v59 = vsub.f32 %v1911_v34, %v2207_v27 }
 0x196   :  { %1340 = vmatprep.subr.mxu1 %v844_v2  ;;  %v826_v47 = vmax.f32 %v762_v6, 0.0  ;;  %v760_v1 = vmul.f32 %v2247_v14, %v696_v53  ;;  %v710_v46 = vsub.f32 %v1996_v48, %v2207_v27  ;;  %v841_v20 = vmax.f32 %v777_v49, 0.0  ;;  %v2813_v2 = vld [vmem:[#allocation6_spill] sm:$0xff] }
 0x197   :  { %1341 = vmatpush3.msra.mxu1 %v828_v45  ;;  %v775_v62 = vmul.f32 %v2247_v14, %v711_v42  ;;  %v694_v43 = vsub.f32 %v1916_v38, %v2207_v27  ;;  %v709_v0 = vsub.f32 %v2811_v40, %v2207_v27  ;;  %v825_v61 = vmax.f32 %v761_v58, 0.0  ;;  %v2814_v45 = vld [vmem:[#allocation7_spill] sm:$0xff]  ;;  %v2815_v49 = vld [vmem:[#allocation10_spill] sm:$0xff] }
 0x198   :  { %1342 = vmatprep.subr.mxu1 %v843_v11  ;;  %v759_v34 = vmul.f32 %v2247_v14, %v695_v59  ;;  %v690_v50 = vsub.f32 %v2812_v13, %v2207_v27  ;;  %v693_v48 = vsub.f32 %v2813_v2, %v2207_v27  ;;  %v840_v55 = vmax.f32 %v776_v18, 0.0  ;;  %v2820_v13 = vld [vmem:[#allocation2_spill] sm:$0xff] }
 0x199   :  { %1343 = vmatpush3.msra.mxu1 %v827_v33  ;;  %v774_v5 = vmul.f32 %v2247_v14, %v710_v46  ;;  %v692_v38 = vsub.f32 %v2814_v45, %v2207_v27  ;;  %v824_v6 = vmax.f32 %v760_v1, 0.0  ;;  %v758_v54 = vmul.f32 %v2247_v14, %v694_v43  ;;  %v2816_v33 = vld [vmem:[#allocation13_spill] sm:$0xff]  ;;  %v2817_v46 = vld [vmem:[#allocation4_spill] sm:$0xff] }
 0x19a   :  { %1344 = vmatprep.subr.mxu1 %v842_v60  ;;  %v773_v11 = vmul.f32 %v2247_v14, %v709_v0  ;;  %v707_v53 = vsub.f32 %v2815_v49, %v2207_v27  ;;  %v708_v58 = vsub.f32 %v2816_v33, %v2207_v27  ;;  %v839_v42 = vmax.f32 %v775_v62, 0.0  ;;  %v2823_v49 = vld [vmem:[#allocation19_spill] sm:$0xff] }
 0x19b   :  { %1345 = vmatpush3.msra.mxu1 %v826_v47  ;;  %v757_v60 = vmul.f32 %v2247_v14, %v693_v48  ;;  %v823_v18 = vmax.f32 %v759_v34, 0.0  ;;  %v2362_v59 = vmul.f32 %v2247_v14, %v744_v9  ;;  %v2368_v47 = vmul.f32 %v2247_v14, %v743_v41  ;;  %v2821_v48 = vld [vmem:[#allocation9_spill] sm:$0xff] }
 0x19c   :  { %1346 = vmatprep.subr.mxu1 %v841_v20  ;;  %v2374_v1 = vmul.f32 %v2247_v14, %v742_v37  ;;  %v691_v20 = vsub.f32 %v2817_v46, %v2207_v27  ;;  %v706_v62 = vsub.f32 %v2818_v57, %v2207_v27  ;;  %v838_v9 = vmax.f32 %v774_v5, 0.0  ;;  %v2822_v5 = vld [vmem:[#allocation3_spill] sm:$0xff] }
 0x19d   :  { %1347 = vmatpush3.msra.mxu1 %v825_v61  ;;  %v772_v43 = vmul.f32 %v2247_v14, %v708_v58  ;;  %v822_v52 = vmax.f32 %v758_v54, 0.0  ;;  %v837_v41 = vmax.f32 %v773_v11, 0.0  ;;  %v756_v40 = vmul.f32 %v2247_v14, %v692_v38 }
 0x19e   :  { %1348 = vmatprep.subr.mxu1 %v840_v55  ;;  %v771_v35 = vmul.f32 %v2247_v14, %v707_v53  ;;  %v2387_v37 = vmul.f32 %v2247_v14, %v741_v32  ;;  %v2393_v0 = vmul.f32 %v2247_v14, %v740_v30  ;;  %v2399_v61 = vmul.f32 %v2247_v14, %v739_v22 }
 0x19f   :  { %1349 = vmatpush3.msra.mxu1 %v824_v6  ;;  %v2405_v15 = vmul.f32 %v2247_v14, %v738_v26  ;;  %v821_v32 = vmax.f32 %v757_v60, 0.0  ;;  %v755_v34 = vmul.f32 %v2247_v14, %v691_v20  ;;  %v2412_v8 = vmul.f32 %v2247_v14, %v737_v21 }
 0x1a0   :  { %1350 = vmatprep.subr.mxu1 %v839_v42  ;;  %v2418_v39 = vmul.f32 %v2247_v14, %v736_v19  ;;  %v705_v26 = vsub.f32 %v2819_v56, %v2207_v27  ;;  %v836_v22 = vmax.f32 %v772_v43, 0.0  ;;  %v770_v30 = vmul.f32 %v2247_v14, %v706_v62  ;;  %v2824_v42 = vld [vmem:[#allocation22_spill] sm:$0xff]  ;;  %v2826_v43 = vld [vmem:[#allocation21_spill] sm:$0xff] }
 0x1a1   :  { %1351 = vmatpush3.msra.mxu1 %v823_v18  ;;  %v689_v2 = vsub.f32 %v2820_v13, %v2207_v27  ;;  %v820_v7 = vmax.f32 %v756_v40, 0.0  ;;  %v754_v21 = vmul.f32 %v2247_v14, %v690_v50  ;;  %v704_v24 = vsub.f32 %v2821_v48, %v2207_v27  ;;  %v2827_v40 = vld [vmem:[#allocation17_spill] sm:$0xff]  ;;  %v880_v56 = vld [vmem:[%s2767_s2] sm:$0xff] }
 0x1a2   :  { %1352 = vmatprep.subr.mxu1 %v838_v9  ;;  %v835_v19 = vmax.f32 %v771_v35, 0.0  ;;  %v769_v55 = vmul.f32 %v2247_v14, %v705_v26  ;;  %v688_v45 = vsub.f32 %v2822_v5, %v2207_v27  ;;  %v819_v38 = vmax.f32 %v755_v34, 0.0  ;;  %v2828_v13 = vld [vmem:[#allocation18_spill] sm:$0xff] }
 0x1a3   :  { %1353 = vmatpush3.msra.mxu1 %v822_v52  ;;  %v753_v6 = vmul.f32 %v2247_v14, %v689_v2  ;;  %v751_v54 = vsub.f32 %v2194_v63, %v2207_v27  ;;  %v834_v11 = vmax.f32 %v770_v30, 0.0  ;;  %v768_v50 = vmul.f32 %v2247_v14, %v704_v24  ;;  %v2825_v63 = vld [vmem:[#allocation20_spill] sm:$0xff] }
 0x1a4   :  { %1354 = vmatprep.subr.mxu1 %v837_v41  ;;  %v735_v53 = vsub.f32 %v2823_v49, %v2207_v27  ;;  %v818_v33 = vmax.f32 %v754_v21, 0.0  ;;  %v752_v58 = vmul.f32 %v2247_v14, %v688_v45  ;;  %v750_v60 = vsub.f32 %v2824_v42, %v2207_v27 }
 0x1a5   :  { %1355 = vmatpush3.msra.mxu1 %v821_v32  ;;  %v833_v18 = vmax.f32 %v769_v55, 0.0  ;;  %v815_v46 = vmul.f32 %v2247_v14, %v751_v54  ;;  %v734_v20 = vsub.f32 %v2825_v63, %v2207_v27  ;;  %v817_v62 = vmax.f32 %v753_v6, 0.0  ;;  %v888_v63 = vld [vmem:[%s2767_s2 + $0x40] sm:$0xff] }
 0x1a6   :  { %1356 = vmatprep.subr.mxu1 %v836_v22  ;;  %v799_v57 = vmul.f32 %v2247_v14, %v735_v53  ;;  %v814_v9 = vmul.f32 %v2247_v14, %v750_v60  ;;  %v749_v52 = vsub.f32 %v2826_v43, %v2207_v27  ;;  %v832_v41 = vmax.f32 %v768_v50, 0.0  ;;  %v885_v22 = vld [vmem:[%s2767_s2 + $0x28] sm:$0xff]  ;;  %v2833_v60 = vld [vmem:[#allocation14_spill] sm:$0xff] }
 0x1a7   :  { %1357 = vmatpush3.msra.mxu1 %v820_v7  ;;  %v733_v35 = vsub.f32 %v2827_v40, %v2207_v27  ;;  %v798_v32 = vmul.f32 %v2247_v14, %v734_v20  ;;  %v816_v34 = vmax.f32 %v752_v58, 0.0  ;;  %v879_v26 = vmax.f32 %v815_v46, 0.0  ;;  %v892_v40 = vld [vmem:[%s2767_s2 + $0x60] sm:$0xff] }
 0x1a8   :  { %1358 = vmatprep.subr.mxu1 %v835_v19  ;;  %v813_v30 = vmul.f32 %v2247_v14, %v749_v52  ;;  %v732_v2 = vsub.f32 %v2828_v13, %v2207_v27  ;;  %v863_v21 = vmax.f32 %v799_v57, 0.0  ;;  %v878_v48 = vmax.f32 %v814_v9, 0.0  ;;  %v2829_v19 = vld [vmem:[#allocation15_spill] sm:$0xff] }
 0x1a9   :  { %1359 = vmatpush3.msra.mxu1 %v819_v38  ;;  %v797_v7 = vmul.f32 %v2247_v14, %v733_v35  ;;  %v812_v24 = vmul.f32 %v2247_v14, %v748_v28  ;;  %v731_v55 = vsub.f32 %v2829_v19, %v2207_v27  ;;  %v862_v45 = vmax.f32 %v798_v32, 0.0  ;;  %v884_v38 = vld [vmem:[%s2767_s2 + $0x20] sm:$0xff]  ;;  %v925_v19 = vld [vmem:[%s2767_s2 + $0x168] sm:$0xff] }
 0x1aa   :  { %1360 = vmatprep.subr.mxu1 %v834_v11  ;;  %v796_v5 = vmul.f32 %v2247_v14, %v732_v2  ;;  %v877_v6 = vmax.f32 %v813_v30, 0.0  ;;  %v2830_v28 = vsub.f32 %v2174_v36, %v2207_v27  ;;  %v2831_v11 = vld [vmem:[#allocation16_spill] sm:$0xff]  ;;  %v2832_v58 = vsub.f32 %v2179_v17, %v2207_v27  ;;  %v893_v17 = vld [vmem:[%s2767_s2 + $0x68] sm:$0xff]  ;;  %v900_v30 = vld [vmem:[%s2767_s2 + $0xa0] sm:$0xff] }
 0x1ab   :  { %1361 = vmatpush3.msra.mxu1 %v818_v33  ;;  %v730_v50 = vsub.f32 %v2831_v11, %v2207_v27  ;;  %v795_v49 = vmul.f32 %v2247_v14, %v731_v55  ;;  %v861_v53 = vmax.f32 %v797_v7, 0.0  ;;  %v876_v33 = vmax.f32 %v812_v24, 0.0  ;;  %v904_v2 = vld [vmem:[%s2767_s2 + $0xc0] sm:$0xff] }
 0x1ac   :  { %1362 = vmatprep.subr.mxu1 %v833_v18  ;;  %v811_v54 = vmul.f32 %v2247_v14, %v2830_v28  ;;  %v810_v42 = vmul.f32 %v2247_v14, %v2832_v58  ;;  %v729_v36 = vsub.f32 %v2833_v60, %v2207_v27  ;;  %v860_v46 = vmax.f32 %v796_v5, 0.0  ;;  %v912_v24 = vld [vmem:[%s2767_s2 + $0x100] sm:$0xff]  ;;  %v929_v5 = vld [vmem:[%s2767_s2 + $0x188] sm:$0xff]  ;;  %v891_v58 = vld [vmem:[%s2767_s2 + $0x58] sm:$0xff] }
 0x1ad   :  { %1363 = vmatpush3.msra.mxu1 %v817_v62  ;;  %v794_v18 = vmul.f32 %v2247_v14, %v730_v50  ;;  %v2834_v57 = vsub.f32 %v2164_v3, %v2207_v27  ;;  %v859_v43 = vmax.f32 %v795_v49, 0.0  ;;  %v897_v27 = vld [vmem:[%s2767_s2 + $0x88] sm:$0xff]  ;;  %v856_v32 = vmax.f32 %v2285_v44, 0.0  ;;  %v924_v55 = vld [vmem:[%s2767_s2 + $0x160] sm:$0xff]  ;;  %v883_v50 = vld [vmem:[%s2767_s2 + $0x18] sm:$0xff] }
 0x1ae   :  { %1364 = vmatprep.subr.mxu1 %v832_v41  ;;  %v875_v20 = vmax.f32 %v811_v54, 0.0  ;;  %v793_v9 = vmul.f32 %v2247_v14, %v729_v36  ;;  %v874_v52 = vmax.f32 %v810_v42, 0.0  ;;  %v870_v44 = vmax.f32 %v2374_v1, 0.0  ;;  %v936_v28 = vld [vmem:[%s2767_s2 + $0x1c0] sm:$0xff]  ;;  %v941_v54 = vld [vmem:[%s2767_s2 + $0x1e8] sm:$0xff]  ;;  %v882_v49 = vld [vmem:[%s2767_s2 + $0x10] sm:$0xff] }
 0x1af   :  { %1365 = vmatpush3.msra.mxu1 %v816_v34  ;;  %v809_v62 = vmul.f32 %v2247_v14, %v2834_v57  ;;  %v858_v41 = vmax.f32 %v794_v18, 0.0  ;;  %v872_v14 = vmax.f32 %v2362_v59, 0.0  ;;  %v896_v34 = vld [vmem:[%s2767_s2 + $0x80] sm:$0xff]  ;;  %v854_v59 = vmax.f32 %v2279_v51, 0.0  ;;  %v890_v42 = vld [vmem:[%s2767_s2 + $0x50] sm:$0xff]  ;;  %v895_v60 = vld [vmem:[%s2767_s2 + $0x78] sm:$0xff] }
 0x1b0   :  { %1009 = vmatmul.mubr.f32.vlgmr.msra.gmra.mxu1 %v880_v56  ;;  %1414 = vmatprep.subr.mxu1 %v879_v26  ;;  %v857_v3 = vmax.f32 %v793_v9, 0.0  ;;  %v871_v56 = vmax.f32 %v2368_v47, 0.0  ;;  %v901_v26 = vld [vmem:[%s2767_s2 + $0xa8] sm:$0xff]  ;;  %v869_v47 = vmax.f32 %v2387_v37, 0.0  ;;  %v853_v13 = vmax.f32 %v2276_v23, 0.0  ;;  %v940_v11 = vld [vmem:[%s2767_s2 + $0x1e0] sm:$0xff] }
 0x1b1   :  { %1415 = vmatpush3.msra.mxu1 %v863_v21  ;;  %1013 = vmatprep.mubr.f32.mxu1 %v885_v22  ;;  %v873_v35 = vmax.f32 %v809_v62, 0.0  ;;  %v855_v22 = vmax.f32 %v2282_v10, 0.0  ;;  %v905_v10 = vld [vmem:[%s2767_s2 + $0xc8] sm:$0xff]  ;;  %v868_v51 = vmax.f32 %v2393_v0, 0.0  ;;  %v852_v1 = vmax.f32 %v2273_v31, 0.0  ;;  %v908_v21 = vld [vmem:[%s2767_s2 + $0xe0] sm:$0xff] }
 0x1b2   :  { %1416 = vmatprep.subr.mxu1 %v878_v48  ;;  %v867_v37 = vmax.f32 %v2399_v61, 0.0  ;;  %v909_v23 = vld [vmem:[%s2767_s2 + $0xe8] sm:$0xff]  ;;  %v851_v7 = vmax.f32 %v2270_v4, 0.0  ;;  %v866_v31 = vmax.f32 %v2405_v15, 0.0  ;;  %v850_v0 = vmax.f32 %v2267_v12, 0.0  ;;  %v894_v36 = vld [vmem:[%s2767_s2 + $0x70] sm:$0xff] }
 0x1b3   :  { %1417 = vmatpush3.msra.mxu1 %v862_v45  ;;  %v865_v61 = vmax.f32 %v2412_v8, 0.0  ;;  %v913_v4 = vld [vmem:[%s2767_s2 + $0x108] sm:$0xff]  ;;  %v849_v48 = vmax.f32 %v2264_v29, 0.0  ;;  %v864_v12 = vmax.f32 %v2418_v39, 0.0  ;;  %v848_v15 = vmax.f32 %v2261_v25, 0.0  ;;  %v916_v29 = vld [vmem:[%s2767_s2 + $0x120] sm:$0xff] }
 0x1b4   :  { %1014 = vmatmul.mubr.f32.gmra.mxu1 %v884_v38  ;;  %1418 = vmatprep.subr.mxu1 %v877_v6  ;;  %v917_v8 = vld [vmem:[%s2767_s2 + $0x128] sm:$0xff]  ;;  %v920_v39 = vld [vmem:[%s2767_s2 + $0x140] sm:$0xff]  ;;  %v899_v18 = vld [vmem:[%s2767_s2 + $0x98] sm:$0xff] }
 0x1b5   :  { %1419 = vmatpush3.msra.mxu1 %v861_v53  ;;  %1018 = vmatprep.mubr.f32.mxu1 %v889_v16  ;;  %v921_v25 = vld [vmem:[%s2767_s2 + $0x148] sm:$0xff]  ;;  %v928_v45 = vld [vmem:[%s2767_s2 + $0x180] sm:$0xff]  ;;  %v887_v53 = vld [vmem:[%s2767_s2 + $0x38] sm:$0xff] }
 0x1b6   :  { %1420 = vmatprep.subr.mxu1 %v876_v33  ;;  %v933_v38 = vld [vmem:[%s2767_s2 + $0x1a8] sm:$0xff]  ;;  %v932_v6 = vld [vmem:[%s2767_s2 + $0x1a0] sm:$0xff]  ;;  %v886_v33 = vld [vmem:[%s2767_s2 + $0x30] sm:$0xff] }
 0x1b7   :  { %1421 = vmatpush3.msra.mxu1 %v860_v46  ;;  %v937_v16 = vld [vmem:[%s2767_s2 + $0x1c8] sm:$0xff]  ;;  %v898_v46 = vld [vmem:[%s2767_s2 + $0x90] sm:$0xff]  ;;  %v911_v62 = vld [vmem:[%s2767_s2 + $0xf8] sm:$0xff] }
 0x1b8   :  { %1019 = vmatmul.mubr.f32.gmra.mxu1 %v888_v63  ;;  %1422 = vmatprep.subr.mxu1 %v875_v20  ;;  %v903_v63 = vld [vmem:[%s2767_s2 + $0xb8] sm:$0xff]  ;;  %v902_v20 = vld [vmem:[%s2767_s2 + $0xb0] sm:$0xff] }
 0x1b9   :  { %1423 = vmatpush3.msra.mxu1 %v859_v43  ;;  %1023 = vmatprep.mubr.f32.mxu1 %v893_v17  ;;  %v907_v17 = vld [vmem:[%s2767_s2 + $0xd8] sm:$0xff]  ;;  %v906_v57 = vld [vmem:[%s2767_s2 + $0xd0] sm:$0xff] }
 0x1ba   :  { %1424 = vmatprep.subr.mxu1 %v874_v52  ;;  %v910_v9 = vld [vmem:[%s2767_s2 + $0xf0] sm:$0xff]  ;;  %v915_v43 = vld [vmem:[%s2767_s2 + $0x118] sm:$0xff] }
 0x1bb   :  { %1425 = vmatpush3.msra.mxu1 %v858_v41  ;;  %v914_v52 = vld [vmem:[%s2767_s2 + $0x110] sm:$0xff]  ;;  %v919_v41 = vld [vmem:[%s2767_s2 + $0x138] sm:$0xff] }
 0x1bc   :  { %1024 = vmatmul.mubr.f32.gmra.mxu1 %v892_v40  ;;  %1426 = vmatprep.subr.mxu1 %v873_v35  ;;  %v918_v40 = vld [vmem:[%s2767_s2 + $0x130] sm:$0xff]  ;;  %v923_v35 = vld [vmem:[%s2767_s2 + $0x158] sm:$0xff] }
 0x1bd   :  { %1427 = vmatpush3.msra.mxu1 %v857_v3  ;;  %1028 = vmatprep.mubr.f32.mxu1 %v897_v27  ;;  %v922_v27 = vld [vmem:[%s2767_s2 + $0x150] sm:$0xff]  ;;  %v927_v3 = vld [vmem:[%s2767_s2 + $0x178] sm:$0xff] }
 0x1be   :  { %1428 = vmatprep.subr.mxu1 %v872_v14  ;;  %v926_v14 = vld [vmem:[%s2767_s2 + $0x170] sm:$0xff] }
 0x1bf   :  { %1429 = vmatpush3.msra.mxu1 %v856_v32  ;;  %v931_v32 = vld [vmem:[%s2767_s2 + $0x198] sm:$0xff] }
 0x1c0   :  { %1029 = vmatmul.mubr.f32.gmra.mxu1 %v896_v34  ;;  %1430 = vmatprep.subr.mxu1 %v871_v56  ;;  %v930_v34 = vld [vmem:[%s2767_s2 + $0x190] sm:$0xff]  ;;  %v935_v56 = vld [vmem:[%s2767_s2 + $0x1b8] sm:$0xff] }
 0x1c1   :  { %1431 = vmatpush3.msra.mxu1 %v855_v22  ;;  %1033 = vmatprep.mubr.f32.mxu1 %v901_v26  ;;  %v934_v26 = vld [vmem:[%s2767_s2 + $0x1b0] sm:$0xff]  ;;  %v939_v22 = vld [vmem:[%s2767_s2 + $0x1d8] sm:$0xff] }
 0x1c2   :  { %1432 = vmatprep.subr.mxu1 %v870_v44  ;;  %v938_v44 = vld [vmem:[%s2767_s2 + $0x1d0] sm:$0xff] }
 0x1c3   :  { %1433 = vmatpush3.msra.mxu1 %v854_v59  ;;  %v943_v59 = vld [vmem:[%s2767_s2 + $0x1f8] sm:$0xff] }
 0x1c4   :  { %1034 = vmatmul.mubr.f32.gmra.mxu1 %v900_v30  ;;  %1434 = vmatprep.subr.mxu1 %v869_v47  ;;  %v942_v30 = vld [vmem:[%s2767_s2 + $0x1f0] sm:$0xff] }
 0x1c5   :  { %1435 = vmatpush3.msra.mxu1 %v853_v13  ;;  %1038 = vmatprep.mubr.f32.mxu1 %v905_v10 }
 0x1c6   :  { %1436 = vmatprep.subr.mxu1 %v868_v51 }
 0x1c7   :  { %1437 = vmatpush3.msra.mxu1 %v852_v1 }
 0x1c8   :  { %1039 = vmatmul.mubr.f32.gmra.mxu1 %v904_v2  ;;  %1438 = vmatprep.subr.mxu1 %v867_v37 }
 0x1c9   :  { %1439 = vmatpush3.msra.mxu1 %v851_v7  ;;  %1043 = vmatprep.mubr.f32.mxu1 %v909_v23 }
 0x1ca   :  { %1440 = vmatprep.subr.mxu1 %v866_v31 }
 0x1cb   :  { %1441 = vmatpush3.msra.mxu1 %v850_v0 }
 0x1cc   :  { %1044 = vmatmul.mubr.f32.gmra.mxu1 %v908_v21  ;;  %1442 = vmatprep.subr.mxu1 %v865_v61 }
 0x1cd   :  { %1443 = vmatpush3.msra.mxu1 %v849_v48  ;;  %1048 = vmatprep.mubr.f32.mxu1 %v913_v4 }
 0x1ce   :  { %1444 = vmatprep.subr.mxu1 %v864_v12 }
 0x1cf   :  { %1445 = vmatpush3.msra.mxu1 %v848_v15 }
 0x1d0   :  { %1049 = vmatmul.mubr.f32.gmra.mxu1 %v912_v24 }
 0x1d1   :  { %1053 = vmatprep.mubr.f32.mxu1 %v917_v8 }
 0x1d4   :  { %1054 = vmatmul.mubr.f32.gmra.mxu1 %v916_v29 }
 0x1d5   :  { %1058 = vmatprep.mubr.f32.mxu1 %v921_v25 }
 0x1d8   :  { %1059 = vmatmul.mubr.f32.gmra.mxu1 %v920_v39 }
 0x1d9   :  { %1063 = vmatprep.mubr.f32.mxu1 %v925_v19 }
 0x1dc   :  { %1064 = vmatmul.mubr.f32.gmra.mxu1 %v924_v55 }
 0x1dd   :  { %1068 = vmatprep.mubr.f32.mxu1 %v929_v5 }
 0x1e0   :  { %1069 = vmatmul.mubr.f32.gmra.mxu1 %v928_v45 }
 0x1e1   :  { %1073 = vmatprep.mubr.f32.mxu1 %v933_v38 }
 0x1e4   :  { %1074 = vmatmul.mubr.f32.gmra.mxu1 %v932_v6 }
 0x1e5   :  { %1078 = vmatprep.mubr.f32.mxu1 %v937_v16 }
 0x1e8   :  { %1079 = vmatmul.mubr.f32.gmra.mxu1 %v936_v28 }
 0x1e9   :  { %1083 = vmatprep.mubr.f32.mxu1 %v941_v54 }
 0x1ec   :  { %1084 = vmatmul.mubr.f32.gmra.mxu1 %v940_v11 }
 0x1ed   :  { %1153 = vmatprep.mubr.f32.mxu1 %v883_v50 }
 0x1f0   :  { %1154 = vmatmul.mubr.f32.vlgmr.msra.gmra.mxu1 %v882_v49 }
 0x1f1   :  { %1158 = vmatprep.mubr.f32.mxu1 %v887_v53 }
 0x1f4   :  { %1159 = vmatmul.mubr.f32.gmra.mxu1 %v886_v33 }
 0x1f5   :  { %1163 = vmatprep.mubr.f32.mxu1 %v891_v58 }
 0x1f8   :  { %1164 = vmatmul.mubr.f32.gmra.mxu1 %v890_v42 }
 0x1f9   :  { %1168 = vmatprep.mubr.f32.mxu1 %v895_v60 }
 0x1fc   :  { %1169 = vmatmul.mubr.f32.gmra.mxu1 %v894_v36 }
 0x1fd   :  { %1173 = vmatprep.mubr.f32.mxu1 %v899_v18 }
 0x200   :  { %1174 = vmatmul.mubr.f32.gmra.mxu1 %v898_v46 }
 0x201   :  { %1178 = vmatprep.mubr.f32.mxu1 %v903_v63 }
 0x204   :  { %1179 = vmatmul.mubr.f32.gmra.mxu1 %v902_v20 }
 0x205   :  { %1183 = vmatprep.mubr.f32.mxu1 %v907_v17 }
 0x208   :  { %1184 = vmatmul.mubr.f32.gmra.mxu1 %v906_v57 }
 0x209   :  { %1188 = vmatprep.mubr.f32.mxu1 %v911_v62 }
 0x20c   :  { %1189 = vmatmul.mubr.f32.gmra.mxu1 %v910_v9 }
 0x20d   :  { %1193 = vmatprep.mubr.f32.mxu1 %v915_v43 }
 0x210   :  { %1194 = vmatmul.mubr.f32.gmra.mxu1 %v914_v52 }
 0x211   :  { %1198 = vmatprep.mubr.f32.mxu1 %v919_v41 }
 0x214   :  { %1199 = vmatmul.mubr.f32.gmra.mxu1 %v918_v40 }
 0x215   :  { %1203 = vmatprep.mubr.f32.mxu1 %v923_v35 }
 0x218   :  { %1204 = vmatmul.mubr.f32.gmra.mxu1 %v922_v27 }
 0x219   :  { %1208 = vmatprep.mubr.f32.mxu1 %v927_v3 }
 0x21c   :  { %1209 = vmatmul.mubr.f32.gmra.mxu1 %v926_v14 }
 0x21d   :  { %1213 = vmatprep.mubr.f32.mxu1 %v931_v32 }
 0x220   :  { %1214 = vmatmul.mubr.f32.gmra.mxu1 %v930_v34 }
 0x221   :  { %1218 = vmatprep.mubr.f32.mxu1 %v935_v56 }
 0x224   :  { %1219 = vmatmul.mubr.f32.gmra.mxu1 %v934_v26 }
 0x225   :  { %1223 = vmatprep.mubr.f32.mxu1 %v939_v22 }
 0x228   :  { %1224 = vmatmul.mubr.f32.gmra.mxu1 %v938_v44 }
 0x229   :  { %1228 = vmatprep.mubr.f32.mxu1 %v943_v59 }
 0x22c   :  { %1229 = vmatmul.mubr.f32.gmra.mxu1 %v942_v30 }
 0x270   :  { %v1366_v47 = vpop.f32.mrf.mxu1 }
 0x272   :  { %v1367_v10 = vpop.f32.mrf.mxu1 }
 0x273   :  { %v1368_v13 = vadd.f32 %v1367_v10, %v1366_v47 }
 0x274   :  { %v1369_v51 = vpop.f32.mrf.mxu1 }
 0x276   :  { %v1370_v1 = vpop.f32.mrf.mxu1 }
 0x277   :  { %v1371_v2 = vadd.f32 %v1370_v1, %v1369_v51 }
 0x278   :  { %v1372_v37 = vpop.f32.mrf.mxu1 }
 0x27a   :  { %v1373_v23 = vpop.f32.mrf.mxu1 }
 0x27b   :  { %v1374_v7 = vadd.f32 %v1373_v23, %v1372_v37 }
 0x27c   :  { %v1375_v31 = vpop.f32.mrf.mxu1 }
 0x27e   :  { %v1376_v0 = vpop.f32.mrf.mxu1 }
 0x27f   :  { %v1377_v21 = vadd.f32 %v1376_v0, %v1375_v31 }
 0x280   :  { %v1378_v61 = vpop.f32.mrf.mxu1 }
 0x282   :  { %v1379_v4 = vpop.f32.mrf.mxu1 }
 0x283   :  { %v1380_v48 = vadd.f32 %v1379_v4, %v1378_v61 }
 0x284   :  { %v1381_v12 = vpop.f32.mrf.mxu1 }
 0x286   :  { %v1382_v15 = vpop.f32.mrf.mxu1 }
 0x287   :  { %v1383_v24 = vadd.f32 %v1382_v15, %v1381_v12 }
 0x288   :  { %v1384_v8 = vpop.f32.mrf.mxu1 }
 0x28a   :  { %v1385_v29 = vpop.f32.mrf.mxu1 }
 0x28b   :  { %v2687_v25 = vadd.f32 %v1385_v29, %v1384_v8 }
 0x28c   :  { %v1387_v39 = vpop.f32.mrf.mxu1 }
 0x28e   :  { %v1388_v19 = vpop.f32.mrf.mxu1 }
 0x28f   :  { %v2689_v55 = vadd.f32 %v1388_v19, %v1387_v39 }
 0x290   :  { %v1390_v5 = vpop.f32.mrf.mxu1 }
 0x292   :  { %v1391_v45 = vpop.f32.mrf.mxu1 }
 0x293   :  { %v2691_v38 = vadd.f32 %v1391_v45, %v1390_v5 }
 0x294   :  { %v1393_v6 = vpop.f32.mrf.mxu1 }
 0x296   :  { %v1394_v16 = vpop.f32.mrf.mxu1 }
 0x297   :  { %v2693_v28 = vadd.f32 %v1394_v16, %v1393_v6 }
 0x298   :  { %v1396_v54 = vpop.f32.mrf.mxu1 }
 0x29a   :  { %v1397_v11 = vpop.f32.mrf.mxu1 }
 0x29b   :  { %v2695_v50 = vadd.f32 %v1397_v11, %v1396_v54 }
 0x29c   :  { %v1399_v49 = vpop.f32.mrf.mxu1 }
 0x29e   :  { %v1400_v53 = vpop.f32.mrf.mxu1 }
 0x29f   :  { %v2697_v33 = vadd.f32 %v1400_v53, %v1399_v49 }
 0x2a0   :  { %v1402_v58 = vpop.f32.mrf.mxu1 }
 0x2a2   :  { %v1403_v42 = vpop.f32.mrf.mxu1 }
 0x2a3   :  { %v2699_v60 = vadd.f32 %v1403_v42, %v1402_v58 }
 0x2a4   :  { %v1405_v36 = vpop.f32.mrf.mxu1 }
 0x2a6   :  { %v1406_v18 = vpop.f32.mrf.mxu1 }
 0x2a7   :  { %v2701_v46 = vadd.f32 %v1406_v18, %v1405_v36 }
 0x2a8   :  { %v1408_v63 = vpop.f32.mrf.mxu1 }
 0x2aa   :  { %v1409_v20 = vpop.f32.mrf.mxu1 }
 0x2ab   :  { %v2703_v17 = vadd.f32 %v1409_v20, %v1408_v63 }
 0x2ac   :  { %v1411_v57 = vpop.f32.mrf.mxu1 }
 0x2ae   :  { %v1412_v62 = vpop.f32.mrf.mxu1 }
 0x2af   :  { %v2705_v9 = vadd.f32 %v1412_v62, %v1411_v57 }
 0x2b0   :  { %v1446_v43 = vpop.f32.mrf.mxu1 }
 0x2b2   :  { %v1447_v52 = vpop.f32.mrf.mxu1 }
 0x2b3   :  { %v1448_v41 = vadd.f32 %v1447_v52, %v1446_v43 }
 0x2b4   :  { %v1449_v40 = vpop.f32.mrf.mxu1 }
 0x2b5   :  { %v1156_v35 = vadd.f32 %v1448_v41, %v1368_v13 }
 0x2b6   :  { %v1450_v27 = vpop.f32.mrf.mxu1 }
 0x2b7   :  { %1234 = vst [vmem:[%s2768_s3] sm:$0xff] %v1156_v35  ;;  %v1451_v3 = vadd.f32 %v1450_v27, %v1449_v40 }
 0x2b8   :  { %v1452_v14 = vpop.f32.mrf.mxu1 }
 0x2b9   :  { %v1161_v32 = vadd.f32 %v1451_v3, %v1371_v2 }
 0x2ba   :  { %v1453_v34 = vpop.f32.mrf.mxu1 }
 0x2bb   :  { %1235 = vst [vmem:[%s2768_s3 + $0x8] sm:$0xff] %v1161_v32  ;;  %v1454_v56 = vadd.f32 %v1453_v34, %v1452_v14 }
 0x2bc   :  { %v1455_v26 = vpop.f32.mrf.mxu1 }
 0x2bd   :  { %v1166_v22 = vadd.f32 %v1454_v56, %v1374_v7 }
 0x2be   :  { %v1456_v44 = vpop.f32.mrf.mxu1 }
 0x2bf   :  { %1236 = vst [vmem:[%s2768_s3 + $0x10] sm:$0xff] %v1166_v22  ;;  %v1457_v59 = vadd.f32 %v1456_v44, %v1455_v26 }
 0x2c0   :  { %v1458_v30 = vpop.f32.mrf.mxu1 }
 0x2c1   :  { %v1171_v47 = vadd.f32 %v1457_v59, %v1377_v21 }
 0x2c2   :  { %v1459_v10 = vpop.f32.mrf.mxu1 }
 0x2c3   :  { %1237 = vst [vmem:[%s2768_s3 + $0x18] sm:$0xff] %v1171_v47  ;;  %v1460_v13 = vadd.f32 %v1459_v10, %v1458_v30 }
 0x2c4   :  { %v1461_v51 = vpop.f32.mrf.mxu1 }
 0x2c5   :  { %v1176_v1 = vadd.f32 %v1460_v13, %v1380_v48 }
 0x2c6   :  { %v1462_v2 = vpop.f32.mrf.mxu1 }
 0x2c7   :  { %1238 = vst [vmem:[%s2768_s3 + $0x20] sm:$0xff] %v1176_v1  ;;  %v1463_v37 = vadd.f32 %v1462_v2, %v1461_v51 }
 0x2c8   :  { %v1464_v23 = vpop.f32.mrf.mxu1 }
 0x2c9   :  { %v1181_v7 = vadd.f32 %v1463_v37, %v1383_v24 }
 0x2ca   :  { %v1465_v31 = vpop.f32.mrf.mxu1 }
 0x2cb   :  { %1239 = vst [vmem:[%s2768_s3 + $0x28] sm:$0xff] %v1181_v7  ;;  %v1466_v0 = vadd.f32 %v1465_v31, %v1464_v23 }
 0x2cc   :  { %v1467_v21 = vpop.f32.mrf.mxu1 }
 0x2cd   :  { %v1186_v61 = vadd.f32 %v1466_v0, %v2687_v25 }
 0x2ce   :  { %v1468_v4 = vpop.f32.mrf.mxu1 }
 0x2cf   :  { %1240 = vst [vmem:[%s2768_s3 + $0x30] sm:$0xff] %v1186_v61  ;;  %v1469_v48 = vadd.f32 %v1468_v4, %v1467_v21 }
 0x2d0   :  { %v1470_v12 = vpop.f32.mrf.mxu1 }
 0x2d1   :  { %v1191_v15 = vadd.f32 %v1469_v48, %v2689_v55 }
 0x2d2   :  { %v1471_v8 = vpop.f32.mrf.mxu1 }
 0x2d3   :  { %1241 = vst [vmem:[%s2768_s3 + $0x38] sm:$0xff] %v1191_v15  ;;  %v1472_v24 = vadd.f32 %v1471_v8, %v1470_v12 }
 0x2d4   :  { %v1473_v29 = vpop.f32.mrf.mxu1 }
 0x2d5   :  { %v1196_v39 = vadd.f32 %v1472_v24, %v2691_v38 }
 0x2d6   :  { %v1474_v19 = vpop.f32.mrf.mxu1 }
 0x2d7   :  { %1242 = vst [vmem:[%s2768_s3 + $0x40] sm:$0xff] %v1196_v39  ;;  %v1475_v25 = vadd.f32 %v1474_v19, %v1473_v29 }
 0x2d8   :  { %v1476_v5 = vpop.f32.mrf.mxu1 }
 0x2d9   :  { %v1201_v45 = vadd.f32 %v1475_v25, %v2693_v28 }
 0x2da   :  { %v1477_v6 = vpop.f32.mrf.mxu1 }
 0x2db   :  { %1243 = vst [vmem:[%s2768_s3 + $0x48] sm:$0xff] %v1201_v45  ;;  %v1478_v55 = vadd.f32 %v1477_v6, %v1476_v5 }
 0x2dc   :  { %v1479_v16 = vpop.f32.mrf.mxu1 }
 0x2dd   :  { %v1206_v54 = vadd.f32 %v1478_v55, %v2695_v50 }
 0x2de   :  { %v1480_v11 = vpop.f32.mrf.mxu1 }
 0x2df   :  { %1244 = vst [vmem:[%s2768_s3 + $0x50] sm:$0xff] %v1206_v54  ;;  %v1481_v38 = vadd.f32 %v1480_v11, %v1479_v16 }
 0x2e0   :  { %v1482_v49 = vpop.f32.mrf.mxu1 }
 0x2e1   :  { %v1211_v53 = vadd.f32 %v1481_v38, %v2697_v33 }
 0x2e2   :  { %v1483_v58 = vpop.f32.mrf.mxu1 }
 0x2e3   :  { %1245 = vst [vmem:[%s2768_s3 + $0x58] sm:$0xff] %v1211_v53  ;;  %v1484_v28 = vadd.f32 %v1483_v58, %v1482_v49 }
 0x2e4   :  { %v1485_v42 = vpop.f32.mrf.mxu1 }
 0x2e5   :  { %v1216_v36 = vadd.f32 %v1484_v28, %v2699_v60 }
 0x2e6   :  { %v1486_v18 = vpop.f32.mrf.mxu1 }
 0x2e7   :  { %1246 = vst [vmem:[%s2768_s3 + $0x60] sm:$0xff] %v1216_v36  ;;  %v1487_v50 = vadd.f32 %v1486_v18, %v1485_v42 }
 0x2e8   :  { %v1488_v63 = vpop.f32.mrf.mxu1 }
 0x2e9   :  { %v1221_v20 = vadd.f32 %v1487_v50, %v2701_v46 }
 0x2ea   :  { %v1489_v57 = vpop.f32.mrf.mxu1 }
 0x2eb   :  { %1247 = vst [vmem:[%s2768_s3 + $0x68] sm:$0xff] %v1221_v20  ;;  %v1490_v33 = vadd.f32 %v1489_v57, %v1488_v63 }
 0x2ec   :  { %v1491_v62 = vpop.f32.mrf.mxu1 }
 0x2ed   :  { %v1226_v43 = vadd.f32 %v1490_v33, %v2703_v17 }
 0x2ee   :  { %v1492_v52 = vpop.f32.mrf.mxu1 }
 0x2ef   :  { %1248 = vst [vmem:[%s2768_s3 + $0x70] sm:$0xff] %v1226_v43  ;;  %v1493_v60 = vadd.f32 %v1492_v52, %v1491_v62 }
 0x2f1   :  { %v1231_v41 = vadd.f32 %v1493_v60, %v2705_v9 }
 0x2f3   :  { %1249 = vst [vmem:[%s2768_s3 + $0x78] sm:$0xff] %v1231_v41 }

// kernel: conv_et_al_forward.4
= control target key start
LH: loop header
LB: loop body
LE: loop exit
PB: predicated region body
PF: predicated region fallthrough
CT: control target
= control target key end

     0   :  { %s3489_s1 = inlined_call_operand.vmem [shape: f32[1152,256], index: 1, kind: input, shape index: {}]   ;;  %s3490_s0 = inlined_call_operand.vmem [shape: f32[128,1152], index: 0, kind: input, shape index: {}]   ;;  %s3491_s2 = inlined_call_operand.vmem [shape: f32[32,128], index: 2, kind: input, shape index: {}]   ;;  %s3492_s3 = inlined_call_operand.vmem [shape: f32[32,256], index: 3, kind: output, shape index: {}]  }
   0x1   :  { %v189_v0 = vld [vmem:[%s3489_s1 + $0xf8] sm:$0xff]  ;;  %v188_v2 = vld [vmem:[%s3489_s1 + $0xf0] sm:$0xff]  ;;  %v187_v4 = vld [vmem:[%s3489_s1 + $0xe8] sm:$0xff] }
   0x2   :  { %v253_v1 = vld [vmem:[%s3489_s1 + $0x2f8] sm:$0xff]  ;;  %446 = vmatprep.subr.mxu0 %v189_v0  ;;  %v252_v3 = vld [vmem:[%s3489_s1 + $0x2f0] sm:$0xff]  ;;  %v251_v5 = vld [vmem:[%s3489_s1 + $0x2e8] sm:$0xff] }
   0x3   :  { %607 = vmatprep.subr.mxu1 %v253_v1  ;;  %447 = vmatpush1.msra.mxu0 %v188_v2  ;;  %v186_v6 = vld [vmem:[%s3489_s1 + $0xe0] sm:$0xff]  ;;  %v185_v8 = vld [vmem:[%s3489_s1 + $0xd8] sm:$0xff]  ;;  %v184_v10 = vld [vmem:[%s3489_s1 + $0xd0] sm:$0xff] }
   0x4   :  { %608 = vmatpush1.msra.mxu1 %v252_v3  ;;  %v250_v7 = vld [vmem:[%s3489_s1 + $0x2e0] sm:$0xff]  ;;  %448 = vmatprep.subr.mxu0 %v187_v4  ;;  %v249_v9 = vld [vmem:[%s3489_s1 + $0x2d8] sm:$0xff]  ;;  %v248_v11 = vld [vmem:[%s3489_s1 + $0x2d0] sm:$0xff] }
   0x5   :  { %609 = vmatprep.subr.mxu1 %v251_v5  ;;  %449 = vmatpush1.msra.mxu0 %v186_v6  ;;  %v183_v12 = vld [vmem:[%s3489_s1 + $0xc8] sm:$0xff]  ;;  %v182_v14 = vld [vmem:[%s3489_s1 + $0xc0] sm:$0xff]  ;;  %v181_v16 = vld [vmem:[%s3489_s1 + $0xb8] sm:$0xff] }
   0x6   :  { %610 = vmatpush1.msra.mxu1 %v250_v7  ;;  %v247_v13 = vld [vmem:[%s3489_s1 + $0x2c8] sm:$0xff]  ;;  %450 = vmatprep.subr.mxu0 %v185_v8  ;;  %v246_v15 = vld [vmem:[%s3489_s1 + $0x2c0] sm:$0xff]  ;;  %v245_v17 = vld [vmem:[%s3489_s1 + $0x2b8] sm:$0xff] }
   0x7   :  { %611 = vmatprep.subr.mxu1 %v249_v9  ;;  %451 = vmatpush1.msra.mxu0 %v184_v10  ;;  %v180_v18 = vld [vmem:[%s3489_s1 + $0xb0] sm:$0xff]  ;;  %v179_v20 = vld [vmem:[%s3489_s1 + $0xa8] sm:$0xff]  ;;  %v178_v22 = vld [vmem:[%s3489_s1 + $0xa0] sm:$0xff] }
   0x8   :  { %612 = vmatpush1.msra.mxu1 %v248_v11  ;;  %452 = vmatprep.subr.mxu0 %v183_v12  ;;  %v244_v19 = vld [vmem:[%s3489_s1 + $0x2b0] sm:$0xff]  ;;  %v243_v21 = vld [vmem:[%s3489_s1 + $0x2a8] sm:$0xff]  ;;  %v242_v23 = vld [vmem:[%s3489_s1 + $0x2a0] sm:$0xff] }
   0x9   :  { %613 = vmatprep.subr.mxu1 %v247_v13  ;;  %453 = vmatpush1.msra.mxu0 %v182_v14  ;;  %v177_v24 = vld [vmem:[%s3489_s1 + $0x98] sm:$0xff]  ;;  %v176_v26 = vld [vmem:[%s3489_s1 + $0x90] sm:$0xff]  ;;  %v175_v28 = vld [vmem:[%s3489_s1 + $0x88] sm:$0xff] }
   0xa   :  { %614 = vmatpush1.msra.mxu1 %v246_v15  ;;  %454 = vmatprep.subr.mxu0 %v181_v16  ;;  %v241_v25 = vld [vmem:[%s3489_s1 + $0x298] sm:$0xff]  ;;  %v240_v27 = vld [vmem:[%s3489_s1 + $0x290] sm:$0xff]  ;;  %v239_v29 = vld [vmem:[%s3489_s1 + $0x288] sm:$0xff] }
   0xb   :  { %615 = vmatprep.subr.mxu1 %v245_v17  ;;  %455 = vmatpush1.msra.mxu0 %v180_v18  ;;  %v174_v30 = vld [vmem:[%s3489_s1 + $0x80] sm:$0xff]  ;;  %v173_v32 = vld [vmem:[%s3489_s1 + $0x78] sm:$0xff]  ;;  %v172_v34 = vld [vmem:[%s3489_s1 + $0x70] sm:$0xff] }
   0xc   :  { %616 = vmatpush1.msra.mxu1 %v244_v19  ;;  %456 = vmatprep.subr.mxu0 %v179_v20  ;;  %v238_v31 = vld [vmem:[%s3489_s1 + $0x280] sm:$0xff]  ;;  %v237_v33 = vld [vmem:[%s3489_s1 + $0x278] sm:$0xff]  ;;  %v236_v35 = vld [vmem:[%s3489_s1 + $0x270] sm:$0xff] }
   0xd   :  { %617 = vmatprep.subr.mxu1 %v243_v21  ;;  %457 = vmatpush1.msra.mxu0 %v178_v22  ;;  %v171_v36 = vld [vmem:[%s3489_s1 + $0x68] sm:$0xff]  ;;  %v170_v38 = vld [vmem:[%s3489_s1 + $0x60] sm:$0xff]  ;;  %v169_v40 = vld [vmem:[%s3489_s1 + $0x58] sm:$0xff] }
   0xe   :  { %618 = vmatpush1.msra.mxu1 %v242_v23  ;;  %458 = vmatprep.subr.mxu0 %v177_v24  ;;  %v235_v37 = vld [vmem:[%s3489_s1 + $0x268] sm:$0xff]  ;;  %v234_v39 = vld [vmem:[%s3489_s1 + $0x260] sm:$0xff]  ;;  %v233_v41 = vld [vmem:[%s3489_s1 + $0x258] sm:$0xff] }
   0xf   :  { %619 = vmatprep.subr.mxu1 %v241_v25  ;;  %459 = vmatpush1.msra.mxu0 %v176_v26  ;;  %v168_v42 = vld [vmem:[%s3489_s1 + $0x50] sm:$0xff]  ;;  %v167_v44 = vld [vmem:[%s3489_s1 + $0x48] sm:$0xff]  ;;  %v166_v46 = vld [vmem:[%s3489_s1 + $0x40] sm:$0xff] }
  0x10   :  { %620 = vmatpush1.msra.mxu1 %v240_v27  ;;  %460 = vmatprep.subr.mxu0 %v175_v28  ;;  %v232_v43 = vld [vmem:[%s3489_s1 + $0x250] sm:$0xff]  ;;  %v231_v45 = vld [vmem:[%s3489_s1 + $0x248] sm:$0xff]  ;;  %v230_v47 = vld [vmem:[%s3489_s1 + $0x240] sm:$0xff] }
  0x11   :  { %621 = vmatprep.subr.mxu1 %v239_v29  ;;  %461 = vmatpush1.msra.mxu0 %v174_v30  ;;  %v165_v48 = vld [vmem:[%s3489_s1 + $0x38] sm:$0xff]  ;;  %v164_v50 = vld [vmem:[%s3489_s1 + $0x30] sm:$0xff]  ;;  %v163_v52 = vld [vmem:[%s3489_s1 + $0x28] sm:$0xff] }
  0x12   :  { %622 = vmatpush1.msra.mxu1 %v238_v31  ;;  %462 = vmatprep.subr.mxu0 %v173_v32  ;;  %v229_v49 = vld [vmem:[%s3489_s1 + $0x238] sm:$0xff]  ;;  %v228_v51 = vld [vmem:[%s3489_s1 + $0x230] sm:$0xff]  ;;  %v227_v53 = vld [vmem:[%s3489_s1 + $0x228] sm:$0xff] }
  0x13   :  { %623 = vmatprep.subr.mxu1 %v237_v33  ;;  %463 = vmatpush1.msra.mxu0 %v172_v34  ;;  %v162_v54 = vld [vmem:[%s3489_s1 + $0x20] sm:$0xff]  ;;  %v161_v56 = vld [vmem:[%s3489_s1 + $0x18] sm:$0xff]  ;;  %v160_v58 = vld [vmem:[%s3489_s1 + $0x10] sm:$0xff] }
  0x14   :  { %624 = vmatpush1.msra.mxu1 %v236_v35  ;;  %464 = vmatprep.subr.mxu0 %v171_v36  ;;  %v226_v55 = vld [vmem:[%s3489_s1 + $0x220] sm:$0xff]  ;;  %v225_v57 = vld [vmem:[%s3489_s1 + $0x218] sm:$0xff]  ;;  %v224_v59 = vld [vmem:[%s3489_s1 + $0x210] sm:$0xff] }
  0x15   :  { %625 = vmatprep.subr.mxu1 %v235_v37  ;;  %465 = vmatpush1.msra.mxu0 %v170_v38  ;;  %v159_v60 = vld [vmem:[%s3489_s1 + $0x8] sm:$0xff]  ;;  %v158_v62 = vld [vmem:[%s3489_s1] sm:$0xff]  ;;  %v221_v0 = vld [vmem:[%s3489_s1 + $0x1f8] sm:$0xff] }
  0x16   :  { %626 = vmatpush1.msra.mxu1 %v234_v39  ;;  %466 = vmatprep.subr.mxu0 %v169_v40  ;;  %v223_v61 = vld [vmem:[%s3489_s1 + $0x208] sm:$0xff]  ;;  %v222_v63 = vld [vmem:[%s3489_s1 + $0x200] sm:$0xff]  ;;  %v285_v1 = vld [vmem:[%s3489_s1 + $0x3f8] sm:$0xff] }
  0x17   :  { %627 = vmatprep.subr.mxu1 %v233_v41  ;;  %467 = vmatpush1.msra.mxu0 %v168_v42  ;;  %v220_v2 = vld [vmem:[%s3489_s1 + $0x1f0] sm:$0xff]  ;;  %v219_v4 = vld [vmem:[%s3489_s1 + $0x1e8] sm:$0xff]  ;;  %v218_v6 = vld [vmem:[%s3489_s1 + $0x1e0] sm:$0xff] }
  0x18   :  { %628 = vmatpush1.msra.mxu1 %v232_v43  ;;  %468 = vmatprep.subr.mxu0 %v167_v44  ;;  %v284_v3 = vld [vmem:[%s3489_s1 + $0x3f0] sm:$0xff]  ;;  %v283_v5 = vld [vmem:[%s3489_s1 + $0x3e8] sm:$0xff]  ;;  %v282_v7 = vld [vmem:[%s3489_s1 + $0x3e0] sm:$0xff] }
  0x19   :  { %629 = vmatprep.subr.mxu1 %v231_v45  ;;  %469 = vmatpush1.msra.mxu0 %v166_v46  ;;  %v217_v8 = vld [vmem:[%s3489_s1 + $0x1d8] sm:$0xff]  ;;  %v216_v10 = vld [vmem:[%s3489_s1 + $0x1d0] sm:$0xff]  ;;  %v215_v12 = vld [vmem:[%s3489_s1 + $0x1c8] sm:$0xff] }
  0x1a   :  { %630 = vmatpush1.msra.mxu1 %v230_v47  ;;  %470 = vmatprep.subr.mxu0 %v165_v48  ;;  %v281_v9 = vld [vmem:[%s3489_s1 + $0x3d8] sm:$0xff]  ;;  %v280_v11 = vld [vmem:[%s3489_s1 + $0x3d0] sm:$0xff]  ;;  %v279_v13 = vld [vmem:[%s3489_s1 + $0x3c8] sm:$0xff] }
  0x1b   :  { %631 = vmatprep.subr.mxu1 %v229_v49  ;;  %471 = vmatpush1.msra.mxu0 %v164_v50  ;;  %v214_v14 = vld [vmem:[%s3489_s1 + $0x1c0] sm:$0xff]  ;;  %v213_v16 = vld [vmem:[%s3489_s1 + $0x1b8] sm:$0xff]  ;;  %v212_v18 = vld [vmem:[%s3489_s1 + $0x1b0] sm:$0xff] }
  0x1c   :  { %632 = vmatpush1.msra.mxu1 %v228_v51  ;;  %472 = vmatprep.subr.mxu0 %v163_v52  ;;  %v278_v15 = vld [vmem:[%s3489_s1 + $0x3c0] sm:$0xff]  ;;  %v277_v17 = vld [vmem:[%s3489_s1 + $0x3b8] sm:$0xff]  ;;  %v276_v19 = vld [vmem:[%s3489_s1 + $0x3b0] sm:$0xff] }
  0x1d   :  { %633 = vmatprep.subr.mxu1 %v227_v53  ;;  %473 = vmatpush1.msra.mxu0 %v162_v54  ;;  %v211_v20 = vld [vmem:[%s3489_s1 + $0x1a8] sm:$0xff]  ;;  %v210_v22 = vld [vmem:[%s3489_s1 + $0x1a0] sm:$0xff]  ;;  %v209_v24 = vld [vmem:[%s3489_s1 + $0x198] sm:$0xff] }
  0x1e   :  { %634 = vmatpush1.msra.mxu1 %v226_v55  ;;  %474 = vmatprep.subr.mxu0 %v161_v56  ;;  %v275_v21 = vld [vmem:[%s3489_s1 + $0x3a8] sm:$0xff]  ;;  %v274_v23 = vld [vmem:[%s3489_s1 + $0x3a0] sm:$0xff]  ;;  %v273_v25 = vld [vmem:[%s3489_s1 + $0x398] sm:$0xff] }
  0x1f   :  { %635 = vmatprep.subr.mxu1 %v225_v57  ;;  %475 = vmatpush1.msra.mxu0 %v160_v58  ;;  %v208_v26 = vld [vmem:[%s3489_s1 + $0x190] sm:$0xff]  ;;  %v207_v28 = vld [vmem:[%s3489_s1 + $0x188] sm:$0xff]  ;;  %v206_v30 = vld [vmem:[%s3489_s1 + $0x180] sm:$0xff] }
  0x20   :  { %636 = vmatpush1.msra.mxu1 %v224_v59  ;;  %476 = vmatprep.subr.mxu0 %v159_v60  ;;  %v272_v27 = vld [vmem:[%s3489_s1 + $0x390] sm:$0xff]  ;;  %v271_v29 = vld [vmem:[%s3489_s1 + $0x388] sm:$0xff]  ;;  %v270_v31 = vld [vmem:[%s3489_s1 + $0x380] sm:$0xff] }
  0x21   :  { %637 = vmatprep.subr.mxu1 %v223_v61  ;;  %477 = vmatpush1.msra.mxu0 %v158_v62  ;;  %v205_v32 = vld [vmem:[%s3489_s1 + $0x178] sm:$0xff]  ;;  %v204_v34 = vld [vmem:[%s3489_s1 + $0x170] sm:$0xff]  ;;  %v203_v36 = vld [vmem:[%s3489_s1 + $0x168] sm:$0xff] }
  0x22   :  { %638 = vmatpush1.msra.mxu1 %v222_v63  ;;  %478 = vmatprep.subr.mxu0 %v221_v0  ;;  %v269_v33 = vld [vmem:[%s3489_s1 + $0x378] sm:$0xff]  ;;  %v268_v35 = vld [vmem:[%s3489_s1 + $0x370] sm:$0xff]  ;;  %v267_v37 = vld [vmem:[%s3489_s1 + $0x368] sm:$0xff] }
  0x23   :  { %639 = vmatprep.subr.mxu1 %v285_v1  ;;  %479 = vmatpush2.msra.mxu0 %v220_v2  ;;  %v202_v38 = vld [vmem:[%s3489_s1 + $0x160] sm:$0xff]  ;;  %v201_v40 = vld [vmem:[%s3489_s1 + $0x158] sm:$0xff]  ;;  %v200_v42 = vld [vmem:[%s3489_s1 + $0x150] sm:$0xff] }
  0x24   :  { %640 = vmatpush2.msra.mxu1 %v284_v3  ;;  %480 = vmatprep.subr.mxu0 %v219_v4  ;;  %v266_v39 = vld [vmem:[%s3489_s1 + $0x360] sm:$0xff]  ;;  %v265_v41 = vld [vmem:[%s3489_s1 + $0x358] sm:$0xff]  ;;  %v264_v43 = vld [vmem:[%s3489_s1 + $0x350] sm:$0xff] }
  0x25   :  { %641 = vmatprep.subr.mxu1 %v283_v5  ;;  %481 = vmatpush2.msra.mxu0 %v218_v6  ;;  %v199_v44 = vld [vmem:[%s3489_s1 + $0x148] sm:$0xff]  ;;  %v198_v46 = vld [vmem:[%s3489_s1 + $0x140] sm:$0xff]  ;;  %v197_v48 = vld [vmem:[%s3489_s1 + $0x138] sm:$0xff] }
  0x26   :  { %642 = vmatpush2.msra.mxu1 %v282_v7  ;;  %482 = vmatprep.subr.mxu0 %v217_v8  ;;  %v263_v45 = vld [vmem:[%s3489_s1 + $0x348] sm:$0xff]  ;;  %v262_v47 = vld [vmem:[%s3489_s1 + $0x340] sm:$0xff]  ;;  %v261_v49 = vld [vmem:[%s3489_s1 + $0x338] sm:$0xff] }
  0x27   :  { %643 = vmatprep.subr.mxu1 %v281_v9  ;;  %483 = vmatpush2.msra.mxu0 %v216_v10  ;;  %v196_v50 = vld [vmem:[%s3489_s1 + $0x130] sm:$0xff]  ;;  %v195_v52 = vld [vmem:[%s3489_s1 + $0x128] sm:$0xff]  ;;  %v194_v54 = vld [vmem:[%s3489_s1 + $0x120] sm:$0xff] }
  0x28   :  { %644 = vmatpush2.msra.mxu1 %v280_v11  ;;  %484 = vmatprep.subr.mxu0 %v215_v12  ;;  %v260_v51 = vld [vmem:[%s3489_s1 + $0x330] sm:$0xff]  ;;  %v259_v53 = vld [vmem:[%s3489_s1 + $0x328] sm:$0xff]  ;;  %v258_v55 = vld [vmem:[%s3489_s1 + $0x320] sm:$0xff] }
  0x29   :  { %645 = vmatprep.subr.mxu1 %v279_v13  ;;  %485 = vmatpush2.msra.mxu0 %v214_v14  ;;  %v193_v56 = vld [vmem:[%s3489_s1 + $0x118] sm:$0xff]  ;;  %v192_v58 = vld [vmem:[%s3489_s1 + $0x110] sm:$0xff]  ;;  %v191_v60 = vld [vmem:[%s3489_s1 + $0x108] sm:$0xff] }
  0x2a   :  { %646 = vmatpush2.msra.mxu1 %v278_v15  ;;  %486 = vmatprep.subr.mxu0 %v213_v16  ;;  %v257_v57 = vld [vmem:[%s3489_s1 + $0x318] sm:$0xff]  ;;  %v256_v59 = vld [vmem:[%s3489_s1 + $0x310] sm:$0xff]  ;;  %v255_v61 = vld [vmem:[%s3489_s1 + $0x308] sm:$0xff] }
  0x2b   :  { %647 = vmatprep.subr.mxu1 %v277_v17  ;;  %487 = vmatpush2.msra.mxu0 %v212_v18  ;;  %v190_v62 = vld [vmem:[%s3489_s1 + $0x100] sm:$0xff]  ;;  %v15_v63 = vld [vmem:[%s3490_s0 + $0x8] sm:$0xff]  ;;  %v17_v1 = vld [vmem:[%s3490_s0 + $0x18] sm:$0xff] }
  0x2c   :  { %648 = vmatpush2.msra.mxu1 %v276_v19  ;;  %488 = vmatprep.subr.mxu0 %v211_v20  ;;  %v254_v0 = vld [vmem:[%s3489_s1 + $0x300] sm:$0xff]  ;;  %v16_v3 = vld [vmem:[%s3490_s0 + $0x10] sm:$0xff]  ;;  %v317_v4 = vld [vmem:[%s3489_s1 + $0x4f8] sm:$0xff] }
  0x2d   :  { %649 = vmatprep.subr.mxu1 %v275_v21  ;;  %489 = vmatpush2.msra.mxu0 %v210_v22  ;;  %v14_v2 = vld [vmem:[%s3490_s0] sm:$0xff]  ;;  %v381_v5 = vld [vmem:[%s3489_s1 + $0x6f8] sm:$0xff]  ;;  %v316_v6 = vld [vmem:[%s3489_s1 + $0x4f0] sm:$0xff] }
  0x2e   :  { %650 = vmatpush2.msra.mxu1 %v274_v23  ;;  %490 = vmatprep.subr.mxu0 %v209_v24  ;;  %v24_v7 = vld [vmem:[%s3490_s0 + $0x50] sm:$0xff]  ;;  %v315_v8 = vld [vmem:[%s3489_s1 + $0x4e8] sm:$0xff]  ;;  %v26_v9 = vld [vmem:[%s3490_s0 + $0x60] sm:$0xff] }
  0x2f   :  { %651 = vmatprep.subr.mxu1 %v273_v25  ;;  %491 = vmatpush2.msra.mxu0 %v208_v26  ;;  %v314_v10 = vld [vmem:[%s3489_s1 + $0x4e0] sm:$0xff]  ;;  %v380_v11 = vld [vmem:[%s3489_s1 + $0x6f0] sm:$0xff]  ;;  %v23_v12 = vld [vmem:[%s3490_s0 + $0x48] sm:$0xff] }
  0x30   :  { %652 = vmatpush2.msra.mxu1 %v272_v27  ;;  %492 = vmatprep.subr.mxu0 %v207_v28  ;;  %v25_v13 = vld [vmem:[%s3490_s0 + $0x58] sm:$0xff]  ;;  %v379_v15 = vld [vmem:[%s3489_s1 + $0x6e8] sm:$0xff]  ;;  %v312_v16 = vld [vmem:[%s3489_s1 + $0x4d0] sm:$0xff] }
  0x31   :  { %653 = vmatprep.subr.mxu1 %v271_v29  ;;  %493 = vmatpush2.msra.mxu0 %v206_v30  ;;  %v313_v14 = vld [vmem:[%s3489_s1 + $0x4d8] sm:$0xff]  ;;  %v378_v17 = vld [vmem:[%s3489_s1 + $0x6e0] sm:$0xff]  ;;  %v311_v18 = vld [vmem:[%s3489_s1 + $0x4c8] sm:$0xff] }
  0x32   :  { %654 = vmatpush2.msra.mxu1 %v270_v31  ;;  %494 = vmatprep.subr.mxu0 %v205_v32  ;;  %v377_v19 = vld [vmem:[%s3489_s1 + $0x6d8] sm:$0xff]  ;;  %v35_v21 = vld [vmem:[%s3490_s0 + $0xa8] sm:$0xff]  ;;  %v310_v22 = vld [vmem:[%s3489_s1 + $0x4c0] sm:$0xff] }
  0x33   :  { %655 = vmatprep.subr.mxu1 %v269_v33  ;;  %495 = vmatpush2.msra.mxu0 %v204_v34  ;;  %v33_v20 = vld [vmem:[%s3490_s0 + $0x98] sm:$0xff]  ;;  %v376_v23 = vld [vmem:[%s3489_s1 + $0x6d0] sm:$0xff]  ;;  %v34_v25 = vld [vmem:[%s3490_s0 + $0xa0] sm:$0xff] }
  0x34   :  { %656 = vmatpush2.msra.mxu1 %v268_v35  ;;  %496 = vmatprep.subr.mxu0 %v203_v36  ;;  %v32_v24 = vld [vmem:[%s3490_s0 + $0x90] sm:$0xff]  ;;  %v309_v26 = vld [vmem:[%s3489_s1 + $0x4b8] sm:$0xff]  ;;  %v375_v27 = vld [vmem:[%s3489_s1 + $0x6c8] sm:$0xff] }
  0x35   :  { %657 = vmatprep.subr.mxu1 %v267_v37  ;;  %497 = vmatpush2.msra.mxu0 %v202_v38  ;;  %v308_v28 = vld [vmem:[%s3489_s1 + $0x4b0] sm:$0xff]  ;;  %v374_v29 = vld [vmem:[%s3489_s1 + $0x6c0] sm:$0xff]  ;;  %v307_v30 = vld [vmem:[%s3489_s1 + $0x4a8] sm:$0xff] }
  0x36   :  { %658 = vmatpush2.msra.mxu1 %v266_v39  ;;  %498 = vmatprep.subr.mxu0 %v201_v40  ;;  %v373_v31 = vld [vmem:[%s3489_s1 + $0x6b8] sm:$0xff]  ;;  %v42_v32 = vld [vmem:[%s3490_s0 + $0xe0] sm:$0xff]  ;;  %v44_v33 = vld [vmem:[%s3490_s0 + $0xf0] sm:$0xff] }
  0x37   :  { %659 = vmatprep.subr.mxu1 %v265_v41  ;;  %499 = vmatpush2.msra.mxu0 %v200_v42  ;;  %v306_v34 = vld [vmem:[%s3489_s1 + $0x4a0] sm:$0xff]  ;;  %v372_v35 = vld [vmem:[%s3489_s1 + $0x6b0] sm:$0xff]  ;;  %v41_v36 = vld [vmem:[%s3490_s0 + $0xd8] sm:$0xff] }
  0x38   :  { %660 = vmatpush2.msra.mxu1 %v264_v43  ;;  %500 = vmatprep.subr.mxu0 %v199_v44  ;;  %v43_v37 = vld [vmem:[%s3490_s0 + $0xe8] sm:$0xff]  ;;  %v305_v38 = vld [vmem:[%s3489_s1 + $0x498] sm:$0xff]  ;;  %v304_v40 = vld [vmem:[%s3489_s1 + $0x490] sm:$0xff] }
  0x39   :  { %661 = vmatprep.subr.mxu1 %v263_v45  ;;  %501 = vmatpush2.msra.mxu0 %v198_v46  ;;  %v371_v39 = vld [vmem:[%s3489_s1 + $0x6a8] sm:$0xff]  ;;  %v370_v41 = vld [vmem:[%s3489_s1 + $0x6a0] sm:$0xff]  ;;  %v369_v43 = vld [vmem:[%s3489_s1 + $0x698] sm:$0xff] }
  0x3a   :  { %662 = vmatpush2.msra.mxu1 %v262_v47  ;;  %502 = vmatprep.subr.mxu0 %v197_v48  ;;  %v303_v42 = vld [vmem:[%s3489_s1 + $0x488] sm:$0xff]  ;;  %v53_v45 = vld [vmem:[%s3490_s0 + $0x138] sm:$0xff]  ;;  %v302_v46 = vld [vmem:[%s3489_s1 + $0x480] sm:$0xff] }
  0x3b   :  { %663 = vmatprep.subr.mxu1 %v261_v49  ;;  %503 = vmatpush2.msra.mxu0 %v196_v50  ;;  %v51_v44 = vld [vmem:[%s3490_s0 + $0x128] sm:$0xff]  ;;  %v368_v47 = vld [vmem:[%s3489_s1 + $0x690] sm:$0xff]  ;;  %v50_v48 = vld [vmem:[%s3490_s0 + $0x120] sm:$0xff] }
  0x3c   :  { %664 = vmatpush2.msra.mxu1 %v260_v51  ;;  %504 = vmatprep.subr.mxu0 %v195_v52  ;;  %v52_v49 = vld [vmem:[%s3490_s0 + $0x130] sm:$0xff]  ;;  %v301_v50 = vld [vmem:[%s3489_s1 + $0x478] sm:$0xff]  ;;  %v367_v51 = vld [vmem:[%s3489_s1 + $0x688] sm:$0xff] }
  0x3d   :  { %665 = vmatprep.subr.mxu1 %v259_v53  ;;  %505 = vmatpush2.msra.mxu0 %v194_v54  ;;  %v300_v52 = vld [vmem:[%s3489_s1 + $0x470] sm:$0xff]  ;;  %v366_v53 = vld [vmem:[%s3489_s1 + $0x680] sm:$0xff]  ;;  %v299_v54 = vld [vmem:[%s3489_s1 + $0x468] sm:$0xff] }
  0x3e   :  { %666 = vmatpush2.msra.mxu1 %v258_v55  ;;  %506 = vmatprep.subr.mxu0 %v193_v56  ;;  %v365_v55 = vld [vmem:[%s3489_s1 + $0x678] sm:$0xff]  ;;  %v60_v56 = vld [vmem:[%s3490_s0 + $0x170] sm:$0xff] }
  0x3f   :  { %667 = vmatprep.subr.mxu1 %v257_v57  ;;  %507 = vmatpush2.msra.mxu0 %v192_v58  ;;  %v62_v57 = vld [vmem:[%s3490_s0 + $0x180] sm:$0xff] }
  0x40   :  { %668 = vmatpush2.msra.mxu1 %v256_v59  ;;  %508 = vmatprep.subr.mxu0 %v191_v60  ;;  %v298_v58 = vld [vmem:[%s3489_s1 + $0x460] sm:$0xff]  ;;  %v364_v59 = vld [vmem:[%s3489_s1 + $0x670] sm:$0xff]  ;;  %v59_v60 = vld [vmem:[%s3490_s0 + $0x168] sm:$0xff] }
  0x41   :  { %669 = vmatprep.subr.mxu1 %v255_v61  ;;  %509 = vmatpush2.msra.mxu0 %v190_v62  ;;  %v61_v61 = vld [vmem:[%s3490_s0 + $0x178] sm:$0xff] }
  0x42   :  { %510 = vmatprep.mubr.f32.mxu0 %v15_v63  ;;  %670 = vmatpush2.msra.mxu1 %v254_v0  ;;  %v297_v62 = vld [vmem:[%s3489_s1 + $0x458] sm:$0xff]  ;;  %v363_v63 = vld [vmem:[%s3489_s1 + $0x668] sm:$0xff]  ;;  %v296_v0 = vld [vmem:[%s3489_s1 + $0x450] sm:$0xff] }
  0x43   :  { %671 = vmatprep.mubr.f32.mxu1 %v17_v1  ;;  %511 = vmatmul.mubr.f32.vlgmr.msra.gmra.mxu0 %v14_v2  ;;  %v362_v1 = vld [vmem:[%s3489_s1 + $0x660] sm:$0xff]  ;;  %v295_v2 = vld [vmem:[%s3489_s1 + $0x448] sm:$0xff] }
  0x44   :  { %672 = vmatmul.mubr.f32.vlgmr.msra.gmra.mxu1 %v16_v3  ;;  %768 = vmatprep.subr.mxu0 %v317_v4  ;;  %v361_v3 = vld [vmem:[%s3489_s1 + $0x658] sm:$0xff] }
  0x45   :  { %929 = vmatprep.subr.mxu1 %v381_v5  ;;  %769 = vmatpush1.msra.mxu0 %v316_v6  ;;  %v69_v4 = vld [vmem:[%s3490_s0 + $0x1b8] sm:$0xff]  ;;  %v71_v5 = vld [vmem:[%s3490_s0 + $0x1c8] sm:$0xff]  ;;  %v294_v6 = vld [vmem:[%s3489_s1 + $0x440] sm:$0xff] }
  0x46   :  { %516 = vmatprep.mubr.f32.mxu0 %v24_v7  ;;  %770 = vmatprep.subr.mxu0 %v315_v8  ;;  %v360_v7 = vld [vmem:[%s3489_s1 + $0x650] sm:$0xff] }
  0x47   :  { %677 = vmatprep.mubr.f32.mxu1 %v26_v9  ;;  %771 = vmatpush1.msra.mxu0 %v314_v10  ;;  %v68_v8 = vld [vmem:[%s3490_s0 + $0x1b0] sm:$0xff]  ;;  %v70_v9 = vld [vmem:[%s3490_s0 + $0x1c0] sm:$0xff]  ;;  %v293_v10 = vld [vmem:[%s3489_s1 + $0x438] sm:$0xff] }
  0x48   :  { %930 = vmatpush1.msra.mxu1 %v380_v11  ;;  %517 = vmatmul.mubr.f32.gmra.mxu0 %v23_v12  ;;  %v359_v11 = vld [vmem:[%s3489_s1 + $0x648] sm:$0xff]  ;;  %v292_v12 = vld [vmem:[%s3489_s1 + $0x430] sm:$0xff] }
  0x49   :  { %678 = vmatmul.mubr.f32.gmra.mxu1 %v25_v13  ;;  %772 = vmatprep.subr.mxu0 %v313_v14  ;;  %v358_v13 = vld [vmem:[%s3489_s1 + $0x640] sm:$0xff]  ;;  %v291_v14 = vld [vmem:[%s3489_s1 + $0x428] sm:$0xff] }
  0x4a   :  { %931 = vmatprep.subr.mxu1 %v379_v15  ;;  %773 = vmatpush1.msra.mxu0 %v312_v16  ;;  %v357_v15 = vld [vmem:[%s3489_s1 + $0x638] sm:$0xff]  ;;  %v78_v16 = vld [vmem:[%s3490_s0 + $0x200] sm:$0xff] }
  0x4b   :  { %932 = vmatpush1.msra.mxu1 %v378_v17  ;;  %774 = vmatprep.subr.mxu0 %v311_v18  ;;  %v80_v17 = vld [vmem:[%s3490_s0 + $0x210] sm:$0xff]  ;;  %v290_v18 = vld [vmem:[%s3489_s1 + $0x420] sm:$0xff] }
  0x4c   :  { %933 = vmatprep.subr.mxu1 %v377_v19  ;;  %522 = vmatprep.mubr.f32.mxu0 %v33_v20  ;;  %v356_v19 = vld [vmem:[%s3489_s1 + $0x630] sm:$0xff]  ;;  %v77_v20 = vld [vmem:[%s3490_s0 + $0x1f8] sm:$0xff] }
  0x4d   :  { %683 = vmatprep.mubr.f32.mxu1 %v35_v21  ;;  %775 = vmatpush1.msra.mxu0 %v310_v22  ;;  %v79_v21 = vld [vmem:[%s3490_s0 + $0x208] sm:$0xff]  ;;  %v289_v22 = vld [vmem:[%s3489_s1 + $0x418] sm:$0xff] }
  0x4e   :  { %934 = vmatpush1.msra.mxu1 %v376_v23  ;;  %523 = vmatmul.mubr.f32.gmra.mxu0 %v32_v24  ;;  %v355_v23 = vld [vmem:[%s3489_s1 + $0x628] sm:$0xff]  ;;  %v288_v24 = vld [vmem:[%s3489_s1 + $0x410] sm:$0xff] }
  0x4f   :  { %684 = vmatmul.mubr.f32.gmra.mxu1 %v34_v25  ;;  %776 = vmatprep.subr.mxu0 %v309_v26  ;;  %v354_v25 = vld [vmem:[%s3489_s1 + $0x620] sm:$0xff]  ;;  %v287_v26 = vld [vmem:[%s3489_s1 + $0x408] sm:$0xff] }
  0x50   :  { %935 = vmatprep.subr.mxu1 %v375_v27  ;;  %777 = vmatpush1.msra.mxu0 %v308_v28  ;;  %v353_v27 = vld [vmem:[%s3489_s1 + $0x618] sm:$0xff]  ;;  %v87_v28 = vld [vmem:[%s3490_s0 + $0x248] sm:$0xff] }
  0x51   :  { %936 = vmatpush1.msra.mxu1 %v374_v29  ;;  %778 = vmatprep.subr.mxu0 %v307_v30  ;;  %v89_v29 = vld [vmem:[%s3490_s0 + $0x258] sm:$0xff]  ;;  %v286_v30 = vld [vmem:[%s3489_s1 + $0x400] sm:$0xff] }
  0x52   :  { %937 = vmatprep.subr.mxu1 %v373_v31  ;;  %528 = vmatprep.mubr.f32.mxu0 %v42_v32  ;;  %v352_v31 = vld [vmem:[%s3489_s1 + $0x610] sm:$0xff]  ;;  %v86_v32 = vld [vmem:[%s3490_s0 + $0x240] sm:$0xff] }
  0x53   :  { %689 = vmatprep.mubr.f32.mxu1 %v44_v33  ;;  %779 = vmatpush1.msra.mxu0 %v306_v34  ;;  %v88_v33 = vld [vmem:[%s3490_s0 + $0x250] sm:$0xff]  ;;  %v349_v34 = vld [vmem:[%s3489_s1 + $0x5f8] sm:$0xff] }
  0x54   :  { %938 = vmatpush1.msra.mxu1 %v372_v35  ;;  %529 = vmatmul.mubr.f32.gmra.mxu0 %v41_v36  ;;  %v351_v35 = vld [vmem:[%s3489_s1 + $0x608] sm:$0xff]  ;;  %v348_v36 = vld [vmem:[%s3489_s1 + $0x5f0] sm:$0xff] }
  0x55   :  { %690 = vmatmul.mubr.f32.gmra.mxu1 %v43_v37  ;;  %780 = vmatprep.subr.mxu0 %v305_v38  ;;  %v350_v37 = vld [vmem:[%s3489_s1 + $0x600] sm:$0xff]  ;;  %v347_v38 = vld [vmem:[%s3489_s1 + $0x5e8] sm:$0xff] }
  0x56   :  { %939 = vmatprep.subr.mxu1 %v371_v39  ;;  %781 = vmatpush1.msra.mxu0 %v304_v40  ;;  %v413_v39 = vld [vmem:[%s3489_s1 + $0x7f8] sm:$0xff]  ;;  %v96_v40 = vld [vmem:[%s3490_s0 + $0x290] sm:$0xff] }
  0x57   :  { %940 = vmatpush1.msra.mxu1 %v370_v41  ;;  %782 = vmatprep.subr.mxu0 %v303_v42  ;;  %v98_v41 = vld [vmem:[%s3490_s0 + $0x2a0] sm:$0xff] }
  0x58   :  { %941 = vmatprep.subr.mxu1 %v369_v43  ;;  %534 = vmatprep.mubr.f32.mxu0 %v51_v44  ;;  %v346_v42 = vld [vmem:[%s3489_s1 + $0x5e0] sm:$0xff]  ;;  %v412_v43 = vld [vmem:[%s3489_s1 + $0x7f0] sm:$0xff]  ;;  %v95_v44 = vld [vmem:[%s3490_s0 + $0x288] sm:$0xff] }
  0x59   :  { %695 = vmatprep.mubr.f32.mxu1 %v53_v45  ;;  %783 = vmatpush1.msra.mxu0 %v302_v46  ;;  %v97_v45 = vld [vmem:[%s3490_s0 + $0x298] sm:$0xff] }
  0x5a   :  { %942 = vmatpush1.msra.mxu1 %v368_v47  ;;  %535 = vmatmul.mubr.f32.gmra.mxu0 %v50_v48  ;;  %v345_v46 = vld [vmem:[%s3489_s1 + $0x5d8] sm:$0xff]  ;;  %v411_v47 = vld [vmem:[%s3489_s1 + $0x7e8] sm:$0xff]  ;;  %v344_v48 = vld [vmem:[%s3489_s1 + $0x5d0] sm:$0xff] }
  0x5b   :  { %696 = vmatmul.mubr.f32.gmra.mxu1 %v52_v49  ;;  %784 = vmatprep.subr.mxu0 %v301_v50  ;;  %v410_v49 = vld [vmem:[%s3489_s1 + $0x7e0] sm:$0xff]  ;;  %v343_v50 = vld [vmem:[%s3489_s1 + $0x5c8] sm:$0xff] }
  0x5c   :  { %943 = vmatprep.subr.mxu1 %v367_v51  ;;  %785 = vmatpush1.msra.mxu0 %v300_v52  ;;  %v409_v51 = vld [vmem:[%s3489_s1 + $0x7d8] sm:$0xff] }
  0x5d   :  { %944 = vmatpush1.msra.mxu1 %v366_v53  ;;  %786 = vmatprep.subr.mxu0 %v299_v54  ;;  %v105_v52 = vld [vmem:[%s3490_s0 + $0x2d8] sm:$0xff]  ;;  %v107_v53 = vld [vmem:[%s3490_s0 + $0x2e8] sm:$0xff]  ;;  %v342_v54 = vld [vmem:[%s3489_s1 + $0x5c0] sm:$0xff] }
  0x5e   :  { %945 = vmatprep.subr.mxu1 %v365_v55  ;;  %540 = vmatprep.mubr.f32.mxu0 %v60_v56  ;;  %v408_v55 = vld [vmem:[%s3489_s1 + $0x7d0] sm:$0xff] }
  0x5f   :  { %701 = vmatprep.mubr.f32.mxu1 %v62_v57  ;;  %787 = vmatpush1.msra.mxu0 %v298_v58  ;;  %v104_v56 = vld [vmem:[%s3490_s0 + $0x2d0] sm:$0xff]  ;;  %v106_v57 = vld [vmem:[%s3490_s0 + $0x2e0] sm:$0xff]  ;;  %v341_v58 = vld [vmem:[%s3489_s1 + $0x5b8] sm:$0xff] }
  0x60   :  { %946 = vmatpush1.msra.mxu1 %v364_v59  ;;  %541 = vmatmul.mubr.f32.gmra.mxu0 %v59_v60  ;;  %v407_v59 = vld [vmem:[%s3489_s1 + $0x7c8] sm:$0xff]  ;;  %v340_v60 = vld [vmem:[%s3489_s1 + $0x5b0] sm:$0xff] }
  0x61   :  { %702 = vmatmul.mubr.f32.gmra.mxu1 %v61_v61  ;;  %788 = vmatprep.subr.mxu0 %v297_v62  ;;  %v406_v61 = vld [vmem:[%s3489_s1 + $0x7c0] sm:$0xff]  ;;  %v339_v62 = vld [vmem:[%s3489_s1 + $0x5a8] sm:$0xff] }
  0x62   :  { %947 = vmatprep.subr.mxu1 %v363_v63  ;;  %789 = vmatpush1.msra.mxu0 %v296_v0  ;;  %v405_v63 = vld [vmem:[%s3489_s1 + $0x7b8] sm:$0xff]  ;;  %v114_v0 = vld [vmem:[%s3490_s0 + $0x320] sm:$0xff] }
  0x63   :  { %948 = vmatpush1.msra.mxu1 %v362_v1  ;;  %790 = vmatprep.subr.mxu0 %v295_v2  ;;  %v116_v1 = vld [vmem:[%s3490_s0 + $0x330] sm:$0xff]  ;;  %v338_v2 = vld [vmem:[%s3489_s1 + $0x5a0] sm:$0xff] }
  0x64   :  { %949 = vmatprep.subr.mxu1 %v361_v3  ;;  %546 = vmatprep.mubr.f32.mxu0 %v69_v4  ;;  %v404_v3 = vld [vmem:[%s3489_s1 + $0x7b0] sm:$0xff]  ;;  %v113_v4 = vld [vmem:[%s3490_s0 + $0x318] sm:$0xff] }
  0x65   :  { %707 = vmatprep.mubr.f32.mxu1 %v71_v5  ;;  %791 = vmatpush1.msra.mxu0 %v294_v6  ;;  %v115_v5 = vld [vmem:[%s3490_s0 + $0x328] sm:$0xff]  ;;  %v337_v6 = vld [vmem:[%s3489_s1 + $0x598] sm:$0xff] }
  0x66   :  { %950 = vmatpush1.msra.mxu1 %v360_v7  ;;  %547 = vmatmul.mubr.f32.gmra.mxu0 %v68_v8  ;;  %v403_v7 = vld [vmem:[%s3489_s1 + $0x7a8] sm:$0xff]  ;;  %v336_v8 = vld [vmem:[%s3489_s1 + $0x590] sm:$0xff] }
  0x67   :  { %708 = vmatmul.mubr.f32.gmra.mxu1 %v70_v9  ;;  %792 = vmatprep.subr.mxu0 %v293_v10  ;;  %v402_v9 = vld [vmem:[%s3489_s1 + $0x7a0] sm:$0xff]  ;;  %v335_v10 = vld [vmem:[%s3489_s1 + $0x588] sm:$0xff] }
  0x68   :  { %951 = vmatprep.subr.mxu1 %v359_v11  ;;  %793 = vmatpush1.msra.mxu0 %v292_v12  ;;  %v401_v11 = vld [vmem:[%s3489_s1 + $0x798] sm:$0xff]  ;;  %v123_v12 = vld [vmem:[%s3490_s0 + $0x368] sm:$0xff] }
  0x69   :  { %952 = vmatpush1.msra.mxu1 %v358_v13  ;;  %794 = vmatprep.subr.mxu0 %v291_v14  ;;  %v125_v13 = vld [vmem:[%s3490_s0 + $0x378] sm:$0xff]  ;;  %v334_v14 = vld [vmem:[%s3489_s1 + $0x580] sm:$0xff] }
  0x6a   :  { %953 = vmatprep.subr.mxu1 %v357_v15  ;;  %552 = vmatprep.mubr.f32.mxu0 %v78_v16  ;;  %v400_v15 = vld [vmem:[%s3489_s1 + $0x790] sm:$0xff]  ;;  %v122_v16 = vld [vmem:[%s3490_s0 + $0x360] sm:$0xff] }
  0x6b   :  { %713 = vmatprep.mubr.f32.mxu1 %v80_v17  ;;  %795 = vmatpush1.msra.mxu0 %v290_v18  ;;  %v124_v17 = vld [vmem:[%s3490_s0 + $0x370] sm:$0xff]  ;;  %v333_v18 = vld [vmem:[%s3489_s1 + $0x578] sm:$0xff] }
  0x6c   :  { %954 = vmatpush1.msra.mxu1 %v356_v19  ;;  %553 = vmatmul.mubr.f32.gmra.mxu0 %v77_v20  ;;  %v399_v19 = vld [vmem:[%s3489_s1 + $0x788] sm:$0xff]  ;;  %v332_v20 = vld [vmem:[%s3489_s1 + $0x570] sm:$0xff] }
  0x6d   :  { %714 = vmatmul.mubr.f32.gmra.mxu1 %v79_v21  ;;  %796 = vmatprep.subr.mxu0 %v289_v22  ;;  %v398_v21 = vld [vmem:[%s3489_s1 + $0x780] sm:$0xff]  ;;  %v331_v22 = vld [vmem:[%s3489_s1 + $0x568] sm:$0xff] }
  0x6e   :  { %955 = vmatprep.subr.mxu1 %v355_v23  ;;  %797 = vmatpush1.msra.mxu0 %v288_v24  ;;  %v397_v23 = vld [vmem:[%s3489_s1 + $0x778] sm:$0xff]  ;;  %v132_v24 = vld [vmem:[%s3490_s0 + $0x3b0] sm:$0xff] }
  0x6f   :  { %956 = vmatpush1.msra.mxu1 %v354_v25  ;;  %798 = vmatprep.subr.mxu0 %v287_v26  ;;  %v134_v25 = vld [vmem:[%s3490_s0 + $0x3c0] sm:$0xff] }
  0x70   :  { %957 = vmatprep.subr.mxu1 %v353_v27  ;;  %558 = vmatprep.mubr.f32.mxu0 %v87_v28  ;;  %v330_v26 = vld [vmem:[%s3489_s1 + $0x560] sm:$0xff]  ;;  %v396_v27 = vld [vmem:[%s3489_s1 + $0x770] sm:$0xff]  ;;  %v131_v28 = vld [vmem:[%s3490_s0 + $0x3a8] sm:$0xff] }
  0x71   :  { %719 = vmatprep.mubr.f32.mxu1 %v89_v29  ;;  %799 = vmatpush1.msra.mxu0 %v286_v30  ;;  %v133_v29 = vld [vmem:[%s3490_s0 + $0x3b8] sm:$0xff] }
  0x72   :  { %958 = vmatpush1.msra.mxu1 %v352_v31  ;;  %559 = vmatmul.mubr.f32.gmra.mxu0 %v86_v32  ;;  %v329_v30 = vld [vmem:[%s3489_s1 + $0x558] sm:$0xff]  ;;  %v395_v31 = vld [vmem:[%s3489_s1 + $0x768] sm:$0xff]  ;;  %v328_v32 = vld [vmem:[%s3489_s1 + $0x550] sm:$0xff] }
  0x73   :  { %720 = vmatmul.mubr.f32.gmra.mxu1 %v88_v33  ;;  %800 = vmatprep.subr.mxu0 %v349_v34  ;;  %v394_v33 = vld [vmem:[%s3489_s1 + $0x760] sm:$0xff]  ;;  %v327_v34 = vld [vmem:[%s3489_s1 + $0x548] sm:$0xff] }
  0x74   :  { %959 = vmatprep.subr.mxu1 %v351_v35  ;;  %801 = vmatpush2.msra.mxu0 %v348_v36  ;;  %v393_v35 = vld [vmem:[%s3489_s1 + $0x758] sm:$0xff] }
  0x75   :  { %960 = vmatpush1.msra.mxu1 %v350_v37  ;;  %802 = vmatprep.subr.mxu0 %v347_v38  ;;  %v141_v36 = vld [vmem:[%s3490_s0 + $0x3f8] sm:$0xff]  ;;  %v143_v37 = vld [vmem:[%s3490_s0 + $0x408] sm:$0xff]  ;;  %v326_v38 = vld [vmem:[%s3489_s1 + $0x540] sm:$0xff] }
  0x76   :  { %961 = vmatprep.subr.mxu1 %v413_v39  ;;  %564 = vmatprep.mubr.f32.mxu0 %v96_v40  ;;  %v392_v39 = vld [vmem:[%s3489_s1 + $0x750] sm:$0xff] }
  0x77   :  { %725 = vmatprep.mubr.f32.mxu1 %v98_v41  ;;  %803 = vmatpush2.msra.mxu0 %v346_v42  ;;  %v140_v40 = vld [vmem:[%s3490_s0 + $0x3f0] sm:$0xff]  ;;  %v142_v41 = vld [vmem:[%s3490_s0 + $0x400] sm:$0xff]  ;;  %v325_v42 = vld [vmem:[%s3489_s1 + $0x538] sm:$0xff] }
  0x78   :  { %962 = vmatpush2.msra.mxu1 %v412_v43  ;;  %565 = vmatmul.mubr.f32.gmra.mxu0 %v95_v44  ;;  %v391_v43 = vld [vmem:[%s3489_s1 + $0x748] sm:$0xff]  ;;  %v324_v44 = vld [vmem:[%s3489_s1 + $0x530] sm:$0xff] }
  0x79   :  { %726 = vmatmul.mubr.f32.gmra.mxu1 %v97_v45  ;;  %804 = vmatprep.subr.mxu0 %v345_v46  ;;  %v390_v45 = vld [vmem:[%s3489_s1 + $0x740] sm:$0xff]  ;;  %v323_v46 = vld [vmem:[%s3489_s1 + $0x528] sm:$0xff] }
  0x7a   :  { %963 = vmatprep.subr.mxu1 %v411_v47  ;;  %805 = vmatpush2.msra.mxu0 %v344_v48  ;;  %v389_v47 = vld [vmem:[%s3489_s1 + $0x738] sm:$0xff]  ;;  %v150_v48 = vld [vmem:[%s3490_s0 + $0x440] sm:$0xff] }
  0x7b   :  { %964 = vmatpush2.msra.mxu1 %v410_v49  ;;  %806 = vmatprep.subr.mxu0 %v343_v50  ;;  %v152_v49 = vld [vmem:[%s3490_s0 + $0x450] sm:$0xff]  ;;  %v322_v50 = vld [vmem:[%s3489_s1 + $0x520] sm:$0xff] }
  0x7c   :  { %965 = vmatprep.subr.mxu1 %v409_v51  ;;  %570 = vmatprep.mubr.f32.mxu0 %v105_v52  ;;  %v388_v51 = vld [vmem:[%s3489_s1 + $0x730] sm:$0xff]  ;;  %v149_v52 = vld [vmem:[%s3490_s0 + $0x438] sm:$0xff] }
  0x7d   :  { %731 = vmatprep.mubr.f32.mxu1 %v107_v53  ;;  %807 = vmatpush2.msra.mxu0 %v342_v54  ;;  %v151_v53 = vld [vmem:[%s3490_s0 + $0x448] sm:$0xff]  ;;  %v321_v54 = vld [vmem:[%s3489_s1 + $0x518] sm:$0xff] }
  0x7e   :  { %966 = vmatpush2.msra.mxu1 %v408_v55  ;;  %571 = vmatmul.mubr.f32.gmra.mxu0 %v104_v56  ;;  %v387_v55 = vld [vmem:[%s3489_s1 + $0x728] sm:$0xff]  ;;  %v320_v56 = vld [vmem:[%s3489_s1 + $0x510] sm:$0xff] }
  0x7f   :  { %732 = vmatmul.mubr.f32.gmra.mxu1 %v106_v57  ;;  %808 = vmatprep.subr.mxu0 %v341_v58  ;;  %v386_v57 = vld [vmem:[%s3489_s1 + $0x720] sm:$0xff]  ;;  %v319_v58 = vld [vmem:[%s3489_s1 + $0x508] sm:$0xff] }
  0x80   :  { %967 = vmatprep.subr.mxu1 %v407_v59  ;;  %809 = vmatpush2.msra.mxu0 %v340_v60  ;;  %v385_v59 = vld [vmem:[%s3489_s1 + $0x718] sm:$0xff]  ;;  %v318_v60 = vld [vmem:[%s3489_s1 + $0x500] sm:$0xff] }
  0x81   :  { %968 = vmatpush2.msra.mxu1 %v406_v61  ;;  %810 = vmatprep.subr.mxu0 %v339_v62  ;;  %v19_v61 = vld [vmem:[%s3490_s0 + $0x28] sm:$0xff]  ;;  %v384_v62 = vld [vmem:[%s3489_s1 + $0x710] sm:$0xff] }
  0x82   :  { %969 = vmatprep.subr.mxu1 %v405_v63  ;;  %576 = vmatprep.mubr.f32.mxu0 %v114_v0  ;;  %v18_v63 = vld [vmem:[%s3490_s0 + $0x20] sm:$0xff]  ;;  %v383_v0 = vld [vmem:[%s3489_s1 + $0x708] sm:$0xff] }
  0x83   :  { %737 = vmatprep.mubr.f32.mxu1 %v116_v1  ;;  %811 = vmatpush2.msra.mxu0 %v338_v2  ;;  %v21_v1 = vld [vmem:[%s3490_s0 + $0x38] sm:$0xff]  ;;  %v382_v2 = vld [vmem:[%s3489_s1 + $0x700] sm:$0xff] }
  0x84   :  { %970 = vmatpush2.msra.mxu1 %v404_v3  ;;  %577 = vmatmul.mubr.f32.gmra.mxu0 %v113_v4  ;;  %v28_v3 = vld [vmem:[%s3490_s0 + $0x70] sm:$0xff] }
  0x85   :  { %738 = vmatmul.mubr.f32.gmra.mxu1 %v115_v5  ;;  %812 = vmatprep.subr.mxu0 %v337_v6  ;;  %v20_v4 = vld [vmem:[%s3490_s0 + $0x30] sm:$0xff]  ;;  %v445_v5 = vld [vmem:[%s3489_s1 + $0x8f8] sm:$0xff]  ;;  %v27_v6 = vld [vmem:[%s3490_s0 + $0x68] sm:$0xff] }
  0x86   :  { %971 = vmatprep.subr.mxu1 %v403_v7  ;;  %813 = vmatpush2.msra.mxu0 %v336_v8  ;;  %v30_v7 = vld [vmem:[%s3490_s0 + $0x80] sm:$0xff]  ;;  %v37_v8 = vld [vmem:[%s3490_s0 + $0xb8] sm:$0xff] }
  0x87   :  { %972 = vmatpush2.msra.mxu1 %v402_v9  ;;  %814 = vmatprep.subr.mxu0 %v335_v10  ;;  %v444_v9 = vld [vmem:[%s3489_s1 + $0x8f0] sm:$0xff]  ;;  %v443_v10 = vld [vmem:[%s3489_s1 + $0x8e8] sm:$0xff] }
  0x88   :  { %973 = vmatprep.subr.mxu1 %v401_v11  ;;  %582 = vmatprep.mubr.f32.mxu0 %v123_v12  ;;  %v29_v11 = vld [vmem:[%s3490_s0 + $0x78] sm:$0xff]  ;;  %v442_v12 = vld [vmem:[%s3489_s1 + $0x8e0] sm:$0xff] }
  0x89   :  { %743 = vmatprep.mubr.f32.mxu1 %v125_v13  ;;  %815 = vmatpush2.msra.mxu0 %v334_v14  ;;  %v36_v13 = vld [vmem:[%s3490_s0 + $0xb0] sm:$0xff]  ;;  %v39_v14 = vld [vmem:[%s3490_s0 + $0xc8] sm:$0xff] }
  0x8a   :  { %974 = vmatpush2.msra.mxu1 %v400_v15  ;;  %583 = vmatmul.mubr.f32.gmra.mxu0 %v122_v16  ;;  %v46_v15 = vld [vmem:[%s3490_s0 + $0x100] sm:$0xff]  ;;  %v441_v16 = vld [vmem:[%s3489_s1 + $0x8d8] sm:$0xff] }
  0x8b   :  { %744 = vmatmul.mubr.f32.gmra.mxu1 %v124_v17  ;;  %816 = vmatprep.subr.mxu0 %v333_v18  ;;  %v440_v17 = vld [vmem:[%s3489_s1 + $0x8d0] sm:$0xff]  ;;  %v38_v18 = vld [vmem:[%s3490_s0 + $0xc0] sm:$0xff] }
  0x8c   :  { %975 = vmatprep.subr.mxu1 %v399_v19  ;;  %817 = vmatpush2.msra.mxu0 %v332_v20  ;;  %v439_v19 = vld [vmem:[%s3489_s1 + $0x8c8] sm:$0xff]  ;;  %v45_v20 = vld [vmem:[%s3490_s0 + $0xf8] sm:$0xff] }
  0x8d   :  { %976 = vmatpush2.msra.mxu1 %v398_v21  ;;  %818 = vmatprep.subr.mxu0 %v331_v22  ;;  %v48_v21 = vld [vmem:[%s3490_s0 + $0x110] sm:$0xff]  ;;  %v55_v22 = vld [vmem:[%s3490_s0 + $0x148] sm:$0xff] }
  0x8e   :  { %977 = vmatprep.subr.mxu1 %v397_v23  ;;  %588 = vmatprep.mubr.f32.mxu0 %v132_v24  ;;  %v438_v23 = vld [vmem:[%s3489_s1 + $0x8c0] sm:$0xff]  ;;  %v437_v24 = vld [vmem:[%s3489_s1 + $0x8b8] sm:$0xff] }
  0x8f   :  { %749 = vmatprep.mubr.f32.mxu1 %v134_v25  ;;  %819 = vmatpush2.msra.mxu0 %v330_v26  ;;  %v47_v25 = vld [vmem:[%s3490_s0 + $0x108] sm:$0xff]  ;;  %v436_v26 = vld [vmem:[%s3489_s1 + $0x8b0] sm:$0xff] }
  0x90   :  { %978 = vmatpush2.msra.mxu1 %v396_v27  ;;  %589 = vmatmul.mubr.f32.gmra.mxu0 %v131_v28  ;;  %v54_v27 = vld [vmem:[%s3490_s0 + $0x140] sm:$0xff]  ;;  %v57_v28 = vld [vmem:[%s3490_s0 + $0x158] sm:$0xff] }
  0x91   :  { %750 = vmatmul.mubr.f32.gmra.mxu1 %v133_v29  ;;  %820 = vmatprep.subr.mxu0 %v329_v30  ;;  %v64_v29 = vld [vmem:[%s3490_s0 + $0x190] sm:$0xff]  ;;  %v435_v30 = vld [vmem:[%s3489_s1 + $0x8a8] sm:$0xff] }
  0x92   :  { %979 = vmatprep.subr.mxu1 %v395_v31  ;;  %821 = vmatpush2.msra.mxu0 %v328_v32  ;;  %v434_v31 = vld [vmem:[%s3489_s1 + $0x8a0] sm:$0xff]  ;;  %v56_v32 = vld [vmem:[%s3490_s0 + $0x150] sm:$0xff] }
  0x93   :  { %980 = vmatpush2.msra.mxu1 %v394_v33  ;;  %822 = vmatprep.subr.mxu0 %v327_v34  ;;  %v433_v33 = vld [vmem:[%s3489_s1 + $0x898] sm:$0xff]  ;;  %v63_v34 = vld [vmem:[%s3490_s0 + $0x188] sm:$0xff] }
  0x94   :  { %981 = vmatprep.subr.mxu1 %v393_v35  ;;  %594 = vmatprep.mubr.f32.mxu0 %v141_v36  ;;  %v66_v35 = vld [vmem:[%s3490_s0 + $0x1a0] sm:$0xff]  ;;  %v73_v36 = vld [vmem:[%s3490_s0 + $0x1d8] sm:$0xff] }
  0x95   :  { %755 = vmatprep.mubr.f32.mxu1 %v143_v37  ;;  %823 = vmatpush2.msra.mxu0 %v326_v38  ;;  %v432_v37 = vld [vmem:[%s3489_s1 + $0x890] sm:$0xff]  ;;  %v431_v38 = vld [vmem:[%s3489_s1 + $0x888] sm:$0xff] }
  0x96   :  { %982 = vmatpush2.msra.mxu1 %v392_v39  ;;  %595 = vmatmul.mubr.f32.gmra.mxu0 %v140_v40  ;;  %v65_v39 = vld [vmem:[%s3490_s0 + $0x198] sm:$0xff]  ;;  %v430_v40 = vld [vmem:[%s3489_s1 + $0x880] sm:$0xff] }
  0x97   :  { %756 = vmatmul.mubr.f32.gmra.mxu1 %v142_v41  ;;  %824 = vmatprep.subr.mxu0 %v325_v42  ;;  %v72_v41 = vld [vmem:[%s3490_s0 + $0x1d0] sm:$0xff]  ;;  %v75_v42 = vld [vmem:[%s3490_s0 + $0x1e8] sm:$0xff] }
  0x98   :  { %983 = vmatprep.subr.mxu1 %v391_v43  ;;  %825 = vmatpush2.msra.mxu0 %v324_v44  ;;  %v82_v43 = vld [vmem:[%s3490_s0 + $0x220] sm:$0xff]  ;;  %v429_v44 = vld [vmem:[%s3489_s1 + $0x878] sm:$0xff] }
  0x99   :  { %984 = vmatpush2.msra.mxu1 %v390_v45  ;;  %826 = vmatprep.subr.mxu0 %v323_v46  ;;  %v428_v45 = vld [vmem:[%s3489_s1 + $0x870] sm:$0xff]  ;;  %v74_v46 = vld [vmem:[%s3490_s0 + $0x1e0] sm:$0xff] }
  0x9a   :  { %985 = vmatprep.subr.mxu1 %v389_v47  ;;  %600 = vmatprep.mubr.f32.mxu0 %v150_v48  ;;  %v427_v47 = vld [vmem:[%s3489_s1 + $0x868] sm:$0xff]  ;;  %v81_v48 = vld [vmem:[%s3490_s0 + $0x218] sm:$0xff] }
  0x9b   :  { %761 = vmatprep.mubr.f32.mxu1 %v152_v49  ;;  %827 = vmatpush2.msra.mxu0 %v322_v50  ;;  %v84_v49 = vld [vmem:[%s3490_s0 + $0x230] sm:$0xff]  ;;  %v91_v50 = vld [vmem:[%s3490_s0 + $0x268] sm:$0xff] }
  0x9c   :  { %986 = vmatpush2.msra.mxu1 %v388_v51  ;;  %601 = vmatmul.mubr.f32.gmra.mxu0 %v149_v52  ;;  %v426_v51 = vld [vmem:[%s3489_s1 + $0x860] sm:$0xff]  ;;  %v425_v52 = vld [vmem:[%s3489_s1 + $0x858] sm:$0xff] }
  0x9d   :  { %762 = vmatmul.mubr.f32.gmra.mxu1 %v151_v53  ;;  %828 = vmatprep.subr.mxu0 %v321_v54  ;;  %v83_v53 = vld [vmem:[%s3490_s0 + $0x228] sm:$0xff]  ;;  %v424_v54 = vld [vmem:[%s3489_s1 + $0x850] sm:$0xff] }
  0x9e   :  { %987 = vmatprep.subr.mxu1 %v387_v55  ;;  %829 = vmatpush2.msra.mxu0 %v320_v56  ;;  %v90_v55 = vld [vmem:[%s3490_s0 + $0x260] sm:$0xff]  ;;  %v93_v56 = vld [vmem:[%s3490_s0 + $0x278] sm:$0xff] }
  0x9f   :  { %988 = vmatpush2.msra.mxu1 %v386_v57  ;;  %830 = vmatprep.subr.mxu0 %v319_v58  ;;  %v100_v57 = vld [vmem:[%s3490_s0 + $0x2b0] sm:$0xff]  ;;  %v423_v58 = vld [vmem:[%s3489_s1 + $0x848] sm:$0xff] }
  0xa0   :  { %989 = vmatprep.subr.mxu1 %v385_v59  ;;  %831 = vmatpush2.msra.mxu0 %v318_v60  ;;  %v422_v59 = vld [vmem:[%s3489_s1 + $0x840] sm:$0xff]  ;;  %v92_v60 = vld [vmem:[%s3490_s0 + $0x270] sm:$0xff] }
  0xa1   :  { %832 = vmatprep.mubr.f32.mxu0 %v19_v61  ;;  %990 = vmatpush2.msra.mxu1 %v384_v62  ;;  %v421_v61 = vld [vmem:[%s3489_s1 + $0x838] sm:$0xff]  ;;  %v99_v62 = vld [vmem:[%s3490_s0 + $0x2a8] sm:$0xff] }
  0xa2   :  { %833 = vmatmul.mubr.f32.vlgmr.msra.gmra.mxu0 %v18_v63  ;;  %991 = vmatprep.subr.mxu1 %v383_v0  ;;  %v102_v63 = vld [vmem:[%s3490_s0 + $0x2c0] sm:$0xff]  ;;  %v109_v0 = vld [vmem:[%s3490_s0 + $0x2f8] sm:$0xff] }
  0xa3   :  { %993 = vmatprep.mubr.f32.mxu1 %v21_v1  ;;  %992 = vmatpush2.msra.mxu1 %v382_v2  ;;  %v420_v1 = vld [vmem:[%s3489_s1 + $0x830] sm:$0xff]  ;;  %v419_v2 = vld [vmem:[%s3489_s1 + $0x828] sm:$0xff] }
  0xa4   :  { %838 = vmatprep.mubr.f32.mxu0 %v28_v3  ;;  %994 = vmatmul.mubr.f32.vlgmr.msra.gmra.mxu1 %v20_v4  ;;  %v101_v3 = vld [vmem:[%s3490_s0 + $0x2b8] sm:$0xff]  ;;  %v418_v4 = vld [vmem:[%s3489_s1 + $0x820] sm:$0xff] }
  0xa5   :  { %1090 = vmatprep.subr.mxu0 %v445_v5  ;;  %999 = vmatprep.mubr.f32.mxu1 %v30_v7  ;;  %v108_v5 = vld [vmem:[%s3490_s0 + $0x2f0] sm:$0xff]  ;;  %v118_v7 = vld [vmem:[%s3490_s0 + $0x340] sm:$0xff] }
  0xa6   :  { %839 = vmatmul.mubr.f32.gmra.mxu0 %v27_v6  ;;  %v111_v6 = vld [vmem:[%s3490_s0 + $0x308] sm:$0xff] }
  0xa7   :  { %844 = vmatprep.mubr.f32.mxu0 %v37_v8  ;;  %1091 = vmatpush1.msra.mxu0 %v444_v9  ;;  %v417_v8 = vld [vmem:[%s3489_s1 + $0x818] sm:$0xff]  ;;  %v416_v9 = vld [vmem:[%s3489_s1 + $0x810] sm:$0xff] }
  0xa8   :  { %1092 = vmatprep.subr.mxu0 %v443_v10  ;;  %1000 = vmatmul.mubr.f32.gmra.mxu1 %v29_v11  ;;  %v110_v10 = vld [vmem:[%s3490_s0 + $0x300] sm:$0xff]  ;;  %v415_v11 = vld [vmem:[%s3489_s1 + $0x808] sm:$0xff] }
  0xa9   :  { %1093 = vmatpush1.msra.mxu0 %v442_v12  ;;  %1005 = vmatprep.mubr.f32.mxu1 %v39_v14  ;;  %v117_v12 = vld [vmem:[%s3490_s0 + $0x338] sm:$0xff]  ;;  %v127_v14 = vld [vmem:[%s3490_s0 + $0x388] sm:$0xff] }
  0xaa   :  { %845 = vmatmul.mubr.f32.gmra.mxu0 %v36_v13  ;;  %1094 = vmatprep.subr.mxu0 %v441_v16  ;;  %v120_v13 = vld [vmem:[%s3490_s0 + $0x350] sm:$0xff]  ;;  %v119_v16 = vld [vmem:[%s3490_s0 + $0x348] sm:$0xff] }
  0xab   :  { %850 = vmatprep.mubr.f32.mxu0 %v46_v15  ;;  %1095 = vmatpush1.msra.mxu0 %v440_v17  ;;  %v414_v15 = vld [vmem:[%s3489_s1 + $0x800] sm:$0xff] }
  0xac   :  { %1006 = vmatmul.mubr.f32.gmra.mxu1 %v38_v18  ;;  %1096 = vmatprep.subr.mxu0 %v439_v19  ;;  %v126_v17 = vld [vmem:[%s3490_s0 + $0x380] sm:$0xff]  ;;  %v129_v18 = vld [vmem:[%s3490_s0 + $0x398] sm:$0xff]  ;;  %v136_v19 = vld [vmem:[%s3490_s0 + $0x3d0] sm:$0xff] }
  0xad   :  { %1011 = vmatprep.mubr.f32.mxu1 %v48_v21  ;;  %1097 = vmatpush1.msra.mxu0 %v438_v23  ;;  %v135_v21 = vld [vmem:[%s3490_s0 + $0x3c8] sm:$0xff]  ;;  %v145_v23 = vld [vmem:[%s3490_s0 + $0x418] sm:$0xff] }
  0xae   :  { %851 = vmatmul.mubr.f32.gmra.mxu0 %v45_v20  ;;  %1098 = vmatprep.subr.mxu0 %v437_v24  ;;  %v128_v20 = vld [vmem:[%s3490_s0 + $0x390] sm:$0xff]  ;;  %v137_v24 = vld [vmem:[%s3490_s0 + $0x3d8] sm:$0xff] }
  0xaf   :  { %856 = vmatprep.mubr.f32.mxu0 %v55_v22  ;;  %1099 = vmatpush1.msra.mxu0 %v436_v26  ;;  %v138_v22 = vld [vmem:[%s3490_s0 + $0x3e0] sm:$0xff]  ;;  %v147_v26 = vld [vmem:[%s3490_s0 + $0x428] sm:$0xff] }
  0xb0   :  { %1012 = vmatmul.mubr.f32.gmra.mxu1 %v47_v25  ;;  %1100 = vmatprep.subr.mxu0 %v435_v30  ;;  %v144_v25 = vld [vmem:[%s3490_s0 + $0x410] sm:$0xff] }
  0xb1   :  { %1017 = vmatprep.mubr.f32.mxu1 %v57_v28  ;;  %1101 = vmatpush1.msra.mxu0 %v434_v31  ;;  %v146_v28 = vld [vmem:[%s3490_s0 + $0x420] sm:$0xff]  ;;  %v156_v30 = vld [vmem:[%s3490_s0 + $0x470] sm:$0xff]  ;;  %v155_v31 = vld [vmem:[%s3490_s0 + $0x468] sm:$0xff] }
  0xb2   :  { %857 = vmatmul.mubr.f32.gmra.mxu0 %v54_v27  ;;  %1102 = vmatprep.subr.mxu0 %v433_v33  ;;  %v154_v27 = vld [vmem:[%s3490_s0 + $0x460] sm:$0xff] }
  0xb3   :  { %862 = vmatprep.mubr.f32.mxu0 %v64_v29  ;;  %1103 = vmatpush1.msra.mxu0 %v432_v37  ;;  %v153_v29 = vld [vmem:[%s3490_s0 + $0x458] sm:$0xff]  ;;  %v22_v33 = vld [vmem:[%s3490_s0 + $0x40] sm:$0xff] }
  0xb4   :  { %1018 = vmatmul.mubr.f32.gmra.mxu1 %v56_v32  ;;  %1104 = vmatprep.subr.mxu0 %v431_v38  ;;  %v3493_v32 = vmov 0.0   ;;  %v58_v37 = vld [vmem:[%s3490_s0 + $0x160] sm:$0xff]  ;;  %v67_v38 = vld [vmem:[%s3490_s0 + $0x1a8] sm:$0xff] }
  0xb5   :  { %1023 = vmatprep.mubr.f32.mxu1 %v66_v35  ;;  %1105 = vmatpush1.msra.mxu0 %v430_v40  ;;  %v40_v35 = vld [vmem:[%s3490_s0 + $0xd0] sm:$0xff]  ;;  %v85_v40 = vld [vmem:[%s3490_s0 + $0x238] sm:$0xff] }
  0xb6   :  { %863 = vmatmul.mubr.f32.gmra.mxu0 %v63_v34  ;;  %1106 = vmatprep.subr.mxu0 %v429_v44  ;;  %v31_v34 = vld [vmem:[%s3490_s0 + $0x88] sm:$0xff] }
  0xb7   :  { %868 = vmatprep.mubr.f32.mxu0 %v73_v36  ;;  %1107 = vmatpush1.msra.mxu0 %v428_v45  ;;  %v49_v36 = vld [vmem:[%s3490_s0 + $0x118] sm:$0xff] }
  0xb8   :  { %1024 = vmatmul.mubr.f32.gmra.mxu1 %v65_v39  ;;  %1108 = vmatprep.subr.mxu0 %v427_v47  ;;  %v76_v39 = vld [vmem:[%s3490_s0 + $0x1f0] sm:$0xff] }
  0xb9   :  { %1029 = vmatprep.mubr.f32.mxu1 %v75_v42  ;;  %1109 = vmatpush1.msra.mxu0 %v426_v51  ;;  %v103_v42 = vld [vmem:[%s3490_s0 + $0x2c8] sm:$0xff] }
  0xba   :  { %869 = vmatmul.mubr.f32.gmra.mxu0 %v72_v41  ;;  %1110 = vmatprep.subr.mxu0 %v425_v52  ;;  %v94_v41 = vld [vmem:[%s3490_s0 + $0x280] sm:$0xff] }
  0xbb   :  { %874 = vmatprep.mubr.f32.mxu0 %v82_v43  ;;  %1111 = vmatpush1.msra.mxu0 %v424_v54 }
  0xbc   :  { %1030 = vmatmul.mubr.f32.gmra.mxu1 %v74_v46  ;;  %1112 = vmatprep.subr.mxu0 %v423_v58 }
  0xbd   :  { %1035 = vmatprep.mubr.f32.mxu1 %v84_v49  ;;  %1113 = vmatpush1.msra.mxu0 %v422_v59 }
  0xbe   :  { %875 = vmatmul.mubr.f32.gmra.mxu0 %v81_v48  ;;  %1114 = vmatprep.subr.mxu0 %v421_v61  ;;  %v112_v48 = vld [vmem:[%s3490_s0 + $0x310] sm:$0xff] }
  0xbf   :  { %880 = vmatprep.mubr.f32.mxu0 %v91_v50  ;;  %1115 = vmatpush1.msra.mxu0 %v420_v1 }
  0xc0   :  { %1036 = vmatmul.mubr.f32.gmra.mxu1 %v83_v53  ;;  %1116 = vmatprep.subr.mxu0 %v419_v2  ;;  %v121_v53 = vld [vmem:[%s3490_s0 + $0x358] sm:$0xff] }
  0xc1   :  { %1041 = vmatprep.mubr.f32.mxu1 %v93_v56  ;;  %1117 = vmatpush1.msra.mxu0 %v418_v4  ;;  %v148_v4 = vld [vmem:[%s3490_s0 + $0x430] sm:$0xff] }
  0xc2   :  { %881 = vmatmul.mubr.f32.gmra.mxu0 %v90_v55  ;;  %1118 = vmatprep.subr.mxu0 %v417_v8  ;;  %v157_v8 = vld [vmem:[%s3490_s0 + $0x478] sm:$0xff] }
  0xc3   :  { %886 = vmatprep.mubr.f32.mxu0 %v100_v57  ;;  %1119 = vmatpush1.msra.mxu0 %v416_v9  ;;  %v130_v57 = vld [vmem:[%s3490_s0 + $0x3a0] sm:$0xff] }
  0xc4   :  { %1042 = vmatmul.mubr.f32.gmra.mxu1 %v92_v60  ;;  %1120 = vmatprep.subr.mxu0 %v415_v11 }
  0xc5   :  { %1047 = vmatprep.mubr.f32.mxu1 %v102_v63  ;;  %1121 = vmatpush1.msra.mxu0 %v414_v15 }
  0xc6   :  { %887 = vmatmul.mubr.f32.gmra.mxu0 %v99_v62 }
  0xc7   :  { %892 = vmatprep.mubr.f32.mxu0 %v109_v0  ;;  %v139_v0 = vld [vmem:[%s3490_s0 + $0x3e8] sm:$0xff] }
  0xc8   :  { %1048 = vmatmul.mubr.f32.gmra.mxu1 %v101_v3 }
  0xc9   :  { %1053 = vmatprep.mubr.f32.mxu1 %v111_v6 }
  0xca   :  { %893 = vmatmul.mubr.f32.gmra.mxu0 %v108_v5 }
  0xcb   :  { %898 = vmatprep.mubr.f32.mxu0 %v118_v7 }
  0xcc   :  { %1054 = vmatmul.mubr.f32.gmra.mxu1 %v110_v10 }
  0xcd   :  { %1059 = vmatprep.mubr.f32.mxu1 %v120_v13 }
  0xce   :  { %899 = vmatmul.mubr.f32.gmra.mxu0 %v117_v12 }
  0xcf   :  { %904 = vmatprep.mubr.f32.mxu0 %v127_v14 }
  0xd0   :  { %1060 = vmatmul.mubr.f32.gmra.mxu1 %v119_v16 }
  0xd1   :  { %1065 = vmatprep.mubr.f32.mxu1 %v129_v18 }
  0xd2   :  { %905 = vmatmul.mubr.f32.gmra.mxu0 %v126_v17 }
  0xd3   :  { %910 = vmatprep.mubr.f32.mxu0 %v136_v19 }
  0xd4   :  { %1066 = vmatmul.mubr.f32.gmra.mxu1 %v128_v20 }
  0xd5   :  { %1071 = vmatprep.mubr.f32.mxu1 %v138_v22 }
  0xd6   :  { %911 = vmatmul.mubr.f32.gmra.mxu0 %v135_v21 }
  0xd7   :  { %916 = vmatprep.mubr.f32.mxu0 %v145_v23 }
  0xd8   :  { %1072 = vmatmul.mubr.f32.gmra.mxu1 %v137_v24 }
  0xd9   :  { %1077 = vmatprep.mubr.f32.mxu1 %v147_v26 }
  0xda   :  { %917 = vmatmul.mubr.f32.gmra.mxu0 %v144_v25 }
  0xdb   :  { %922 = vmatprep.mubr.f32.mxu0 %v154_v27 }
  0xdc   :  { %1078 = vmatmul.mubr.f32.gmra.mxu1 %v146_v28 }
  0xdd   :  { %1083 = vmatprep.mubr.f32.mxu1 %v156_v30 }
  0xde   :  { %923 = vmatmul.mubr.f32.gmra.mxu0 %v153_v29 }
  0xdf   :  { %1154 = vmatprep.mubr.f32.mxu0 %v3493_v32 }
  0xe0   :  { %1084 = vmatmul.mubr.f32.gmra.mxu1 %v155_v31 }
  0xe1   :  { %1545 = vmatprep.mubr.f32.mxu1 %v3493_v32 }
  0xe2   :  { %1155 = vmatmul.mubr.f32.vlgmr.msra.gmra.mxu0 %v22_v33 }
  0xe3   :  { %1160 = vmatprep.mubr.f32.mxu0 %v3493_v32 }
  0xe6   :  { %1161 = vmatmul.mubr.f32.gmra.mxu0 %v31_v34 }
  0xe7   :  { %1166 = vmatprep.mubr.f32.mxu0 %v3493_v32 }
  0xea   :  { %1167 = vmatmul.mubr.f32.gmra.mxu0 %v40_v35 }
  0xeb   :  { %1172 = vmatprep.mubr.f32.mxu0 %v3493_v32 }
  0xee   :  { %1173 = vmatmul.mubr.f32.gmra.mxu0 %v49_v36 }
  0xef   :  { %1178 = vmatprep.mubr.f32.mxu0 %v3493_v32 }
  0xf2   :  { %1179 = vmatmul.mubr.f32.gmra.mxu0 %v58_v37 }
  0xf3   :  { %1184 = vmatprep.mubr.f32.mxu0 %v3493_v32 }
  0xf6   :  { %1185 = vmatmul.mubr.f32.gmra.mxu0 %v67_v38 }
  0xf7   :  { %1190 = vmatprep.mubr.f32.mxu0 %v3493_v32 }
  0xfa   :  { %1191 = vmatmul.mubr.f32.gmra.mxu0 %v76_v39 }
  0xfb   :  { %1196 = vmatprep.mubr.f32.mxu0 %v3493_v32 }
  0xfe   :  { %1197 = vmatmul.mubr.f32.gmra.mxu0 %v85_v40 }
  0xff   :  { %1202 = vmatprep.mubr.f32.mxu0 %v3493_v32 }
 0x102   :  { %1203 = vmatmul.mubr.f32.gmra.mxu0 %v94_v41 }
 0x103   :  { %1208 = vmatprep.mubr.f32.mxu0 %v3493_v32  ;;  %v512_v43 = vpop.f32.mrf.mxu0 }
 0x104   :  { %v673_v44 = vpop.f32.mrf.mxu1 }
 0x105   :  { %v2897_v45 = vadd.f32 %v673_v44, %v512_v43  ;;  %v514_v46 = vpop.f32.mrf.mxu0 }
 0x106   :  { %1209 = vmatmul.mubr.f32.gmra.mxu0 %v103_v42  ;;  %v675_v47 = vpop.f32.mrf.mxu1 }
 0x107   :  { %1214 = vmatprep.mubr.f32.mxu0 %v3493_v32  ;;  %v2903_v49 = vadd.f32 %v675_v47, %v514_v46 }
 0x108   :  { %v518_v50 = vpop.f32.mrf.mxu0 }
 0x109   :  { %v679_v51 = vpop.f32.mrf.mxu1 }
 0x10a   :  { %1215 = vmatmul.mubr.f32.gmra.mxu0 %v112_v48  ;;  %v2905_v52 = vadd.f32 %v679_v51, %v518_v50  ;;  %v520_v54 = vpop.f32.mrf.mxu0 }
 0x10b   :  { %1220 = vmatprep.mubr.f32.mxu0 %v3493_v32  ;;  %v681_v55 = vpop.f32.mrf.mxu1 }
 0x10c   :  { %v2911_v56 = vadd.f32 %v681_v55, %v520_v54 }
 0x10e   :  { %1221 = vmatmul.mubr.f32.gmra.mxu0 %v121_v53  ;;  %v524_v58 = vpop.f32.mrf.mxu0 }
 0x10f   :  { %1226 = vmatprep.mubr.f32.mxu0 %v3493_v32  ;;  %v685_v59 = vpop.f32.mrf.mxu1 }
 0x110   :  { %v2917_v60 = vadd.f32 %v685_v59, %v524_v58  ;;  %v526_v61 = vpop.f32.mrf.mxu0 }
 0x111   :  { %v687_v62 = vpop.f32.mrf.mxu1 }
 0x112   :  { %1227 = vmatmul.mubr.f32.gmra.mxu0 %v130_v57  ;;  %v2919_v63 = vadd.f32 %v687_v62, %v526_v61 }
 0x113   :  { %1232 = vmatprep.mubr.f32.mxu0 %v3493_v32 }
 0x114   :  { %v530_v1 = vpop.f32.mrf.mxu0 }
 0x115   :  { %v691_v2 = vpop.f32.mrf.mxu1 }
 0x116   :  { %1233 = vmatmul.mubr.f32.gmra.mxu0 %v139_v0  ;;  %v2925_v3 = vadd.f32 %v691_v2, %v530_v1  ;;  %v532_v5 = vpop.f32.mrf.mxu0 }
 0x117   :  { %1238 = vmatprep.mubr.f32.mxu0 %v3493_v32  ;;  %v693_v6 = vpop.f32.mrf.mxu1 }
 0x118   :  { %v2931_v7 = vadd.f32 %v693_v6, %v532_v5 }
 0x11a   :  { %1239 = vmatmul.mubr.f32.gmra.mxu0 %v148_v4  ;;  %v536_v9 = vpop.f32.mrf.mxu0 }
 0x11b   :  { %1244 = vmatprep.mubr.f32.mxu0 %v3493_v32  ;;  %v697_v10 = vpop.f32.mrf.mxu1 }
 0x11c   :  { %v2937_v11 = vadd.f32 %v697_v10, %v536_v9  ;;  %v538_v12 = vpop.f32.mrf.mxu0 }
 0x11d   :  { %v699_v13 = vpop.f32.mrf.mxu1 }
 0x11e   :  { %1245 = vmatmul.mubr.f32.gmra.mxu0 %v157_v8  ;;  %v2939_v14 = vadd.f32 %v699_v13, %v538_v12 }
 0x120   :  { %v542_v15 = vpop.f32.mrf.mxu0 }
 0x121   :  { %v703_v16 = vpop.f32.mrf.mxu1 }
 0x122   :  { %v2941_v17 = vadd.f32 %v703_v16, %v542_v15  ;;  %v544_v18 = vpop.f32.mrf.mxu0 }
 0x123   :  { %v705_v19 = vpop.f32.mrf.mxu1 }
 0x124   :  { %v2943_v20 = vadd.f32 %v705_v19, %v544_v18 }
 0x126   :  { %v548_v21 = vpop.f32.mrf.mxu0 }
 0x127   :  { %v709_v22 = vpop.f32.mrf.mxu1 }
 0x128   :  { %v2945_v23 = vadd.f32 %v709_v22, %v548_v21  ;;  %v550_v24 = vpop.f32.mrf.mxu0 }
 0x129   :  { %v711_v25 = vpop.f32.mrf.mxu1 }
 0x12a   :  { %v2947_v26 = vadd.f32 %v711_v25, %v550_v24 }
 0x12c   :  { %v554_v27 = vpop.f32.mrf.mxu0 }
 0x12d   :  { %v715_v28 = vpop.f32.mrf.mxu1 }
 0x12e   :  { %v2949_v29 = vadd.f32 %v715_v28, %v554_v27  ;;  %v556_v30 = vpop.f32.mrf.mxu0 }
 0x12f   :  { %v717_v31 = vpop.f32.mrf.mxu1 }
 0x130   :  { %v2951_v33 = vadd.f32 %v717_v31, %v556_v30 }
 0x132   :  { %v560_v34 = vpop.f32.mrf.mxu0 }
 0x133   :  { %v721_v35 = vpop.f32.mrf.mxu1 }
 0x134   :  { %v2953_v36 = vadd.f32 %v721_v35, %v560_v34  ;;  %v562_v37 = vpop.f32.mrf.mxu0 }
 0x135   :  { %v723_v38 = vpop.f32.mrf.mxu1 }
 0x136   :  { %v2955_v39 = vadd.f32 %v723_v38, %v562_v37 }
 0x138   :  { %v566_v40 = vpop.f32.mrf.mxu0 }
 0x139   :  { %v727_v41 = vpop.f32.mrf.mxu1 }
 0x13a   :  { %v2957_v42 = vadd.f32 %v727_v41, %v566_v40  ;;  %v568_v43 = vpop.f32.mrf.mxu0 }
 0x13b   :  { %v729_v44 = vpop.f32.mrf.mxu1 }
 0x13c   :  { %v2959_v46 = vadd.f32 %v729_v44, %v568_v43 }
 0x13e   :  { %v572_v47 = vpop.f32.mrf.mxu0 }
 0x13f   :  { %v733_v48 = vpop.f32.mrf.mxu1 }
 0x140   :  { %v2961_v50 = vadd.f32 %v733_v48, %v572_v47  ;;  %v574_v51 = vpop.f32.mrf.mxu0 }
 0x141   :  { %v735_v53 = vpop.f32.mrf.mxu1 }
 0x142   :  { %v2963_v54 = vadd.f32 %v735_v53, %v574_v51 }
 0x144   :  { %v578_v55 = vpop.f32.mrf.mxu0 }
 0x145   :  { %v739_v57 = vpop.f32.mrf.mxu1 }
 0x146   :  { %v2965_v58 = vadd.f32 %v739_v57, %v578_v55  ;;  %v580_v59 = vpop.f32.mrf.mxu0 }
 0x147   :  { %v741_v61 = vpop.f32.mrf.mxu1 }
 0x148   :  { %v2967_v62 = vadd.f32 %v741_v61, %v580_v59 }
 0x14a   :  { %v584_v0 = vpop.f32.mrf.mxu0 }
 0x14b   :  { %v745_v1 = vpop.f32.mrf.mxu1 }
 0x14c   :  { %v2969_v2 = vadd.f32 %v745_v1, %v584_v0  ;;  %v586_v4 = vpop.f32.mrf.mxu0 }
 0x14d   :  { %v747_v5 = vpop.f32.mrf.mxu1 }
 0x14e   :  { %v2971_v6 = vadd.f32 %v747_v5, %v586_v4 }
 0x150   :  { %v590_v8 = vpop.f32.mrf.mxu0 }
 0x151   :  { %v751_v9 = vpop.f32.mrf.mxu1 }
 0x152   :  { %v2973_v10 = vadd.f32 %v751_v9, %v590_v8  ;;  %v592_v12 = vpop.f32.mrf.mxu0 }
 0x153   :  { %v753_v13 = vpop.f32.mrf.mxu1 }
 0x154   :  { %v2975_v15 = vadd.f32 %v753_v13, %v592_v12 }
 0x156   :  { %v596_v16 = vpop.f32.mrf.mxu0 }
 0x157   :  { %v757_v18 = vpop.f32.mrf.mxu1 }
 0x158   :  { %v2977_v19 = vadd.f32 %v757_v18, %v596_v16  ;;  %v2979_v21 = vpop.f32.mrf.mxu0 }
 0x159   :  { %v2981_v22 = vpop.f32.mrf.mxu1 }
 0x15c   :  { %v2983_v24 = vpop.f32.mrf.mxu0 }
 0x15d   :  { %v2985_v25 = vpop.f32.mrf.mxu1 }
 0x15e   :  { %v2987_v27 = vpop.f32.mrf.mxu0 }
 0x15f   :  { %3495 = vst [vmem:[#allocation2_spill] sm:$0xff] %v2987_v27  ;;  %v2989_v30 = vpop.f32.mrf.mxu1 }
 0x160   :  { %3496 = vst [vmem:[#allocation3_spill] sm:$0xff] %v2989_v30 }
 0x162   :  { %v834_v28 = vpop.f32.mrf.mxu0 }
 0x163   :  { %v2992_v31 = vadd.f32 %v834_v28, %v2897_v45 }
 0x164   :  { %v836_v34 = vpop.f32.mrf.mxu0  ;;  %v2997_v37 = vpop.f32.mrf.mxu1 }
 0x165   :  { %v2995_v35 = vadd.f32 %v836_v34, %v2903_v49 }
 0x166   :  { %v840_v38 = vpop.f32.mrf.mxu0  ;;  %v3002_v41 = vpop.f32.mrf.mxu1 }
 0x167   :  { %v3000_v40 = vadd.f32 %v840_v38, %v2905_v52 }
 0x168   :  { %v842_v43 = vpop.f32.mrf.mxu0  ;;  %v3007_v47 = vpop.f32.mrf.mxu1 }
 0x169   :  { %v3005_v44 = vadd.f32 %v842_v43, %v2911_v56 }
 0x16a   :  { %v846_v45 = vpop.f32.mrf.mxu0  ;;  %v3012_v49 = vpop.f32.mrf.mxu1 }
 0x16b   :  { %v3010_v48 = vadd.f32 %v846_v45, %v2917_v60 }
 0x16c   :  { %v848_v51 = vpop.f32.mrf.mxu0  ;;  %v3017_v55 = vpop.f32.mrf.mxu1 }
 0x16d   :  { %v3015_v53 = vadd.f32 %v848_v51, %v2919_v63 }
 0x16e   :  { %v852_v52 = vpop.f32.mrf.mxu0  ;;  %v3025_v0 = vpop.f32.mrf.mxu1 }
 0x16f   :  { %v3020_v57 = vadd.f32 %v852_v52, %v2925_v3 }
 0x170   :  { %v854_v56 = vpop.f32.mrf.mxu0  ;;  %v3033_v5 = vpop.f32.mrf.mxu1 }
 0x171   :  { %v3023_v59 = vadd.f32 %v854_v56, %v2931_v7 }
 0x172   :  { %v858_v61 = vpop.f32.mrf.mxu0  ;;  %v3041_v12 = vpop.f32.mrf.mxu1 }
 0x173   :  { %v3028_v60 = vadd.f32 %v858_v61, %v2937_v11 }
 0x174   :  { %v860_v1 = vpop.f32.mrf.mxu0  ;;  %v3049_v18 = vpop.f32.mrf.mxu1 }
 0x175   :  { %v3031_v63 = vadd.f32 %v860_v1, %v2939_v14 }
 0x176   :  { %v864_v4 = vpop.f32.mrf.mxu0  ;;  %v3057_v38 = vpop.f32.mrf.mxu1 }
 0x177   :  { %v3036_v3 = vadd.f32 %v864_v4, %v2941_v17 }
 0x178   :  { %v866_v8 = vpop.f32.mrf.mxu0  ;;  %v3065_v51 = vpop.f32.mrf.mxu1 }
 0x179   :  { %v3039_v7 = vadd.f32 %v866_v8, %v2943_v20 }
 0x17a   :  { %v870_v9 = vpop.f32.mrf.mxu0  ;;  %v3073_v61 = vpop.f32.mrf.mxu1 }
 0x17b   :  { %v3044_v11 = vadd.f32 %v870_v9, %v2945_v23 }
 0x17c   :  { %v872_v13 = vpop.f32.mrf.mxu0  ;;  %v3081_v8 = vpop.f32.mrf.mxu1 }
 0x17d   :  { %v3047_v14 = vadd.f32 %v872_v13, %v2947_v26 }
 0x17e   :  { %v876_v16 = vpop.f32.mrf.mxu0 }
 0x17f   :  { %v3052_v17 = vadd.f32 %v876_v16, %v2949_v29  ;;  %v3089_v16 = vpop.f32.mrf.mxu1 }
 0x180   :  { %v878_v28 = vpop.f32.mrf.mxu0 }
 0x181   :  { %v3055_v20 = vadd.f32 %v878_v28, %v2951_v33 }
 0x182   :  { %v882_v34 = vpop.f32.mrf.mxu0 }
 0x183   :  { %v3060_v23 = vadd.f32 %v882_v34, %v2953_v36 }
 0x184   :  { %v884_v43 = vpop.f32.mrf.mxu0 }
 0x185   :  { %v3063_v26 = vadd.f32 %v884_v43, %v2955_v39  ;;  %v3097_v43 = vpop.f32.mrf.mxu1 }
 0x186   :  { %v888_v45 = vpop.f32.mrf.mxu0 }
 0x187   :  { %v3068_v29 = vadd.f32 %v888_v45, %v2957_v42 }
 0x188   :  { %v890_v52 = vpop.f32.mrf.mxu0 }
 0x189   :  { %v3071_v33 = vadd.f32 %v890_v52, %v2959_v46 }
 0x18a   :  { %v894_v56 = vpop.f32.mrf.mxu0 }
 0x18b   :  { %v3076_v36 = vadd.f32 %v894_v56, %v2961_v50  ;;  %v3105_v56 = vpop.f32.mrf.mxu1 }
 0x18c   :  { %v896_v1 = vpop.f32.mrf.mxu0 }
 0x18d   :  { %v3079_v39 = vadd.f32 %v896_v1, %v2963_v54 }
 0x18e   :  { %v900_v4 = vpop.f32.mrf.mxu0 }
 0x18f   :  { %v3084_v42 = vadd.f32 %v900_v4, %v2965_v58  ;;  %v3114_v4 = vpop.f32.mrf.mxu1 }
 0x190   :  { %v902_v9 = vpop.f32.mrf.mxu0 }
 0x191   :  { %v3087_v46 = vadd.f32 %v902_v9, %v2967_v62 }
 0x192   :  { %v906_v13 = vpop.f32.mrf.mxu0 }
 0x193   :  { %v3092_v50 = vadd.f32 %v906_v13, %v2969_v2  ;;  %v3118_v13 = vpop.f32.mrf.mxu1 }
 0x194   :  { %v908_v28 = vpop.f32.mrf.mxu0 }
 0x195   :  { %v3095_v54 = vadd.f32 %v908_v28, %v2971_v6 }
 0x196   :  { %v912_v34 = vpop.f32.mrf.mxu0 }
 0x197   :  { %v3100_v58 = vadd.f32 %v912_v34, %v2973_v10  ;;  %v3120_v34 = vpop.f32.mrf.mxu1 }
 0x198   :  { %v914_v45 = vpop.f32.mrf.mxu0 }
 0x199   :  { %v3103_v62 = vadd.f32 %v914_v45, %v2975_v15  ;;  %v3124_v32 = vpop.f32.mrf.mxu1 }
 0x19a   :  { %v918_v52 = vpop.f32.mrf.mxu0 }
 0x19b   :  { %3497 = vst [vmem:[#allocation4_spill] sm:$0xff] %v3103_v62  ;;  %v3108_v2 = vadd.f32 %v918_v52, %v2977_v19  ;;  %v1002_v19 = vadd.f32 %v3007_v47, %v3000_v40  ;;  %v1010_v40 = vadd.f32 %v3025_v0, %v3015_v53  ;;  %v1014_v47 = vadd.f32 %v3033_v5, %v3020_v57 }
 0x19c   :  { %v3110_v1 = vpop.f32.mrf.mxu0  ;;  %v1020_v0 = vadd.f32 %v3049_v18, %v3028_v60 }
 0x19d   :  { %3498 = vst [vmem:[#allocation5_spill] sm:$0xff] %v3108_v2  ;;  %3499 = vst [vmem:[#allocation6_spill] sm:$0xff] %v3110_v1  ;;  %v1008_v2 = vadd.f32 %v3017_v55, %v3010_v48  ;;  %v998_v1 = vadd.f32 %v3002_v41, %v2995_v35  ;;  %v1016_v48 = vadd.f32 %v3041_v12, %v3023_v59 }
 0x19e   :  { %v3112_v6 = vpop.f32.mrf.mxu0 }
 0x19f   :  { %3500 = vst [vmem:[#allocation7_spill] sm:$0xff] %v3112_v6  ;;  %v996_v6 = vadd.f32 %v2997_v37, %v2992_v31 }
 0x1a0   :  { %v3116_v9 = vpop.f32.mrf.mxu0 }
 0x1a1   :  { %3501 = vst [vmem:[#allocation8_spill] sm:$0xff] %v3116_v9  ;;  %v1004_v9 = vadd.f32 %v3012_v49, %v3005_v44  ;;  %v3148_v49 = vpop.f32.mrf.mxu1 }
 0x1a2   :  { %v1156_v10 = vpop.f32.mrf.mxu0 }
 0x1a3   :  { %v3140_v62 = vadd.f32 %v1156_v10, %v996_v6  ;;  %v3170_v6 = vpop.f32.mrf.mxu1 }
 0x1a4   :  { %v1158_v28 = vpop.f32.mrf.mxu0 }
 0x1a5   :  { %v3150_v55 = vadd.f32 %v1158_v28, %v998_v1  ;;  %v1295_v5 = vmul.f32 %v3140_v62, %v3140_v62 }
 0x1a6   :  { %v1162_v15 = vpop.f32.mrf.mxu0 }
 0x1a7   :  { %v3132_v30 = vadd.f32 %v1162_v15, %v1002_v19 }
 0x1a8   :  { %v1164_v45 = vpop.f32.mrf.mxu0 }
 0x1a9   :  { %v3142_v31 = vadd.f32 %v1164_v45, %v1004_v9  ;;  %v1297_v35 = vmul.f32 %v3132_v30, %v3132_v30  ;;  %v1251_v60 = vadd.f32 %v3132_v30, %v3140_v62  ;;  %v1296_v9 = vmul.f32 %v3150_v55, %v3150_v55 }
 0x1aa   :  { %v1168_v52 = vpop.f32.mrf.mxu0 }
 0x1ab   :  { %v3144_v37 = vadd.f32 %v1168_v52, %v1008_v2  ;;  %v1298_v59 = vmul.f32 %v3142_v31, %v3142_v31  ;;  %v1327_v10 = vadd.f32 %v1297_v35, %v1295_v5 }
 0x1ac   :  { %v1170_v27 = vpop.f32.mrf.mxu0 }
 0x1ad   :  { %v3154_v41 = vadd.f32 %v1170_v27, %v1010_v40  ;;  %v1299_v12 = vmul.f32 %v3144_v37, %v3144_v37  ;;  %v1022_v27 = vadd.f32 %v3057_v38, %v3031_v63  ;;  %v1026_v63 = vadd.f32 %v3065_v51, %v3036_v3  ;;  %v3195_v3 = vpop.f32.mrf.mxu1 }
 0x1ae   :  { %v1174_v44 = vpop.f32.mrf.mxu0  ;;  %v1272_v38 = vadd.f32 %v3142_v31, %v3150_v55  ;;  %v1252_v19 = vadd.f32 %v1251_v60, %v3144_v37  ;;  %v1348_v40 = vadd.f32 %v1298_v59, %v1296_v9  ;;  %v1032_v59 = vadd.f32 %v3081_v8, %v3044_v11 }
 0x1af   :  { %v3156_v53 = vadd.f32 %v1174_v44, %v1014_v47  ;;  %v1300_v28 = vmul.f32 %v3154_v41, %v3154_v41  ;;  %v1328_v47 = vadd.f32 %v1327_v10, %v1299_v12 }
 0x1b0   :  { %v1176_v57 = vpop.f32.mrf.mxu0  ;;  %v1273_v51 = vadd.f32 %v1272_v38, %v3154_v41 }
 0x1b1   :  { %v3166_v2 = vadd.f32 %v1176_v57, %v1016_v48  ;;  %v1301_v15 = vmul.f32 %v3156_v53, %v3156_v53  ;;  %v1028_v57 = vadd.f32 %v3073_v61, %v3039_v7  ;;  %v1349_v12 = vadd.f32 %v1348_v40, %v1300_v28  ;;  %v3213_v28 = vpop.f32.mrf.mxu1 }
 0x1b2   :  { %v1180_v1 = vpop.f32.mrf.mxu0 }
 0x1b3   :  { %v3174_v18 = vadd.f32 %v1180_v1, %v1020_v0  ;;  %v1302_v44 = vmul.f32 %v3166_v2, %v3166_v2  ;;  %v1253_v0 = vadd.f32 %v1252_v19, %v3156_v53  ;;  %v1329_v1 = vadd.f32 %v1328_v47, %v1301_v15 }
 0x1b4   :  { %v1182_v45 = vpop.f32.mrf.mxu0  ;;  %v1274_v9 = vadd.f32 %v1273_v51, %v3166_v2  ;;  %v1038_v47 = vadd.f32 %v3097_v43, %v3052_v17 }
 0x1b5   :  { %v3187_v52 = vadd.f32 %v1182_v45, %v1022_v27  ;;  %v1303_v48 = vmul.f32 %v3174_v18, %v3174_v18  ;;  %v1254_v7 = vadd.f32 %v1253_v0, %v3174_v18  ;;  %v1034_v45 = vadd.f32 %v3089_v16, %v3047_v14 }
 0x1b6   :  { %v1186_v35 = vpop.f32.mrf.mxu0  ;;  %v1040_v0 = vadd.f32 %v3105_v56, %v3055_v20 }
 0x1b7   :  { %v3199_v5 = vadd.f32 %v1186_v35, %v1026_v63  ;;  %v1304_v27 = vmul.f32 %v3187_v52, %v3187_v52  ;;  %v1350_v63 = vadd.f32 %v1349_v12, %v1302_v44  ;;  %v1330_v11 = vadd.f32 %v1329_v1, %v1303_v48  ;;  %v1067_v1 = vpop.f32.mrf.mxu1 }
 0x1b8   :  { %v1188_v60 = vpop.f32.mrf.mxu0  ;;  %v1275_v15 = vadd.f32 %v1274_v9, %v3187_v52  ;;  %v1044_v9 = vadd.f32 %v3114_v4, %v3060_v23 }
 0x1b9   :  { %v1305_v61 = vmul.f32 %v3199_v5, %v3199_v5  ;;  %v3209_v10 = vadd.f32 %v1188_v60, %v1028_v57  ;;  %v1255_v38 = vadd.f32 %v1254_v7, %v3199_v5  ;;  %v1351_v35 = vadd.f32 %v1350_v63, %v1304_v27 }
 0x1ba   :  { %v1192_v8 = vpop.f32.mrf.mxu0  ;;  %v1046_v63 = vadd.f32 %v3118_v13, %v3063_v26 }
 0x1bb   :  { %v1306_v19 = vmul.f32 %v3209_v10, %v3209_v10  ;;  %v3219_v40 = vadd.f32 %v1192_v8, %v1032_v59  ;;  %v1331_v57 = vadd.f32 %v1330_v11, %v1305_v61  ;;  %v1276_v16 = vadd.f32 %v1275_v15, %v3209_v10  ;;  %v1069_v8 = vpop.f32.mrf.mxu1 }
 0x1bc   :  { %v1194_v14 = vpop.f32.mrf.mxu0 }
 0x1bd   :  { %v1256_v44 = vadd.f32 %v1255_v38, %v3219_v40  ;;  %v1307_v48 = vmul.f32 %v3219_v40, %v3219_v40  ;;  %v3227_v51 = vadd.f32 %v1194_v14, %v1034_v45  ;;  %v1352_v59 = vadd.f32 %v1351_v35, %v1306_v19 }
 0x1be   :  { %v1198_v12 = vpop.f32.mrf.mxu0  ;;  %v1050_v19 = vadd.f32 %v3120_v34, %v3068_v29  ;;  %v1052_v14 = vadd.f32 %v3124_v32, %v3071_v33 }
 0x1bf   :  { %v1332_v60 = vadd.f32 %v1331_v57, %v1307_v48  ;;  %v1277_v17 = vadd.f32 %v1276_v16, %v3227_v51  ;;  %v1308_v43 = vmul.f32 %v3227_v51, %v3227_v51  ;;  %v3234_v27 = vadd.f32 %v1198_v12, %v1038_v47 }
 0x1c0   :  { %v1200_v7 = vpop.f32.mrf.mxu0 }
 0x1c1   :  { %v1353_v61 = vadd.f32 %v1352_v59, %v1308_v43  ;;  %v1257_v45 = vadd.f32 %v1256_v44, %v3234_v27  ;;  %v1309_v20 = vmul.f32 %v3234_v27, %v3234_v27  ;;  %v3241_v56 = vadd.f32 %v1200_v7, %v1040_v0  ;;  %v1073_v44 = vpop.f32.mrf.mxu1 }
 0x1c2   :  { %v1204_v11 = vpop.f32.mrf.mxu0  ;;  %v1056_v59 = vadd.f32 %v3148_v49, %v3076_v36  ;;  %v1058_v43 = vadd.f32 %v3170_v6, %v3079_v39 }
 0x1c3   :  { %v1333_v15 = vadd.f32 %v1332_v60, %v1309_v20  ;;  %v1278_v38 = vadd.f32 %v1277_v17, %v3241_v56  ;;  %v1310_v23 = vmul.f32 %v3241_v56, %v3241_v56  ;;  %v3248_v4 = vadd.f32 %v1204_v11, %v1044_v9  ;;  %v1075_v7 = vpop.f32.mrf.mxu1 }
 0x1c4   :  { %v1206_v47 = vpop.f32.mrf.mxu0  ;;  %v1062_v20 = vadd.f32 %v3195_v3, %v3084_v42 }
 0x1c5   :  { %v1354_v35 = vadd.f32 %v1353_v61, %v1310_v23  ;;  %v1258_v57 = vadd.f32 %v1257_v45, %v3248_v4  ;;  %v1311_v26 = vmul.f32 %v3248_v4, %v3248_v4  ;;  %v3255_v13 = vadd.f32 %v1206_v47, %v1046_v63 }
 0x1c6   :  { %v1210_v16 = vpop.f32.mrf.mxu0 }
 0x1c7   :  { %v1334_v48 = vadd.f32 %v1333_v15, %v1311_v26  ;;  %v1279_v0 = vadd.f32 %v1278_v38, %v3255_v13  ;;  %v1312_v29 = vmul.f32 %v3255_v13, %v3255_v13  ;;  %v3262_v34 = vadd.f32 %v1210_v16, %v1050_v19  ;;  %v1079_v19 = vpop.f32.mrf.mxu1 }
 0x1c8   :  { %v1212_v12 = vpop.f32.mrf.mxu0  ;;  %v1064_v38 = vadd.f32 %v3213_v28, %v3087_v46  ;;  %v1070_v28 = vadd.f32 %v1069_v8, %v3095_v54 }
 0x1c9   :  { %v1355_v60 = vadd.f32 %v1354_v35, %v1312_v29  ;;  %v1259_v17 = vadd.f32 %v1258_v57, %v3262_v34  ;;  %v1313_v32 = vmul.f32 %v3262_v34, %v3262_v34  ;;  %v3269_v33 = vadd.f32 %v1212_v12, %v1052_v14  ;;  %v1081_v29 = vpop.f32.mrf.mxu1 }
 0x1ca   :  { %v1216_v9 = vpop.f32.mrf.mxu0  ;;  %v1068_v57 = vadd.f32 %v1067_v1, %v3092_v50  ;;  %v760_v1 = vadd.f32 %v2981_v22, %v2979_v21 }
 0x1cb   :  { %v1335_v61 = vadd.f32 %v1334_v48, %v1313_v32  ;;  %v1280_v45 = vadd.f32 %v1279_v0, %v3269_v33  ;;  %v1314_v36 = vmul.f32 %v3269_v33, %v3269_v33  ;;  %v3276_v49 = vadd.f32 %v1216_v9, %v1056_v59  ;;  %v1085_v21 = vpop.f32.mrf.mxu1 }
 0x1cc   :  { %v1218_v63 = vpop.f32.mrf.mxu0 }
 0x1cd   :  { %v1356_v11 = vadd.f32 %v1355_v60, %v1314_v36  ;;  %v1260_v15 = vadd.f32 %v1259_v17, %v3276_v49  ;;  %v1315_v39 = vmul.f32 %v3276_v49, %v3276_v49  ;;  %v3283_v6 = vadd.f32 %v1218_v63, %v1058_v43 }
 0x1ce   :  { %v1222_v23 = vpop.f32.mrf.mxu0  ;;  %v1074_v17 = vadd.f32 %v1073_v44, %v3100_v58 }
 0x1cf   :  { %v1336_v47 = vadd.f32 %v1335_v61, %v1315_v39  ;;  %v1281_v35 = vadd.f32 %v1280_v45, %v3283_v6  ;;  %v1316_v42 = vmul.f32 %v3283_v6, %v3283_v6  ;;  %v3290_v3 = vadd.f32 %v1222_v23, %v1062_v20  ;;  %v3502_v45 = vld [vmem:[#allocation4_spill] sm:$0xff]  ;;  %v3503_v20 = vld [vmem:[#allocation6_spill] sm:$0xff] }
 0x1d0   :  { %v1224_v26 = vpop.f32.mrf.mxu0  ;;  %v764_v61 = vadd.f32 %v2985_v25, %v2983_v24  ;;  %v1076_v36 = vadd.f32 %v1075_v7, %v3502_v45  ;;  %v921_v63 = vadd.f32 %v3503_v20, %v760_v1  ;;  %v3504_v39 = vld [vmem:[#allocation2_spill] sm:$0xff]  ;;  %v3507_v24 = vld [vmem:[#allocation7_spill] sm:$0xff] }
 0x1d1   :  { %v1357_v14 = vadd.f32 %v1356_v11, %v1316_v42  ;;  %v1261_v16 = vadd.f32 %v1260_v15, %v3290_v3  ;;  %v1317_v48 = vmul.f32 %v3290_v3, %v3290_v3  ;;  %v3296_v46 = vadd.f32 %v1224_v26, %v1064_v38  ;;  %v3505_v38 = vld [vmem:[#allocation3_spill] sm:$0xff] }
 0x1d2   :  { %v1228_v0 = vpop.f32.mrf.mxu0  ;;  %v766_v23 = vadd.f32 %v3505_v38, %v3504_v39  ;;  %v925_v25 = vadd.f32 %v3507_v24, %v764_v61 }
 0x1d3   :  { %v1337_v59 = vadd.f32 %v1336_v47, %v1317_v48  ;;  %v1282_v12 = vadd.f32 %v1281_v35, %v3296_v46  ;;  %v1318_v60 = vmul.f32 %v3296_v46, %v3296_v46  ;;  %v3302_v50 = vadd.f32 %v1228_v0, %v1068_v57  ;;  %v3506_v47 = vld [vmem:[#allocation5_spill] sm:$0xff]  ;;  %v3508_v48 = vld [vmem:[#allocation8_spill] sm:$0xff] }
 0x1d4   :  { %v1230_v32 = vpop.f32.mrf.mxu0  ;;  %v1080_v35 = vadd.f32 %v1079_v19, %v3506_v47 }
 0x1d5   :  { %v1358_v43 = vadd.f32 %v1357_v14, %v1318_v60  ;;  %v1262_v9 = vadd.f32 %v1261_v16, %v3302_v50  ;;  %v1319_v54 = vmul.f32 %v3302_v50, %v3302_v50  ;;  %v3310_v8 = vadd.f32 %v1230_v32, %v1070_v28 }
 0x1d6   :  { %v1234_v11 = vpop.f32.mrf.mxu0  ;;  %v1082_v16 = vadd.f32 %v1081_v29, %v921_v63  ;;  %v927_v28 = vadd.f32 %v3508_v48, %v766_v23 }
 0x1d7   :  { %v1338_v22 = vadd.f32 %v1337_v59, %v1319_v54  ;;  %v1283_v58 = vadd.f32 %v1282_v12, %v3310_v8  ;;  %v1320_v44 = vmul.f32 %v3310_v8, %v3310_v8  ;;  %v3319_v15 = vadd.f32 %v1234_v11, %v1074_v17  ;;  %v1087_v59 = vpop.f32.mrf.mxu1 }
 0x1d8   :  { %v1236_v7 = vpop.f32.mrf.mxu0  ;;  %v1086_v17 = vadd.f32 %v1085_v21, %v925_v25  ;;  %v1088_v61 = vadd.f32 %v1087_v59, %v927_v28 }
 0x1d9   :  { %v1359_v42 = vadd.f32 %v1358_v43, %v1320_v44  ;;  %v1263_v57 = vadd.f32 %v1262_v9, %v3319_v15  ;;  %v1321_v26 = vmul.f32 %v3319_v15, %v3319_v15  ;;  %v3328_v14 = vadd.f32 %v1236_v7, %v1076_v36 }
 0x1da   :  { %v1240_v0 = vpop.f32.mrf.mxu0 }
 0x1db   :  { %v1339_v12 = vadd.f32 %v1338_v22, %v1321_v26  ;;  %v1284_v60 = vadd.f32 %v1283_v58, %v3328_v14  ;;  %v1322_v19 = vmul.f32 %v3328_v14, %v3328_v14  ;;  %v3334_v1 = vadd.f32 %v1240_v0, %v1080_v35 }
 0x1dc   :  { %v1242_v32 = vpop.f32.mrf.mxu0 }
 0x1dd   :  { %v1360_v43 = vadd.f32 %v1359_v42, %v1322_v19  ;;  %v1264_v9 = vadd.f32 %v1263_v57, %v3334_v1  ;;  %v1323_v29 = vmul.f32 %v3334_v1, %v3334_v1  ;;  %v3339_v54 = vadd.f32 %v1242_v32, %v1082_v16 }
 0x1de   :  { %v1246_v45 = vpop.f32.mrf.mxu0 }
 0x1df   :  { %v1340_v36 = vadd.f32 %v1339_v12, %v1323_v29  ;;  %v1285_v20 = vadd.f32 %v1284_v60, %v3339_v54  ;;  %v1324_v63 = vmul.f32 %v3339_v54, %v3339_v54  ;;  %v3344_v11 = vadd.f32 %v1246_v45, %v1086_v17 }
 0x1e0   :  { %v1248_v21 = vpop.f32.mrf.mxu0 }
 0x1e1   :  { %v1361_v22 = vadd.f32 %v1360_v43, %v1324_v63  ;;  %v1265_v58 = vadd.f32 %v1264_v9, %v3344_v11  ;;  %v1325_v44 = vmul.f32 %v3344_v11, %v3344_v11  ;;  %v3349_v39 = vadd.f32 %v1248_v21, %v1088_v61 }
 0x1e3   :  { %v1266_v38 = vrot.slane %v1265_v58, 4  ;;  %v1341_v23 = vadd.f32 %v1340_v36, %v1325_v44  ;;  %v1286_v47 = vadd.f32 %v1285_v20, %v3349_v39  ;;  %v1326_v35 = vmul.f32 %v3349_v39, %v3349_v39 }
 0x1e5   :  { %v1267_v24 = vadd.f32 %v1266_v38, %v1265_v58  ;;  %v1342_v25 = vrot.slane %v1341_v23, 4  ;;  %v1287_v7 = vrot.slane %v1286_v47, 4  ;;  %v1362_v42 = vadd.f32 %v1361_v22, %v1326_v35 }
 0x1e7   :  { %v1268_v57 = vrot.slane %v1267_v24, 2  ;;  %v1343_v26 = vadd.f32 %v1342_v25, %v1341_v23  ;;  %v1288_v16 = vadd.f32 %v1287_v7, %v1286_v47  ;;  %v1363_v48 = vrot.slane %v1362_v42, 4 }
 0x1e9   :  { %v1269_v28 = vadd.f32 %v1268_v57, %v1267_v24  ;;  %v1344_v0 = vrot.slane %v1343_v26, 2  ;;  %v1289_v59 = vrot.slane %v1288_v16, 2  ;;  %v1364_v12 = vadd.f32 %v1363_v48, %v1362_v42 }
 0x1eb   :  { %v1270_v60 = vrot.slane %v1269_v28, 1  ;;  %v1345_v19 = vadd.f32 %v1344_v0, %v1343_v26  ;;  %v1290_v17 = vadd.f32 %v1289_v59, %v1288_v16  ;;  %v1365_v32 = vrot.slane %v1364_v12, 2 }
 0x1ed   :  { %v1271_v43 = vadd.f32 %v1270_v60, %v1269_v28  ;;  %v1346_v9 = vrot.slane %v1345_v19, 1  ;;  %v1291_v29 = vrot.slane %v1290_v17, 1  ;;  %v1366_v61 = vadd.f32 %v1365_v32, %v1364_v12 }
 0x1ef   :  { %v3354_v45 = vmul.f32 0.0078125, %v1271_v43  ;;  %v1347_v36 = vadd.f32 %v1346_v9, %v1345_v19  ;;  %v1292_v20 = vadd.f32 %v1291_v29, %v1290_v17  ;;  %v1367_v63 = vrot.slane %v1366_v61, 1 }
 0x1f1   :  { %v1369_v21 = vmul.f32 0.0078125, %v1347_v36  ;;  %v1371_v22 = vmul.f32 %v3354_v45, %v3354_v45  ;;  %v1411_v58 = vsub.f32 %v3344_v11, %v3354_v45  ;;  %v3360_v44 = vmul.f32 0.0078125, %v1292_v20 }
 0x1f2   :  { %v1368_v38 = vadd.f32 %v1367_v63, %v1366_v61  ;;  %v1409_v23 = vsub.f32 %v3334_v1, %v3354_v45  ;;  %v1407_v47 = vsub.f32 %v3319_v15, %v3354_v45  ;;  %v1405_v35 = vsub.f32 %v3302_v50, %v3354_v45 }
 0x1f3   :  { %v1373_v24 = vsub.f32 %v1369_v21, %v1371_v22  ;;  %v1372_v25 = vmul.f32 %v3360_v44, %v3360_v44  ;;  %v1412_v7 = vsub.f32 %v3349_v39, %v3360_v44  ;;  %v1410_v11 = vsub.f32 %v3339_v54, %v3360_v44 }
 0x1f4   :  { %v1370_v42 = vmul.f32 0.0078125, %v1368_v38  ;;  %v1408_v1 = vsub.f32 %v3328_v14, %v3360_v44  ;;  %v1406_v15 = vsub.f32 %v3310_v8, %v3360_v44  ;;  %v1404_v50 = vsub.f32 %v3296_v46, %v3360_v44 }
 0x1f5   :  { %v1375_v57 = vmax.f32 %v1373_v24, 0.0  ;;  %v1403_v26 = vsub.f32 %v3290_v3, %v3354_v45  ;;  %v1402_v39 = vsub.f32 %v3283_v6, %v3360_v44  ;;  %v1401_v54 = vsub.f32 %v3276_v49, %v3354_v45 }
 0x1f6   :  { %v1374_v16 = vsub.f32 %v1370_v42, %v1372_v25  ;;  %v1400_v14 = vsub.f32 %v3269_v33, %v3360_v44  ;;  %v1399_v8 = vsub.f32 %v3262_v34, %v3354_v45  ;;  %v1398_v46 = vsub.f32 %v3255_v13, %v3360_v44 }
 0x1f7   :  { %v1377_v48 = vadd.f32 1e-05, %v1375_v57  ;;  %v1397_v3 = vsub.f32 %v3248_v4, %v3354_v45  ;;  %v1396_v6 = vsub.f32 %v3241_v56, %v3360_v44  ;;  %v1395_v49 = vsub.f32 %v3234_v27, %v3354_v45 }
 0x1f8   :  { %v1376_v28 = vmax.f32 %v1374_v16, 0.0  ;;  %v1394_v33 = vsub.f32 %v3227_v51, %v3360_v44  ;;  %v1393_v34 = vsub.f32 %v3219_v40, %v3354_v45  ;;  %v1392_v13 = vsub.f32 %v3209_v10, %v3360_v44 }
 0x1f9   :  { %1583 = vrsqrt.f32 %v1377_v48  ;;  %v1391_v4 = vsub.f32 %v3199_v5, %v3354_v45  ;;  %v1390_v20 = vsub.f32 %v3187_v52, %v3360_v44  ;;  %v1389_v63 = vsub.f32 %v3174_v18, %v3354_v45 }
 0x1fa   :  { %v1378_v0 = vadd.f32 1e-05, %v1376_v28  ;;  %v1388_v21 = vsub.f32 %v3166_v2, %v3360_v44  ;;  %v1387_v38 = vsub.f32 %v3156_v53, %v3354_v45  ;;  %v1385_v53 = vsub.f32 %v3144_v37, %v3354_v45 }
 0x1fb   :  { %v1382_v57 = vsub.f32 %v3150_v55, %v3360_v44  ;;  %v1381_v55 = vsub.f32 %v3140_v62, %v3354_v45 }
 0x1fc   :  { %1585 = vrsqrt.f32 %v1378_v0 }
 0x206   :  { %v3406_v56 = vpop.eup %1583 }
 0x207   :  { %v1443_v27 = vmul.f32 %v3406_v56, %v1411_v58  ;;  %v1441_v59 = vmul.f32 %v3406_v56, %v1409_v23  ;;  %v1439_v51 = vmul.f32 %v3406_v56, %v1407_v47  ;;  %v1437_v12 = vmul.f32 %v3406_v56, %v1405_v35 }
 0x208   :  { %v1435_v40 = vmul.f32 %v3406_v56, %v1403_v26  ;;  %v1433_v10 = vmul.f32 %v3406_v56, %v1401_v54  ;;  %v3415_v60 = vmul.f32 %v3406_v56, %v1399_v8  ;;  %v3418_v5 = vmul.f32 %v3406_v56, %v1397_v3 }
 0x209   :  { %v1586_v19 = vpop.eup %1585  ;;  %v1475_v22 = vmax.f32 %v1443_v27, 0.0  ;;  %v1386_v23 = vsub.f32 %v3154_v41, %v3360_v44  ;;  %v1427_v52 = vmul.f32 %v3406_v56, %v1395_v49  ;;  %v1473_v25 = vmax.f32 %v1441_v59, 0.0 }
 0x20a   :  { %v1444_v17 = vmul.f32 %v1586_v19, %v1412_v7  ;;  %v1442_v32 = vmul.f32 %v1586_v19, %v1410_v11  ;;  %v1440_v43 = vmul.f32 %v1586_v19, %v1408_v1  ;;  %v1438_v9 = vmul.f32 %v1586_v19, %v1406_v15 }
 0x20b   :  { %v1436_v29 = vmul.f32 %v1586_v19, %v1404_v50  ;;  %v1434_v61 = vmul.f32 %v1586_v19, %v1402_v39  ;;  %v1432_v58 = vmul.f32 %v1586_v19, %v1400_v14  ;;  %v1430_v35 = vmul.f32 %v1586_v19, %v1398_v46 }
 0x20c   :  { %v1476_v36 = vmax.f32 %v1444_v17, 0.0  ;;  %v1474_v47 = vmax.f32 %v1442_v32, 0.0  ;;  %v1428_v24 = vmul.f32 %v1586_v19, %v1396_v6  ;;  %v1426_v18 = vmul.f32 %v1586_v19, %v1394_v33 }
 0x20d   :  { %v1425_v7 = vmul.f32 %v3406_v56, %v1393_v34  ;;  %v1424_v2 = vmul.f32 %v1586_v19, %v1392_v13  ;;  %v1472_v11 = vmax.f32 %v1440_v43, 0.0  ;;  %v1423_v42 = vmul.f32 %v3406_v56, %v1391_v4  ;;  %v1477_v43 = vld [vmem:[%s3491_s2] sm:$0xff] }
 0x20e   :  { %1481 = vmatprep.subr.mxu1 %v1476_v36  ;;  %v1384_v41 = vsub.f32 %v3142_v31, %v3360_v44  ;;  %v1471_v1 = vmax.f32 %v1439_v51, 0.0  ;;  %v1422_v15 = vmul.f32 %v1586_v19, %v1390_v20  ;;  %v1383_v50 = vsub.f32 %v3132_v30, %v3354_v45  ;;  %v1480_v36 = vld [vmem:[%s3491_s2 + $0x18] sm:$0xff] }
 0x20f   :  { %1482 = vmatpush1.msra.mxu1 %v1475_v22  ;;  %v1470_v26 = vmax.f32 %v1438_v9, 0.0  ;;  %v1421_v39 = vmul.f32 %v3406_v56, %v1389_v63  ;;  %v1420_v54 = vmul.f32 %v1586_v19, %v1388_v21  ;;  %v1419_v16 = vmul.f32 %v3406_v56, %v1387_v38 }
 0x210   :  { %1483 = vmatprep.subr.mxu1 %v1474_v47  ;;  %v1469_v37 = vmax.f32 %v1437_v12, 0.0  ;;  %v1418_v14 = vmul.f32 %v1586_v19, %v1386_v23  ;;  %v1417_v31 = vmul.f32 %v3406_v56, %v1385_v53  ;;  %v1416_v8 = vmul.f32 %v1586_v19, %v1384_v41 }
 0x211   :  { %1484 = vmatpush1.msra.mxu1 %v1473_v25  ;;  %v1468_v46 = vmax.f32 %v1436_v29, 0.0  ;;  %v1415_v30 = vmul.f32 %v3406_v56, %v1383_v50  ;;  %v1467_v44 = vmax.f32 %v1435_v40, 0.0  ;;  %v1414_v48 = vmul.f32 %v1586_v19, %v1382_v57  ;;  %v1478_v29 = vld [vmem:[%s3491_s2 + $0x8] sm:$0xff] }
 0x212   :  { %1485 = vmatprep.subr.mxu1 %v1472_v11  ;;  %v1466_v3 = vmax.f32 %v1434_v61, 0.0  ;;  %v1413_v6 = vmul.f32 %v3406_v56, %v1381_v55  ;;  %v1465_v49 = vmax.f32 %v1433_v10, 0.0  ;;  %v1464_v28 = vmax.f32 %v1432_v58, 0.0  ;;  %v1479_v61 = vld [vmem:[%s3491_s2 + $0x10] sm:$0xff] }
 0x213   :  { %1486 = vmatpush1.msra.mxu1 %v1471_v1  ;;  %v1463_v33 = vmax.f32 %v3415_v60, 0.0  ;;  %v1462_v34 = vmax.f32 %v1430_v35, 0.0  ;;  %v1461_v13 = vmax.f32 %v3418_v5, 0.0  ;;  %v1460_v62 = vmax.f32 %v1428_v24, 0.0 }
 0x214   :  { %1487 = vmatprep.subr.mxu1 %v1470_v26  ;;  %v1459_v45 = vmax.f32 %v1427_v52, 0.0  ;;  %v1458_v4 = vmax.f32 %v1426_v18, 0.0  ;;  %v1457_v0 = vmax.f32 %v1425_v7, 0.0  ;;  %v1456_v56 = vmax.f32 %v1424_v2, 0.0 }
 0x215   :  { %1488 = vmatpush1.msra.mxu1 %v1469_v37  ;;  %v1455_v27 = vmax.f32 %v1423_v42, 0.0  ;;  %v1454_v59 = vmax.f32 %v1422_v15, 0.0  ;;  %v1453_v51 = vmax.f32 %v1421_v39, 0.0  ;;  %v1452_v12 = vmax.f32 %v1420_v54, 0.0 }
 0x216   :  { %1489 = vmatprep.subr.mxu1 %v1468_v46  ;;  %v1451_v40 = vmax.f32 %v1419_v16, 0.0  ;;  %v1450_v10 = vmax.f32 %v1418_v14, 0.0  ;;  %v1449_v60 = vmax.f32 %v1417_v31, 0.0  ;;  %v1448_v5 = vmax.f32 %v1416_v8, 0.0 }
 0x217   :  { %1490 = vmatpush1.msra.mxu1 %v1467_v44  ;;  %v1447_v19 = vmax.f32 %v1415_v30, 0.0  ;;  %v1446_v17 = vmax.f32 %v1414_v48, 0.0  ;;  %v1445_v32 = vmax.f32 %v1413_v6, 0.0  ;;  %v3509_v9 = vmov 0.0  }
 0x218   :  { %1491 = vmatprep.subr.mxu1 %v1466_v3 }
 0x219   :  { %1492 = vmatpush1.msra.mxu1 %v1465_v49 }
 0x21a   :  { %1493 = vmatprep.subr.mxu1 %v1464_v28 }
 0x21b   :  { %1494 = vmatpush1.msra.mxu1 %v1463_v33 }
 0x21c   :  { %1495 = vmatprep.subr.mxu1 %v1462_v34 }
 0x21d   :  { %1496 = vmatpush1.msra.mxu1 %v1461_v13 }
 0x21e   :  { %1497 = vmatprep.subr.mxu1 %v1460_v62 }
 0x21f   :  { %1498 = vmatpush1.msra.mxu1 %v1459_v45 }
 0x220   :  { %1499 = vmatprep.subr.mxu1 %v1458_v4 }
 0x221   :  { %1500 = vmatpush1.msra.mxu1 %v1457_v0 }
 0x222   :  { %1501 = vmatprep.subr.mxu1 %v1456_v56 }
 0x223   :  { %1502 = vmatpush1.msra.mxu1 %v1455_v27 }
 0x224   :  { %1503 = vmatprep.subr.mxu1 %v1454_v59 }
 0x225   :  { %1504 = vmatpush1.msra.mxu1 %v1453_v51 }
 0x226   :  { %1505 = vmatprep.subr.mxu1 %v1452_v12 }
 0x227   :  { %1506 = vmatpush1.msra.mxu1 %v1451_v40 }
 0x228   :  { %1507 = vmatprep.subr.mxu1 %v1450_v10 }
 0x229   :  { %1508 = vmatpush1.msra.mxu1 %v1449_v60 }
 0x22a   :  { %1509 = vmatprep.subr.mxu1 %v1448_v5 }
 0x22b   :  { %1510 = vmatpush1.msra.mxu1 %v1447_v19 }
 0x22c   :  { %1511 = vmatprep.subr.mxu1 %v1446_v17 }
 0x22d   :  { %1512 = vmatpush1.msra.mxu1 %v1445_v32 }
 0x22e   :  { %1546 = vmatmul.mubr.f32.vlgmr.msra.gmra.mxu1 %v1477_v43 }
 0x22f   :  { %1551 = vmatprep.mubr.f32.mxu1 %v3509_v9 }
 0x232   :  { %1552 = vmatmul.mubr.f32.gmra.mxu1 %v1478_v29 }
 0x233   :  { %1557 = vmatprep.mubr.f32.mxu1 %v3509_v9 }
 0x236   :  { %1558 = vmatmul.mubr.f32.gmra.mxu1 %v1479_v61 }
 0x237   :  { %1563 = vmatprep.mubr.f32.mxu1 %v3509_v9 }
 0x23a   :  { %1564 = vmatmul.mubr.f32.gmra.mxu1 %v1480_v36 }
 0x2ee   :  { %v1547_v20 = vpop.f32.mrf.mxu1 }
 0x2ef   :  { %1570 = vst [vmem:[%s3492_s3] sm:$0xff] %v1547_v20 }
 0x2f0   :  { %v1549_v63 = vpop.f32.mrf.mxu1 }
 0x2f1   :  { %1571 = vst [vmem:[%s3492_s3 + $0x8] sm:$0xff] %v1549_v63 }
 0x2f2   :  { %v1553_v21 = vpop.f32.mrf.mxu1 }
 0x2f3   :  { %1572 = vst [vmem:[%s3492_s3 + $0x10] sm:$0xff] %v1553_v21 }
 0x2f4   :  { %v1555_v22 = vpop.f32.mrf.mxu1 }
 0x2f5   :  { %1573 = vst [vmem:[%s3492_s3 + $0x18] sm:$0xff] %v1555_v22 }
 0x2f6   :  { %v1559_v58 = vpop.f32.mrf.mxu1 }
 0x2f7   :  { %1574 = vst [vmem:[%s3492_s3 + $0x20] sm:$0xff] %v1559_v58 }
 0x2f8   :  { %v1561_v38 = vpop.f32.mrf.mxu1 }
 0x2f9   :  { %1575 = vst [vmem:[%s3492_s3 + $0x28] sm:$0xff] %v1561_v38 }
 0x2fa   :  { %v1565_v23 = vpop.f32.mrf.mxu1 }
 0x2fb   :  { %1576 = vst [vmem:[%s3492_s3 + $0x30] sm:$0xff] %v1565_v23 }
 0x2fc   :  { %v1567_v47 = vpop.f32.mrf.mxu1 }
 0x2fd   :  { %1577 = vst [vmem:[%s3492_s3 + $0x38] sm:$0xff] %v1567_v47 }

// kernel: conv_et_al_forward.5
= control target key start
LH: loop header
LB: loop body
LE: loop exit
PB: predicated region body
PF: predicated region fallthrough
CT: control target
= control target key end

     0   :  { %s3094_s9 = smov 0   ;;  %s3096_s10 = smov 0   ;;  %s5171_s0 = inlined_call_operand.vmem [shape: f32[32,2304], index: 0, kind: input, shape index: {}]   ;;  %s5172_s1 = inlined_call_operand.vmem [shape: f32[2304,512], index: 1, kind: input, shape index: {}]   ;;  %s5173_s2 = inlined_call_operand.vmem [shape: f32[32,512], index: 2, kind: output, shape index: {}]  }
   0x1   :  { %s3098_s11 = smov 0  }
   0x2 LB: > { %s2946_s12 = sadd.s32 4294967295, %s3077_s11   ;;  %s3111_s13 = sadd.s32 1, %s3077_s11   ;;  %s3077_s11 = sphi %s3098_s11, %s5187_s11   ;;  %s3073_s10 = sphi %s3096_s10, %s5186_s10   ;;  %s3069_s9 = sphi %s3094_s9, %s5185_s9  }
   0x3   : > { %s37_s14 = ssub.s32 %s3077_s11, %s3111_s13  ;;  %s40_s15 = sadd.s32 1, %s3073_s10 }
   0x4   : > { %p38_p0 = scmp.eq.s32.totalorder %s37_s14, 0  ;;  %p47_p1 = scmp.ne.s32.totalorder %s3073_s10, %s3069_s9 }
   0x5   : > { %p48_p2 = scmp.eq.s32.totalorder %s3077_s11, 0  ;;  %p77_p3 = scmp.eq.s32.totalorder %s2946_s12, 1 }
   0x6   : > { %s3122_s16 = scalar_select %p38_p0, %s3073_s10, %s40_s15  }
   0x7   : > { %p49_p4 = por %p48_p2, %p47_p1  ;;  %p3124_p5 = por %p77_p3, %p47_p1 }
   0x8   : > { %p2949_p6 = scmp.ge.s32.totalorder %s3077_s11, 2 }
   0xa   : > { %102 = sbr.rel (%p2949_p6) target bundleno = 307 (0x133), region = 20 }
   0xf   : > { %105 = sbr.rel (!%p49_p4) target bundleno = 307 (0x133), region = 24  ;;  %s107_s18 = sand.u32 (%p49_p4), 1, %s3073_s10  }
  0x10   : > { %s2959_s19 = sshll.u32 (%p49_p4), %s3077_s11, 4  ;;  %s3025_s20 = smul.u32 (%p49_p4), 4608, %s107_s18 }
  0x11   : > { %s3134_s23 = scalar_lea.vmem (%p49_p4), %s5172_s1, %s2959_s19 }
  0x12   : > { %v125_v0 = vld [vmem:[%s3134_s23] sm:$0xff] (%p49_p4)  ;;  %v127_v1 = vld [vmem:[%s3134_s23 + $0x8] sm:$0xff] (%p49_p4)  ;;  %s3142_s24 = scalar_lea.vmem (%p49_p4), [#allocation2], %s3025_s20 }
  0x13   : > { %v129_v2 = vld [vmem:[%s3134_s23 + $0x20] sm:$0xff] (%p49_p4)  ;;  %v131_v3 = vld [vmem:[%s3134_s23 + $0x28] sm:$0xff] (%p49_p4)  ;;  %126 = vst [vmem:[%s3142_s24] sm:$0xff] (%p49_p4), %v125_v0  ;;  %128 = vst [vmem:[%s3142_s24 + $0x8] sm:$0xff] (%p49_p4), %v127_v1 }
  0x14   : > { %v133_v4 = vld [vmem:[%s3134_s23 + $0x40] sm:$0xff]  ;;  %v135_v5 = vld [vmem:[%s3134_s23 + $0x48] sm:$0xff]  ;;  %130 = vst [vmem:[%s3142_s24 + $0x10] sm:$0xff] %v129_v2  ;;  %132 = vst [vmem:[%s3142_s24 + $0x18] sm:$0xff] %v131_v3 }
  0x15   : > { %134 = vst [vmem:[%s3142_s24 + $0x20] sm:$0xff] %v133_v4  ;;  %136 = vst [vmem:[%s3142_s24 + $0x28] sm:$0xff] %v135_v5  ;;  %v137_v6 = vld [vmem:[%s3134_s23 + $0x60] sm:$0xff]  ;;  %v139_v7 = vld [vmem:[%s3134_s23 + $0x68] sm:$0xff] }
  0x16   : > { %v141_v8 = vld [vmem:[%s3134_s23 + $0x80] sm:$0xff]  ;;  %138 = vst [vmem:[%s3142_s24 + $0x30] sm:$0xff] %v137_v6  ;;  %140 = vst [vmem:[%s3142_s24 + $0x38] sm:$0xff] %v139_v7  ;;  %v143_v9 = vld [vmem:[%s3134_s23 + $0x88] sm:$0xff] }
  0x17   : > { %142 = vst [vmem:[%s3142_s24 + $0x40] sm:$0xff] %v141_v8  ;;  %v145_v10 = vld [vmem:[%s3134_s23 + $0xa0] sm:$0xff]  ;;  %v147_v11 = vld [vmem:[%s3134_s23 + $0xa8] sm:$0xff]  ;;  %144 = vst [vmem:[%s3142_s24 + $0x48] sm:$0xff] %v143_v9 }
  0x18   : > { %146 = vst [vmem:[%s3142_s24 + $0x50] sm:$0xff] %v145_v10  ;;  %148 = vst [vmem:[%s3142_s24 + $0x58] sm:$0xff] %v147_v11  ;;  %v149_v12 = vld [vmem:[%s3134_s23 + $0xc0] sm:$0xff]  ;;  %v151_v13 = vld [vmem:[%s3134_s23 + $0xc8] sm:$0xff] }
  0x19   : > { %v153_v14 = vld [vmem:[%s3134_s23 + $0xe0] sm:$0xff]  ;;  %150 = vst [vmem:[%s3142_s24 + $0x60] sm:$0xff] %v149_v12  ;;  %152 = vst [vmem:[%s3142_s24 + $0x68] sm:$0xff] %v151_v13  ;;  %v155_v15 = vld [vmem:[%s3134_s23 + $0xe8] sm:$0xff] }
  0x1a   : > { %154 = vst [vmem:[%s3142_s24 + $0x70] sm:$0xff] %v153_v14  ;;  %v157_v16 = vld [vmem:[%s3134_s23 + $0x100] sm:$0xff]  ;;  %v159_v17 = vld [vmem:[%s3134_s23 + $0x108] sm:$0xff]  ;;  %156 = vst [vmem:[%s3142_s24 + $0x78] sm:$0xff] %v155_v15 }
  0x1b   : > { %158 = vst [vmem:[%s3142_s24 + $0x80] sm:$0xff] %v157_v16  ;;  %160 = vst [vmem:[%s3142_s24 + $0x88] sm:$0xff] %v159_v17  ;;  %v161_v18 = vld [vmem:[%s3134_s23 + $0x120] sm:$0xff]  ;;  %v163_v19 = vld [vmem:[%s3134_s23 + $0x128] sm:$0xff] }
  0x1c   : > { %v165_v20 = vld [vmem:[%s3134_s23 + $0x140] sm:$0xff]  ;;  %162 = vst [vmem:[%s3142_s24 + $0x90] sm:$0xff] %v161_v18  ;;  %164 = vst [vmem:[%s3142_s24 + $0x98] sm:$0xff] %v163_v19  ;;  %v167_v21 = vld [vmem:[%s3134_s23 + $0x148] sm:$0xff] }
  0x1d   : > { %166 = vst [vmem:[%s3142_s24 + $0xa0] sm:$0xff] %v165_v20  ;;  %v169_v22 = vld [vmem:[%s3134_s23 + $0x160] sm:$0xff]  ;;  %v171_v23 = vld [vmem:[%s3134_s23 + $0x168] sm:$0xff]  ;;  %168 = vst [vmem:[%s3142_s24 + $0xa8] sm:$0xff] %v167_v21 }
  0x1e   : > { %170 = vst [vmem:[%s3142_s24 + $0xb0] sm:$0xff] %v169_v22  ;;  %172 = vst [vmem:[%s3142_s24 + $0xb8] sm:$0xff] %v171_v23  ;;  %v173_v24 = vld [vmem:[%s3134_s23 + $0x180] sm:$0xff]  ;;  %v175_v25 = vld [vmem:[%s3134_s23 + $0x188] sm:$0xff] }
  0x1f   : > { %v177_v26 = vld [vmem:[%s3134_s23 + $0x1a0] sm:$0xff]  ;;  %174 = vst [vmem:[%s3142_s24 + $0xc0] sm:$0xff] %v173_v24  ;;  %176 = vst [vmem:[%s3142_s24 + $0xc8] sm:$0xff] %v175_v25  ;;  %v179_v27 = vld [vmem:[%s3134_s23 + $0x1a8] sm:$0xff] }
  0x20   : > { %178 = vst [vmem:[%s3142_s24 + $0xd0] sm:$0xff] %v177_v26  ;;  %v181_v28 = vld [vmem:[%s3134_s23 + $0x1c0] sm:$0xff]  ;;  %v183_v29 = vld [vmem:[%s3134_s23 + $0x1c8] sm:$0xff]  ;;  %180 = vst [vmem:[%s3142_s24 + $0xd8] sm:$0xff] %v179_v27 }
  0x21   : > { %182 = vst [vmem:[%s3142_s24 + $0xe0] sm:$0xff] %v181_v28  ;;  %184 = vst [vmem:[%s3142_s24 + $0xe8] sm:$0xff] %v183_v29  ;;  %v185_v30 = vld [vmem:[%s3134_s23 + $0x1e0] sm:$0xff]  ;;  %v187_v31 = vld [vmem:[%s3134_s23 + $0x1e8] sm:$0xff] }
  0x22   : > { %v189_v32 = vld [vmem:[%s3134_s23 + $0x200] sm:$0xff]  ;;  %186 = vst [vmem:[%s3142_s24 + $0xf0] sm:$0xff] %v185_v30  ;;  %188 = vst [vmem:[%s3142_s24 + $0xf8] sm:$0xff] %v187_v31  ;;  %v191_v33 = vld [vmem:[%s3134_s23 + $0x208] sm:$0xff] }
  0x23   : > { %190 = vst [vmem:[%s3142_s24 + $0x100] sm:$0xff] %v189_v32  ;;  %v193_v34 = vld [vmem:[%s3134_s23 + $0x220] sm:$0xff]  ;;  %v195_v35 = vld [vmem:[%s3134_s23 + $0x228] sm:$0xff]  ;;  %192 = vst [vmem:[%s3142_s24 + $0x108] sm:$0xff] %v191_v33 }
  0x24   : > { %194 = vst [vmem:[%s3142_s24 + $0x110] sm:$0xff] %v193_v34  ;;  %196 = vst [vmem:[%s3142_s24 + $0x118] sm:$0xff] %v195_v35  ;;  %v197_v36 = vld [vmem:[%s3134_s23 + $0x240] sm:$0xff]  ;;  %v199_v37 = vld [vmem:[%s3134_s23 + $0x248] sm:$0xff] }
  0x25   : > { %v201_v38 = vld [vmem:[%s3134_s23 + $0x260] sm:$0xff]  ;;  %198 = vst [vmem:[%s3142_s24 + $0x120] sm:$0xff] %v197_v36  ;;  %200 = vst [vmem:[%s3142_s24 + $0x128] sm:$0xff] %v199_v37  ;;  %v203_v39 = vld [vmem:[%s3134_s23 + $0x268] sm:$0xff] }
  0x26   : > { %202 = vst [vmem:[%s3142_s24 + $0x130] sm:$0xff] %v201_v38  ;;  %v205_v40 = vld [vmem:[%s3134_s23 + $0x280] sm:$0xff]  ;;  %v207_v41 = vld [vmem:[%s3134_s23 + $0x288] sm:$0xff]  ;;  %204 = vst [vmem:[%s3142_s24 + $0x138] sm:$0xff] %v203_v39 }
  0x27   : > { %206 = vst [vmem:[%s3142_s24 + $0x140] sm:$0xff] %v205_v40  ;;  %208 = vst [vmem:[%s3142_s24 + $0x148] sm:$0xff] %v207_v41  ;;  %v209_v42 = vld [vmem:[%s3134_s23 + $0x2a0] sm:$0xff]  ;;  %v211_v43 = vld [vmem:[%s3134_s23 + $0x2a8] sm:$0xff] }
  0x28   : > { %v213_v44 = vld [vmem:[%s3134_s23 + $0x2c0] sm:$0xff]  ;;  %210 = vst [vmem:[%s3142_s24 + $0x150] sm:$0xff] %v209_v42  ;;  %212 = vst [vmem:[%s3142_s24 + $0x158] sm:$0xff] %v211_v43  ;;  %v215_v45 = vld [vmem:[%s3134_s23 + $0x2c8] sm:$0xff] }
  0x29   : > { %214 = vst [vmem:[%s3142_s24 + $0x160] sm:$0xff] %v213_v44  ;;  %v217_v46 = vld [vmem:[%s3134_s23 + $0x2e0] sm:$0xff]  ;;  %v219_v47 = vld [vmem:[%s3134_s23 + $0x2e8] sm:$0xff]  ;;  %216 = vst [vmem:[%s3142_s24 + $0x168] sm:$0xff] %v215_v45 }
  0x2a   : > { %218 = vst [vmem:[%s3142_s24 + $0x170] sm:$0xff] %v217_v46  ;;  %220 = vst [vmem:[%s3142_s24 + $0x178] sm:$0xff] %v219_v47  ;;  %v221_v48 = vld [vmem:[%s3134_s23 + $0x300] sm:$0xff]  ;;  %v223_v49 = vld [vmem:[%s3134_s23 + $0x308] sm:$0xff] }
  0x2b   : > { %v225_v50 = vld [vmem:[%s3134_s23 + $0x320] sm:$0xff]  ;;  %222 = vst [vmem:[%s3142_s24 + $0x180] sm:$0xff] %v221_v48  ;;  %224 = vst [vmem:[%s3142_s24 + $0x188] sm:$0xff] %v223_v49  ;;  %v227_v51 = vld [vmem:[%s3134_s23 + $0x328] sm:$0xff] }
  0x2c   : > { %226 = vst [vmem:[%s3142_s24 + $0x190] sm:$0xff] %v225_v50  ;;  %v229_v52 = vld [vmem:[%s3134_s23 + $0x340] sm:$0xff]  ;;  %v231_v53 = vld [vmem:[%s3134_s23 + $0x348] sm:$0xff]  ;;  %228 = vst [vmem:[%s3142_s24 + $0x198] sm:$0xff] %v227_v51 }
  0x2d   : > { %230 = vst [vmem:[%s3142_s24 + $0x1a0] sm:$0xff] %v229_v52  ;;  %232 = vst [vmem:[%s3142_s24 + $0x1a8] sm:$0xff] %v231_v53  ;;  %v233_v54 = vld [vmem:[%s3134_s23 + $0x360] sm:$0xff]  ;;  %v235_v55 = vld [vmem:[%s3134_s23 + $0x368] sm:$0xff] }
  0x2e   : > { %v237_v56 = vld [vmem:[%s3134_s23 + $0x380] sm:$0xff]  ;;  %234 = vst [vmem:[%s3142_s24 + $0x1b0] sm:$0xff] %v233_v54  ;;  %236 = vst [vmem:[%s3142_s24 + $0x1b8] sm:$0xff] %v235_v55  ;;  %v239_v57 = vld [vmem:[%s3134_s23 + $0x388] sm:$0xff] }
  0x2f   : > { %238 = vst [vmem:[%s3142_s24 + $0x1c0] sm:$0xff] %v237_v56  ;;  %v241_v58 = vld [vmem:[%s3134_s23 + $0x3a0] sm:$0xff]  ;;  %v243_v59 = vld [vmem:[%s3134_s23 + $0x3a8] sm:$0xff]  ;;  %240 = vst [vmem:[%s3142_s24 + $0x1c8] sm:$0xff] %v239_v57 }
  0x30   : > { %242 = vst [vmem:[%s3142_s24 + $0x1d0] sm:$0xff] %v241_v58  ;;  %244 = vst [vmem:[%s3142_s24 + $0x1d8] sm:$0xff] %v243_v59  ;;  %v245_v60 = vld [vmem:[%s3134_s23 + $0x3c0] sm:$0xff]  ;;  %v247_v61 = vld [vmem:[%s3134_s23 + $0x3c8] sm:$0xff] }
  0x31   : > { %v249_v62 = vld [vmem:[%s3134_s23 + $0x3e0] sm:$0xff]  ;;  %246 = vst [vmem:[%s3142_s24 + $0x1e0] sm:$0xff] %v245_v60  ;;  %248 = vst [vmem:[%s3142_s24 + $0x1e8] sm:$0xff] %v247_v61  ;;  %v251_v63 = vld [vmem:[%s3134_s23 + $0x3e8] sm:$0xff] }
  0x32   : > { %250 = vst [vmem:[%s3142_s24 + $0x1f0] sm:$0xff] %v249_v62  ;;  %v253_v0 = vld [vmem:[%s3134_s23 + $0x400] sm:$0xff]  ;;  %v255_v1 = vld [vmem:[%s3134_s23 + $0x408] sm:$0xff]  ;;  %252 = vst [vmem:[%s3142_s24 + $0x1f8] sm:$0xff] %v251_v63 }
  0x33   : > { %254 = vst [vmem:[%s3142_s24 + $0x200] sm:$0xff] %v253_v0  ;;  %256 = vst [vmem:[%s3142_s24 + $0x208] sm:$0xff] %v255_v1  ;;  %v257_v2 = vld [vmem:[%s3134_s23 + $0x420] sm:$0xff]  ;;  %v259_v3 = vld [vmem:[%s3134_s23 + $0x428] sm:$0xff] }
  0x34   : > { %v261_v4 = vld [vmem:[%s3134_s23 + $0x440] sm:$0xff]  ;;  %258 = vst [vmem:[%s3142_s24 + $0x210] sm:$0xff] %v257_v2  ;;  %260 = vst [vmem:[%s3142_s24 + $0x218] sm:$0xff] %v259_v3  ;;  %v263_v5 = vld [vmem:[%s3134_s23 + $0x448] sm:$0xff] }
  0x35   : > { %262 = vst [vmem:[%s3142_s24 + $0x220] sm:$0xff] %v261_v4  ;;  %v265_v6 = vld [vmem:[%s3134_s23 + $0x460] sm:$0xff]  ;;  %v267_v7 = vld [vmem:[%s3134_s23 + $0x468] sm:$0xff]  ;;  %264 = vst [vmem:[%s3142_s24 + $0x228] sm:$0xff] %v263_v5 }
  0x36   : > { %266 = vst [vmem:[%s3142_s24 + $0x230] sm:$0xff] %v265_v6  ;;  %268 = vst [vmem:[%s3142_s24 + $0x238] sm:$0xff] %v267_v7  ;;  %v269_v8 = vld [vmem:[%s3134_s23 + $0x480] sm:$0xff]  ;;  %v271_v9 = vld [vmem:[%s3134_s23 + $0x488] sm:$0xff] }
  0x37   : > { %v273_v10 = vld [vmem:[%s3134_s23 + $0x4a0] sm:$0xff]  ;;  %270 = vst [vmem:[%s3142_s24 + $0x240] sm:$0xff] %v269_v8  ;;  %272 = vst [vmem:[%s3142_s24 + $0x248] sm:$0xff] %v271_v9  ;;  %v275_v11 = vld [vmem:[%s3134_s23 + $0x4a8] sm:$0xff] }
  0x38   : > { %274 = vst [vmem:[%s3142_s24 + $0x250] sm:$0xff] %v273_v10  ;;  %v277_v12 = vld [vmem:[%s3134_s23 + $0x4c0] sm:$0xff]  ;;  %v279_v13 = vld [vmem:[%s3134_s23 + $0x4c8] sm:$0xff]  ;;  %276 = vst [vmem:[%s3142_s24 + $0x258] sm:$0xff] %v275_v11 }
  0x39   : > { %278 = vst [vmem:[%s3142_s24 + $0x260] sm:$0xff] %v277_v12  ;;  %280 = vst [vmem:[%s3142_s24 + $0x268] sm:$0xff] %v279_v13  ;;  %v281_v14 = vld [vmem:[%s3134_s23 + $0x4e0] sm:$0xff]  ;;  %v283_v15 = vld [vmem:[%s3134_s23 + $0x4e8] sm:$0xff] }
  0x3a   : > { %v285_v16 = vld [vmem:[%s3134_s23 + $0x500] sm:$0xff]  ;;  %282 = vst [vmem:[%s3142_s24 + $0x270] sm:$0xff] %v281_v14  ;;  %284 = vst [vmem:[%s3142_s24 + $0x278] sm:$0xff] %v283_v15  ;;  %v287_v17 = vld [vmem:[%s3134_s23 + $0x508] sm:$0xff] }
  0x3b   : > { %286 = vst [vmem:[%s3142_s24 + $0x280] sm:$0xff] %v285_v16  ;;  %v289_v18 = vld [vmem:[%s3134_s23 + $0x520] sm:$0xff]  ;;  %v291_v19 = vld [vmem:[%s3134_s23 + $0x528] sm:$0xff]  ;;  %288 = vst [vmem:[%s3142_s24 + $0x288] sm:$0xff] %v287_v17 }
  0x3c   : > { %290 = vst [vmem:[%s3142_s24 + $0x290] sm:$0xff] %v289_v18  ;;  %292 = vst [vmem:[%s3142_s24 + $0x298] sm:$0xff] %v291_v19  ;;  %v293_v20 = vld [vmem:[%s3134_s23 + $0x540] sm:$0xff]  ;;  %v295_v21 = vld [vmem:[%s3134_s23 + $0x548] sm:$0xff] }
  0x3d   : > { %v297_v22 = vld [vmem:[%s3134_s23 + $0x560] sm:$0xff]  ;;  %294 = vst [vmem:[%s3142_s24 + $0x2a0] sm:$0xff] %v293_v20  ;;  %296 = vst [vmem:[%s3142_s24 + $0x2a8] sm:$0xff] %v295_v21  ;;  %v299_v23 = vld [vmem:[%s3134_s23 + $0x568] sm:$0xff] }
  0x3e   : > { %298 = vst [vmem:[%s3142_s24 + $0x2b0] sm:$0xff] %v297_v22  ;;  %v301_v24 = vld [vmem:[%s3134_s23 + $0x580] sm:$0xff]  ;;  %v303_v25 = vld [vmem:[%s3134_s23 + $0x588] sm:$0xff]  ;;  %300 = vst [vmem:[%s3142_s24 + $0x2b8] sm:$0xff] %v299_v23 }
  0x3f   : > { %302 = vst [vmem:[%s3142_s24 + $0x2c0] sm:$0xff] %v301_v24  ;;  %304 = vst [vmem:[%s3142_s24 + $0x2c8] sm:$0xff] %v303_v25  ;;  %v305_v26 = vld [vmem:[%s3134_s23 + $0x5a0] sm:$0xff]  ;;  %v307_v27 = vld [vmem:[%s3134_s23 + $0x5a8] sm:$0xff] }
  0x40   : > { %v309_v28 = vld [vmem:[%s3134_s23 + $0x5c0] sm:$0xff]  ;;  %306 = vst [vmem:[%s3142_s24 + $0x2d0] sm:$0xff] %v305_v26  ;;  %308 = vst [vmem:[%s3142_s24 + $0x2d8] sm:$0xff] %v307_v27  ;;  %v311_v29 = vld [vmem:[%s3134_s23 + $0x5c8] sm:$0xff] }
  0x41   : > { %310 = vst [vmem:[%s3142_s24 + $0x2e0] sm:$0xff] %v309_v28  ;;  %v313_v30 = vld [vmem:[%s3134_s23 + $0x5e0] sm:$0xff]  ;;  %v315_v31 = vld [vmem:[%s3134_s23 + $0x5e8] sm:$0xff]  ;;  %312 = vst [vmem:[%s3142_s24 + $0x2e8] sm:$0xff] %v311_v29 }
  0x42   : > { %314 = vst [vmem:[%s3142_s24 + $0x2f0] sm:$0xff] %v313_v30  ;;  %316 = vst [vmem:[%s3142_s24 + $0x2f8] sm:$0xff] %v315_v31  ;;  %v317_v32 = vld [vmem:[%s3134_s23 + $0x600] sm:$0xff]  ;;  %v319_v33 = vld [vmem:[%s3134_s23 + $0x608] sm:$0xff] }
  0x43   : > { %v321_v34 = vld [vmem:[%s3134_s23 + $0x620] sm:$0xff]  ;;  %318 = vst [vmem:[%s3142_s24 + $0x300] sm:$0xff] %v317_v32  ;;  %320 = vst [vmem:[%s3142_s24 + $0x308] sm:$0xff] %v319_v33  ;;  %v323_v35 = vld [vmem:[%s3134_s23 + $0x628] sm:$0xff] }
  0x44   : > { %322 = vst [vmem:[%s3142_s24 + $0x310] sm:$0xff] %v321_v34  ;;  %v325_v36 = vld [vmem:[%s3134_s23 + $0x640] sm:$0xff]  ;;  %v327_v37 = vld [vmem:[%s3134_s23 + $0x648] sm:$0xff]  ;;  %324 = vst [vmem:[%s3142_s24 + $0x318] sm:$0xff] %v323_v35 }
  0x45   : > { %326 = vst [vmem:[%s3142_s24 + $0x320] sm:$0xff] %v325_v36  ;;  %328 = vst [vmem:[%s3142_s24 + $0x328] sm:$0xff] %v327_v37  ;;  %v329_v38 = vld [vmem:[%s3134_s23 + $0x660] sm:$0xff]  ;;  %v331_v39 = vld [vmem:[%s3134_s23 + $0x668] sm:$0xff] }
  0x46   : > { %v333_v40 = vld [vmem:[%s3134_s23 + $0x680] sm:$0xff]  ;;  %330 = vst [vmem:[%s3142_s24 + $0x330] sm:$0xff] %v329_v38  ;;  %332 = vst [vmem:[%s3142_s24 + $0x338] sm:$0xff] %v331_v39  ;;  %v335_v41 = vld [vmem:[%s3134_s23 + $0x688] sm:$0xff] }
  0x47   : > { %334 = vst [vmem:[%s3142_s24 + $0x340] sm:$0xff] %v333_v40  ;;  %v337_v42 = vld [vmem:[%s3134_s23 + $0x6a0] sm:$0xff]  ;;  %v339_v43 = vld [vmem:[%s3134_s23 + $0x6a8] sm:$0xff]  ;;  %336 = vst [vmem:[%s3142_s24 + $0x348] sm:$0xff] %v335_v41 }
  0x48   : > { %338 = vst [vmem:[%s3142_s24 + $0x350] sm:$0xff] %v337_v42  ;;  %340 = vst [vmem:[%s3142_s24 + $0x358] sm:$0xff] %v339_v43  ;;  %v341_v44 = vld [vmem:[%s3134_s23 + $0x6c0] sm:$0xff]  ;;  %v343_v45 = vld [vmem:[%s3134_s23 + $0x6c8] sm:$0xff] }
  0x49   : > { %v345_v46 = vld [vmem:[%s3134_s23 + $0x6e0] sm:$0xff]  ;;  %342 = vst [vmem:[%s3142_s24 + $0x360] sm:$0xff] %v341_v44  ;;  %344 = vst [vmem:[%s3142_s24 + $0x368] sm:$0xff] %v343_v45  ;;  %v347_v47 = vld [vmem:[%s3134_s23 + $0x6e8] sm:$0xff] }
  0x4a   : > { %346 = vst [vmem:[%s3142_s24 + $0x370] sm:$0xff] %v345_v46  ;;  %v349_v48 = vld [vmem:[%s3134_s23 + $0x700] sm:$0xff]  ;;  %v351_v49 = vld [vmem:[%s3134_s23 + $0x708] sm:$0xff]  ;;  %348 = vst [vmem:[%s3142_s24 + $0x378] sm:$0xff] %v347_v47 }
  0x4b   : > { %350 = vst [vmem:[%s3142_s24 + $0x380] sm:$0xff] %v349_v48  ;;  %352 = vst [vmem:[%s3142_s24 + $0x388] sm:$0xff] %v351_v49  ;;  %v353_v50 = vld [vmem:[%s3134_s23 + $0x720] sm:$0xff]  ;;  %v355_v51 = vld [vmem:[%s3134_s23 + $0x728] sm:$0xff] }
  0x4c   : > { %v357_v52 = vld [vmem:[%s3134_s23 + $0x740] sm:$0xff]  ;;  %354 = vst [vmem:[%s3142_s24 + $0x390] sm:$0xff] %v353_v50  ;;  %356 = vst [vmem:[%s3142_s24 + $0x398] sm:$0xff] %v355_v51  ;;  %v359_v53 = vld [vmem:[%s3134_s23 + $0x748] sm:$0xff] }
  0x4d   : > { %358 = vst [vmem:[%s3142_s24 + $0x3a0] sm:$0xff] %v357_v52  ;;  %v361_v54 = vld [vmem:[%s3134_s23 + $0x760] sm:$0xff]  ;;  %v363_v55 = vld [vmem:[%s3134_s23 + $0x768] sm:$0xff]  ;;  %360 = vst [vmem:[%s3142_s24 + $0x3a8] sm:$0xff] %v359_v53 }
  0x4e   : > { %362 = vst [vmem:[%s3142_s24 + $0x3b0] sm:$0xff] %v361_v54  ;;  %364 = vst [vmem:[%s3142_s24 + $0x3b8] sm:$0xff] %v363_v55  ;;  %v365_v56 = vld [vmem:[%s3134_s23 + $0x780] sm:$0xff]  ;;  %v367_v57 = vld [vmem:[%s3134_s23 + $0x788] sm:$0xff] }
  0x4f   : > { %v369_v58 = vld [vmem:[%s3134_s23 + $0x7a0] sm:$0xff]  ;;  %366 = vst [vmem:[%s3142_s24 + $0x3c0] sm:$0xff] %v365_v56  ;;  %368 = vst [vmem:[%s3142_s24 + $0x3c8] sm:$0xff] %v367_v57  ;;  %v371_v59 = vld [vmem:[%s3134_s23 + $0x7a8] sm:$0xff] }
  0x50   : > { %370 = vst [vmem:[%s3142_s24 + $0x3d0] sm:$0xff] %v369_v58  ;;  %v373_v60 = vld [vmem:[%s3134_s23 + $0x7c0] sm:$0xff]  ;;  %v375_v61 = vld [vmem:[%s3134_s23 + $0x7c8] sm:$0xff]  ;;  %372 = vst [vmem:[%s3142_s24 + $0x3d8] sm:$0xff] %v371_v59 }
  0x51   : > { %374 = vst [vmem:[%s3142_s24 + $0x3e0] sm:$0xff] %v373_v60  ;;  %376 = vst [vmem:[%s3142_s24 + $0x3e8] sm:$0xff] %v375_v61  ;;  %v377_v62 = vld [vmem:[%s3134_s23 + $0x7e0] sm:$0xff]  ;;  %v379_v63 = vld [vmem:[%s3134_s23 + $0x7e8] sm:$0xff] }
  0x52   : > { %v381_v0 = vld [vmem:[%s3134_s23 + $0x800] sm:$0xff]  ;;  %378 = vst [vmem:[%s3142_s24 + $0x3f0] sm:$0xff] %v377_v62  ;;  %380 = vst [vmem:[%s3142_s24 + $0x3f8] sm:$0xff] %v379_v63  ;;  %v383_v1 = vld [vmem:[%s3134_s23 + $0x808] sm:$0xff] }
  0x53   : > { %382 = vst [vmem:[%s3142_s24 + $0x400] sm:$0xff] %v381_v0  ;;  %v385_v2 = vld [vmem:[%s3134_s23 + $0x820] sm:$0xff]  ;;  %v387_v3 = vld [vmem:[%s3134_s23 + $0x828] sm:$0xff]  ;;  %384 = vst [vmem:[%s3142_s24 + $0x408] sm:$0xff] %v383_v1 }
  0x54   : > { %386 = vst [vmem:[%s3142_s24 + $0x410] sm:$0xff] %v385_v2  ;;  %388 = vst [vmem:[%s3142_s24 + $0x418] sm:$0xff] %v387_v3  ;;  %v389_v4 = vld [vmem:[%s3134_s23 + $0x840] sm:$0xff]  ;;  %v391_v5 = vld [vmem:[%s3134_s23 + $0x848] sm:$0xff] }
  0x55   : > { %v393_v6 = vld [vmem:[%s3134_s23 + $0x860] sm:$0xff]  ;;  %390 = vst [vmem:[%s3142_s24 + $0x420] sm:$0xff] %v389_v4  ;;  %392 = vst [vmem:[%s3142_s24 + $0x428] sm:$0xff] %v391_v5  ;;  %v395_v7 = vld [vmem:[%s3134_s23 + $0x868] sm:$0xff] }
  0x56   : > { %394 = vst [vmem:[%s3142_s24 + $0x430] sm:$0xff] %v393_v6  ;;  %v397_v8 = vld [vmem:[%s3134_s23 + $0x880] sm:$0xff]  ;;  %v399_v9 = vld [vmem:[%s3134_s23 + $0x888] sm:$0xff]  ;;  %396 = vst [vmem:[%s3142_s24 + $0x438] sm:$0xff] %v395_v7 }
  0x57   : > { %398 = vst [vmem:[%s3142_s24 + $0x440] sm:$0xff] %v397_v8  ;;  %400 = vst [vmem:[%s3142_s24 + $0x448] sm:$0xff] %v399_v9  ;;  %v401_v10 = vld [vmem:[%s3134_s23 + $0x8a0] sm:$0xff]  ;;  %v403_v11 = vld [vmem:[%s3134_s23 + $0x8a8] sm:$0xff] }
  0x58   : > { %v405_v12 = vld [vmem:[%s3134_s23 + $0x8c0] sm:$0xff]  ;;  %402 = vst [vmem:[%s3142_s24 + $0x450] sm:$0xff] %v401_v10  ;;  %404 = vst [vmem:[%s3142_s24 + $0x458] sm:$0xff] %v403_v11  ;;  %v407_v13 = vld [vmem:[%s3134_s23 + $0x8c8] sm:$0xff] }
  0x59   : > { %406 = vst [vmem:[%s3142_s24 + $0x460] sm:$0xff] %v405_v12  ;;  %v409_v14 = vld [vmem:[%s3134_s23 + $0x8e0] sm:$0xff]  ;;  %v411_v15 = vld [vmem:[%s3134_s23 + $0x8e8] sm:$0xff]  ;;  %408 = vst [vmem:[%s3142_s24 + $0x468] sm:$0xff] %v407_v13 }
  0x5a   : > { %410 = vst [vmem:[%s3142_s24 + $0x470] sm:$0xff] %v409_v14  ;;  %412 = vst [vmem:[%s3142_s24 + $0x478] sm:$0xff] %v411_v15  ;;  %v413_v16 = vld [vmem:[%s3134_s23 + $0x900] sm:$0xff]  ;;  %v415_v17 = vld [vmem:[%s3134_s23 + $0x908] sm:$0xff] }
  0x5b   : > { %v417_v18 = vld [vmem:[%s3134_s23 + $0x920] sm:$0xff]  ;;  %414 = vst [vmem:[%s3142_s24 + $0x480] sm:$0xff] %v413_v16  ;;  %416 = vst [vmem:[%s3142_s24 + $0x488] sm:$0xff] %v415_v17  ;;  %v419_v19 = vld [vmem:[%s3134_s23 + $0x928] sm:$0xff] }
  0x5c   : > { %418 = vst [vmem:[%s3142_s24 + $0x490] sm:$0xff] %v417_v18  ;;  %v421_v20 = vld [vmem:[%s3134_s23 + $0x940] sm:$0xff]  ;;  %v423_v21 = vld [vmem:[%s3134_s23 + $0x948] sm:$0xff]  ;;  %420 = vst [vmem:[%s3142_s24 + $0x498] sm:$0xff] %v419_v19 }
  0x5d   : > { %422 = vst [vmem:[%s3142_s24 + $0x4a0] sm:$0xff] %v421_v20  ;;  %424 = vst [vmem:[%s3142_s24 + $0x4a8] sm:$0xff] %v423_v21  ;;  %v425_v22 = vld [vmem:[%s3134_s23 + $0x960] sm:$0xff]  ;;  %v427_v23 = vld [vmem:[%s3134_s23 + $0x968] sm:$0xff] }
  0x5e   : > { %v429_v24 = vld [vmem:[%s3134_s23 + $0x980] sm:$0xff]  ;;  %426 = vst [vmem:[%s3142_s24 + $0x4b0] sm:$0xff] %v425_v22  ;;  %428 = vst [vmem:[%s3142_s24 + $0x4b8] sm:$0xff] %v427_v23  ;;  %v431_v25 = vld [vmem:[%s3134_s23 + $0x988] sm:$0xff] }
  0x5f   : > { %430 = vst [vmem:[%s3142_s24 + $0x4c0] sm:$0xff] %v429_v24  ;;  %v433_v26 = vld [vmem:[%s3134_s23 + $0x9a0] sm:$0xff]  ;;  %v435_v27 = vld [vmem:[%s3134_s23 + $0x9a8] sm:$0xff]  ;;  %432 = vst [vmem:[%s3142_s24 + $0x4c8] sm:$0xff] %v431_v25 }
  0x60   : > { %434 = vst [vmem:[%s3142_s24 + $0x4d0] sm:$0xff] %v433_v26  ;;  %436 = vst [vmem:[%s3142_s24 + $0x4d8] sm:$0xff] %v435_v27  ;;  %v437_v28 = vld [vmem:[%s3134_s23 + $0x9c0] sm:$0xff]  ;;  %v439_v29 = vld [vmem:[%s3134_s23 + $0x9c8] sm:$0xff] }
  0x61   : > { %v441_v30 = vld [vmem:[%s3134_s23 + $0x9e0] sm:$0xff]  ;;  %438 = vst [vmem:[%s3142_s24 + $0x4e0] sm:$0xff] %v437_v28  ;;  %440 = vst [vmem:[%s3142_s24 + $0x4e8] sm:$0xff] %v439_v29  ;;  %v443_v31 = vld [vmem:[%s3134_s23 + $0x9e8] sm:$0xff] }
  0x62   : > { %442 = vst [vmem:[%s3142_s24 + $0x4f0] sm:$0xff] %v441_v30  ;;  %v445_v32 = vld [vmem:[%s3134_s23 + $0xa00] sm:$0xff]  ;;  %v447_v33 = vld [vmem:[%s3134_s23 + $0xa08] sm:$0xff]  ;;  %444 = vst [vmem:[%s3142_s24 + $0x4f8] sm:$0xff] %v443_v31 }
  0x63   : > { %446 = vst [vmem:[%s3142_s24 + $0x500] sm:$0xff] %v445_v32  ;;  %448 = vst [vmem:[%s3142_s24 + $0x508] sm:$0xff] %v447_v33  ;;  %v449_v34 = vld [vmem:[%s3134_s23 + $0xa20] sm:$0xff]  ;;  %v451_v35 = vld [vmem:[%s3134_s23 + $0xa28] sm:$0xff] }
  0x64   : > { %v453_v36 = vld [vmem:[%s3134_s23 + $0xa40] sm:$0xff]  ;;  %450 = vst [vmem:[%s3142_s24 + $0x510] sm:$0xff] %v449_v34  ;;  %452 = vst [vmem:[%s3142_s24 + $0x518] sm:$0xff] %v451_v35  ;;  %v455_v37 = vld [vmem:[%s3134_s23 + $0xa48] sm:$0xff] }
  0x65   : > { %454 = vst [vmem:[%s3142_s24 + $0x520] sm:$0xff] %v453_v36  ;;  %v457_v38 = vld [vmem:[%s3134_s23 + $0xa60] sm:$0xff]  ;;  %v459_v39 = vld [vmem:[%s3134_s23 + $0xa68] sm:$0xff]  ;;  %456 = vst [vmem:[%s3142_s24 + $0x528] sm:$0xff] %v455_v37 }
  0x66   : > { %458 = vst [vmem:[%s3142_s24 + $0x530] sm:$0xff] %v457_v38  ;;  %460 = vst [vmem:[%s3142_s24 + $0x538] sm:$0xff] %v459_v39  ;;  %v461_v40 = vld [vmem:[%s3134_s23 + $0xa80] sm:$0xff]  ;;  %v463_v41 = vld [vmem:[%s3134_s23 + $0xa88] sm:$0xff] }
  0x67   : > { %v465_v42 = vld [vmem:[%s3134_s23 + $0xaa0] sm:$0xff]  ;;  %462 = vst [vmem:[%s3142_s24 + $0x540] sm:$0xff] %v461_v40  ;;  %464 = vst [vmem:[%s3142_s24 + $0x548] sm:$0xff] %v463_v41  ;;  %v467_v43 = vld [vmem:[%s3134_s23 + $0xaa8] sm:$0xff] }
  0x68   : > { %466 = vst [vmem:[%s3142_s24 + $0x550] sm:$0xff] %v465_v42  ;;  %v469_v44 = vld [vmem:[%s3134_s23 + $0xac0] sm:$0xff]  ;;  %v471_v45 = vld [vmem:[%s3134_s23 + $0xac8] sm:$0xff]  ;;  %468 = vst [vmem:[%s3142_s24 + $0x558] sm:$0xff] %v467_v43 }
  0x69   : > { %470 = vst [vmem:[%s3142_s24 + $0x560] sm:$0xff] %v469_v44  ;;  %472 = vst [vmem:[%s3142_s24 + $0x568] sm:$0xff] %v471_v45  ;;  %v473_v46 = vld [vmem:[%s3134_s23 + $0xae0] sm:$0xff]  ;;  %v475_v47 = vld [vmem:[%s3134_s23 + $0xae8] sm:$0xff] }
  0x6a   : > { %v477_v48 = vld [vmem:[%s3134_s23 + $0xb00] sm:$0xff]  ;;  %474 = vst [vmem:[%s3142_s24 + $0x570] sm:$0xff] %v473_v46  ;;  %476 = vst [vmem:[%s3142_s24 + $0x578] sm:$0xff] %v475_v47  ;;  %v479_v49 = vld [vmem:[%s3134_s23 + $0xb08] sm:$0xff] }
  0x6b   : > { %478 = vst [vmem:[%s3142_s24 + $0x580] sm:$0xff] %v477_v48  ;;  %v481_v50 = vld [vmem:[%s3134_s23 + $0xb20] sm:$0xff]  ;;  %v483_v51 = vld [vmem:[%s3134_s23 + $0xb28] sm:$0xff]  ;;  %480 = vst [vmem:[%s3142_s24 + $0x588] sm:$0xff] %v479_v49 }
  0x6c   : > { %482 = vst [vmem:[%s3142_s24 + $0x590] sm:$0xff] %v481_v50  ;;  %484 = vst [vmem:[%s3142_s24 + $0x598] sm:$0xff] %v483_v51  ;;  %v485_v52 = vld [vmem:[%s3134_s23 + $0xb40] sm:$0xff]  ;;  %v487_v53 = vld [vmem:[%s3134_s23 + $0xb48] sm:$0xff] }
  0x6d   : > { %v489_v54 = vld [vmem:[%s3134_s23 + $0xb60] sm:$0xff]  ;;  %486 = vst [vmem:[%s3142_s24 + $0x5a0] sm:$0xff] %v485_v52  ;;  %488 = vst [vmem:[%s3142_s24 + $0x5a8] sm:$0xff] %v487_v53  ;;  %v491_v55 = vld [vmem:[%s3134_s23 + $0xb68] sm:$0xff] }
  0x6e   : > { %490 = vst [vmem:[%s3142_s24 + $0x5b0] sm:$0xff] %v489_v54  ;;  %v493_v56 = vld [vmem:[%s3134_s23 + $0xb80] sm:$0xff]  ;;  %v495_v57 = vld [vmem:[%s3134_s23 + $0xb88] sm:$0xff]  ;;  %492 = vst [vmem:[%s3142_s24 + $0x5b8] sm:$0xff] %v491_v55 }
  0x6f   : > { %494 = vst [vmem:[%s3142_s24 + $0x5c0] sm:$0xff] %v493_v56  ;;  %496 = vst [vmem:[%s3142_s24 + $0x5c8] sm:$0xff] %v495_v57  ;;  %v497_v58 = vld [vmem:[%s3134_s23 + $0xba0] sm:$0xff]  ;;  %v499_v59 = vld [vmem:[%s3134_s23 + $0xba8] sm:$0xff] }
  0x70   : > { %v501_v60 = vld [vmem:[%s3134_s23 + $0xbc0] sm:$0xff]  ;;  %498 = vst [vmem:[%s3142_s24 + $0x5d0] sm:$0xff] %v497_v58  ;;  %500 = vst [vmem:[%s3142_s24 + $0x5d8] sm:$0xff] %v499_v59  ;;  %v503_v61 = vld [vmem:[%s3134_s23 + $0xbc8] sm:$0xff] }
  0x71   : > { %502 = vst [vmem:[%s3142_s24 + $0x5e0] sm:$0xff] %v501_v60  ;;  %v505_v62 = vld [vmem:[%s3134_s23 + $0xbe0] sm:$0xff]  ;;  %v507_v63 = vld [vmem:[%s3134_s23 + $0xbe8] sm:$0xff]  ;;  %504 = vst [vmem:[%s3142_s24 + $0x5e8] sm:$0xff] %v503_v61 }
  0x72   : > { %506 = vst [vmem:[%s3142_s24 + $0x5f0] sm:$0xff] %v505_v62  ;;  %508 = vst [vmem:[%s3142_s24 + $0x5f8] sm:$0xff] %v507_v63  ;;  %v509_v0 = vld [vmem:[%s3134_s23 + $0xc00] sm:$0xff]  ;;  %v511_v1 = vld [vmem:[%s3134_s23 + $0xc08] sm:$0xff] }
  0x73   : > { %v513_v2 = vld [vmem:[%s3134_s23 + $0xc20] sm:$0xff]  ;;  %510 = vst [vmem:[%s3142_s24 + $0x600] sm:$0xff] %v509_v0  ;;  %512 = vst [vmem:[%s3142_s24 + $0x608] sm:$0xff] %v511_v1  ;;  %v515_v3 = vld [vmem:[%s3134_s23 + $0xc28] sm:$0xff] }
  0x74   : > { %514 = vst [vmem:[%s3142_s24 + $0x610] sm:$0xff] %v513_v2  ;;  %v517_v4 = vld [vmem:[%s3134_s23 + $0xc40] sm:$0xff]  ;;  %v519_v5 = vld [vmem:[%s3134_s23 + $0xc48] sm:$0xff]  ;;  %516 = vst [vmem:[%s3142_s24 + $0x618] sm:$0xff] %v515_v3 }
  0x75   : > { %518 = vst [vmem:[%s3142_s24 + $0x620] sm:$0xff] %v517_v4  ;;  %520 = vst [vmem:[%s3142_s24 + $0x628] sm:$0xff] %v519_v5  ;;  %v521_v6 = vld [vmem:[%s3134_s23 + $0xc60] sm:$0xff]  ;;  %v523_v7 = vld [vmem:[%s3134_s23 + $0xc68] sm:$0xff] }
  0x76   : > { %v525_v8 = vld [vmem:[%s3134_s23 + $0xc80] sm:$0xff]  ;;  %522 = vst [vmem:[%s3142_s24 + $0x630] sm:$0xff] %v521_v6  ;;  %524 = vst [vmem:[%s3142_s24 + $0x638] sm:$0xff] %v523_v7  ;;  %v527_v9 = vld [vmem:[%s3134_s23 + $0xc88] sm:$0xff] }
  0x77   : > { %526 = vst [vmem:[%s3142_s24 + $0x640] sm:$0xff] %v525_v8  ;;  %v529_v10 = vld [vmem:[%s3134_s23 + $0xca0] sm:$0xff]  ;;  %v531_v11 = vld [vmem:[%s3134_s23 + $0xca8] sm:$0xff]  ;;  %528 = vst [vmem:[%s3142_s24 + $0x648] sm:$0xff] %v527_v9 }
  0x78   : > { %530 = vst [vmem:[%s3142_s24 + $0x650] sm:$0xff] %v529_v10  ;;  %532 = vst [vmem:[%s3142_s24 + $0x658] sm:$0xff] %v531_v11  ;;  %v533_v12 = vld [vmem:[%s3134_s23 + $0xcc0] sm:$0xff]  ;;  %v535_v13 = vld [vmem:[%s3134_s23 + $0xcc8] sm:$0xff] }
  0x79   : > { %v537_v14 = vld [vmem:[%s3134_s23 + $0xce0] sm:$0xff]  ;;  %534 = vst [vmem:[%s3142_s24 + $0x660] sm:$0xff] %v533_v12  ;;  %536 = vst [vmem:[%s3142_s24 + $0x668] sm:$0xff] %v535_v13  ;;  %v539_v15 = vld [vmem:[%s3134_s23 + $0xce8] sm:$0xff] }
  0x7a   : > { %538 = vst [vmem:[%s3142_s24 + $0x670] sm:$0xff] %v537_v14  ;;  %v541_v16 = vld [vmem:[%s3134_s23 + $0xd00] sm:$0xff]  ;;  %v543_v17 = vld [vmem:[%s3134_s23 + $0xd08] sm:$0xff]  ;;  %540 = vst [vmem:[%s3142_s24 + $0x678] sm:$0xff] %v539_v15 }
  0x7b   : > { %542 = vst [vmem:[%s3142_s24 + $0x680] sm:$0xff] %v541_v16  ;;  %544 = vst [vmem:[%s3142_s24 + $0x688] sm:$0xff] %v543_v17  ;;  %v545_v18 = vld [vmem:[%s3134_s23 + $0xd20] sm:$0xff]  ;;  %v547_v19 = vld [vmem:[%s3134_s23 + $0xd28] sm:$0xff] }
  0x7c   : > { %v549_v20 = vld [vmem:[%s3134_s23 + $0xd40] sm:$0xff]  ;;  %546 = vst [vmem:[%s3142_s24 + $0x690] sm:$0xff] %v545_v18  ;;  %548 = vst [vmem:[%s3142_s24 + $0x698] sm:$0xff] %v547_v19  ;;  %v551_v21 = vld [vmem:[%s3134_s23 + $0xd48] sm:$0xff] }
  0x7d   : > { %550 = vst [vmem:[%s3142_s24 + $0x6a0] sm:$0xff] %v549_v20  ;;  %v553_v22 = vld [vmem:[%s3134_s23 + $0xd60] sm:$0xff]  ;;  %v555_v23 = vld [vmem:[%s3134_s23 + $0xd68] sm:$0xff]  ;;  %552 = vst [vmem:[%s3142_s24 + $0x6a8] sm:$0xff] %v551_v21 }
  0x7e   : > { %554 = vst [vmem:[%s3142_s24 + $0x6b0] sm:$0xff] %v553_v22  ;;  %556 = vst [vmem:[%s3142_s24 + $0x6b8] sm:$0xff] %v555_v23  ;;  %v557_v24 = vld [vmem:[%s3134_s23 + $0xd80] sm:$0xff]  ;;  %v559_v25 = vld [vmem:[%s3134_s23 + $0xd88] sm:$0xff] }
  0x7f   : > { %v561_v26 = vld [vmem:[%s3134_s23 + $0xda0] sm:$0xff]  ;;  %558 = vst [vmem:[%s3142_s24 + $0x6c0] sm:$0xff] %v557_v24  ;;  %560 = vst [vmem:[%s3142_s24 + $0x6c8] sm:$0xff] %v559_v25  ;;  %v563_v27 = vld [vmem:[%s3134_s23 + $0xda8] sm:$0xff] }
  0x80   : > { %562 = vst [vmem:[%s3142_s24 + $0x6d0] sm:$0xff] %v561_v26  ;;  %v565_v28 = vld [vmem:[%s3134_s23 + $0xdc0] sm:$0xff]  ;;  %v567_v29 = vld [vmem:[%s3134_s23 + $0xdc8] sm:$0xff]  ;;  %564 = vst [vmem:[%s3142_s24 + $0x6d8] sm:$0xff] %v563_v27 }
  0x81   : > { %566 = vst [vmem:[%s3142_s24 + $0x6e0] sm:$0xff] %v565_v28  ;;  %568 = vst [vmem:[%s3142_s24 + $0x6e8] sm:$0xff] %v567_v29  ;;  %v569_v30 = vld [vmem:[%s3134_s23 + $0xde0] sm:$0xff]  ;;  %v571_v31 = vld [vmem:[%s3134_s23 + $0xde8] sm:$0xff] }
  0x82   : > { %v573_v32 = vld [vmem:[%s3134_s23 + $0xe00] sm:$0xff]  ;;  %570 = vst [vmem:[%s3142_s24 + $0x6f0] sm:$0xff] %v569_v30  ;;  %572 = vst [vmem:[%s3142_s24 + $0x6f8] sm:$0xff] %v571_v31  ;;  %v575_v33 = vld [vmem:[%s3134_s23 + $0xe08] sm:$0xff] }
  0x83   : > { %574 = vst [vmem:[%s3142_s24 + $0x700] sm:$0xff] %v573_v32  ;;  %v577_v34 = vld [vmem:[%s3134_s23 + $0xe20] sm:$0xff]  ;;  %v579_v35 = vld [vmem:[%s3134_s23 + $0xe28] sm:$0xff]  ;;  %576 = vst [vmem:[%s3142_s24 + $0x708] sm:$0xff] %v575_v33 }
  0x84   : > { %578 = vst [vmem:[%s3142_s24 + $0x710] sm:$0xff] %v577_v34  ;;  %580 = vst [vmem:[%s3142_s24 + $0x718] sm:$0xff] %v579_v35  ;;  %v581_v36 = vld [vmem:[%s3134_s23 + $0xe40] sm:$0xff]  ;;  %v583_v37 = vld [vmem:[%s3134_s23 + $0xe48] sm:$0xff] }
  0x85   : > { %v585_v38 = vld [vmem:[%s3134_s23 + $0xe60] sm:$0xff]  ;;  %582 = vst [vmem:[%s3142_s24 + $0x720] sm:$0xff] %v581_v36  ;;  %584 = vst [vmem:[%s3142_s24 + $0x728] sm:$0xff] %v583_v37  ;;  %v587_v39 = vld [vmem:[%s3134_s23 + $0xe68] sm:$0xff] }
  0x86   : > { %586 = vst [vmem:[%s3142_s24 + $0x730] sm:$0xff] %v585_v38  ;;  %v589_v40 = vld [vmem:[%s3134_s23 + $0xe80] sm:$0xff]  ;;  %v591_v41 = vld [vmem:[%s3134_s23 + $0xe88] sm:$0xff]  ;;  %588 = vst [vmem:[%s3142_s24 + $0x738] sm:$0xff] %v587_v39 }
  0x87   : > { %590 = vst [vmem:[%s3142_s24 + $0x740] sm:$0xff] %v589_v40  ;;  %592 = vst [vmem:[%s3142_s24 + $0x748] sm:$0xff] %v591_v41  ;;  %v593_v42 = vld [vmem:[%s3134_s23 + $0xea0] sm:$0xff]  ;;  %v595_v43 = vld [vmem:[%s3134_s23 + $0xea8] sm:$0xff] }
  0x88   : > { %v597_v44 = vld [vmem:[%s3134_s23 + $0xec0] sm:$0xff]  ;;  %594 = vst [vmem:[%s3142_s24 + $0x750] sm:$0xff] %v593_v42  ;;  %596 = vst [vmem:[%s3142_s24 + $0x758] sm:$0xff] %v595_v43  ;;  %v599_v45 = vld [vmem:[%s3134_s23 + $0xec8] sm:$0xff] }
  0x89   : > { %598 = vst [vmem:[%s3142_s24 + $0x760] sm:$0xff] %v597_v44  ;;  %v601_v46 = vld [vmem:[%s3134_s23 + $0xee0] sm:$0xff]  ;;  %v603_v47 = vld [vmem:[%s3134_s23 + $0xee8] sm:$0xff]  ;;  %600 = vst [vmem:[%s3142_s24 + $0x768] sm:$0xff] %v599_v45 }
  0x8a   : > { %602 = vst [vmem:[%s3142_s24 + $0x770] sm:$0xff] %v601_v46  ;;  %604 = vst [vmem:[%s3142_s24 + $0x778] sm:$0xff] %v603_v47  ;;  %v605_v48 = vld [vmem:[%s3134_s23 + $0xf00] sm:$0xff]  ;;  %v607_v49 = vld [vmem:[%s3134_s23 + $0xf08] sm:$0xff] }
  0x8b   : > { %v609_v50 = vld [vmem:[%s3134_s23 + $0xf20] sm:$0xff]  ;;  %606 = vst [vmem:[%s3142_s24 + $0x780] sm:$0xff] %v605_v48  ;;  %608 = vst [vmem:[%s3142_s24 + $0x788] sm:$0xff] %v607_v49  ;;  %v611_v51 = vld [vmem:[%s3134_s23 + $0xf28] sm:$0xff] }
  0x8c   : > { %610 = vst [vmem:[%s3142_s24 + $0x790] sm:$0xff] %v609_v50  ;;  %v613_v52 = vld [vmem:[%s3134_s23 + $0xf40] sm:$0xff]  ;;  %v615_v53 = vld [vmem:[%s3134_s23 + $0xf48] sm:$0xff]  ;;  %612 = vst [vmem:[%s3142_s24 + $0x798] sm:$0xff] %v611_v51 }
  0x8d   : > { %614 = vst [vmem:[%s3142_s24 + $0x7a0] sm:$0xff] %v613_v52  ;;  %616 = vst [vmem:[%s3142_s24 + $0x7a8] sm:$0xff] %v615_v53  ;;  %v617_v54 = vld [vmem:[%s3134_s23 + $0xf60] sm:$0xff]  ;;  %v619_v55 = vld [vmem:[%s3134_s23 + $0xf68] sm:$0xff] }
  0x8e   : > { %v621_v56 = vld [vmem:[%s3134_s23 + $0xf80] sm:$0xff]  ;;  %618 = vst [vmem:[%s3142_s24 + $0x7b0] sm:$0xff] %v617_v54  ;;  %620 = vst [vmem:[%s3142_s24 + $0x7b8] sm:$0xff] %v619_v55  ;;  %v623_v57 = vld [vmem:[%s3134_s23 + $0xf88] sm:$0xff] }
  0x8f   : > { %622 = vst [vmem:[%s3142_s24 + $0x7c0] sm:$0xff] %v621_v56  ;;  %v625_v58 = vld [vmem:[%s3134_s23 + $0xfa0] sm:$0xff]  ;;  %v627_v59 = vld [vmem:[%s3134_s23 + $0xfa8] sm:$0xff]  ;;  %624 = vst [vmem:[%s3142_s24 + $0x7c8] sm:$0xff] %v623_v57 }
  0x90   : > { %626 = vst [vmem:[%s3142_s24 + $0x7d0] sm:$0xff] %v625_v58  ;;  %628 = vst [vmem:[%s3142_s24 + $0x7d8] sm:$0xff] %v627_v59  ;;  %v629_v60 = vld [vmem:[%s3134_s23 + $0xfc0] sm:$0xff]  ;;  %v631_v61 = vld [vmem:[%s3134_s23 + $0xfc8] sm:$0xff] }
  0x91   : > { %v633_v62 = vld [vmem:[%s3134_s23 + $0xfe0] sm:$0xff]  ;;  %630 = vst [vmem:[%s3142_s24 + $0x7e0] sm:$0xff] %v629_v60  ;;  %632 = vst [vmem:[%s3142_s24 + $0x7e8] sm:$0xff] %v631_v61  ;;  %v635_v63 = vld [vmem:[%s3134_s23 + $0xfe8] sm:$0xff] }
  0x92   : > { %634 = vst [vmem:[%s3142_s24 + $0x7f0] sm:$0xff] %v633_v62  ;;  %v637_v0 = vld [vmem:[%s3134_s23 + $0x1000] sm:$0xff]  ;;  %v639_v1 = vld [vmem:[%s3134_s23 + $0x1008] sm:$0xff]  ;;  %636 = vst [vmem:[%s3142_s24 + $0x7f8] sm:$0xff] %v635_v63 }
  0x93   : > { %638 = vst [vmem:[%s3142_s24 + $0x800] sm:$0xff] %v637_v0  ;;  %640 = vst [vmem:[%s3142_s24 + $0x808] sm:$0xff] %v639_v1  ;;  %v641_v2 = vld [vmem:[%s3134_s23 + $0x1020] sm:$0xff]  ;;  %v643_v3 = vld [vmem:[%s3134_s23 + $0x1028] sm:$0xff] }
  0x94   : > { %v645_v4 = vld [vmem:[%s3134_s23 + $0x1040] sm:$0xff]  ;;  %642 = vst [vmem:[%s3142_s24 + $0x810] sm:$0xff] %v641_v2  ;;  %644 = vst [vmem:[%s3142_s24 + $0x818] sm:$0xff] %v643_v3  ;;  %v647_v5 = vld [vmem:[%s3134_s23 + $0x1048] sm:$0xff] }
  0x95   : > { %646 = vst [vmem:[%s3142_s24 + $0x820] sm:$0xff] %v645_v4  ;;  %v649_v6 = vld [vmem:[%s3134_s23 + $0x1060] sm:$0xff]  ;;  %v651_v7 = vld [vmem:[%s3134_s23 + $0x1068] sm:$0xff]  ;;  %648 = vst [vmem:[%s3142_s24 + $0x828] sm:$0xff] %v647_v5 }
  0x96   : > { %650 = vst [vmem:[%s3142_s24 + $0x830] sm:$0xff] %v649_v6  ;;  %652 = vst [vmem:[%s3142_s24 + $0x838] sm:$0xff] %v651_v7  ;;  %v653_v8 = vld [vmem:[%s3134_s23 + $0x1080] sm:$0xff]  ;;  %v655_v9 = vld [vmem:[%s3134_s23 + $0x1088] sm:$0xff] }
  0x97   : > { %v657_v10 = vld [vmem:[%s3134_s23 + $0x10a0] sm:$0xff]  ;;  %654 = vst [vmem:[%s3142_s24 + $0x840] sm:$0xff] %v653_v8  ;;  %656 = vst [vmem:[%s3142_s24 + $0x848] sm:$0xff] %v655_v9  ;;  %v659_v11 = vld [vmem:[%s3134_s23 + $0x10a8] sm:$0xff] }
  0x98   : > { %658 = vst [vmem:[%s3142_s24 + $0x850] sm:$0xff] %v657_v10  ;;  %v661_v12 = vld [vmem:[%s3134_s23 + $0x10c0] sm:$0xff]  ;;  %v663_v13 = vld [vmem:[%s3134_s23 + $0x10c8] sm:$0xff]  ;;  %660 = vst [vmem:[%s3142_s24 + $0x858] sm:$0xff] %v659_v11 }
  0x99   : > { %662 = vst [vmem:[%s3142_s24 + $0x860] sm:$0xff] %v661_v12  ;;  %664 = vst [vmem:[%s3142_s24 + $0x868] sm:$0xff] %v663_v13  ;;  %v665_v14 = vld [vmem:[%s3134_s23 + $0x10e0] sm:$0xff]  ;;  %v667_v15 = vld [vmem:[%s3134_s23 + $0x10e8] sm:$0xff] }
  0x9a   : > { %v669_v16 = vld [vmem:[%s3134_s23 + $0x1100] sm:$0xff]  ;;  %666 = vst [vmem:[%s3142_s24 + $0x870] sm:$0xff] %v665_v14  ;;  %668 = vst [vmem:[%s3142_s24 + $0x878] sm:$0xff] %v667_v15  ;;  %v671_v17 = vld [vmem:[%s3134_s23 + $0x1108] sm:$0xff] }
  0x9b   : > { %670 = vst [vmem:[%s3142_s24 + $0x880] sm:$0xff] %v669_v16  ;;  %v673_v18 = vld [vmem:[%s3134_s23 + $0x1120] sm:$0xff]  ;;  %v675_v19 = vld [vmem:[%s3134_s23 + $0x1128] sm:$0xff]  ;;  %672 = vst [vmem:[%s3142_s24 + $0x888] sm:$0xff] %v671_v17 }
  0x9c   : > { %674 = vst [vmem:[%s3142_s24 + $0x890] sm:$0xff] %v673_v18  ;;  %676 = vst [vmem:[%s3142_s24 + $0x898] sm:$0xff] %v675_v19  ;;  %v677_v20 = vld [vmem:[%s3134_s23 + $0x1140] sm:$0xff]  ;;  %v679_v21 = vld [vmem:[%s3134_s23 + $0x1148] sm:$0xff] }
  0x9d   : > { %v681_v22 = vld [vmem:[%s3134_s23 + $0x1160] sm:$0xff]  ;;  %678 = vst [vmem:[%s3142_s24 + $0x8a0] sm:$0xff] %v677_v20  ;;  %680 = vst [vmem:[%s3142_s24 + $0x8a8] sm:$0xff] %v679_v21  ;;  %v683_v23 = vld [vmem:[%s3134_s23 + $0x1168] sm:$0xff] }
  0x9e   : > { %682 = vst [vmem:[%s3142_s24 + $0x8b0] sm:$0xff] %v681_v22  ;;  %v685_v24 = vld [vmem:[%s3134_s23 + $0x1180] sm:$0xff]  ;;  %v687_v25 = vld [vmem:[%s3134_s23 + $0x1188] sm:$0xff]  ;;  %684 = vst [vmem:[%s3142_s24 + $0x8b8] sm:$0xff] %v683_v23 }
  0x9f   : > { %686 = vst [vmem:[%s3142_s24 + $0x8c0] sm:$0xff] %v685_v24  ;;  %688 = vst [vmem:[%s3142_s24 + $0x8c8] sm:$0xff] %v687_v25  ;;  %v689_v26 = vld [vmem:[%s3134_s23 + $0x11a0] sm:$0xff]  ;;  %v691_v27 = vld [vmem:[%s3134_s23 + $0x11a8] sm:$0xff] }
  0xa0   : > { %v693_v28 = vld [vmem:[%s3134_s23 + $0x11c0] sm:$0xff]  ;;  %690 = vst [vmem:[%s3142_s24 + $0x8d0] sm:$0xff] %v689_v26  ;;  %692 = vst [vmem:[%s3142_s24 + $0x8d8] sm:$0xff] %v691_v27  ;;  %v695_v29 = vld [vmem:[%s3134_s23 + $0x11c8] sm:$0xff] }
  0xa1   : > { %694 = vst [vmem:[%s3142_s24 + $0x8e0] sm:$0xff] %v693_v28  ;;  %v697_v30 = vld [vmem:[%s3134_s23 + $0x11e0] sm:$0xff]  ;;  %v699_v31 = vld [vmem:[%s3134_s23 + $0x11e8] sm:$0xff]  ;;  %696 = vst [vmem:[%s3142_s24 + $0x8e8] sm:$0xff] %v695_v29 }
  0xa2   : > { %698 = vst [vmem:[%s3142_s24 + $0x8f0] sm:$0xff] %v697_v30  ;;  %700 = vst [vmem:[%s3142_s24 + $0x8f8] sm:$0xff] %v699_v31  ;;  %v701_v32 = vld [vmem:[%s3134_s23 + $0x1200] sm:$0xff]  ;;  %v703_v33 = vld [vmem:[%s3134_s23 + $0x1208] sm:$0xff] }
  0xa3   : > { %v705_v34 = vld [vmem:[%s3134_s23 + $0x1220] sm:$0xff]  ;;  %702 = vst [vmem:[%s3142_s24 + $0x900] sm:$0xff] %v701_v32  ;;  %704 = vst [vmem:[%s3142_s24 + $0x908] sm:$0xff] %v703_v33  ;;  %v707_v35 = vld [vmem:[%s3134_s23 + $0x1228] sm:$0xff] }
  0xa4   : > { %706 = vst [vmem:[%s3142_s24 + $0x910] sm:$0xff] %v705_v34  ;;  %v709_v36 = vld [vmem:[%s3134_s23 + $0x1240] sm:$0xff]  ;;  %v711_v37 = vld [vmem:[%s3134_s23 + $0x1248] sm:$0xff]  ;;  %708 = vst [vmem:[%s3142_s24 + $0x918] sm:$0xff] %v707_v35 }
  0xa5   : > { %710 = vst [vmem:[%s3142_s24 + $0x920] sm:$0xff] %v709_v36  ;;  %712 = vst [vmem:[%s3142_s24 + $0x928] sm:$0xff] %v711_v37  ;;  %v713_v38 = vld [vmem:[%s3134_s23 + $0x1260] sm:$0xff]  ;;  %v715_v39 = vld [vmem:[%s3134_s23 + $0x1268] sm:$0xff] }
  0xa6   : > { %v717_v40 = vld [vmem:[%s3134_s23 + $0x1280] sm:$0xff]  ;;  %714 = vst [vmem:[%s3142_s24 + $0x930] sm:$0xff] %v713_v38  ;;  %716 = vst [vmem:[%s3142_s24 + $0x938] sm:$0xff] %v715_v39  ;;  %v719_v41 = vld [vmem:[%s3134_s23 + $0x1288] sm:$0xff] }
  0xa7   : > { %718 = vst [vmem:[%s3142_s24 + $0x940] sm:$0xff] %v717_v40  ;;  %v721_v42 = vld [vmem:[%s3134_s23 + $0x12a0] sm:$0xff]  ;;  %v723_v43 = vld [vmem:[%s3134_s23 + $0x12a8] sm:$0xff]  ;;  %720 = vst [vmem:[%s3142_s24 + $0x948] sm:$0xff] %v719_v41 }
  0xa8   : > { %722 = vst [vmem:[%s3142_s24 + $0x950] sm:$0xff] %v721_v42  ;;  %724 = vst [vmem:[%s3142_s24 + $0x958] sm:$0xff] %v723_v43  ;;  %v725_v44 = vld [vmem:[%s3134_s23 + $0x12c0] sm:$0xff]  ;;  %v727_v45 = vld [vmem:[%s3134_s23 + $0x12c8] sm:$0xff] }
  0xa9   : > { %v729_v46 = vld [vmem:[%s3134_s23 + $0x12e0] sm:$0xff]  ;;  %726 = vst [vmem:[%s3142_s24 + $0x960] sm:$0xff] %v725_v44  ;;  %728 = vst [vmem:[%s3142_s24 + $0x968] sm:$0xff] %v727_v45  ;;  %v731_v47 = vld [vmem:[%s3134_s23 + $0x12e8] sm:$0xff] }
  0xaa   : > { %730 = vst [vmem:[%s3142_s24 + $0x970] sm:$0xff] %v729_v46  ;;  %v733_v48 = vld [vmem:[%s3134_s23 + $0x1300] sm:$0xff]  ;;  %v735_v49 = vld [vmem:[%s3134_s23 + $0x1308] sm:$0xff]  ;;  %732 = vst [vmem:[%s3142_s24 + $0x978] sm:$0xff] %v731_v47 }
  0xab   : > { %734 = vst [vmem:[%s3142_s24 + $0x980] sm:$0xff] %v733_v48  ;;  %736 = vst [vmem:[%s3142_s24 + $0x988] sm:$0xff] %v735_v49  ;;  %v737_v50 = vld [vmem:[%s3134_s23 + $0x1320] sm:$0xff]  ;;  %v739_v51 = vld [vmem:[%s3134_s23 + $0x1328] sm:$0xff] }
  0xac   : > { %v741_v52 = vld [vmem:[%s3134_s23 + $0x1340] sm:$0xff]  ;;  %738 = vst [vmem:[%s3142_s24 + $0x990] sm:$0xff] %v737_v50  ;;  %740 = vst [vmem:[%s3142_s24 + $0x998] sm:$0xff] %v739_v51  ;;  %v743_v53 = vld [vmem:[%s3134_s23 + $0x1348] sm:$0xff] }
  0xad   : > { %742 = vst [vmem:[%s3142_s24 + $0x9a0] sm:$0xff] %v741_v52  ;;  %v745_v54 = vld [vmem:[%s3134_s23 + $0x1360] sm:$0xff]  ;;  %v747_v55 = vld [vmem:[%s3134_s23 + $0x1368] sm:$0xff]  ;;  %744 = vst [vmem:[%s3142_s24 + $0x9a8] sm:$0xff] %v743_v53 }
  0xae   : > { %746 = vst [vmem:[%s3142_s24 + $0x9b0] sm:$0xff] %v745_v54  ;;  %748 = vst [vmem:[%s3142_s24 + $0x9b8] sm:$0xff] %v747_v55  ;;  %v749_v56 = vld [vmem:[%s3134_s23 + $0x1380] sm:$0xff]  ;;  %v751_v57 = vld [vmem:[%s3134_s23 + $0x1388] sm:$0xff] }
  0xaf   : > { %v753_v58 = vld [vmem:[%s3134_s23 + $0x13a0] sm:$0xff]  ;;  %750 = vst [vmem:[%s3142_s24 + $0x9c0] sm:$0xff] %v749_v56  ;;  %752 = vst [vmem:[%s3142_s24 + $0x9c8] sm:$0xff] %v751_v57  ;;  %v755_v59 = vld [vmem:[%s3134_s23 + $0x13a8] sm:$0xff] }
  0xb0   : > { %754 = vst [vmem:[%s3142_s24 + $0x9d0] sm:$0xff] %v753_v58  ;;  %v757_v60 = vld [vmem:[%s3134_s23 + $0x13c0] sm:$0xff]  ;;  %v759_v61 = vld [vmem:[%s3134_s23 + $0x13c8] sm:$0xff]  ;;  %756 = vst [vmem:[%s3142_s24 + $0x9d8] sm:$0xff] %v755_v59 }
  0xb1   : > { %758 = vst [vmem:[%s3142_s24 + $0x9e0] sm:$0xff] %v757_v60  ;;  %760 = vst [vmem:[%s3142_s24 + $0x9e8] sm:$0xff] %v759_v61  ;;  %v761_v62 = vld [vmem:[%s3134_s23 + $0x13e0] sm:$0xff]  ;;  %v763_v63 = vld [vmem:[%s3134_s23 + $0x13e8] sm:$0xff] }
  0xb2   : > { %v765_v0 = vld [vmem:[%s3134_s23 + $0x1400] sm:$0xff]  ;;  %762 = vst [vmem:[%s3142_s24 + $0x9f0] sm:$0xff] %v761_v62  ;;  %764 = vst [vmem:[%s3142_s24 + $0x9f8] sm:$0xff] %v763_v63  ;;  %v767_v1 = vld [vmem:[%s3134_s23 + $0x1408] sm:$0xff] }
  0xb3   : > { %766 = vst [vmem:[%s3142_s24 + $0xa00] sm:$0xff] %v765_v0  ;;  %v769_v2 = vld [vmem:[%s3134_s23 + $0x1420] sm:$0xff]  ;;  %v771_v3 = vld [vmem:[%s3134_s23 + $0x1428] sm:$0xff]  ;;  %768 = vst [vmem:[%s3142_s24 + $0xa08] sm:$0xff] %v767_v1 }
  0xb4   : > { %770 = vst [vmem:[%s3142_s24 + $0xa10] sm:$0xff] %v769_v2  ;;  %772 = vst [vmem:[%s3142_s24 + $0xa18] sm:$0xff] %v771_v3  ;;  %v773_v4 = vld [vmem:[%s3134_s23 + $0x1440] sm:$0xff]  ;;  %v775_v5 = vld [vmem:[%s3134_s23 + $0x1448] sm:$0xff] }
  0xb5   : > { %v777_v6 = vld [vmem:[%s3134_s23 + $0x1460] sm:$0xff]  ;;  %774 = vst [vmem:[%s3142_s24 + $0xa20] sm:$0xff] %v773_v4  ;;  %776 = vst [vmem:[%s3142_s24 + $0xa28] sm:$0xff] %v775_v5  ;;  %v779_v7 = vld [vmem:[%s3134_s23 + $0x1468] sm:$0xff] }
  0xb6   : > { %778 = vst [vmem:[%s3142_s24 + $0xa30] sm:$0xff] %v777_v6  ;;  %v781_v8 = vld [vmem:[%s3134_s23 + $0x1480] sm:$0xff]  ;;  %v783_v9 = vld [vmem:[%s3134_s23 + $0x1488] sm:$0xff]  ;;  %780 = vst [vmem:[%s3142_s24 + $0xa38] sm:$0xff] %v779_v7 }
  0xb7   : > { %782 = vst [vmem:[%s3142_s24 + $0xa40] sm:$0xff] %v781_v8  ;;  %784 = vst [vmem:[%s3142_s24 + $0xa48] sm:$0xff] %v783_v9  ;;  %v785_v10 = vld [vmem:[%s3134_s23 + $0x14a0] sm:$0xff]  ;;  %v787_v11 = vld [vmem:[%s3134_s23 + $0x14a8] sm:$0xff] }
  0xb8   : > { %v789_v12 = vld [vmem:[%s3134_s23 + $0x14c0] sm:$0xff]  ;;  %786 = vst [vmem:[%s3142_s24 + $0xa50] sm:$0xff] %v785_v10  ;;  %788 = vst [vmem:[%s3142_s24 + $0xa58] sm:$0xff] %v787_v11  ;;  %v791_v13 = vld [vmem:[%s3134_s23 + $0x14c8] sm:$0xff] }
  0xb9   : > { %790 = vst [vmem:[%s3142_s24 + $0xa60] sm:$0xff] %v789_v12  ;;  %v793_v14 = vld [vmem:[%s3134_s23 + $0x14e0] sm:$0xff]  ;;  %v795_v15 = vld [vmem:[%s3134_s23 + $0x14e8] sm:$0xff]  ;;  %792 = vst [vmem:[%s3142_s24 + $0xa68] sm:$0xff] %v791_v13 }
  0xba   : > { %794 = vst [vmem:[%s3142_s24 + $0xa70] sm:$0xff] %v793_v14  ;;  %796 = vst [vmem:[%s3142_s24 + $0xa78] sm:$0xff] %v795_v15  ;;  %v797_v16 = vld [vmem:[%s3134_s23 + $0x1500] sm:$0xff]  ;;  %v799_v17 = vld [vmem:[%s3134_s23 + $0x1508] sm:$0xff] }
  0xbb   : > { %v801_v18 = vld [vmem:[%s3134_s23 + $0x1520] sm:$0xff]  ;;  %798 = vst [vmem:[%s3142_s24 + $0xa80] sm:$0xff] %v797_v16  ;;  %800 = vst [vmem:[%s3142_s24 + $0xa88] sm:$0xff] %v799_v17  ;;  %v803_v19 = vld [vmem:[%s3134_s23 + $0x1528] sm:$0xff] }
  0xbc   : > { %802 = vst [vmem:[%s3142_s24 + $0xa90] sm:$0xff] %v801_v18  ;;  %v805_v20 = vld [vmem:[%s3134_s23 + $0x1540] sm:$0xff]  ;;  %v807_v21 = vld [vmem:[%s3134_s23 + $0x1548] sm:$0xff]  ;;  %804 = vst [vmem:[%s3142_s24 + $0xa98] sm:$0xff] %v803_v19 }
  0xbd   : > { %806 = vst [vmem:[%s3142_s24 + $0xaa0] sm:$0xff] %v805_v20  ;;  %808 = vst [vmem:[%s3142_s24 + $0xaa8] sm:$0xff] %v807_v21  ;;  %v809_v22 = vld [vmem:[%s3134_s23 + $0x1560] sm:$0xff]  ;;  %v811_v23 = vld [vmem:[%s3134_s23 + $0x1568] sm:$0xff] }
  0xbe   : > { %v813_v24 = vld [vmem:[%s3134_s23 + $0x1580] sm:$0xff]  ;;  %810 = vst [vmem:[%s3142_s24 + $0xab0] sm:$0xff] %v809_v22  ;;  %812 = vst [vmem:[%s3142_s24 + $0xab8] sm:$0xff] %v811_v23  ;;  %v815_v25 = vld [vmem:[%s3134_s23 + $0x1588] sm:$0xff] }
  0xbf   : > { %814 = vst [vmem:[%s3142_s24 + $0xac0] sm:$0xff] %v813_v24  ;;  %v817_v26 = vld [vmem:[%s3134_s23 + $0x15a0] sm:$0xff]  ;;  %v819_v27 = vld [vmem:[%s3134_s23 + $0x15a8] sm:$0xff]  ;;  %816 = vst [vmem:[%s3142_s24 + $0xac8] sm:$0xff] %v815_v25 }
  0xc0   : > { %818 = vst [vmem:[%s3142_s24 + $0xad0] sm:$0xff] %v817_v26  ;;  %820 = vst [vmem:[%s3142_s24 + $0xad8] sm:$0xff] %v819_v27  ;;  %v821_v28 = vld [vmem:[%s3134_s23 + $0x15c0] sm:$0xff]  ;;  %v823_v29 = vld [vmem:[%s3134_s23 + $0x15c8] sm:$0xff] }
  0xc1   : > { %v825_v30 = vld [vmem:[%s3134_s23 + $0x15e0] sm:$0xff]  ;;  %822 = vst [vmem:[%s3142_s24 + $0xae0] sm:$0xff] %v821_v28  ;;  %824 = vst [vmem:[%s3142_s24 + $0xae8] sm:$0xff] %v823_v29  ;;  %v827_v31 = vld [vmem:[%s3134_s23 + $0x15e8] sm:$0xff] }
  0xc2   : > { %826 = vst [vmem:[%s3142_s24 + $0xaf0] sm:$0xff] %v825_v30  ;;  %v829_v32 = vld [vmem:[%s3134_s23 + $0x1600] sm:$0xff]  ;;  %v831_v33 = vld [vmem:[%s3134_s23 + $0x1608] sm:$0xff]  ;;  %828 = vst [vmem:[%s3142_s24 + $0xaf8] sm:$0xff] %v827_v31 }
  0xc3   : > { %830 = vst [vmem:[%s3142_s24 + $0xb00] sm:$0xff] %v829_v32  ;;  %832 = vst [vmem:[%s3142_s24 + $0xb08] sm:$0xff] %v831_v33  ;;  %v833_v34 = vld [vmem:[%s3134_s23 + $0x1620] sm:$0xff]  ;;  %v835_v35 = vld [vmem:[%s3134_s23 + $0x1628] sm:$0xff] }
  0xc4   : > { %v837_v36 = vld [vmem:[%s3134_s23 + $0x1640] sm:$0xff]  ;;  %834 = vst [vmem:[%s3142_s24 + $0xb10] sm:$0xff] %v833_v34  ;;  %836 = vst [vmem:[%s3142_s24 + $0xb18] sm:$0xff] %v835_v35  ;;  %v839_v37 = vld [vmem:[%s3134_s23 + $0x1648] sm:$0xff] }
  0xc5   : > { %838 = vst [vmem:[%s3142_s24 + $0xb20] sm:$0xff] %v837_v36  ;;  %v841_v38 = vld [vmem:[%s3134_s23 + $0x1660] sm:$0xff]  ;;  %v843_v39 = vld [vmem:[%s3134_s23 + $0x1668] sm:$0xff]  ;;  %840 = vst [vmem:[%s3142_s24 + $0xb28] sm:$0xff] %v839_v37 }
  0xc6   : > { %842 = vst [vmem:[%s3142_s24 + $0xb30] sm:$0xff] %v841_v38  ;;  %844 = vst [vmem:[%s3142_s24 + $0xb38] sm:$0xff] %v843_v39  ;;  %v845_v40 = vld [vmem:[%s3134_s23 + $0x1680] sm:$0xff]  ;;  %v847_v41 = vld [vmem:[%s3134_s23 + $0x1688] sm:$0xff] }
  0xc7   : > { %v849_v42 = vld [vmem:[%s3134_s23 + $0x16a0] sm:$0xff]  ;;  %846 = vst [vmem:[%s3142_s24 + $0xb40] sm:$0xff] %v845_v40  ;;  %848 = vst [vmem:[%s3142_s24 + $0xb48] sm:$0xff] %v847_v41  ;;  %v851_v43 = vld [vmem:[%s3134_s23 + $0x16a8] sm:$0xff] }
  0xc8   : > { %850 = vst [vmem:[%s3142_s24 + $0xb50] sm:$0xff] %v849_v42  ;;  %v853_v44 = vld [vmem:[%s3134_s23 + $0x16c0] sm:$0xff]  ;;  %v855_v45 = vld [vmem:[%s3134_s23 + $0x16c8] sm:$0xff]  ;;  %852 = vst [vmem:[%s3142_s24 + $0xb58] sm:$0xff] %v851_v43 }
  0xc9   : > { %854 = vst [vmem:[%s3142_s24 + $0xb60] sm:$0xff] %v853_v44  ;;  %856 = vst [vmem:[%s3142_s24 + $0xb68] sm:$0xff] %v855_v45  ;;  %v857_v46 = vld [vmem:[%s3134_s23 + $0x16e0] sm:$0xff]  ;;  %v859_v47 = vld [vmem:[%s3134_s23 + $0x16e8] sm:$0xff] }
  0xca   : > { %v861_v48 = vld [vmem:[%s3134_s23 + $0x1700] sm:$0xff]  ;;  %858 = vst [vmem:[%s3142_s24 + $0xb70] sm:$0xff] %v857_v46  ;;  %860 = vst [vmem:[%s3142_s24 + $0xb78] sm:$0xff] %v859_v47  ;;  %v863_v49 = vld [vmem:[%s3134_s23 + $0x1708] sm:$0xff] }
  0xcb   : > { %862 = vst [vmem:[%s3142_s24 + $0xb80] sm:$0xff] %v861_v48  ;;  %v865_v50 = vld [vmem:[%s3134_s23 + $0x1720] sm:$0xff]  ;;  %v867_v51 = vld [vmem:[%s3134_s23 + $0x1728] sm:$0xff]  ;;  %864 = vst [vmem:[%s3142_s24 + $0xb88] sm:$0xff] %v863_v49 }
  0xcc   : > { %866 = vst [vmem:[%s3142_s24 + $0xb90] sm:$0xff] %v865_v50  ;;  %868 = vst [vmem:[%s3142_s24 + $0xb98] sm:$0xff] %v867_v51  ;;  %v869_v52 = vld [vmem:[%s3134_s23 + $0x1740] sm:$0xff]  ;;  %v871_v53 = vld [vmem:[%s3134_s23 + $0x1748] sm:$0xff] }
  0xcd   : > { %v873_v54 = vld [vmem:[%s3134_s23 + $0x1760] sm:$0xff]  ;;  %870 = vst [vmem:[%s3142_s24 + $0xba0] sm:$0xff] %v869_v52  ;;  %872 = vst [vmem:[%s3142_s24 + $0xba8] sm:$0xff] %v871_v53  ;;  %v875_v55 = vld [vmem:[%s3134_s23 + $0x1768] sm:$0xff] }
  0xce   : > { %874 = vst [vmem:[%s3142_s24 + $0xbb0] sm:$0xff] %v873_v54  ;;  %v877_v56 = vld [vmem:[%s3134_s23 + $0x1780] sm:$0xff]  ;;  %v879_v57 = vld [vmem:[%s3134_s23 + $0x1788] sm:$0xff]  ;;  %876 = vst [vmem:[%s3142_s24 + $0xbb8] sm:$0xff] %v875_v55 }
  0xcf   : > { %878 = vst [vmem:[%s3142_s24 + $0xbc0] sm:$0xff] %v877_v56  ;;  %880 = vst [vmem:[%s3142_s24 + $0xbc8] sm:$0xff] %v879_v57  ;;  %v881_v58 = vld [vmem:[%s3134_s23 + $0x17a0] sm:$0xff]  ;;  %v883_v59 = vld [vmem:[%s3134_s23 + $0x17a8] sm:$0xff] }
  0xd0   : > { %v885_v60 = vld [vmem:[%s3134_s23 + $0x17c0] sm:$0xff]  ;;  %882 = vst [vmem:[%s3142_s24 + $0xbd0] sm:$0xff] %v881_v58  ;;  %884 = vst [vmem:[%s3142_s24 + $0xbd8] sm:$0xff] %v883_v59  ;;  %v887_v61 = vld [vmem:[%s3134_s23 + $0x17c8] sm:$0xff] }
  0xd1   : > { %886 = vst [vmem:[%s3142_s24 + $0xbe0] sm:$0xff] %v885_v60  ;;  %v889_v62 = vld [vmem:[%s3134_s23 + $0x17e0] sm:$0xff]  ;;  %v891_v63 = vld [vmem:[%s3134_s23 + $0x17e8] sm:$0xff]  ;;  %888 = vst [vmem:[%s3142_s24 + $0xbe8] sm:$0xff] %v887_v61 }
  0xd2   : > { %890 = vst [vmem:[%s3142_s24 + $0xbf0] sm:$0xff] %v889_v62  ;;  %892 = vst [vmem:[%s3142_s24 + $0xbf8] sm:$0xff] %v891_v63  ;;  %v893_v0 = vld [vmem:[%s3134_s23 + $0x1800] sm:$0xff]  ;;  %v895_v1 = vld [vmem:[%s3134_s23 + $0x1808] sm:$0xff] }
  0xd3   : > { %v897_v2 = vld [vmem:[%s3134_s23 + $0x1820] sm:$0xff]  ;;  %894 = vst [vmem:[%s3142_s24 + $0xc00] sm:$0xff] %v893_v0  ;;  %896 = vst [vmem:[%s3142_s24 + $0xc08] sm:$0xff] %v895_v1  ;;  %v899_v3 = vld [vmem:[%s3134_s23 + $0x1828] sm:$0xff] }
  0xd4   : > { %898 = vst [vmem:[%s3142_s24 + $0xc10] sm:$0xff] %v897_v2  ;;  %v901_v4 = vld [vmem:[%s3134_s23 + $0x1840] sm:$0xff]  ;;  %v903_v5 = vld [vmem:[%s3134_s23 + $0x1848] sm:$0xff]  ;;  %900 = vst [vmem:[%s3142_s24 + $0xc18] sm:$0xff] %v899_v3 }
  0xd5   : > { %902 = vst [vmem:[%s3142_s24 + $0xc20] sm:$0xff] %v901_v4  ;;  %904 = vst [vmem:[%s3142_s24 + $0xc28] sm:$0xff] %v903_v5  ;;  %v905_v6 = vld [vmem:[%s3134_s23 + $0x1860] sm:$0xff]  ;;  %v907_v7 = vld [vmem:[%s3134_s23 + $0x1868] sm:$0xff] }
  0xd6   : > { %v909_v8 = vld [vmem:[%s3134_s23 + $0x1880] sm:$0xff]  ;;  %906 = vst [vmem:[%s3142_s24 + $0xc30] sm:$0xff] %v905_v6  ;;  %908 = vst [vmem:[%s3142_s24 + $0xc38] sm:$0xff] %v907_v7  ;;  %v911_v9 = vld [vmem:[%s3134_s23 + $0x1888] sm:$0xff] }
  0xd7   : > { %910 = vst [vmem:[%s3142_s24 + $0xc40] sm:$0xff] %v909_v8  ;;  %v913_v10 = vld [vmem:[%s3134_s23 + $0x18a0] sm:$0xff]  ;;  %v915_v11 = vld [vmem:[%s3134_s23 + $0x18a8] sm:$0xff]  ;;  %912 = vst [vmem:[%s3142_s24 + $0xc48] sm:$0xff] %v911_v9 }
  0xd8   : > { %914 = vst [vmem:[%s3142_s24 + $0xc50] sm:$0xff] %v913_v10  ;;  %916 = vst [vmem:[%s3142_s24 + $0xc58] sm:$0xff] %v915_v11  ;;  %v917_v12 = vld [vmem:[%s3134_s23 + $0x18c0] sm:$0xff]  ;;  %v919_v13 = vld [vmem:[%s3134_s23 + $0x18c8] sm:$0xff] }
  0xd9   : > { %v921_v14 = vld [vmem:[%s3134_s23 + $0x18e0] sm:$0xff]  ;;  %918 = vst [vmem:[%s3142_s24 + $0xc60] sm:$0xff] %v917_v12  ;;  %920 = vst [vmem:[%s3142_s24 + $0xc68] sm:$0xff] %v919_v13  ;;  %v923_v15 = vld [vmem:[%s3134_s23 + $0x18e8] sm:$0xff] }
  0xda   : > { %922 = vst [vmem:[%s3142_s24 + $0xc70] sm:$0xff] %v921_v14  ;;  %v925_v16 = vld [vmem:[%s3134_s23 + $0x1900] sm:$0xff]  ;;  %v927_v17 = vld [vmem:[%s3134_s23 + $0x1908] sm:$0xff]  ;;  %924 = vst [vmem:[%s3142_s24 + $0xc78] sm:$0xff] %v923_v15 }
  0xdb   : > { %926 = vst [vmem:[%s3142_s24 + $0xc80] sm:$0xff] %v925_v16  ;;  %928 = vst [vmem:[%s3142_s24 + $0xc88] sm:$0xff] %v927_v17  ;;  %v929_v18 = vld [vmem:[%s3134_s23 + $0x1920] sm:$0xff]  ;;  %v931_v19 = vld [vmem:[%s3134_s23 + $0x1928] sm:$0xff] }
  0xdc   : > { %v933_v20 = vld [vmem:[%s3134_s23 + $0x1940] sm:$0xff]  ;;  %930 = vst [vmem:[%s3142_s24 + $0xc90] sm:$0xff] %v929_v18  ;;  %932 = vst [vmem:[%s3142_s24 + $0xc98] sm:$0xff] %v931_v19  ;;  %v935_v21 = vld [vmem:[%s3134_s23 + $0x1948] sm:$0xff] }
  0xdd   : > { %934 = vst [vmem:[%s3142_s24 + $0xca0] sm:$0xff] %v933_v20  ;;  %v937_v22 = vld [vmem:[%s3134_s23 + $0x1960] sm:$0xff]  ;;  %v939_v23 = vld [vmem:[%s3134_s23 + $0x1968] sm:$0xff]  ;;  %936 = vst [vmem:[%s3142_s24 + $0xca8] sm:$0xff] %v935_v21 }
  0xde   : > { %938 = vst [vmem:[%s3142_s24 + $0xcb0] sm:$0xff] %v937_v22  ;;  %940 = vst [vmem:[%s3142_s24 + $0xcb8] sm:$0xff] %v939_v23  ;;  %v941_v24 = vld [vmem:[%s3134_s23 + $0x1980] sm:$0xff]  ;;  %v943_v25 = vld [vmem:[%s3134_s23 + $0x1988] sm:$0xff] }
  0xdf   : > { %v945_v26 = vld [vmem:[%s3134_s23 + $0x19a0] sm:$0xff]  ;;  %942 = vst [vmem:[%s3142_s24 + $0xcc0] sm:$0xff] %v941_v24  ;;  %944 = vst [vmem:[%s3142_s24 + $0xcc8] sm:$0xff] %v943_v25  ;;  %v947_v27 = vld [vmem:[%s3134_s23 + $0x19a8] sm:$0xff] }
  0xe0   : > { %946 = vst [vmem:[%s3142_s24 + $0xcd0] sm:$0xff] %v945_v26  ;;  %v949_v28 = vld [vmem:[%s3134_s23 + $0x19c0] sm:$0xff]  ;;  %v951_v29 = vld [vmem:[%s3134_s23 + $0x19c8] sm:$0xff]  ;;  %948 = vst [vmem:[%s3142_s24 + $0xcd8] sm:$0xff] %v947_v27 }
  0xe1   : > { %950 = vst [vmem:[%s3142_s24 + $0xce0] sm:$0xff] %v949_v28  ;;  %952 = vst [vmem:[%s3142_s24 + $0xce8] sm:$0xff] %v951_v29  ;;  %v953_v30 = vld [vmem:[%s3134_s23 + $0x19e0] sm:$0xff]  ;;  %v955_v31 = vld [vmem:[%s3134_s23 + $0x19e8] sm:$0xff] }
  0xe2   : > { %v957_v32 = vld [vmem:[%s3134_s23 + $0x1a00] sm:$0xff]  ;;  %954 = vst [vmem:[%s3142_s24 + $0xcf0] sm:$0xff] %v953_v30  ;;  %956 = vst [vmem:[%s3142_s24 + $0xcf8] sm:$0xff] %v955_v31  ;;  %v959_v33 = vld [vmem:[%s3134_s23 + $0x1a08] sm:$0xff] }
  0xe3   : > { %958 = vst [vmem:[%s3142_s24 + $0xd00] sm:$0xff] %v957_v32  ;;  %v961_v34 = vld [vmem:[%s3134_s23 + $0x1a20] sm:$0xff]  ;;  %v963_v35 = vld [vmem:[%s3134_s23 + $0x1a28] sm:$0xff]  ;;  %960 = vst [vmem:[%s3142_s24 + $0xd08] sm:$0xff] %v959_v33 }
  0xe4   : > { %962 = vst [vmem:[%s3142_s24 + $0xd10] sm:$0xff] %v961_v34  ;;  %964 = vst [vmem:[%s3142_s24 + $0xd18] sm:$0xff] %v963_v35  ;;  %v965_v36 = vld [vmem:[%s3134_s23 + $0x1a40] sm:$0xff]  ;;  %v967_v37 = vld [vmem:[%s3134_s23 + $0x1a48] sm:$0xff] }
  0xe5   : > { %v969_v38 = vld [vmem:[%s3134_s23 + $0x1a60] sm:$0xff]  ;;  %966 = vst [vmem:[%s3142_s24 + $0xd20] sm:$0xff] %v965_v36  ;;  %968 = vst [vmem:[%s3142_s24 + $0xd28] sm:$0xff] %v967_v37  ;;  %v971_v39 = vld [vmem:[%s3134_s23 + $0x1a68] sm:$0xff] }
  0xe6   : > { %970 = vst [vmem:[%s3142_s24 + $0xd30] sm:$0xff] %v969_v38  ;;  %v973_v40 = vld [vmem:[%s3134_s23 + $0x1a80] sm:$0xff]  ;;  %v975_v41 = vld [vmem:[%s3134_s23 + $0x1a88] sm:$0xff]  ;;  %972 = vst [vmem:[%s3142_s24 + $0xd38] sm:$0xff] %v971_v39 }
  0xe7   : > { %974 = vst [vmem:[%s3142_s24 + $0xd40] sm:$0xff] %v973_v40  ;;  %976 = vst [vmem:[%s3142_s24 + $0xd48] sm:$0xff] %v975_v41  ;;  %v977_v42 = vld [vmem:[%s3134_s23 + $0x1aa0] sm:$0xff]  ;;  %v979_v43 = vld [vmem:[%s3134_s23 + $0x1aa8] sm:$0xff] }
  0xe8   : > { %v981_v44 = vld [vmem:[%s3134_s23 + $0x1ac0] sm:$0xff]  ;;  %978 = vst [vmem:[%s3142_s24 + $0xd50] sm:$0xff] %v977_v42  ;;  %980 = vst [vmem:[%s3142_s24 + $0xd58] sm:$0xff] %v979_v43  ;;  %v983_v45 = vld [vmem:[%s3134_s23 + $0x1ac8] sm:$0xff] }
  0xe9   : > { %982 = vst [vmem:[%s3142_s24 + $0xd60] sm:$0xff] %v981_v44  ;;  %v985_v46 = vld [vmem:[%s3134_s23 + $0x1ae0] sm:$0xff]  ;;  %v987_v47 = vld [vmem:[%s3134_s23 + $0x1ae8] sm:$0xff]  ;;  %984 = vst [vmem:[%s3142_s24 + $0xd68] sm:$0xff] %v983_v45 }
  0xea   : > { %986 = vst [vmem:[%s3142_s24 + $0xd70] sm:$0xff] %v985_v46  ;;  %988 = vst [vmem:[%s3142_s24 + $0xd78] sm:$0xff] %v987_v47  ;;  %v989_v48 = vld [vmem:[%s3134_s23 + $0x1b00] sm:$0xff]  ;;  %v991_v49 = vld [vmem:[%s3134_s23 + $0x1b08] sm:$0xff] }
  0xeb   : > { %v993_v50 = vld [vmem:[%s3134_s23 + $0x1b20] sm:$0xff]  ;;  %990 = vst [vmem:[%s3142_s24 + $0xd80] sm:$0xff] %v989_v48  ;;  %992 = vst [vmem:[%s3142_s24 + $0xd88] sm:$0xff] %v991_v49  ;;  %v995_v51 = vld [vmem:[%s3134_s23 + $0x1b28] sm:$0xff] }
  0xec   : > { %994 = vst [vmem:[%s3142_s24 + $0xd90] sm:$0xff] %v993_v50  ;;  %v997_v52 = vld [vmem:[%s3134_s23 + $0x1b40] sm:$0xff]  ;;  %v999_v53 = vld [vmem:[%s3134_s23 + $0x1b48] sm:$0xff]  ;;  %996 = vst [vmem:[%s3142_s24 + $0xd98] sm:$0xff] %v995_v51 }
  0xed   : > { %998 = vst [vmem:[%s3142_s24 + $0xda0] sm:$0xff] %v997_v52  ;;  %1000 = vst [vmem:[%s3142_s24 + $0xda8] sm:$0xff] %v999_v53  ;;  %v1001_v54 = vld [vmem:[%s3134_s23 + $0x1b60] sm:$0xff]  ;;  %v1003_v55 = vld [vmem:[%s3134_s23 + $0x1b68] sm:$0xff] }
  0xee   : > { %v1005_v56 = vld [vmem:[%s3134_s23 + $0x1b80] sm:$0xff]  ;;  %1002 = vst [vmem:[%s3142_s24 + $0xdb0] sm:$0xff] %v1001_v54  ;;  %1004 = vst [vmem:[%s3142_s24 + $0xdb8] sm:$0xff] %v1003_v55  ;;  %v1007_v57 = vld [vmem:[%s3134_s23 + $0x1b88] sm:$0xff] }
  0xef   : > { %1006 = vst [vmem:[%s3142_s24 + $0xdc0] sm:$0xff] %v1005_v56  ;;  %v1009_v58 = vld [vmem:[%s3134_s23 + $0x1ba0] sm:$0xff]  ;;  %v1011_v59 = vld [vmem:[%s3134_s23 + $0x1ba8] sm:$0xff]  ;;  %1008 = vst [vmem:[%s3142_s24 + $0xdc8] sm:$0xff] %v1007_v57 }
  0xf0   : > { %1010 = vst [vmem:[%s3142_s24 + $0xdd0] sm:$0xff] %v1009_v58  ;;  %1012 = vst [vmem:[%s3142_s24 + $0xdd8] sm:$0xff] %v1011_v59  ;;  %v1013_v60 = vld [vmem:[%s3134_s23 + $0x1bc0] sm:$0xff]  ;;  %v1015_v61 = vld [vmem:[%s3134_s23 + $0x1bc8] sm:$0xff] }
  0xf1   : > { %v1017_v62 = vld [vmem:[%s3134_s23 + $0x1be0] sm:$0xff]  ;;  %1014 = vst [vmem:[%s3142_s24 + $0xde0] sm:$0xff] %v1013_v60  ;;  %1016 = vst [vmem:[%s3142_s24 + $0xde8] sm:$0xff] %v1015_v61  ;;  %v1019_v63 = vld [vmem:[%s3134_s23 + $0x1be8] sm:$0xff] }
  0xf2   : > { %1018 = vst [vmem:[%s3142_s24 + $0xdf0] sm:$0xff] %v1017_v62  ;;  %v1021_v0 = vld [vmem:[%s3134_s23 + $0x1c00] sm:$0xff]  ;;  %v1023_v1 = vld [vmem:[%s3134_s23 + $0x1c08] sm:$0xff]  ;;  %1020 = vst [vmem:[%s3142_s24 + $0xdf8] sm:$0xff] %v1019_v63 }
  0xf3   : > { %1022 = vst [vmem:[%s3142_s24 + $0xe00] sm:$0xff] %v1021_v0  ;;  %1024 = vst [vmem:[%s3142_s24 + $0xe08] sm:$0xff] %v1023_v1  ;;  %v1025_v2 = vld [vmem:[%s3134_s23 + $0x1c20] sm:$0xff]  ;;  %v1027_v3 = vld [vmem:[%s3134_s23 + $0x1c28] sm:$0xff] }
  0xf4   : > { %v1029_v4 = vld [vmem:[%s3134_s23 + $0x1c40] sm:$0xff]  ;;  %1026 = vst [vmem:[%s3142_s24 + $0xe10] sm:$0xff] %v1025_v2  ;;  %1028 = vst [vmem:[%s3142_s24 + $0xe18] sm:$0xff] %v1027_v3  ;;  %v1031_v5 = vld [vmem:[%s3134_s23 + $0x1c48] sm:$0xff] }
  0xf5   : > { %1030 = vst [vmem:[%s3142_s24 + $0xe20] sm:$0xff] %v1029_v4  ;;  %v1033_v6 = vld [vmem:[%s3134_s23 + $0x1c60] sm:$0xff]  ;;  %v1035_v7 = vld [vmem:[%s3134_s23 + $0x1c68] sm:$0xff]  ;;  %1032 = vst [vmem:[%s3142_s24 + $0xe28] sm:$0xff] %v1031_v5 }
  0xf6   : > { %1034 = vst [vmem:[%s3142_s24 + $0xe30] sm:$0xff] %v1033_v6  ;;  %1036 = vst [vmem:[%s3142_s24 + $0xe38] sm:$0xff] %v1035_v7  ;;  %v1037_v8 = vld [vmem:[%s3134_s23 + $0x1c80] sm:$0xff]  ;;  %v1039_v9 = vld [vmem:[%s3134_s23 + $0x1c88] sm:$0xff] }
  0xf7   : > { %v1041_v10 = vld [vmem:[%s3134_s23 + $0x1ca0] sm:$0xff]  ;;  %1038 = vst [vmem:[%s3142_s24 + $0xe40] sm:$0xff] %v1037_v8  ;;  %1040 = vst [vmem:[%s3142_s24 + $0xe48] sm:$0xff] %v1039_v9  ;;  %v1043_v11 = vld [vmem:[%s3134_s23 + $0x1ca8] sm:$0xff] }
  0xf8   : > { %1042 = vst [vmem:[%s3142_s24 + $0xe50] sm:$0xff] %v1041_v10  ;;  %v1045_v12 = vld [vmem:[%s3134_s23 + $0x1cc0] sm:$0xff]  ;;  %v1047_v13 = vld [vmem:[%s3134_s23 + $0x1cc8] sm:$0xff]  ;;  %1044 = vst [vmem:[%s3142_s24 + $0xe58] sm:$0xff] %v1043_v11 }
  0xf9   : > { %1046 = vst [vmem:[%s3142_s24 + $0xe60] sm:$0xff] %v1045_v12  ;;  %1048 = vst [vmem:[%s3142_s24 + $0xe68] sm:$0xff] %v1047_v13  ;;  %v1049_v14 = vld [vmem:[%s3134_s23 + $0x1ce0] sm:$0xff]  ;;  %v1051_v15 = vld [vmem:[%s3134_s23 + $0x1ce8] sm:$0xff] }
  0xfa   : > { %v1053_v16 = vld [vmem:[%s3134_s23 + $0x1d00] sm:$0xff]  ;;  %1050 = vst [vmem:[%s3142_s24 + $0xe70] sm:$0xff] %v1049_v14  ;;  %1052 = vst [vmem:[%s3142_s24 + $0xe78] sm:$0xff] %v1051_v15  ;;  %v1055_v17 = vld [vmem:[%s3134_s23 + $0x1d08] sm:$0xff] }
  0xfb   : > { %1054 = vst [vmem:[%s3142_s24 + $0xe80] sm:$0xff] %v1053_v16  ;;  %v1057_v18 = vld [vmem:[%s3134_s23 + $0x1d20] sm:$0xff]  ;;  %v1059_v19 = vld [vmem:[%s3134_s23 + $0x1d28] sm:$0xff]  ;;  %1056 = vst [vmem:[%s3142_s24 + $0xe88] sm:$0xff] %v1055_v17 }
  0xfc   : > { %1058 = vst [vmem:[%s3142_s24 + $0xe90] sm:$0xff] %v1057_v18  ;;  %1060 = vst [vmem:[%s3142_s24 + $0xe98] sm:$0xff] %v1059_v19  ;;  %v1061_v20 = vld [vmem:[%s3134_s23 + $0x1d40] sm:$0xff]  ;;  %v1063_v21 = vld [vmem:[%s3134_s23 + $0x1d48] sm:$0xff] }
  0xfd   : > { %v1065_v22 = vld [vmem:[%s3134_s23 + $0x1d60] sm:$0xff]  ;;  %1062 = vst [vmem:[%s3142_s24 + $0xea0] sm:$0xff] %v1061_v20  ;;  %1064 = vst [vmem:[%s3142_s24 + $0xea8] sm:$0xff] %v1063_v21  ;;  %v1067_v23 = vld [vmem:[%s3134_s23 + $0x1d68] sm:$0xff] }
  0xfe   : > { %1066 = vst [vmem:[%s3142_s24 + $0xeb0] sm:$0xff] %v1065_v22  ;;  %v1069_v24 = vld [vmem:[%s3134_s23 + $0x1d80] sm:$0xff]  ;;  %v1071_v25 = vld [vmem:[%s3134_s23 + $0x1d88] sm:$0xff]  ;;  %1068 = vst [vmem:[%s3142_s24 + $0xeb8] sm:$0xff] %v1067_v23 }
  0xff   : > { %1070 = vst [vmem:[%s3142_s24 + $0xec0] sm:$0xff] %v1069_v24  ;;  %1072 = vst [vmem:[%s3142_s24 + $0xec8] sm:$0xff] %v1071_v25  ;;  %v1073_v26 = vld [vmem:[%s3134_s23 + $0x1da0] sm:$0xff]  ;;  %v1075_v27 = vld [vmem:[%s3134_s23 + $0x1da8] sm:$0xff] }
 0x100   : > { %v1077_v28 = vld [vmem:[%s3134_s23 + $0x1dc0] sm:$0xff]  ;;  %1074 = vst [vmem:[%s3142_s24 + $0xed0] sm:$0xff] %v1073_v26  ;;  %1076 = vst [vmem:[%s3142_s24 + $0xed8] sm:$0xff] %v1075_v27  ;;  %v1079_v29 = vld [vmem:[%s3134_s23 + $0x1dc8] sm:$0xff] }
 0x101   : > { %1078 = vst [vmem:[%s3142_s24 + $0xee0] sm:$0xff] %v1077_v28  ;;  %v1081_v30 = vld [vmem:[%s3134_s23 + $0x1de0] sm:$0xff]  ;;  %v1083_v31 = vld [vmem:[%s3134_s23 + $0x1de8] sm:$0xff]  ;;  %1080 = vst [vmem:[%s3142_s24 + $0xee8] sm:$0xff] %v1079_v29 }
 0x102   : > { %1082 = vst [vmem:[%s3142_s24 + $0xef0] sm:$0xff] %v1081_v30  ;;  %1084 = vst [vmem:[%s3142_s24 + $0xef8] sm:$0xff] %v1083_v31  ;;  %v1085_v32 = vld [vmem:[%s3134_s23 + $0x1e00] sm:$0xff]  ;;  %v1087_v33 = vld [vmem:[%s3134_s23 + $0x1e08] sm:$0xff] }
 0x103   : > { %v1089_v34 = vld [vmem:[%s3134_s23 + $0x1e20] sm:$0xff]  ;;  %1086 = vst [vmem:[%s3142_s24 + $0xf00] sm:$0xff] %v1085_v32  ;;  %1088 = vst [vmem:[%s3142_s24 + $0xf08] sm:$0xff] %v1087_v33  ;;  %v1091_v35 = vld [vmem:[%s3134_s23 + $0x1e28] sm:$0xff] }
 0x104   : > { %1090 = vst [vmem:[%s3142_s24 + $0xf10] sm:$0xff] %v1089_v34  ;;  %v1093_v36 = vld [vmem:[%s3134_s23 + $0x1e40] sm:$0xff]  ;;  %v1095_v37 = vld [vmem:[%s3134_s23 + $0x1e48] sm:$0xff]  ;;  %1092 = vst [vmem:[%s3142_s24 + $0xf18] sm:$0xff] %v1091_v35 }
 0x105   : > { %1094 = vst [vmem:[%s3142_s24 + $0xf20] sm:$0xff] %v1093_v36  ;;  %1096 = vst [vmem:[%s3142_s24 + $0xf28] sm:$0xff] %v1095_v37  ;;  %v1097_v38 = vld [vmem:[%s3134_s23 + $0x1e60] sm:$0xff]  ;;  %v1099_v39 = vld [vmem:[%s3134_s23 + $0x1e68] sm:$0xff] }
 0x106   : > { %v1101_v40 = vld [vmem:[%s3134_s23 + $0x1e80] sm:$0xff]  ;;  %1098 = vst [vmem:[%s3142_s24 + $0xf30] sm:$0xff] %v1097_v38  ;;  %1100 = vst [vmem:[%s3142_s24 + $0xf38] sm:$0xff] %v1099_v39  ;;  %v1103_v41 = vld [vmem:[%s3134_s23 + $0x1e88] sm:$0xff] }
 0x107   : > { %1102 = vst [vmem:[%s3142_s24 + $0xf40] sm:$0xff] %v1101_v40  ;;  %v1105_v42 = vld [vmem:[%s3134_s23 + $0x1ea0] sm:$0xff]  ;;  %v1107_v43 = vld [vmem:[%s3134_s23 + $0x1ea8] sm:$0xff]  ;;  %1104 = vst [vmem:[%s3142_s24 + $0xf48] sm:$0xff] %v1103_v41 }
 0x108   : > { %1106 = vst [vmem:[%s3142_s24 + $0xf50] sm:$0xff] %v1105_v42  ;;  %1108 = vst [vmem:[%s3142_s24 + $0xf58] sm:$0xff] %v1107_v43  ;;  %v1109_v44 = vld [vmem:[%s3134_s23 + $0x1ec0] sm:$0xff]  ;;  %v1111_v45 = vld [vmem:[%s3134_s23 + $0x1ec8] sm:$0xff] }
 0x109   : > { %v1113_v46 = vld [vmem:[%s3134_s23 + $0x1ee0] sm:$0xff]  ;;  %1110 = vst [vmem:[%s3142_s24 + $0xf60] sm:$0xff] %v1109_v44  ;;  %1112 = vst [vmem:[%s3142_s24 + $0xf68] sm:$0xff] %v1111_v45  ;;  %v1115_v47 = vld [vmem:[%s3134_s23 + $0x1ee8] sm:$0xff] }
 0x10a   : > { %1114 = vst [vmem:[%s3142_s24 + $0xf70] sm:$0xff] %v1113_v46  ;;  %v1117_v48 = vld [vmem:[%s3134_s23 + $0x1f00] sm:$0xff]  ;;  %v1119_v49 = vld [vmem:[%s3134_s23 + $0x1f08] sm:$0xff]  ;;  %1116 = vst [vmem:[%s3142_s24 + $0xf78] sm:$0xff] %v1115_v47 }
 0x10b   : > { %1118 = vst [vmem:[%s3142_s24 + $0xf80] sm:$0xff] %v1117_v48  ;;  %1120 = vst [vmem:[%s3142_s24 + $0xf88] sm:$0xff] %v1119_v49  ;;  %v1121_v50 = vld [vmem:[%s3134_s23 + $0x1f20] sm:$0xff]  ;;  %v1123_v51 = vld [vmem:[%s3134_s23 + $0x1f28] sm:$0xff] }
 0x10c   : > { %v1125_v52 = vld [vmem:[%s3134_s23 + $0x1f40] sm:$0xff]  ;;  %1122 = vst [vmem:[%s3142_s24 + $0xf90] sm:$0xff] %v1121_v50  ;;  %1124 = vst [vmem:[%s3142_s24 + $0xf98] sm:$0xff] %v1123_v51  ;;  %v1127_v53 = vld [vmem:[%s3134_s23 + $0x1f48] sm:$0xff] }
 0x10d   : > { %1126 = vst [vmem:[%s3142_s24 + $0xfa0] sm:$0xff] %v1125_v52  ;;  %v1129_v54 = vld [vmem:[%s3134_s23 + $0x1f60] sm:$0xff]  ;;  %v1131_v55 = vld [vmem:[%s3134_s23 + $0x1f68] sm:$0xff]  ;;  %1128 = vst [vmem:[%s3142_s24 + $0xfa8] sm:$0xff] %v1127_v53 }
 0x10e   : > { %1130 = vst [vmem:[%s3142_s24 + $0xfb0] sm:$0xff] %v1129_v54  ;;  %1132 = vst [vmem:[%s3142_s24 + $0xfb8] sm:$0xff] %v1131_v55  ;;  %v1133_v56 = vld [vmem:[%s3134_s23 + $0x1f80] sm:$0xff]  ;;  %v1135_v57 = vld [vmem:[%s3134_s23 + $0x1f88] sm:$0xff] }
 0x10f   : > { %v1137_v58 = vld [vmem:[%s3134_s23 + $0x1fa0] sm:$0xff]  ;;  %1134 = vst [vmem:[%s3142_s24 + $0xfc0] sm:$0xff] %v1133_v56  ;;  %1136 = vst [vmem:[%s3142_s24 + $0xfc8] sm:$0xff] %v1135_v57  ;;  %v1139_v59 = vld [vmem:[%s3134_s23 + $0x1fa8] sm:$0xff] }
 0x110   : > { %1138 = vst [vmem:[%s3142_s24 + $0xfd0] sm:$0xff] %v1137_v58  ;;  %v1141_v60 = vld [vmem:[%s3134_s23 + $0x1fc0] sm:$0xff]  ;;  %v1143_v61 = vld [vmem:[%s3134_s23 + $0x1fc8] sm:$0xff]  ;;  %1140 = vst [vmem:[%s3142_s24 + $0xfd8] sm:$0xff] %v1139_v59 }
 0x111   : > { %1142 = vst [vmem:[%s3142_s24 + $0xfe0] sm:$0xff] %v1141_v60  ;;  %1144 = vst [vmem:[%s3142_s24 + $0xfe8] sm:$0xff] %v1143_v61  ;;  %v1145_v62 = vld [vmem:[%s3134_s23 + $0x1fe0] sm:$0xff]  ;;  %v1147_v63 = vld [vmem:[%s3134_s23 + $0x1fe8] sm:$0xff] }
 0x112   : > { %v1149_v0 = vld [vmem:[%s3134_s23 + $0x2000] sm:$0xff]  ;;  %1146 = vst [vmem:[%s3142_s24 + $0xff0] sm:$0xff] %v1145_v62  ;;  %1148 = vst [vmem:[%s3142_s24 + $0xff8] sm:$0xff] %v1147_v63  ;;  %v1151_v1 = vld [vmem:[%s3134_s23 + $0x2008] sm:$0xff] }
 0x113   : > { %1150 = vst [vmem:[%s3142_s24 + $0x1000] sm:$0xff] %v1149_v0  ;;  %v1153_v2 = vld [vmem:[%s3134_s23 + $0x2020] sm:$0xff]  ;;  %v1155_v3 = vld [vmem:[%s3134_s23 + $0x2028] sm:$0xff]  ;;  %1152 = vst [vmem:[%s3142_s24 + $0x1008] sm:$0xff] %v1151_v1 }
 0x114   : > { %1154 = vst [vmem:[%s3142_s24 + $0x1010] sm:$0xff] %v1153_v2  ;;  %1156 = vst [vmem:[%s3142_s24 + $0x1018] sm:$0xff] %v1155_v3  ;;  %v1157_v4 = vld [vmem:[%s3134_s23 + $0x2040] sm:$0xff]  ;;  %v1159_v5 = vld [vmem:[%s3134_s23 + $0x2048] sm:$0xff] }
 0x115   : > { %v1161_v6 = vld [vmem:[%s3134_s23 + $0x2060] sm:$0xff]  ;;  %1158 = vst [vmem:[%s3142_s24 + $0x1020] sm:$0xff] %v1157_v4  ;;  %1160 = vst [vmem:[%s3142_s24 + $0x1028] sm:$0xff] %v1159_v5  ;;  %v1163_v7 = vld [vmem:[%s3134_s23 + $0x2068] sm:$0xff] }
 0x116   : > { %1162 = vst [vmem:[%s3142_s24 + $0x1030] sm:$0xff] %v1161_v6  ;;  %v1165_v8 = vld [vmem:[%s3134_s23 + $0x2080] sm:$0xff]  ;;  %v1167_v9 = vld [vmem:[%s3134_s23 + $0x2088] sm:$0xff]  ;;  %1164 = vst [vmem:[%s3142_s24 + $0x1038] sm:$0xff] %v1163_v7 }
 0x117   : > { %1166 = vst [vmem:[%s3142_s24 + $0x1040] sm:$0xff] %v1165_v8  ;;  %1168 = vst [vmem:[%s3142_s24 + $0x1048] sm:$0xff] %v1167_v9  ;;  %v1169_v10 = vld [vmem:[%s3134_s23 + $0x20a0] sm:$0xff]  ;;  %v1171_v11 = vld [vmem:[%s3134_s23 + $0x20a8] sm:$0xff] }
 0x118   : > { %v1173_v12 = vld [vmem:[%s3134_s23 + $0x20c0] sm:$0xff]  ;;  %1170 = vst [vmem:[%s3142_s24 + $0x1050] sm:$0xff] %v1169_v10  ;;  %1172 = vst [vmem:[%s3142_s24 + $0x1058] sm:$0xff] %v1171_v11  ;;  %v1175_v13 = vld [vmem:[%s3134_s23 + $0x20c8] sm:$0xff] }
 0x119   : > { %1174 = vst [vmem:[%s3142_s24 + $0x1060] sm:$0xff] %v1173_v12  ;;  %v1177_v14 = vld [vmem:[%s3134_s23 + $0x20e0] sm:$0xff]  ;;  %v1179_v15 = vld [vmem:[%s3134_s23 + $0x20e8] sm:$0xff]  ;;  %1176 = vst [vmem:[%s3142_s24 + $0x1068] sm:$0xff] %v1175_v13 }
 0x11a   : > { %1178 = vst [vmem:[%s3142_s24 + $0x1070] sm:$0xff] %v1177_v14  ;;  %1180 = vst [vmem:[%s3142_s24 + $0x1078] sm:$0xff] %v1179_v15  ;;  %v1181_v16 = vld [vmem:[%s3134_s23 + $0x2100] sm:$0xff]  ;;  %v1183_v17 = vld [vmem:[%s3134_s23 + $0x2108] sm:$0xff] }
 0x11b   : > { %v1185_v18 = vld [vmem:[%s3134_s23 + $0x2120] sm:$0xff]  ;;  %1182 = vst [vmem:[%s3142_s24 + $0x1080] sm:$0xff] %v1181_v16  ;;  %1184 = vst [vmem:[%s3142_s24 + $0x1088] sm:$0xff] %v1183_v17  ;;  %v1187_v19 = vld [vmem:[%s3134_s23 + $0x2128] sm:$0xff] }
 0x11c   : > { %1186 = vst [vmem:[%s3142_s24 + $0x1090] sm:$0xff] %v1185_v18  ;;  %v1189_v20 = vld [vmem:[%s3134_s23 + $0x2140] sm:$0xff]  ;;  %v1191_v21 = vld [vmem:[%s3134_s23 + $0x2148] sm:$0xff]  ;;  %1188 = vst [vmem:[%s3142_s24 + $0x1098] sm:$0xff] %v1187_v19 }
 0x11d   : > { %1190 = vst [vmem:[%s3142_s24 + $0x10a0] sm:$0xff] %v1189_v20  ;;  %1192 = vst [vmem:[%s3142_s24 + $0x10a8] sm:$0xff] %v1191_v21  ;;  %v1193_v22 = vld [vmem:[%s3134_s23 + $0x2160] sm:$0xff]  ;;  %v1195_v23 = vld [vmem:[%s3134_s23 + $0x2168] sm:$0xff] }
 0x11e   : > { %v1197_v24 = vld [vmem:[%s3134_s23 + $0x2180] sm:$0xff]  ;;  %1194 = vst [vmem:[%s3142_s24 + $0x10b0] sm:$0xff] %v1193_v22  ;;  %1196 = vst [vmem:[%s3142_s24 + $0x10b8] sm:$0xff] %v1195_v23  ;;  %v1199_v25 = vld [vmem:[%s3134_s23 + $0x2188] sm:$0xff] }
 0x11f   : > { %1198 = vst [vmem:[%s3142_s24 + $0x10c0] sm:$0xff] %v1197_v24  ;;  %v1201_v26 = vld [vmem:[%s3134_s23 + $0x21a0] sm:$0xff]  ;;  %v1203_v27 = vld [vmem:[%s3134_s23 + $0x21a8] sm:$0xff]  ;;  %1200 = vst [vmem:[%s3142_s24 + $0x10c8] sm:$0xff] %v1199_v25 }
 0x120   : > { %1202 = vst [vmem:[%s3142_s24 + $0x10d0] sm:$0xff] %v1201_v26  ;;  %1204 = vst [vmem:[%s3142_s24 + $0x10d8] sm:$0xff] %v1203_v27  ;;  %v1205_v28 = vld [vmem:[%s3134_s23 + $0x21c0] sm:$0xff]  ;;  %v1207_v29 = vld [vmem:[%s3134_s23 + $0x21c8] sm:$0xff] }
 0x121   : > { %v1209_v30 = vld [vmem:[%s3134_s23 + $0x21e0] sm:$0xff]  ;;  %1206 = vst [vmem:[%s3142_s24 + $0x10e0] sm:$0xff] %v1205_v28  ;;  %1208 = vst [vmem:[%s3142_s24 + $0x10e8] sm:$0xff] %v1207_v29  ;;  %v1211_v31 = vld [vmem:[%s3134_s23 + $0x21e8] sm:$0xff] }
 0x122   : > { %1210 = vst [vmem:[%s3142_s24 + $0x10f0] sm:$0xff] %v1209_v30  ;;  %v1213_v32 = vld [vmem:[%s3134_s23 + $0x2200] sm:$0xff]  ;;  %v1215_v33 = vld [vmem:[%s3134_s23 + $0x2208] sm:$0xff]  ;;  %1212 = vst [vmem:[%s3142_s24 + $0x10f8] sm:$0xff] %v1211_v31 }
 0x123   : > { %1214 = vst [vmem:[%s3142_s24 + $0x1100] sm:$0xff] %v1213_v32  ;;  %1216 = vst [vmem:[%s3142_s24 + $0x1108] sm:$0xff] %v1215_v33  ;;  %v1217_v34 = vld [vmem:[%s3134_s23 + $0x2220] sm:$0xff]  ;;  %v1219_v35 = vld [vmem:[%s3134_s23 + $0x2228] sm:$0xff] }
 0x124   : > { %v1221_v36 = vld [vmem:[%s3134_s23 + $0x2240] sm:$0xff]  ;;  %1218 = vst [vmem:[%s3142_s24 + $0x1110] sm:$0xff] %v1217_v34  ;;  %1220 = vst [vmem:[%s3142_s24 + $0x1118] sm:$0xff] %v1219_v35  ;;  %v1223_v37 = vld [vmem:[%s3134_s23 + $0x2248] sm:$0xff] }
 0x125   : > { %1222 = vst [vmem:[%s3142_s24 + $0x1120] sm:$0xff] %v1221_v36  ;;  %v1225_v38 = vld [vmem:[%s3134_s23 + $0x2260] sm:$0xff]  ;;  %v1227_v39 = vld [vmem:[%s3134_s23 + $0x2268] sm:$0xff]  ;;  %1224 = vst [vmem:[%s3142_s24 + $0x1128] sm:$0xff] %v1223_v37 }
 0x126   : > { %1226 = vst [vmem:[%s3142_s24 + $0x1130] sm:$0xff] %v1225_v38  ;;  %1228 = vst [vmem:[%s3142_s24 + $0x1138] sm:$0xff] %v1227_v39  ;;  %v1229_v40 = vld [vmem:[%s3134_s23 + $0x2280] sm:$0xff]  ;;  %v1231_v41 = vld [vmem:[%s3134_s23 + $0x2288] sm:$0xff] }
 0x127   : > { %v1233_v42 = vld [vmem:[%s3134_s23 + $0x22a0] sm:$0xff]  ;;  %1230 = vst [vmem:[%s3142_s24 + $0x1140] sm:$0xff] %v1229_v40  ;;  %1232 = vst [vmem:[%s3142_s24 + $0x1148] sm:$0xff] %v1231_v41  ;;  %v1235_v43 = vld [vmem:[%s3134_s23 + $0x22a8] sm:$0xff] }
 0x128   : > { %1234 = vst [vmem:[%s3142_s24 + $0x1150] sm:$0xff] %v1233_v42  ;;  %v1237_v44 = vld [vmem:[%s3134_s23 + $0x22c0] sm:$0xff]  ;;  %v1239_v45 = vld [vmem:[%s3134_s23 + $0x22c8] sm:$0xff]  ;;  %1236 = vst [vmem:[%s3142_s24 + $0x1158] sm:$0xff] %v1235_v43 }
 0x129   : > { %1238 = vst [vmem:[%s3142_s24 + $0x1160] sm:$0xff] %v1237_v44  ;;  %1240 = vst [vmem:[%s3142_s24 + $0x1168] sm:$0xff] %v1239_v45  ;;  %v1241_v46 = vld [vmem:[%s3134_s23 + $0x22e0] sm:$0xff]  ;;  %v1243_v47 = vld [vmem:[%s3134_s23 + $0x22e8] sm:$0xff] }
 0x12a   : > { %v1245_v48 = vld [vmem:[%s3134_s23 + $0x2300] sm:$0xff]  ;;  %1242 = vst [vmem:[%s3142_s24 + $0x1170] sm:$0xff] %v1241_v46  ;;  %1244 = vst [vmem:[%s3142_s24 + $0x1178] sm:$0xff] %v1243_v47  ;;  %v1247_v49 = vld [vmem:[%s3134_s23 + $0x2308] sm:$0xff] }
 0x12b   : > { %1246 = vst [vmem:[%s3142_s24 + $0x1180] sm:$0xff] %v1245_v48  ;;  %v1249_v50 = vld [vmem:[%s3134_s23 + $0x2320] sm:$0xff]  ;;  %v1251_v51 = vld [vmem:[%s3134_s23 + $0x2328] sm:$0xff]  ;;  %1248 = vst [vmem:[%s3142_s24 + $0x1188] sm:$0xff] %v1247_v49 }
 0x12c   : > { %1250 = vst [vmem:[%s3142_s24 + $0x1190] sm:$0xff] %v1249_v50  ;;  %1252 = vst [vmem:[%s3142_s24 + $0x1198] sm:$0xff] %v1251_v51  ;;  %v1253_v52 = vld [vmem:[%s3134_s23 + $0x2340] sm:$0xff]  ;;  %v1255_v53 = vld [vmem:[%s3134_s23 + $0x2348] sm:$0xff] }
 0x12d   : > { %v1257_v54 = vld [vmem:[%s3134_s23 + $0x2360] sm:$0xff]  ;;  %1254 = vst [vmem:[%s3142_s24 + $0x11a0] sm:$0xff] %v1253_v52  ;;  %1256 = vst [vmem:[%s3142_s24 + $0x11a8] sm:$0xff] %v1255_v53  ;;  %v1259_v55 = vld [vmem:[%s3134_s23 + $0x2368] sm:$0xff] }
 0x12e   : > { %1258 = vst [vmem:[%s3142_s24 + $0x11b0] sm:$0xff] %v1257_v54  ;;  %v1261_v56 = vld [vmem:[%s3134_s23 + $0x2380] sm:$0xff]  ;;  %v1263_v57 = vld [vmem:[%s3134_s23 + $0x2388] sm:$0xff]  ;;  %1260 = vst [vmem:[%s3142_s24 + $0x11b8] sm:$0xff] %v1259_v55 }
 0x12f   : > { %1262 = vst [vmem:[%s3142_s24 + $0x11c0] sm:$0xff] %v1261_v56  ;;  %1264 = vst [vmem:[%s3142_s24 + $0x11c8] sm:$0xff] %v1263_v57  ;;  %v1265_v58 = vld [vmem:[%s3134_s23 + $0x23a0] sm:$0xff]  ;;  %v1267_v59 = vld [vmem:[%s3134_s23 + $0x23a8] sm:$0xff] }
 0x130   : > { %v1269_v60 = vld [vmem:[%s3134_s23 + $0x23c0] sm:$0xff]  ;;  %1266 = vst [vmem:[%s3142_s24 + $0x11d0] sm:$0xff] %v1265_v58  ;;  %1268 = vst [vmem:[%s3142_s24 + $0x11d8] sm:$0xff] %v1267_v59  ;;  %v1271_v61 = vld [vmem:[%s3134_s23 + $0x23c8] sm:$0xff] }
 0x131   : > { %1270 = vst [vmem:[%s3142_s24 + $0x11e0] sm:$0xff] %v1269_v60  ;;  %v1273_v62 = vld [vmem:[%s3134_s23 + $0x23e0] sm:$0xff]  ;;  %v1275_v63 = vld [vmem:[%s3134_s23 + $0x23e8] sm:$0xff]  ;;  %1272 = vst [vmem:[%s3142_s24 + $0x11e8] sm:$0xff] %v1271_v61 }
 0x132   : > { %1274 = vst [vmem:[%s3142_s24 + $0x11f0] sm:$0xff] %v1273_v62  ;;  %1276 = vst [vmem:[%s3142_s24 + $0x11f8] sm:$0xff] %v1275_v63 }
 0x133 PF: > { %p2952_p7 = scmp.ge.s32.totalorder %s3077_s11, 1  ;;  %p1281_p8 = scmp.lt.s32.totalorder %s3077_s11, 3 }
 0x135   : > { %p1282_p9 = pnand %p2952_p7, %p1281_p8 }
 0x137   : > { %1285 = sbr.rel (%p1282_p9) target bundleno = 931 (0x3a3), region = 47 }
 0x13c   : > { %s1288_s25 = sand.u32 1, %s3069_s9   ;;  %v1311_v0 = vld [vmem:[%s5171_s0 + $0x8] sm:$0xff]  ;;  %v1313_v1 = vld [vmem:[%s5171_s0 + $0x18] sm:$0xff] }
 0x13d   : > { %s3026_s30 = smul.u32 4608, %s1288_s25  ;;  %2022 = vmatprep.mubr.f32.mxu0 %v1311_v0  ;;  %2111 = vmatprep.mubr.f32.mxu1 %v1313_v1  ;;  %s2953_s15 = sshll.u32 %s1288_s25, 6 }
 0x13e   : > { %s1307_s9 = scalar_lea.vmem [#allocation3], %s2953_s15  ;;  %s2960_s25 = sshll.u32 (%p3124_p5), %s2946_s12, 4 }
 0x13f   : > { %s4301_s3 = scalar_lea.vmem [#allocation2], %s3026_s30  ;;  %s2858_s20 = scalar_lea.vmem (%p3124_p5), %s5173_s2, %s2960_s25 }
 0x140   : > { %v1413_v2 = vld [vmem:[%s4301_s3 + $0xf8] sm:$0xff]  ;;  %v1412_v4 = vld [vmem:[%s4301_s3 + $0xf0] sm:$0xff]  ;;  %v1411_v6 = vld [vmem:[%s4301_s3 + $0xe8] sm:$0xff] }
 0x141   : > { %v1477_v3 = vld [vmem:[%s4301_s3 + $0x2f8] sm:$0xff]  ;;  %1958 = vmatprep.subr.mxu0 %v1413_v2  ;;  %v1476_v5 = vld [vmem:[%s4301_s3 + $0x2f0] sm:$0xff]  ;;  %v1475_v7 = vld [vmem:[%s4301_s3 + $0x2e8] sm:$0xff] }
 0x142   : > { %2047 = vmatprep.subr.mxu1 %v1477_v3  ;;  %1959 = vmatpush1.msra.mxu0 %v1412_v4  ;;  %v1410_v8 = vld [vmem:[%s4301_s3 + $0xe0] sm:$0xff]  ;;  %v1409_v10 = vld [vmem:[%s4301_s3 + $0xd8] sm:$0xff]  ;;  %v1408_v12 = vld [vmem:[%s4301_s3 + $0xd0] sm:$0xff] }
 0x143   : > { %2048 = vmatpush1.msra.mxu1 %v1476_v5  ;;  %v1474_v9 = vld [vmem:[%s4301_s3 + $0x2e0] sm:$0xff]  ;;  %1960 = vmatprep.subr.mxu0 %v1411_v6  ;;  %v1473_v11 = vld [vmem:[%s4301_s3 + $0x2d8] sm:$0xff]  ;;  %v1472_v13 = vld [vmem:[%s4301_s3 + $0x2d0] sm:$0xff] }
 0x144   : > { %2049 = vmatprep.subr.mxu1 %v1475_v7  ;;  %1961 = vmatpush1.msra.mxu0 %v1410_v8  ;;  %v1407_v14 = vld [vmem:[%s4301_s3 + $0xc8] sm:$0xff]  ;;  %v1406_v16 = vld [vmem:[%s4301_s3 + $0xc0] sm:$0xff]  ;;  %v1405_v18 = vld [vmem:[%s4301_s3 + $0xb8] sm:$0xff] }
 0x145   : > { %2050 = vmatpush1.msra.mxu1 %v1474_v9  ;;  %v1471_v15 = vld [vmem:[%s4301_s3 + $0x2c8] sm:$0xff]  ;;  %1962 = vmatprep.subr.mxu0 %v1409_v10  ;;  %v1470_v17 = vld [vmem:[%s4301_s3 + $0x2c0] sm:$0xff]  ;;  %v1469_v19 = vld [vmem:[%s4301_s3 + $0x2b8] sm:$0xff] }
 0x146   : > { %2051 = vmatprep.subr.mxu1 %v1473_v11  ;;  %1963 = vmatpush1.msra.mxu0 %v1408_v12  ;;  %v1404_v20 = vld [vmem:[%s4301_s3 + $0xb0] sm:$0xff]  ;;  %v1403_v22 = vld [vmem:[%s4301_s3 + $0xa8] sm:$0xff]  ;;  %v1402_v24 = vld [vmem:[%s4301_s3 + $0xa0] sm:$0xff] }
 0x147   : > { %2052 = vmatpush1.msra.mxu1 %v1472_v13  ;;  %1964 = vmatprep.subr.mxu0 %v1407_v14  ;;  %v1468_v21 = vld [vmem:[%s4301_s3 + $0x2b0] sm:$0xff]  ;;  %v1467_v23 = vld [vmem:[%s4301_s3 + $0x2a8] sm:$0xff]  ;;  %v1466_v25 = vld [vmem:[%s4301_s3 + $0x2a0] sm:$0xff] }
 0x148   : > { %2053 = vmatprep.subr.mxu1 %v1471_v15  ;;  %1965 = vmatpush1.msra.mxu0 %v1406_v16  ;;  %v1401_v26 = vld [vmem:[%s4301_s3 + $0x98] sm:$0xff]  ;;  %v1400_v28 = vld [vmem:[%s4301_s3 + $0x90] sm:$0xff]  ;;  %v1399_v30 = vld [vmem:[%s4301_s3 + $0x88] sm:$0xff] }
 0x149   : > { %2054 = vmatpush1.msra.mxu1 %v1470_v17  ;;  %1966 = vmatprep.subr.mxu0 %v1405_v18  ;;  %v1465_v27 = vld [vmem:[%s4301_s3 + $0x298] sm:$0xff]  ;;  %v1464_v29 = vld [vmem:[%s4301_s3 + $0x290] sm:$0xff]  ;;  %v1463_v31 = vld [vmem:[%s4301_s3 + $0x288] sm:$0xff] }
 0x14a   : > { %2055 = vmatprep.subr.mxu1 %v1469_v19  ;;  %1967 = vmatpush1.msra.mxu0 %v1404_v20  ;;  %v1398_v32 = vld [vmem:[%s4301_s3 + $0x80] sm:$0xff]  ;;  %v1397_v34 = vld [vmem:[%s4301_s3 + $0x78] sm:$0xff]  ;;  %v1396_v36 = vld [vmem:[%s4301_s3 + $0x70] sm:$0xff] }
 0x14b   : > { %2056 = vmatpush1.msra.mxu1 %v1468_v21  ;;  %1968 = vmatprep.subr.mxu0 %v1403_v22  ;;  %v1462_v33 = vld [vmem:[%s4301_s3 + $0x280] sm:$0xff]  ;;  %v1461_v35 = vld [vmem:[%s4301_s3 + $0x278] sm:$0xff]  ;;  %v1460_v37 = vld [vmem:[%s4301_s3 + $0x270] sm:$0xff] }
 0x14c   : > { %2057 = vmatprep.subr.mxu1 %v1467_v23  ;;  %1969 = vmatpush1.msra.mxu0 %v1402_v24  ;;  %v1395_v38 = vld [vmem:[%s4301_s3 + $0x68] sm:$0xff]  ;;  %v1394_v40 = vld [vmem:[%s4301_s3 + $0x60] sm:$0xff]  ;;  %v1393_v42 = vld [vmem:[%s4301_s3 + $0x58] sm:$0xff] }
 0x14d   : > { %2058 = vmatpush1.msra.mxu1 %v1466_v25  ;;  %1970 = vmatprep.subr.mxu0 %v1401_v26  ;;  %v1459_v39 = vld [vmem:[%s4301_s3 + $0x268] sm:$0xff]  ;;  %v1458_v41 = vld [vmem:[%s4301_s3 + $0x260] sm:$0xff]  ;;  %v1457_v43 = vld [vmem:[%s4301_s3 + $0x258] sm:$0xff] }
 0x14e   : > { %2059 = vmatprep.subr.mxu1 %v1465_v27  ;;  %1971 = vmatpush1.msra.mxu0 %v1400_v28  ;;  %v1392_v44 = vld [vmem:[%s4301_s3 + $0x50] sm:$0xff]  ;;  %v1391_v46 = vld [vmem:[%s4301_s3 + $0x48] sm:$0xff]  ;;  %v1390_v48 = vld [vmem:[%s4301_s3 + $0x40] sm:$0xff] }
 0x14f   : > { %2060 = vmatpush1.msra.mxu1 %v1464_v29  ;;  %1972 = vmatprep.subr.mxu0 %v1399_v30  ;;  %v1456_v45 = vld [vmem:[%s4301_s3 + $0x250] sm:$0xff]  ;;  %v1455_v47 = vld [vmem:[%s4301_s3 + $0x248] sm:$0xff]  ;;  %v1454_v49 = vld [vmem:[%s4301_s3 + $0x240] sm:$0xff] }
 0x150   : > { %2061 = vmatprep.subr.mxu1 %v1463_v31  ;;  %1973 = vmatpush1.msra.mxu0 %v1398_v32  ;;  %v1389_v50 = vld [vmem:[%s4301_s3 + $0x38] sm:$0xff]  ;;  %v1388_v52 = vld [vmem:[%s4301_s3 + $0x30] sm:$0xff]  ;;  %v1387_v54 = vld [vmem:[%s4301_s3 + $0x28] sm:$0xff] }
 0x151   : > { %2062 = vmatpush1.msra.mxu1 %v1462_v33  ;;  %1974 = vmatprep.subr.mxu0 %v1397_v34  ;;  %v1453_v51 = vld [vmem:[%s4301_s3 + $0x238] sm:$0xff]  ;;  %v1452_v53 = vld [vmem:[%s4301_s3 + $0x230] sm:$0xff]  ;;  %v1451_v55 = vld [vmem:[%s4301_s3 + $0x228] sm:$0xff] }
 0x152   : > { %2063 = vmatprep.subr.mxu1 %v1461_v35  ;;  %1975 = vmatpush1.msra.mxu0 %v1396_v36  ;;  %v1386_v56 = vld [vmem:[%s4301_s3 + $0x20] sm:$0xff]  ;;  %v1385_v58 = vld [vmem:[%s4301_s3 + $0x18] sm:$0xff]  ;;  %v1384_v60 = vld [vmem:[%s4301_s3 + $0x10] sm:$0xff] }
 0x153   : > { %2064 = vmatpush1.msra.mxu1 %v1460_v37  ;;  %1976 = vmatprep.subr.mxu0 %v1395_v38  ;;  %v1450_v57 = vld [vmem:[%s4301_s3 + $0x220] sm:$0xff]  ;;  %v1449_v59 = vld [vmem:[%s4301_s3 + $0x218] sm:$0xff]  ;;  %v1448_v61 = vld [vmem:[%s4301_s3 + $0x210] sm:$0xff] }
 0x154   : > { %2065 = vmatprep.subr.mxu1 %v1459_v39  ;;  %1977 = vmatpush1.msra.mxu0 %v1394_v40  ;;  %v1383_v62 = vld [vmem:[%s4301_s3 + $0x8] sm:$0xff]  ;;  %v1382_v0 = vld [vmem:[%s4301_s3] sm:$0xff]  ;;  %v1445_v2 = vld [vmem:[%s4301_s3 + $0x1f8] sm:$0xff] }
 0x155   : > { %2066 = vmatpush1.msra.mxu1 %v1458_v41  ;;  %1978 = vmatprep.subr.mxu0 %v1393_v42  ;;  %v1447_v63 = vld [vmem:[%s4301_s3 + $0x208] sm:$0xff]  ;;  %v1446_v1 = vld [vmem:[%s4301_s3 + $0x200] sm:$0xff]  ;;  %v1509_v3 = vld [vmem:[%s4301_s3 + $0x3f8] sm:$0xff] }
 0x156   : > { %2067 = vmatprep.subr.mxu1 %v1457_v43  ;;  %1979 = vmatpush1.msra.mxu0 %v1392_v44  ;;  %v1444_v4 = vld [vmem:[%s4301_s3 + $0x1f0] sm:$0xff]  ;;  %v1443_v6 = vld [vmem:[%s4301_s3 + $0x1e8] sm:$0xff]  ;;  %v1442_v8 = vld [vmem:[%s4301_s3 + $0x1e0] sm:$0xff] }
 0x157   : > { %2068 = vmatpush1.msra.mxu1 %v1456_v45  ;;  %1980 = vmatprep.subr.mxu0 %v1391_v46  ;;  %v1508_v5 = vld [vmem:[%s4301_s3 + $0x3f0] sm:$0xff]  ;;  %v1507_v7 = vld [vmem:[%s4301_s3 + $0x3e8] sm:$0xff]  ;;  %v1506_v9 = vld [vmem:[%s4301_s3 + $0x3e0] sm:$0xff] }
 0x158   : > { %2069 = vmatprep.subr.mxu1 %v1455_v47  ;;  %1981 = vmatpush1.msra.mxu0 %v1390_v48  ;;  %v1441_v10 = vld [vmem:[%s4301_s3 + $0x1d8] sm:$0xff]  ;;  %v1440_v12 = vld [vmem:[%s4301_s3 + $0x1d0] sm:$0xff]  ;;  %v1439_v14 = vld [vmem:[%s4301_s3 + $0x1c8] sm:$0xff] }
 0x159   : > { %2070 = vmatpush1.msra.mxu1 %v1454_v49  ;;  %1982 = vmatprep.subr.mxu0 %v1389_v50  ;;  %v1505_v11 = vld [vmem:[%s4301_s3 + $0x3d8] sm:$0xff]  ;;  %v1504_v13 = vld [vmem:[%s4301_s3 + $0x3d0] sm:$0xff]  ;;  %v1503_v15 = vld [vmem:[%s4301_s3 + $0x3c8] sm:$0xff] }
 0x15a   : > { %2071 = vmatprep.subr.mxu1 %v1453_v51  ;;  %1983 = vmatpush1.msra.mxu0 %v1388_v52  ;;  %v1438_v16 = vld [vmem:[%s4301_s3 + $0x1c0] sm:$0xff]  ;;  %v1437_v18 = vld [vmem:[%s4301_s3 + $0x1b8] sm:$0xff]  ;;  %v1436_v20 = vld [vmem:[%s4301_s3 + $0x1b0] sm:$0xff] }
 0x15b   : > { %2072 = vmatpush1.msra.mxu1 %v1452_v53  ;;  %1984 = vmatprep.subr.mxu0 %v1387_v54  ;;  %v1502_v17 = vld [vmem:[%s4301_s3 + $0x3c0] sm:$0xff]  ;;  %v1501_v19 = vld [vmem:[%s4301_s3 + $0x3b8] sm:$0xff]  ;;  %v1500_v21 = vld [vmem:[%s4301_s3 + $0x3b0] sm:$0xff] }
 0x15c   : > { %2073 = vmatprep.subr.mxu1 %v1451_v55  ;;  %1985 = vmatpush1.msra.mxu0 %v1386_v56  ;;  %v1435_v22 = vld [vmem:[%s4301_s3 + $0x1a8] sm:$0xff]  ;;  %v1434_v24 = vld [vmem:[%s4301_s3 + $0x1a0] sm:$0xff]  ;;  %v1433_v26 = vld [vmem:[%s4301_s3 + $0x198] sm:$0xff] }
 0x15d   : > { %2074 = vmatpush1.msra.mxu1 %v1450_v57  ;;  %1986 = vmatprep.subr.mxu0 %v1385_v58  ;;  %v1499_v23 = vld [vmem:[%s4301_s3 + $0x3a8] sm:$0xff]  ;;  %v1498_v25 = vld [vmem:[%s4301_s3 + $0x3a0] sm:$0xff]  ;;  %v1497_v27 = vld [vmem:[%s4301_s3 + $0x398] sm:$0xff] }
 0x15e   : > { %2075 = vmatprep.subr.mxu1 %v1449_v59  ;;  %1987 = vmatpush1.msra.mxu0 %v1384_v60  ;;  %v1432_v28 = vld [vmem:[%s4301_s3 + $0x190] sm:$0xff]  ;;  %v1431_v30 = vld [vmem:[%s4301_s3 + $0x188] sm:$0xff]  ;;  %v1430_v32 = vld [vmem:[%s4301_s3 + $0x180] sm:$0xff] }
 0x15f   : > { %2076 = vmatpush1.msra.mxu1 %v1448_v61  ;;  %1988 = vmatprep.subr.mxu0 %v1383_v62  ;;  %v1496_v29 = vld [vmem:[%s4301_s3 + $0x390] sm:$0xff]  ;;  %v1495_v31 = vld [vmem:[%s4301_s3 + $0x388] sm:$0xff]  ;;  %v1494_v33 = vld [vmem:[%s4301_s3 + $0x380] sm:$0xff] }
 0x160   : > { %2077 = vmatprep.subr.mxu1 %v1447_v63  ;;  %1989 = vmatpush1.msra.mxu0 %v1382_v0  ;;  %v1429_v34 = vld [vmem:[%s4301_s3 + $0x178] sm:$0xff]  ;;  %v1428_v36 = vld [vmem:[%s4301_s3 + $0x170] sm:$0xff]  ;;  %v1427_v38 = vld [vmem:[%s4301_s3 + $0x168] sm:$0xff] }
 0x161   : > { %2078 = vmatpush1.msra.mxu1 %v1446_v1  ;;  %1990 = vmatprep.subr.mxu0 %v1445_v2  ;;  %v1493_v35 = vld [vmem:[%s4301_s3 + $0x378] sm:$0xff]  ;;  %v1492_v37 = vld [vmem:[%s4301_s3 + $0x370] sm:$0xff]  ;;  %v1491_v39 = vld [vmem:[%s4301_s3 + $0x368] sm:$0xff] }
 0x162   : > { %2079 = vmatprep.subr.mxu1 %v1509_v3  ;;  %1991 = vmatpush2.msra.mxu0 %v1444_v4  ;;  %v1426_v40 = vld [vmem:[%s4301_s3 + $0x160] sm:$0xff]  ;;  %v1425_v42 = vld [vmem:[%s4301_s3 + $0x158] sm:$0xff]  ;;  %v1424_v44 = vld [vmem:[%s4301_s3 + $0x150] sm:$0xff] }
 0x163   : > { %2080 = vmatpush2.msra.mxu1 %v1508_v5  ;;  %1992 = vmatprep.subr.mxu0 %v1443_v6  ;;  %v1490_v41 = vld [vmem:[%s4301_s3 + $0x360] sm:$0xff]  ;;  %v1489_v43 = vld [vmem:[%s4301_s3 + $0x358] sm:$0xff]  ;;  %v1488_v45 = vld [vmem:[%s4301_s3 + $0x350] sm:$0xff] }
 0x164   : > { %2081 = vmatprep.subr.mxu1 %v1507_v7  ;;  %1993 = vmatpush2.msra.mxu0 %v1442_v8  ;;  %v1423_v46 = vld [vmem:[%s4301_s3 + $0x148] sm:$0xff]  ;;  %v1422_v48 = vld [vmem:[%s4301_s3 + $0x140] sm:$0xff]  ;;  %v1421_v50 = vld [vmem:[%s4301_s3 + $0x138] sm:$0xff] }
 0x165   : > { %2082 = vmatpush2.msra.mxu1 %v1506_v9  ;;  %1994 = vmatprep.subr.mxu0 %v1441_v10  ;;  %v1487_v47 = vld [vmem:[%s4301_s3 + $0x348] sm:$0xff]  ;;  %v1486_v49 = vld [vmem:[%s4301_s3 + $0x340] sm:$0xff]  ;;  %v1485_v51 = vld [vmem:[%s4301_s3 + $0x338] sm:$0xff] }
 0x166   : > { %2083 = vmatprep.subr.mxu1 %v1505_v11  ;;  %1995 = vmatpush2.msra.mxu0 %v1440_v12  ;;  %v1420_v52 = vld [vmem:[%s4301_s3 + $0x130] sm:$0xff]  ;;  %v1419_v54 = vld [vmem:[%s4301_s3 + $0x128] sm:$0xff]  ;;  %v1418_v56 = vld [vmem:[%s4301_s3 + $0x120] sm:$0xff] }
 0x167   : > { %2084 = vmatpush2.msra.mxu1 %v1504_v13  ;;  %1996 = vmatprep.subr.mxu0 %v1439_v14  ;;  %v1484_v53 = vld [vmem:[%s4301_s3 + $0x330] sm:$0xff]  ;;  %v1483_v55 = vld [vmem:[%s4301_s3 + $0x328] sm:$0xff]  ;;  %v1482_v57 = vld [vmem:[%s4301_s3 + $0x320] sm:$0xff] }
 0x168   : > { %2085 = vmatprep.subr.mxu1 %v1503_v15  ;;  %1997 = vmatpush2.msra.mxu0 %v1438_v16  ;;  %v1417_v58 = vld [vmem:[%s4301_s3 + $0x118] sm:$0xff]  ;;  %v1416_v60 = vld [vmem:[%s4301_s3 + $0x110] sm:$0xff]  ;;  %v1415_v62 = vld [vmem:[%s4301_s3 + $0x108] sm:$0xff] }
 0x169   : > { %2086 = vmatpush2.msra.mxu1 %v1502_v17  ;;  %1998 = vmatprep.subr.mxu0 %v1437_v18  ;;  %v1481_v59 = vld [vmem:[%s4301_s3 + $0x318] sm:$0xff]  ;;  %v1480_v61 = vld [vmem:[%s4301_s3 + $0x310] sm:$0xff]  ;;  %v1479_v63 = vld [vmem:[%s4301_s3 + $0x308] sm:$0xff] }
 0x16a   : > { %2087 = vmatprep.subr.mxu1 %v1501_v19  ;;  %1999 = vmatpush2.msra.mxu0 %v1436_v20  ;;  %v1414_v0 = vld [vmem:[%s4301_s3 + $0x100] sm:$0xff]  ;;  %v1312_v3 = vld [vmem:[%s5171_s0 + $0x10] sm:$0xff]  ;;  %v1541_v4 = vld [vmem:[%s4301_s3 + $0x4f8] sm:$0xff] }
 0x16b   : > { %2088 = vmatpush2.msra.mxu1 %v1500_v21  ;;  %2000 = vmatprep.subr.mxu0 %v1435_v22  ;;  %v1478_v1 = vld [vmem:[%s4301_s3 + $0x300] sm:$0xff]  ;;  %v1605_v5 = vld [vmem:[%s4301_s3 + $0x6f8] sm:$0xff]  ;;  %v1540_v6 = vld [vmem:[%s4301_s3 + $0x4f0] sm:$0xff] }
 0x16c   : > { %2089 = vmatprep.subr.mxu1 %v1499_v23  ;;  %2001 = vmatpush2.msra.mxu0 %v1434_v24  ;;  %v1310_v2 = vld [vmem:[%s5171_s0] sm:$0xff]  ;;  %v1604_v7 = vld [vmem:[%s4301_s3 + $0x6f0] sm:$0xff]  ;;  %v1539_v8 = vld [vmem:[%s4301_s3 + $0x4e8] sm:$0xff] }
 0x16d   : > { %2090 = vmatpush2.msra.mxu1 %v1498_v25  ;;  %2002 = vmatprep.subr.mxu0 %v1433_v26  ;;  %v1603_v9 = vld [vmem:[%s4301_s3 + $0x6e8] sm:$0xff]  ;;  %v1538_v10 = vld [vmem:[%s4301_s3 + $0x4e0] sm:$0xff]  ;;  %v1537_v12 = vld [vmem:[%s4301_s3 + $0x4d8] sm:$0xff] }
 0x16e   : > { %2091 = vmatprep.subr.mxu1 %v1497_v27  ;;  %2003 = vmatpush2.msra.mxu0 %v1432_v28  ;;  %v1602_v11 = vld [vmem:[%s4301_s3 + $0x6e0] sm:$0xff]  ;;  %v1601_v13 = vld [vmem:[%s4301_s3 + $0x6d8] sm:$0xff]  ;;  %v1536_v14 = vld [vmem:[%s4301_s3 + $0x4d0] sm:$0xff] }
 0x16f   : > { %2092 = vmatpush2.msra.mxu1 %v1496_v29  ;;  %2004 = vmatprep.subr.mxu0 %v1431_v30  ;;  %v1600_v15 = vld [vmem:[%s4301_s3 + $0x6d0] sm:$0xff]  ;;  %v1535_v16 = vld [vmem:[%s4301_s3 + $0x4c8] sm:$0xff]  ;;  %v1534_v18 = vld [vmem:[%s4301_s3 + $0x4c0] sm:$0xff] }
 0x170   : > { %2093 = vmatprep.subr.mxu1 %v1495_v31  ;;  %2005 = vmatpush2.msra.mxu0 %v1430_v32  ;;  %v1599_v17 = vld [vmem:[%s4301_s3 + $0x6c8] sm:$0xff]  ;;  %v1598_v19 = vld [vmem:[%s4301_s3 + $0x6c0] sm:$0xff]  ;;  %v1533_v20 = vld [vmem:[%s4301_s3 + $0x4b8] sm:$0xff] }
 0x171   : > { %2094 = vmatpush2.msra.mxu1 %v1494_v33  ;;  %2006 = vmatprep.subr.mxu0 %v1429_v34  ;;  %v1597_v21 = vld [vmem:[%s4301_s3 + $0x6b8] sm:$0xff]  ;;  %v1532_v22 = vld [vmem:[%s4301_s3 + $0x4b0] sm:$0xff]  ;;  %v1531_v24 = vld [vmem:[%s4301_s3 + $0x4a8] sm:$0xff] }
 0x172   : > { %2095 = vmatprep.subr.mxu1 %v1493_v35  ;;  %2007 = vmatpush2.msra.mxu0 %v1428_v36  ;;  %v1596_v23 = vld [vmem:[%s4301_s3 + $0x6b0] sm:$0xff]  ;;  %v1595_v25 = vld [vmem:[%s4301_s3 + $0x6a8] sm:$0xff]  ;;  %v1530_v26 = vld [vmem:[%s4301_s3 + $0x4a0] sm:$0xff] }
 0x173   : > { %2096 = vmatpush2.msra.mxu1 %v1492_v37  ;;  %2008 = vmatprep.subr.mxu0 %v1427_v38  ;;  %v1594_v27 = vld [vmem:[%s4301_s3 + $0x6a0] sm:$0xff]  ;;  %v1529_v28 = vld [vmem:[%s4301_s3 + $0x498] sm:$0xff]  ;;  %v1528_v30 = vld [vmem:[%s4301_s3 + $0x490] sm:$0xff] }
 0x174   : > { %2097 = vmatprep.subr.mxu1 %v1491_v39  ;;  %2009 = vmatpush2.msra.mxu0 %v1426_v40  ;;  %v1593_v29 = vld [vmem:[%s4301_s3 + $0x698] sm:$0xff]  ;;  %v1592_v31 = vld [vmem:[%s4301_s3 + $0x690] sm:$0xff]  ;;  %v1527_v32 = vld [vmem:[%s4301_s3 + $0x488] sm:$0xff] }
 0x175   : > { %2098 = vmatpush2.msra.mxu1 %v1490_v41  ;;  %2010 = vmatprep.subr.mxu0 %v1425_v42  ;;  %v1591_v33 = vld [vmem:[%s4301_s3 + $0x688] sm:$0xff]  ;;  %v1526_v34 = vld [vmem:[%s4301_s3 + $0x480] sm:$0xff]  ;;  %v1525_v36 = vld [vmem:[%s4301_s3 + $0x478] sm:$0xff] }
 0x176   : > { %2099 = vmatprep.subr.mxu1 %v1489_v43  ;;  %2011 = vmatpush2.msra.mxu0 %v1424_v44  ;;  %v1590_v35 = vld [vmem:[%s4301_s3 + $0x680] sm:$0xff]  ;;  %v1589_v37 = vld [vmem:[%s4301_s3 + $0x678] sm:$0xff]  ;;  %v1524_v38 = vld [vmem:[%s4301_s3 + $0x470] sm:$0xff] }
 0x177   : > { %2100 = vmatpush2.msra.mxu1 %v1488_v45  ;;  %2012 = vmatprep.subr.mxu0 %v1423_v46  ;;  %v1588_v39 = vld [vmem:[%s4301_s3 + $0x670] sm:$0xff]  ;;  %v1523_v40 = vld [vmem:[%s4301_s3 + $0x468] sm:$0xff]  ;;  %v1522_v42 = vld [vmem:[%s4301_s3 + $0x460] sm:$0xff] }
 0x178   : > { %2101 = vmatprep.subr.mxu1 %v1487_v47  ;;  %2013 = vmatpush2.msra.mxu0 %v1422_v48  ;;  %v1587_v41 = vld [vmem:[%s4301_s3 + $0x668] sm:$0xff]  ;;  %v1586_v43 = vld [vmem:[%s4301_s3 + $0x660] sm:$0xff]  ;;  %v1521_v44 = vld [vmem:[%s4301_s3 + $0x458] sm:$0xff] }
 0x179   : > { %2102 = vmatpush2.msra.mxu1 %v1486_v49  ;;  %2014 = vmatprep.subr.mxu0 %v1421_v50  ;;  %v1585_v45 = vld [vmem:[%s4301_s3 + $0x658] sm:$0xff]  ;;  %v1520_v46 = vld [vmem:[%s4301_s3 + $0x450] sm:$0xff]  ;;  %v1519_v48 = vld [vmem:[%s4301_s3 + $0x448] sm:$0xff] }
 0x17a   : > { %2103 = vmatprep.subr.mxu1 %v1485_v51  ;;  %2015 = vmatpush2.msra.mxu0 %v1420_v52  ;;  %v1584_v47 = vld [vmem:[%s4301_s3 + $0x650] sm:$0xff]  ;;  %v1583_v49 = vld [vmem:[%s4301_s3 + $0x648] sm:$0xff]  ;;  %v1518_v50 = vld [vmem:[%s4301_s3 + $0x440] sm:$0xff] }
 0x17b   : > { %2104 = vmatpush2.msra.mxu1 %v1484_v53  ;;  %2016 = vmatprep.subr.mxu0 %v1419_v54  ;;  %v1582_v51 = vld [vmem:[%s4301_s3 + $0x640] sm:$0xff]  ;;  %v1517_v52 = vld [vmem:[%s4301_s3 + $0x438] sm:$0xff]  ;;  %v1516_v54 = vld [vmem:[%s4301_s3 + $0x430] sm:$0xff] }
 0x17c   : > { %2105 = vmatprep.subr.mxu1 %v1483_v55  ;;  %2017 = vmatpush2.msra.mxu0 %v1418_v56  ;;  %v1581_v53 = vld [vmem:[%s4301_s3 + $0x638] sm:$0xff]  ;;  %v1580_v55 = vld [vmem:[%s4301_s3 + $0x630] sm:$0xff]  ;;  %v1515_v56 = vld [vmem:[%s4301_s3 + $0x428] sm:$0xff] }
 0x17d   : > { %2106 = vmatpush2.msra.mxu1 %v1482_v57  ;;  %2018 = vmatprep.subr.mxu0 %v1417_v58  ;;  %v1579_v57 = vld [vmem:[%s4301_s3 + $0x628] sm:$0xff]  ;;  %v1514_v58 = vld [vmem:[%s4301_s3 + $0x420] sm:$0xff] }
 0x17e   : > { %2107 = vmatprep.subr.mxu1 %v1481_v59  ;;  %2019 = vmatpush2.msra.mxu0 %v1416_v60  ;;  %v1578_v59 = vld [vmem:[%s4301_s3 + $0x620] sm:$0xff]  ;;  %v1513_v60 = vld [vmem:[%s4301_s3 + $0x418] sm:$0xff] }
 0x17f   : > { %2108 = vmatpush2.msra.mxu1 %v1480_v61  ;;  %2020 = vmatprep.subr.mxu0 %v1415_v62  ;;  %v1577_v61 = vld [vmem:[%s4301_s3 + $0x618] sm:$0xff]  ;;  %v1512_v62 = vld [vmem:[%s4301_s3 + $0x410] sm:$0xff] }
 0x180   : > { %2109 = vmatprep.subr.mxu1 %v1479_v63  ;;  %2021 = vmatpush2.msra.mxu0 %v1414_v0  ;;  %v1576_v63 = vld [vmem:[%s4301_s3 + $0x610] sm:$0xff]  ;;  %v1511_v0 = vld [vmem:[%s4301_s3 + $0x408] sm:$0xff] }
 0x181   : > { %2110 = vmatpush2.msra.mxu1 %v1478_v1  ;;  %2023 = vmatmul.mubr.f32.vlgmr.msra.gmra.mxu0 %v1310_v2  ;;  %v1575_v1 = vld [vmem:[%s4301_s3 + $0x608] sm:$0xff]  ;;  %v1510_v2 = vld [vmem:[%s4301_s3 + $0x400] sm:$0xff] }
 0x182   : > { %2112 = vmatmul.mubr.f32.vlgmr.msra.gmra.mxu1 %v1312_v3  ;;  %2136 = vmatprep.subr.mxu0 %v1541_v4  ;;  %v1574_v3 = vld [vmem:[%s4301_s3 + $0x600] sm:$0xff]  ;;  %v1573_v4 = vld [vmem:[%s4301_s3 + $0x5f8] sm:$0xff] }
 0x183   : > { %2225 = vmatprep.subr.mxu1 %v1605_v5  ;;  %2137 = vmatpush1.msra.mxu0 %v1540_v6  ;;  %v1637_v5 = vld [vmem:[%s4301_s3 + $0x7f8] sm:$0xff]  ;;  %v1572_v6 = vld [vmem:[%s4301_s3 + $0x5f0] sm:$0xff] }
 0x184   : > { %2226 = vmatpush1.msra.mxu1 %v1604_v7  ;;  %2138 = vmatprep.subr.mxu0 %v1539_v8  ;;  %v1636_v7 = vld [vmem:[%s4301_s3 + $0x7f0] sm:$0xff]  ;;  %v1571_v8 = vld [vmem:[%s4301_s3 + $0x5e8] sm:$0xff] }
 0x185   : > { %2227 = vmatprep.subr.mxu1 %v1603_v9  ;;  %2139 = vmatpush1.msra.mxu0 %v1538_v10  ;;  %v1635_v9 = vld [vmem:[%s4301_s3 + $0x7e8] sm:$0xff]  ;;  %v1570_v10 = vld [vmem:[%s4301_s3 + $0x5e0] sm:$0xff] }
 0x186   : > { %2228 = vmatpush1.msra.mxu1 %v1602_v11  ;;  %2140 = vmatprep.subr.mxu0 %v1537_v12  ;;  %v1634_v11 = vld [vmem:[%s4301_s3 + $0x7e0] sm:$0xff]  ;;  %v1569_v12 = vld [vmem:[%s4301_s3 + $0x5d8] sm:$0xff] }
 0x187   : > { %2229 = vmatprep.subr.mxu1 %v1601_v13  ;;  %2141 = vmatpush1.msra.mxu0 %v1536_v14  ;;  %v1633_v13 = vld [vmem:[%s4301_s3 + $0x7d8] sm:$0xff]  ;;  %v1568_v14 = vld [vmem:[%s4301_s3 + $0x5d0] sm:$0xff] }
 0x188   : > { %2230 = vmatpush1.msra.mxu1 %v1600_v15  ;;  %2142 = vmatprep.subr.mxu0 %v1535_v16  ;;  %v1632_v15 = vld [vmem:[%s4301_s3 + $0x7d0] sm:$0xff]  ;;  %v1567_v16 = vld [vmem:[%s4301_s3 + $0x5c8] sm:$0xff] }
 0x189   : > { %2231 = vmatprep.subr.mxu1 %v1599_v17  ;;  %2143 = vmatpush1.msra.mxu0 %v1534_v18  ;;  %v1631_v17 = vld [vmem:[%s4301_s3 + $0x7c8] sm:$0xff]  ;;  %v1566_v18 = vld [vmem:[%s4301_s3 + $0x5c0] sm:$0xff] }
 0x18a   : > { %2232 = vmatpush1.msra.mxu1 %v1598_v19  ;;  %2144 = vmatprep.subr.mxu0 %v1533_v20  ;;  %v1630_v19 = vld [vmem:[%s4301_s3 + $0x7c0] sm:$0xff]  ;;  %v1565_v20 = vld [vmem:[%s4301_s3 + $0x5b8] sm:$0xff] }
 0x18b   : > { %2233 = vmatprep.subr.mxu1 %v1597_v21  ;;  %2145 = vmatpush1.msra.mxu0 %v1532_v22  ;;  %v1629_v21 = vld [vmem:[%s4301_s3 + $0x7b8] sm:$0xff]  ;;  %v1564_v22 = vld [vmem:[%s4301_s3 + $0x5b0] sm:$0xff] }
 0x18c   : > { %2234 = vmatpush1.msra.mxu1 %v1596_v23  ;;  %2146 = vmatprep.subr.mxu0 %v1531_v24  ;;  %v1628_v23 = vld [vmem:[%s4301_s3 + $0x7b0] sm:$0xff]  ;;  %v1563_v24 = vld [vmem:[%s4301_s3 + $0x5a8] sm:$0xff] }
 0x18d   : > { %2235 = vmatprep.subr.mxu1 %v1595_v25  ;;  %2147 = vmatpush1.msra.mxu0 %v1530_v26  ;;  %v1627_v25 = vld [vmem:[%s4301_s3 + $0x7a8] sm:$0xff]  ;;  %v1562_v26 = vld [vmem:[%s4301_s3 + $0x5a0] sm:$0xff] }
 0x18e   : > { %2236 = vmatpush1.msra.mxu1 %v1594_v27  ;;  %2148 = vmatprep.subr.mxu0 %v1529_v28  ;;  %v1626_v27 = vld [vmem:[%s4301_s3 + $0x7a0] sm:$0xff]  ;;  %v1561_v28 = vld [vmem:[%s4301_s3 + $0x598] sm:$0xff] }
 0x18f   : > { %2237 = vmatprep.subr.mxu1 %v1593_v29  ;;  %2149 = vmatpush1.msra.mxu0 %v1528_v30  ;;  %v1625_v29 = vld [vmem:[%s4301_s3 + $0x798] sm:$0xff]  ;;  %v1560_v30 = vld [vmem:[%s4301_s3 + $0x590] sm:$0xff] }
 0x190   : > { %2238 = vmatpush1.msra.mxu1 %v1592_v31  ;;  %2150 = vmatprep.subr.mxu0 %v1527_v32  ;;  %v1624_v31 = vld [vmem:[%s4301_s3 + $0x790] sm:$0xff]  ;;  %v1559_v32 = vld [vmem:[%s4301_s3 + $0x588] sm:$0xff] }
 0x191   : > { %2239 = vmatprep.subr.mxu1 %v1591_v33  ;;  %2151 = vmatpush1.msra.mxu0 %v1526_v34  ;;  %v1623_v33 = vld [vmem:[%s4301_s3 + $0x788] sm:$0xff]  ;;  %v1558_v34 = vld [vmem:[%s4301_s3 + $0x580] sm:$0xff] }
 0x192   : > { %2240 = vmatpush1.msra.mxu1 %v1590_v35  ;;  %2152 = vmatprep.subr.mxu0 %v1525_v36  ;;  %v1622_v35 = vld [vmem:[%s4301_s3 + $0x780] sm:$0xff]  ;;  %v1557_v36 = vld [vmem:[%s4301_s3 + $0x578] sm:$0xff] }
 0x193   : > { %2241 = vmatprep.subr.mxu1 %v1589_v37  ;;  %2153 = vmatpush1.msra.mxu0 %v1524_v38  ;;  %v1621_v37 = vld [vmem:[%s4301_s3 + $0x778] sm:$0xff]  ;;  %v1556_v38 = vld [vmem:[%s4301_s3 + $0x570] sm:$0xff] }
 0x194   : > { %2242 = vmatpush1.msra.mxu1 %v1588_v39  ;;  %2154 = vmatprep.subr.mxu0 %v1523_v40  ;;  %v1620_v39 = vld [vmem:[%s4301_s3 + $0x770] sm:$0xff]  ;;  %v1329_v40 = vld [vmem:[%s5171_s0 + $0x98] sm:$0xff] }
 0x195   : > { %2243 = vmatprep.subr.mxu1 %v1587_v41  ;;  %2155 = vmatpush1.msra.mxu0 %v1522_v42  ;;  %v1331_v41 = vld [vmem:[%s5171_s0 + $0xa8] sm:$0xff] }
 0x196   : > { %2244 = vmatpush1.msra.mxu1 %v1586_v43  ;;  %2156 = vmatprep.subr.mxu0 %v1521_v44  ;;  %v1555_v42 = vld [vmem:[%s4301_s3 + $0x568] sm:$0xff]  ;;  %v1328_v44 = vld [vmem:[%s5171_s0 + $0x90] sm:$0xff] }
 0x197   : > { %2245 = vmatprep.subr.mxu1 %v1585_v45  ;;  %2157 = vmatpush1.msra.mxu0 %v1520_v46  ;;  %v1619_v43 = vld [vmem:[%s4301_s3 + $0x768] sm:$0xff]  ;;  %v1330_v45 = vld [vmem:[%s5171_s0 + $0xa0] sm:$0xff] }
 0x198   : > { %2246 = vmatpush1.msra.mxu1 %v1584_v47  ;;  %2158 = vmatprep.subr.mxu0 %v1519_v48  ;;  %v1554_v46 = vld [vmem:[%s4301_s3 + $0x560] sm:$0xff]  ;;  %v1553_v48 = vld [vmem:[%s4301_s3 + $0x558] sm:$0xff] }
 0x199   : > { %2247 = vmatprep.subr.mxu1 %v1583_v49  ;;  %2159 = vmatpush1.msra.mxu0 %v1518_v50  ;;  %v1618_v47 = vld [vmem:[%s4301_s3 + $0x760] sm:$0xff]  ;;  %v1617_v49 = vld [vmem:[%s4301_s3 + $0x758] sm:$0xff]  ;;  %v1552_v50 = vld [vmem:[%s4301_s3 + $0x550] sm:$0xff] }
 0x19a   : > { %2248 = vmatpush1.msra.mxu1 %v1582_v51  ;;  %2160 = vmatprep.subr.mxu0 %v1517_v52  ;;  %v1616_v51 = vld [vmem:[%s4301_s3 + $0x750] sm:$0xff]  ;;  %v1347_v52 = vld [vmem:[%s5171_s0 + $0x128] sm:$0xff] }
 0x19b   : > { %2249 = vmatprep.subr.mxu1 %v1581_v53  ;;  %2161 = vmatpush1.msra.mxu0 %v1516_v54  ;;  %v1349_v53 = vld [vmem:[%s5171_s0 + $0x138] sm:$0xff]  ;;  %v1551_v54 = vld [vmem:[%s4301_s3 + $0x548] sm:$0xff] }
 0x19c   : > { %2250 = vmatpush1.msra.mxu1 %v1580_v55  ;;  %2162 = vmatprep.subr.mxu0 %v1515_v56  ;;  %v1615_v55 = vld [vmem:[%s4301_s3 + $0x748] sm:$0xff]  ;;  %v1346_v56 = vld [vmem:[%s5171_s0 + $0x120] sm:$0xff] }
 0x19d   : > { %2251 = vmatprep.subr.mxu1 %v1579_v57  ;;  %2163 = vmatpush1.msra.mxu0 %v1514_v58  ;;  %v1348_v57 = vld [vmem:[%s5171_s0 + $0x130] sm:$0xff]  ;;  %v1550_v58 = vld [vmem:[%s4301_s3 + $0x540] sm:$0xff] }
 0x19e   : > { %2252 = vmatpush1.msra.mxu1 %v1578_v59  ;;  %2164 = vmatprep.subr.mxu0 %v1513_v60  ;;  %v1614_v59 = vld [vmem:[%s4301_s3 + $0x740] sm:$0xff]  ;;  %v1549_v60 = vld [vmem:[%s4301_s3 + $0x538] sm:$0xff] }
 0x19f   : > { %2253 = vmatprep.subr.mxu1 %v1577_v61  ;;  %2165 = vmatpush1.msra.mxu0 %v1512_v62  ;;  %v1613_v61 = vld [vmem:[%s4301_s3 + $0x738] sm:$0xff]  ;;  %v1548_v62 = vld [vmem:[%s4301_s3 + $0x530] sm:$0xff] }
 0x1a0   : > { %2254 = vmatpush1.msra.mxu1 %v1576_v63  ;;  %2166 = vmatprep.subr.mxu0 %v1511_v0  ;;  %v1612_v63 = vld [vmem:[%s4301_s3 + $0x730] sm:$0xff]  ;;  %v1365_v0 = vld [vmem:[%s5171_s0 + $0x1b8] sm:$0xff] }
 0x1a1   : > { %2255 = vmatprep.subr.mxu1 %v1575_v1  ;;  %2167 = vmatpush1.msra.mxu0 %v1510_v2  ;;  %v1367_v1 = vld [vmem:[%s5171_s0 + $0x1c8] sm:$0xff] }
 0x1a2   : > { %2256 = vmatpush1.msra.mxu1 %v1574_v3  ;;  %2168 = vmatprep.subr.mxu0 %v1573_v4  ;;  %v1547_v2 = vld [vmem:[%s4301_s3 + $0x528] sm:$0xff]  ;;  %v1364_v4 = vld [vmem:[%s5171_s0 + $0x1b0] sm:$0xff] }
 0x1a3   : > { %2257 = vmatprep.subr.mxu1 %v1637_v5  ;;  %2169 = vmatpush2.msra.mxu0 %v1572_v6  ;;  %v1611_v3 = vld [vmem:[%s4301_s3 + $0x728] sm:$0xff]  ;;  %v1366_v5 = vld [vmem:[%s5171_s0 + $0x1c0] sm:$0xff] }
 0x1a4   : > { %2258 = vmatpush2.msra.mxu1 %v1636_v7  ;;  %2170 = vmatprep.subr.mxu0 %v1571_v8  ;;  %v1546_v6 = vld [vmem:[%s4301_s3 + $0x520] sm:$0xff]  ;;  %v1545_v8 = vld [vmem:[%s4301_s3 + $0x518] sm:$0xff] }
 0x1a5   : > { %2259 = vmatprep.subr.mxu1 %v1635_v9  ;;  %2171 = vmatpush2.msra.mxu0 %v1570_v10  ;;  %v1610_v7 = vld [vmem:[%s4301_s3 + $0x720] sm:$0xff]  ;;  %v1609_v9 = vld [vmem:[%s4301_s3 + $0x718] sm:$0xff]  ;;  %v1544_v10 = vld [vmem:[%s4301_s3 + $0x510] sm:$0xff] }
 0x1a6   : > { %2260 = vmatpush2.msra.mxu1 %v1634_v11  ;;  %2172 = vmatprep.subr.mxu0 %v1569_v12  ;;  %v1608_v11 = vld [vmem:[%s4301_s3 + $0x710] sm:$0xff]  ;;  %v1543_v12 = vld [vmem:[%s4301_s3 + $0x508] sm:$0xff] }
 0x1a7   : > { %2261 = vmatprep.subr.mxu1 %v1633_v13  ;;  %2173 = vmatpush2.msra.mxu0 %v1568_v14  ;;  %v1607_v13 = vld [vmem:[%s4301_s3 + $0x708] sm:$0xff]  ;;  %v1542_v14 = vld [vmem:[%s4301_s3 + $0x500] sm:$0xff] }
 0x1a8   : > { %2262 = vmatpush2.msra.mxu1 %v1632_v15  ;;  %2174 = vmatprep.subr.mxu0 %v1567_v16  ;;  %v1315_v15 = vld [vmem:[%s5171_s0 + $0x28] sm:$0xff]  ;;  %v1606_v16 = vld [vmem:[%s4301_s3 + $0x700] sm:$0xff] }
 0x1a9   : > { %2263 = vmatprep.subr.mxu1 %v1631_v17  ;;  %2175 = vmatpush2.msra.mxu0 %v1566_v18  ;;  %v1314_v17 = vld [vmem:[%s5171_s0 + $0x20] sm:$0xff]  ;;  %v1317_v18 = vld [vmem:[%s5171_s0 + $0x38] sm:$0xff] }
 0x1aa   : > { %2264 = vmatpush2.msra.mxu1 %v1630_v19  ;;  %2176 = vmatprep.subr.mxu0 %v1565_v20  ;;  %v1669_v19 = vld [vmem:[%s4301_s3 + $0x8f8] sm:$0xff] }
 0x1ab   : > { %2265 = vmatprep.subr.mxu1 %v1629_v21  ;;  %2177 = vmatpush2.msra.mxu0 %v1564_v22  ;;  %v1733_v20 = vld [vmem:[%s4301_s3 + $0xaf8] sm:$0xff]  ;;  %v1316_v21 = vld [vmem:[%s5171_s0 + $0x30] sm:$0xff] }
 0x1ac   : > { %2266 = vmatpush2.msra.mxu1 %v1628_v23  ;;  %2178 = vmatprep.subr.mxu0 %v1563_v24  ;;  %v1668_v22 = vld [vmem:[%s4301_s3 + $0x8f0] sm:$0xff]  ;;  %v1667_v24 = vld [vmem:[%s4301_s3 + $0x8e8] sm:$0xff] }
 0x1ad   : > { %2267 = vmatprep.subr.mxu1 %v1627_v25  ;;  %2179 = vmatpush2.msra.mxu0 %v1562_v26  ;;  %v1732_v23 = vld [vmem:[%s4301_s3 + $0xaf0] sm:$0xff]  ;;  %v1731_v25 = vld [vmem:[%s4301_s3 + $0xae8] sm:$0xff]  ;;  %v1333_v26 = vld [vmem:[%s5171_s0 + $0xb8] sm:$0xff] }
 0x1ae   : > { %2268 = vmatpush2.msra.mxu1 %v1626_v27  ;;  %2180 = vmatprep.subr.mxu0 %v1561_v28  ;;  %v1666_v27 = vld [vmem:[%s4301_s3 + $0x8e0] sm:$0xff] }
 0x1af   : > { %2269 = vmatprep.subr.mxu1 %v1625_v29  ;;  %2181 = vmatpush2.msra.mxu0 %v1560_v30  ;;  %v1730_v28 = vld [vmem:[%s4301_s3 + $0xae0] sm:$0xff]  ;;  %v1332_v29 = vld [vmem:[%s5171_s0 + $0xb0] sm:$0xff]  ;;  %v1665_v30 = vld [vmem:[%s4301_s3 + $0x8d8] sm:$0xff] }
 0x1b0   : > { %2270 = vmatpush2.msra.mxu1 %v1624_v31  ;;  %2182 = vmatprep.subr.mxu0 %v1559_v32  ;;  %v1729_v31 = vld [vmem:[%s4301_s3 + $0xad8] sm:$0xff]  ;;  %v1335_v32 = vld [vmem:[%s5171_s0 + $0xc8] sm:$0xff] }
 0x1b1   : > { %2271 = vmatprep.subr.mxu1 %v1623_v33  ;;  %2183 = vmatpush2.msra.mxu0 %v1558_v34  ;;  %v1664_v33 = vld [vmem:[%s4301_s3 + $0x8d0] sm:$0xff] }
 0x1b2   : > { %2272 = vmatpush2.msra.mxu1 %v1622_v35  ;;  %2184 = vmatprep.subr.mxu0 %v1557_v36  ;;  %v1728_v34 = vld [vmem:[%s4301_s3 + $0xad0] sm:$0xff]  ;;  %v1663_v35 = vld [vmem:[%s4301_s3 + $0x8c8] sm:$0xff]  ;;  %v1334_v36 = vld [vmem:[%s5171_s0 + $0xc0] sm:$0xff] }
 0x1b3   : > { %2273 = vmatprep.subr.mxu1 %v1621_v37  ;;  %2185 = vmatpush2.msra.mxu0 %v1556_v38  ;;  %v1727_v37 = vld [vmem:[%s4301_s3 + $0xac8] sm:$0xff] }
 0x1b4   : > { %2274 = vmatpush2.msra.mxu1 %v1620_v39  ;;  %2028 = vmatprep.mubr.f32.mxu0 %v1329_v40  ;;  %v1351_v38 = vld [vmem:[%s5171_s0 + $0x148] sm:$0xff]  ;;  %v1662_v39 = vld [vmem:[%s4301_s3 + $0x8c0] sm:$0xff] }
 0x1b5   : > { %2117 = vmatprep.mubr.f32.mxu1 %v1331_v41  ;;  %2186 = vmatprep.subr.mxu0 %v1555_v42  ;;  %v1726_v40 = vld [vmem:[%s4301_s3 + $0xac0] sm:$0xff]  ;;  %v1661_v42 = vld [vmem:[%s4301_s3 + $0x8b8] sm:$0xff] }
 0x1b6   : > { %2275 = vmatprep.subr.mxu1 %v1619_v43  ;;  %2029 = vmatmul.mubr.f32.gmra.mxu0 %v1328_v44  ;;  %v1350_v41 = vld [vmem:[%s5171_s0 + $0x140] sm:$0xff]  ;;  %v1725_v43 = vld [vmem:[%s4301_s3 + $0xab8] sm:$0xff] }
 0x1b7   : > { %2118 = vmatmul.mubr.f32.gmra.mxu1 %v1330_v45  ;;  %2187 = vmatpush2.msra.mxu0 %v1554_v46  ;;  %v1353_v44 = vld [vmem:[%s5171_s0 + $0x158] sm:$0xff]  ;;  %v1660_v45 = vld [vmem:[%s4301_s3 + $0x8b0] sm:$0xff] }
 0x1b8   : > { %2276 = vmatpush2.msra.mxu1 %v1618_v47  ;;  %2188 = vmatprep.subr.mxu0 %v1553_v48  ;;  %v1724_v46 = vld [vmem:[%s4301_s3 + $0xab0] sm:$0xff]  ;;  %v1659_v47 = vld [vmem:[%s4301_s3 + $0x8a8] sm:$0xff] }
 0x1b9   : > { %2277 = vmatprep.subr.mxu1 %v1617_v49  ;;  %2189 = vmatpush2.msra.mxu0 %v1552_v50  ;;  %v1352_v48 = vld [vmem:[%s5171_s0 + $0x150] sm:$0xff]  ;;  %v1723_v49 = vld [vmem:[%s4301_s3 + $0xaa8] sm:$0xff]  ;;  %v1369_v50 = vld [vmem:[%s5171_s0 + $0x1d8] sm:$0xff] }
 0x1ba   : > { %2278 = vmatpush2.msra.mxu1 %v1616_v51  ;;  %2034 = vmatprep.mubr.f32.mxu0 %v1347_v52  ;;  %v1658_v51 = vld [vmem:[%s4301_s3 + $0x8a0] sm:$0xff] }
 0x1bb   : > { %2123 = vmatprep.mubr.f32.mxu1 %v1349_v53  ;;  %2190 = vmatprep.subr.mxu0 %v1551_v54  ;;  %v1722_v52 = vld [vmem:[%s4301_s3 + $0xaa0] sm:$0xff]  ;;  %v1368_v53 = vld [vmem:[%s5171_s0 + $0x1d0] sm:$0xff]  ;;  %v1657_v54 = vld [vmem:[%s4301_s3 + $0x898] sm:$0xff] }
 0x1bc   : > { %2279 = vmatprep.subr.mxu1 %v1615_v55  ;;  %2035 = vmatmul.mubr.f32.gmra.mxu0 %v1346_v56  ;;  %v1721_v55 = vld [vmem:[%s4301_s3 + $0xa98] sm:$0xff]  ;;  %v1371_v56 = vld [vmem:[%s5171_s0 + $0x1e8] sm:$0xff] }
 0x1bd   : > { %2124 = vmatmul.mubr.f32.gmra.mxu1 %v1348_v57  ;;  %2191 = vmatpush2.msra.mxu0 %v1550_v58  ;;  %v1656_v57 = vld [vmem:[%s4301_s3 + $0x890] sm:$0xff] }
 0x1be   : > { %2280 = vmatpush2.msra.mxu1 %v1614_v59  ;;  %2192 = vmatprep.subr.mxu0 %v1549_v60  ;;  %v1720_v58 = vld [vmem:[%s4301_s3 + $0xa90] sm:$0xff]  ;;  %v1655_v59 = vld [vmem:[%s4301_s3 + $0x888] sm:$0xff]  ;;  %v1370_v60 = vld [vmem:[%s5171_s0 + $0x1e0] sm:$0xff] }
 0x1bf   : > { %2281 = vmatprep.subr.mxu1 %v1613_v61  ;;  %2193 = vmatpush2.msra.mxu0 %v1548_v62  ;;  %v1719_v61 = vld [vmem:[%s4301_s3 + $0xa88] sm:$0xff]  ;;  %v1654_v62 = vld [vmem:[%s4301_s3 + $0x880] sm:$0xff] }
 0x1c0   : > { %2282 = vmatpush2.msra.mxu1 %v1612_v63  ;;  %2040 = vmatprep.mubr.f32.mxu0 %v1365_v0  ;;  %v1718_v63 = vld [vmem:[%s4301_s3 + $0xa80] sm:$0xff]  ;;  %v1653_v0 = vld [vmem:[%s4301_s3 + $0x878] sm:$0xff] }
 0x1c1   : > { %2129 = vmatprep.mubr.f32.mxu1 %v1367_v1  ;;  %2194 = vmatprep.subr.mxu0 %v1547_v2  ;;  %v1717_v1 = vld [vmem:[%s4301_s3 + $0xa78] sm:$0xff]  ;;  %v1652_v2 = vld [vmem:[%s4301_s3 + $0x870] sm:$0xff] }
 0x1c2   : > { %2283 = vmatprep.subr.mxu1 %v1611_v3  ;;  %2041 = vmatmul.mubr.f32.gmra.mxu0 %v1364_v4  ;;  %v1716_v3 = vld [vmem:[%s4301_s3 + $0xa70] sm:$0xff]  ;;  %v1651_v4 = vld [vmem:[%s4301_s3 + $0x868] sm:$0xff] }
 0x1c3   : > { %2130 = vmatmul.mubr.f32.gmra.mxu1 %v1366_v5  ;;  %2195 = vmatpush2.msra.mxu0 %v1546_v6  ;;  %v1715_v5 = vld [vmem:[%s4301_s3 + $0xa68] sm:$0xff]  ;;  %v1650_v6 = vld [vmem:[%s4301_s3 + $0x860] sm:$0xff] }
 0x1c4   : > { %2284 = vmatpush2.msra.mxu1 %v1610_v7  ;;  %2196 = vmatprep.subr.mxu0 %v1545_v8  ;;  %v1714_v7 = vld [vmem:[%s4301_s3 + $0xa60] sm:$0xff]  ;;  %v1649_v8 = vld [vmem:[%s4301_s3 + $0x858] sm:$0xff] }
 0x1c5   : > { %2285 = vmatprep.subr.mxu1 %v1609_v9  ;;  %2197 = vmatpush2.msra.mxu0 %v1544_v10  ;;  %v1713_v9 = vld [vmem:[%s4301_s3 + $0xa58] sm:$0xff]  ;;  %v1648_v10 = vld [vmem:[%s4301_s3 + $0x850] sm:$0xff] }
 0x1c6   : > { %2286 = vmatpush2.msra.mxu1 %v1608_v11  ;;  %2198 = vmatprep.subr.mxu0 %v1543_v12  ;;  %v1712_v11 = vld [vmem:[%s4301_s3 + $0xa50] sm:$0xff]  ;;  %v1647_v12 = vld [vmem:[%s4301_s3 + $0x848] sm:$0xff] }
 0x1c7   : > { %2287 = vmatprep.subr.mxu1 %v1607_v13  ;;  %2199 = vmatpush2.msra.mxu0 %v1542_v14  ;;  %v1711_v13 = vld [vmem:[%s4301_s3 + $0xa48] sm:$0xff]  ;;  %v1646_v14 = vld [vmem:[%s4301_s3 + $0x840] sm:$0xff] }
 0x1c8   : > { %2200 = vmatprep.mubr.f32.mxu0 %v1315_v15  ;;  %2288 = vmatpush2.msra.mxu1 %v1606_v16  ;;  %v1710_v15 = vld [vmem:[%s4301_s3 + $0xa40] sm:$0xff]  ;;  %v1645_v16 = vld [vmem:[%s4301_s3 + $0x838] sm:$0xff] }
 0x1c9   : > { %2201 = vmatmul.mubr.f32.vlgmr.msra.gmra.mxu0 %v1314_v17  ;;  %2289 = vmatprep.mubr.f32.mxu1 %v1317_v18  ;;  %v1709_v17 = vld [vmem:[%s4301_s3 + $0xa38] sm:$0xff]  ;;  %v1644_v18 = vld [vmem:[%s4301_s3 + $0x830] sm:$0xff] }
 0x1ca   : > { %2314 = vmatprep.subr.mxu0 %v1669_v19  ;;  %2403 = vmatprep.subr.mxu1 %v1733_v20  ;;  %v1708_v19 = vld [vmem:[%s4301_s3 + $0xa30] sm:$0xff]  ;;  %v1643_v20 = vld [vmem:[%s4301_s3 + $0x828] sm:$0xff] }
 0x1cb   : > { %2290 = vmatmul.mubr.f32.vlgmr.msra.gmra.mxu1 %v1316_v21  ;;  %2315 = vmatpush1.msra.mxu0 %v1668_v22  ;;  %v1707_v21 = vld [vmem:[%s4301_s3 + $0xa28] sm:$0xff]  ;;  %v1642_v22 = vld [vmem:[%s4301_s3 + $0x820] sm:$0xff] }
 0x1cc   : > { %2404 = vmatpush1.msra.mxu1 %v1732_v23  ;;  %2316 = vmatprep.subr.mxu0 %v1667_v24  ;;  %v1706_v23 = vld [vmem:[%s4301_s3 + $0xa20] sm:$0xff]  ;;  %v1641_v24 = vld [vmem:[%s4301_s3 + $0x818] sm:$0xff] }
 0x1cd   : > { %2405 = vmatprep.subr.mxu1 %v1731_v25  ;;  %2206 = vmatprep.mubr.f32.mxu0 %v1333_v26  ;;  %v1705_v25 = vld [vmem:[%s4301_s3 + $0xa18] sm:$0xff]  ;;  %v1640_v26 = vld [vmem:[%s4301_s3 + $0x810] sm:$0xff] }
 0x1ce   : > { %2317 = vmatpush1.msra.mxu0 %v1666_v27  ;;  %2406 = vmatpush1.msra.mxu1 %v1730_v28  ;;  %v1704_v27 = vld [vmem:[%s4301_s3 + $0xa10] sm:$0xff]  ;;  %v1639_v28 = vld [vmem:[%s4301_s3 + $0x808] sm:$0xff] }
 0x1cf   : > { %2207 = vmatmul.mubr.f32.gmra.mxu0 %v1332_v29  ;;  %2318 = vmatprep.subr.mxu0 %v1665_v30  ;;  %v1703_v29 = vld [vmem:[%s4301_s3 + $0xa08] sm:$0xff]  ;;  %v1638_v30 = vld [vmem:[%s4301_s3 + $0x800] sm:$0xff] }
 0x1d0   : > { %2407 = vmatprep.subr.mxu1 %v1729_v31  ;;  %2295 = vmatprep.mubr.f32.mxu1 %v1335_v32  ;;  %v1702_v31 = vld [vmem:[%s4301_s3 + $0xa00] sm:$0xff]  ;;  %v1701_v32 = vld [vmem:[%s4301_s3 + $0x9f8] sm:$0xff] }
 0x1d1   : > { %2319 = vmatpush1.msra.mxu0 %v1664_v33  ;;  %2408 = vmatpush1.msra.mxu1 %v1728_v34  ;;  %v1765_v33 = vld [vmem:[%s4301_s3 + $0xbf8] sm:$0xff]  ;;  %v1700_v34 = vld [vmem:[%s4301_s3 + $0x9f0] sm:$0xff] }
 0x1d2   : > { %2320 = vmatprep.subr.mxu0 %v1663_v35  ;;  %2296 = vmatmul.mubr.f32.gmra.mxu1 %v1334_v36  ;;  %v1764_v35 = vld [vmem:[%s4301_s3 + $0xbf0] sm:$0xff]  ;;  %v1699_v36 = vld [vmem:[%s4301_s3 + $0x9e8] sm:$0xff] }
 0x1d3   : > { %2409 = vmatprep.subr.mxu1 %v1727_v37  ;;  %2212 = vmatprep.mubr.f32.mxu0 %v1351_v38  ;;  %v1763_v37 = vld [vmem:[%s4301_s3 + $0xbe8] sm:$0xff]  ;;  %v1698_v38 = vld [vmem:[%s4301_s3 + $0x9e0] sm:$0xff] }
 0x1d4   : > { %2321 = vmatpush1.msra.mxu0 %v1662_v39  ;;  %2410 = vmatpush1.msra.mxu1 %v1726_v40  ;;  %v1762_v39 = vld [vmem:[%s4301_s3 + $0xbe0] sm:$0xff]  ;;  %v1697_v40 = vld [vmem:[%s4301_s3 + $0x9d8] sm:$0xff] }
 0x1d5   : > { %2213 = vmatmul.mubr.f32.gmra.mxu0 %v1350_v41  ;;  %2322 = vmatprep.subr.mxu0 %v1661_v42  ;;  %v1761_v41 = vld [vmem:[%s4301_s3 + $0xbd8] sm:$0xff]  ;;  %v1696_v42 = vld [vmem:[%s4301_s3 + $0x9d0] sm:$0xff] }
 0x1d6   : > { %2411 = vmatprep.subr.mxu1 %v1725_v43  ;;  %2301 = vmatprep.mubr.f32.mxu1 %v1353_v44  ;;  %v1760_v43 = vld [vmem:[%s4301_s3 + $0xbd0] sm:$0xff]  ;;  %v1695_v44 = vld [vmem:[%s4301_s3 + $0x9c8] sm:$0xff] }
 0x1d7   : > { %2323 = vmatpush1.msra.mxu0 %v1660_v45  ;;  %2412 = vmatpush1.msra.mxu1 %v1724_v46  ;;  %v1759_v45 = vld [vmem:[%s4301_s3 + $0xbc8] sm:$0xff]  ;;  %v1694_v46 = vld [vmem:[%s4301_s3 + $0x9c0] sm:$0xff] }
 0x1d8   : > { %2324 = vmatprep.subr.mxu0 %v1659_v47  ;;  %2302 = vmatmul.mubr.f32.gmra.mxu1 %v1352_v48  ;;  %v1758_v47 = vld [vmem:[%s4301_s3 + $0xbc0] sm:$0xff]  ;;  %v1693_v48 = vld [vmem:[%s4301_s3 + $0x9b8] sm:$0xff] }
 0x1d9   : > { %2413 = vmatprep.subr.mxu1 %v1723_v49  ;;  %2218 = vmatprep.mubr.f32.mxu0 %v1369_v50  ;;  %v1757_v49 = vld [vmem:[%s4301_s3 + $0xbb8] sm:$0xff]  ;;  %v1692_v50 = vld [vmem:[%s4301_s3 + $0x9b0] sm:$0xff] }
 0x1da   : > { %2325 = vmatpush1.msra.mxu0 %v1658_v51  ;;  %2414 = vmatpush1.msra.mxu1 %v1722_v52  ;;  %v1756_v51 = vld [vmem:[%s4301_s3 + $0xbb0] sm:$0xff]  ;;  %v1691_v52 = vld [vmem:[%s4301_s3 + $0x9a8] sm:$0xff] }
 0x1db   : > { %2219 = vmatmul.mubr.f32.gmra.mxu0 %v1368_v53  ;;  %2326 = vmatprep.subr.mxu0 %v1657_v54  ;;  %v1755_v53 = vld [vmem:[%s4301_s3 + $0xba8] sm:$0xff]  ;;  %v1690_v54 = vld [vmem:[%s4301_s3 + $0x9a0] sm:$0xff] }
 0x1dc   : > { %2415 = vmatprep.subr.mxu1 %v1721_v55  ;;  %2307 = vmatprep.mubr.f32.mxu1 %v1371_v56  ;;  %v1754_v55 = vld [vmem:[%s4301_s3 + $0xba0] sm:$0xff]  ;;  %v1689_v56 = vld [vmem:[%s4301_s3 + $0x998] sm:$0xff] }
 0x1dd   : > { %2327 = vmatpush1.msra.mxu0 %v1656_v57  ;;  %2416 = vmatpush1.msra.mxu1 %v1720_v58  ;;  %v1753_v57 = vld [vmem:[%s4301_s3 + $0xb98] sm:$0xff]  ;;  %v1688_v58 = vld [vmem:[%s4301_s3 + $0x990] sm:$0xff] }
 0x1de   : > { %2328 = vmatprep.subr.mxu0 %v1655_v59  ;;  %2308 = vmatmul.mubr.f32.gmra.mxu1 %v1370_v60  ;;  %v1752_v59 = vld [vmem:[%s4301_s3 + $0xb90] sm:$0xff]  ;;  %v1687_v60 = vld [vmem:[%s4301_s3 + $0x988] sm:$0xff] }
 0x1df   : > { %2417 = vmatprep.subr.mxu1 %v1719_v61  ;;  %2329 = vmatpush1.msra.mxu0 %v1654_v62  ;;  %v1751_v61 = vld [vmem:[%s4301_s3 + $0xb88] sm:$0xff]  ;;  %v1686_v62 = vld [vmem:[%s4301_s3 + $0x980] sm:$0xff] }
 0x1e0   : > { %2418 = vmatpush1.msra.mxu1 %v1718_v63  ;;  %2330 = vmatprep.subr.mxu0 %v1653_v0  ;;  %v1750_v63 = vld [vmem:[%s4301_s3 + $0xb80] sm:$0xff]  ;;  %v1685_v0 = vld [vmem:[%s4301_s3 + $0x978] sm:$0xff] }
 0x1e1   : > { %2419 = vmatprep.subr.mxu1 %v1717_v1  ;;  %2331 = vmatpush1.msra.mxu0 %v1652_v2  ;;  %v1749_v1 = vld [vmem:[%s4301_s3 + $0xb78] sm:$0xff]  ;;  %v1684_v2 = vld [vmem:[%s4301_s3 + $0x970] sm:$0xff] }
 0x1e2   : > { %2420 = vmatpush1.msra.mxu1 %v1716_v3  ;;  %2332 = vmatprep.subr.mxu0 %v1651_v4  ;;  %v1748_v3 = vld [vmem:[%s4301_s3 + $0xb70] sm:$0xff]  ;;  %v1683_v4 = vld [vmem:[%s4301_s3 + $0x968] sm:$0xff] }
 0x1e3   : > { %2421 = vmatprep.subr.mxu1 %v1715_v5  ;;  %2333 = vmatpush1.msra.mxu0 %v1650_v6  ;;  %v1747_v5 = vld [vmem:[%s4301_s3 + $0xb68] sm:$0xff]  ;;  %v1682_v6 = vld [vmem:[%s4301_s3 + $0x960] sm:$0xff] }
 0x1e4   : > { %2422 = vmatpush1.msra.mxu1 %v1714_v7  ;;  %2334 = vmatprep.subr.mxu0 %v1649_v8  ;;  %v1746_v7 = vld [vmem:[%s4301_s3 + $0xb60] sm:$0xff]  ;;  %v1681_v8 = vld [vmem:[%s4301_s3 + $0x958] sm:$0xff] }
 0x1e5   : > { %2423 = vmatprep.subr.mxu1 %v1713_v9  ;;  %2335 = vmatpush1.msra.mxu0 %v1648_v10  ;;  %v1745_v9 = vld [vmem:[%s4301_s3 + $0xb58] sm:$0xff]  ;;  %v1680_v10 = vld [vmem:[%s4301_s3 + $0x950] sm:$0xff] }
 0x1e6   : > { %2424 = vmatpush1.msra.mxu1 %v1712_v11  ;;  %2336 = vmatprep.subr.mxu0 %v1647_v12  ;;  %v1744_v11 = vld [vmem:[%s4301_s3 + $0xb50] sm:$0xff]  ;;  %v1679_v12 = vld [vmem:[%s4301_s3 + $0x948] sm:$0xff] }
 0x1e7   : > { %2425 = vmatprep.subr.mxu1 %v1711_v13  ;;  %2337 = vmatpush1.msra.mxu0 %v1646_v14  ;;  %v1743_v13 = vld [vmem:[%s4301_s3 + $0xb48] sm:$0xff]  ;;  %v1678_v14 = vld [vmem:[%s4301_s3 + $0x940] sm:$0xff] }
 0x1e8   : > { %2426 = vmatpush1.msra.mxu1 %v1710_v15  ;;  %2338 = vmatprep.subr.mxu0 %v1645_v16  ;;  %v1742_v15 = vld [vmem:[%s4301_s3 + $0xb40] sm:$0xff]  ;;  %v1677_v16 = vld [vmem:[%s4301_s3 + $0x938] sm:$0xff] }
 0x1e9   : > { %2427 = vmatprep.subr.mxu1 %v1709_v17  ;;  %2339 = vmatpush1.msra.mxu0 %v1644_v18  ;;  %v1741_v17 = vld [vmem:[%s4301_s3 + $0xb38] sm:$0xff]  ;;  %v1676_v18 = vld [vmem:[%s4301_s3 + $0x930] sm:$0xff] }
 0x1ea   : > { %2428 = vmatpush1.msra.mxu1 %v1708_v19  ;;  %2340 = vmatprep.subr.mxu0 %v1643_v20  ;;  %v1740_v19 = vld [vmem:[%s4301_s3 + $0xb30] sm:$0xff]  ;;  %v1675_v20 = vld [vmem:[%s4301_s3 + $0x928] sm:$0xff] }
 0x1eb   : > { %2429 = vmatprep.subr.mxu1 %v1707_v21  ;;  %2341 = vmatpush1.msra.mxu0 %v1642_v22  ;;  %v1739_v21 = vld [vmem:[%s4301_s3 + $0xb28] sm:$0xff]  ;;  %v1674_v22 = vld [vmem:[%s4301_s3 + $0x920] sm:$0xff] }
 0x1ec   : > { %2430 = vmatpush1.msra.mxu1 %v1706_v23  ;;  %2342 = vmatprep.subr.mxu0 %v1641_v24  ;;  %v1738_v23 = vld [vmem:[%s4301_s3 + $0xb20] sm:$0xff]  ;;  %v1673_v24 = vld [vmem:[%s4301_s3 + $0x918] sm:$0xff] }
 0x1ed   : > { %2431 = vmatprep.subr.mxu1 %v1705_v25  ;;  %2343 = vmatpush1.msra.mxu0 %v1640_v26  ;;  %v1737_v25 = vld [vmem:[%s4301_s3 + $0xb18] sm:$0xff]  ;;  %v1672_v26 = vld [vmem:[%s4301_s3 + $0x910] sm:$0xff] }
 0x1ee   : > { %2432 = vmatpush1.msra.mxu1 %v1704_v27  ;;  %2344 = vmatprep.subr.mxu0 %v1639_v28  ;;  %v1736_v27 = vld [vmem:[%s4301_s3 + $0xb10] sm:$0xff]  ;;  %v1671_v28 = vld [vmem:[%s4301_s3 + $0x908] sm:$0xff] }
 0x1ef   : > { %2433 = vmatprep.subr.mxu1 %v1703_v29  ;;  %2345 = vmatpush1.msra.mxu0 %v1638_v30  ;;  %v1735_v29 = vld [vmem:[%s4301_s3 + $0xb08] sm:$0xff]  ;;  %v1670_v30 = vld [vmem:[%s4301_s3 + $0x900] sm:$0xff] }
 0x1f0   : > { %2434 = vmatpush1.msra.mxu1 %v1702_v31  ;;  %2346 = vmatprep.subr.mxu0 %v1701_v32  ;;  %v1319_v31 = vld [vmem:[%s5171_s0 + $0x48] sm:$0xff]  ;;  %v1734_v32 = vld [vmem:[%s4301_s3 + $0xb00] sm:$0xff] }
 0x1f1   : > { %2435 = vmatprep.subr.mxu1 %v1765_v33  ;;  %2347 = vmatpush2.msra.mxu0 %v1700_v34  ;;  %v1318_v33 = vld [vmem:[%s5171_s0 + $0x40] sm:$0xff]  ;;  %v1321_v34 = vld [vmem:[%s5171_s0 + $0x58] sm:$0xff] }
 0x1f2   : > { %2436 = vmatpush2.msra.mxu1 %v1764_v35  ;;  %2348 = vmatprep.subr.mxu0 %v1699_v36  ;;  %v1797_v35 = vld [vmem:[%s4301_s3 + $0xcf8] sm:$0xff] }
 0x1f3   : > { %2437 = vmatprep.subr.mxu1 %v1763_v37  ;;  %2349 = vmatpush2.msra.mxu0 %v1698_v38  ;;  %v1861_v36 = vld [vmem:[%s4301_s3 + $0xef8] sm:$0xff]  ;;  %v1320_v37 = vld [vmem:[%s5171_s0 + $0x50] sm:$0xff] }
 0x1f4   : > { %2438 = vmatpush2.msra.mxu1 %v1762_v39  ;;  %2350 = vmatprep.subr.mxu0 %v1697_v40  ;;  %v1796_v38 = vld [vmem:[%s4301_s3 + $0xcf0] sm:$0xff]  ;;  %v1795_v40 = vld [vmem:[%s4301_s3 + $0xce8] sm:$0xff] }
 0x1f5   : > { %2439 = vmatprep.subr.mxu1 %v1761_v41  ;;  %2351 = vmatpush2.msra.mxu0 %v1696_v42  ;;  %v1860_v39 = vld [vmem:[%s4301_s3 + $0xef0] sm:$0xff]  ;;  %v1859_v41 = vld [vmem:[%s4301_s3 + $0xee8] sm:$0xff]  ;;  %v1337_v42 = vld [vmem:[%s5171_s0 + $0xd8] sm:$0xff] }
 0x1f6   : > { %2440 = vmatpush2.msra.mxu1 %v1760_v43  ;;  %2352 = vmatprep.subr.mxu0 %v1695_v44  ;;  %v1794_v43 = vld [vmem:[%s4301_s3 + $0xce0] sm:$0xff] }
 0x1f7   : > { %2441 = vmatprep.subr.mxu1 %v1759_v45  ;;  %2353 = vmatpush2.msra.mxu0 %v1694_v46  ;;  %v1858_v44 = vld [vmem:[%s4301_s3 + $0xee0] sm:$0xff]  ;;  %v1336_v45 = vld [vmem:[%s5171_s0 + $0xd0] sm:$0xff]  ;;  %v1793_v46 = vld [vmem:[%s4301_s3 + $0xcd8] sm:$0xff] }
 0x1f8   : > { %2442 = vmatpush2.msra.mxu1 %v1758_v47  ;;  %2354 = vmatprep.subr.mxu0 %v1693_v48  ;;  %v1857_v47 = vld [vmem:[%s4301_s3 + $0xed8] sm:$0xff]  ;;  %v1339_v48 = vld [vmem:[%s5171_s0 + $0xe8] sm:$0xff] }
 0x1f9   : > { %2443 = vmatprep.subr.mxu1 %v1757_v49  ;;  %2355 = vmatpush2.msra.mxu0 %v1692_v50  ;;  %v1792_v49 = vld [vmem:[%s4301_s3 + $0xcd0] sm:$0xff] }
 0x1fa   : > { %2444 = vmatpush2.msra.mxu1 %v1756_v51  ;;  %2356 = vmatprep.subr.mxu0 %v1691_v52  ;;  %v1856_v50 = vld [vmem:[%s4301_s3 + $0xed0] sm:$0xff]  ;;  %v1791_v51 = vld [vmem:[%s4301_s3 + $0xcc8] sm:$0xff]  ;;  %v1338_v52 = vld [vmem:[%s5171_s0 + $0xe0] sm:$0xff] }
 0x1fb   : > { %2445 = vmatprep.subr.mxu1 %v1755_v53  ;;  %2357 = vmatpush2.msra.mxu0 %v1690_v54  ;;  %v1855_v53 = vld [vmem:[%s4301_s3 + $0xec8] sm:$0xff] }
 0x1fc   : > { %2446 = vmatpush2.msra.mxu1 %v1754_v55  ;;  %2358 = vmatprep.subr.mxu0 %v1689_v56  ;;  %v1355_v54 = vld [vmem:[%s5171_s0 + $0x168] sm:$0xff]  ;;  %v1790_v55 = vld [vmem:[%s4301_s3 + $0xcc0] sm:$0xff] }
 0x1fd   : > { %2447 = vmatprep.subr.mxu1 %v1753_v57  ;;  %2359 = vmatpush2.msra.mxu0 %v1688_v58  ;;  %v1854_v56 = vld [vmem:[%s4301_s3 + $0xec0] sm:$0xff]  ;;  %v1789_v58 = vld [vmem:[%s4301_s3 + $0xcb8] sm:$0xff] }
 0x1fe   : > { %2448 = vmatpush2.msra.mxu1 %v1752_v59  ;;  %2360 = vmatprep.subr.mxu0 %v1687_v60  ;;  %v1354_v57 = vld [vmem:[%s5171_s0 + $0x160] sm:$0xff]  ;;  %v1853_v59 = vld [vmem:[%s4301_s3 + $0xeb8] sm:$0xff] }
 0x1ff   : > { %2449 = vmatprep.subr.mxu1 %v1751_v61  ;;  %2361 = vmatpush2.msra.mxu0 %v1686_v62  ;;  %v1357_v60 = vld [vmem:[%s5171_s0 + $0x178] sm:$0xff]  ;;  %v1788_v61 = vld [vmem:[%s4301_s3 + $0xcb0] sm:$0xff] }
 0x200   : > { %2450 = vmatpush2.msra.mxu1 %v1750_v63  ;;  %2362 = vmatprep.subr.mxu0 %v1685_v0  ;;  %v1852_v62 = vld [vmem:[%s4301_s3 + $0xeb0] sm:$0xff]  ;;  %v1787_v63 = vld [vmem:[%s4301_s3 + $0xca8] sm:$0xff] }
 0x201   : > { %2451 = vmatprep.subr.mxu1 %v1749_v1  ;;  %2363 = vmatpush2.msra.mxu0 %v1684_v2  ;;  %v1356_v0 = vld [vmem:[%s5171_s0 + $0x170] sm:$0xff]  ;;  %v1851_v1 = vld [vmem:[%s4301_s3 + $0xea8] sm:$0xff]  ;;  %v1373_v2 = vld [vmem:[%s5171_s0 + $0x1f8] sm:$0xff] }
 0x202   : > { %2452 = vmatpush2.msra.mxu1 %v1748_v3  ;;  %2364 = vmatprep.subr.mxu0 %v1683_v4  ;;  %v1786_v3 = vld [vmem:[%s4301_s3 + $0xca0] sm:$0xff] }
 0x203   : > { %2453 = vmatprep.subr.mxu1 %v1747_v5  ;;  %2365 = vmatpush2.msra.mxu0 %v1682_v6  ;;  %v1850_v4 = vld [vmem:[%s4301_s3 + $0xea0] sm:$0xff]  ;;  %v1372_v5 = vld [vmem:[%s5171_s0 + $0x1f0] sm:$0xff]  ;;  %v1785_v6 = vld [vmem:[%s4301_s3 + $0xc98] sm:$0xff] }
 0x204   : > { %2454 = vmatpush2.msra.mxu1 %v1746_v7  ;;  %2366 = vmatprep.subr.mxu0 %v1681_v8  ;;  %v1849_v7 = vld [vmem:[%s4301_s3 + $0xe98] sm:$0xff]  ;;  %v1375_v8 = vld [vmem:[%s5171_s0 + $0x208] sm:$0xff] }
 0x205   : > { %2455 = vmatprep.subr.mxu1 %v1745_v9  ;;  %2367 = vmatpush2.msra.mxu0 %v1680_v10  ;;  %v1784_v9 = vld [vmem:[%s4301_s3 + $0xc90] sm:$0xff] }
 0x206   : > { %2456 = vmatpush2.msra.mxu1 %v1744_v11  ;;  %2368 = vmatprep.subr.mxu0 %v1679_v12  ;;  %v1848_v10 = vld [vmem:[%s4301_s3 + $0xe90] sm:$0xff]  ;;  %v1783_v11 = vld [vmem:[%s4301_s3 + $0xc88] sm:$0xff]  ;;  %v1374_v12 = vld [vmem:[%s5171_s0 + $0x200] sm:$0xff] }
 0x207   : > { %2457 = vmatprep.subr.mxu1 %v1743_v13  ;;  %2369 = vmatpush2.msra.mxu0 %v1678_v14  ;;  %v1847_v13 = vld [vmem:[%s4301_s3 + $0xe88] sm:$0xff]  ;;  %v1782_v14 = vld [vmem:[%s4301_s3 + $0xc80] sm:$0xff] }
 0x208   : > { %2458 = vmatpush2.msra.mxu1 %v1742_v15  ;;  %2370 = vmatprep.subr.mxu0 %v1677_v16  ;;  %v1846_v15 = vld [vmem:[%s4301_s3 + $0xe80] sm:$0xff]  ;;  %v1781_v16 = vld [vmem:[%s4301_s3 + $0xc78] sm:$0xff] }
 0x209   : > { %2459 = vmatprep.subr.mxu1 %v1741_v17  ;;  %2371 = vmatpush2.msra.mxu0 %v1676_v18  ;;  %v1845_v17 = vld [vmem:[%s4301_s3 + $0xe78] sm:$0xff]  ;;  %v1780_v18 = vld [vmem:[%s4301_s3 + $0xc70] sm:$0xff] }
 0x20a   : > { %2460 = vmatpush2.msra.mxu1 %v1740_v19  ;;  %2372 = vmatprep.subr.mxu0 %v1675_v20  ;;  %v1844_v19 = vld [vmem:[%s4301_s3 + $0xe70] sm:$0xff]  ;;  %v1779_v20 = vld [vmem:[%s4301_s3 + $0xc68] sm:$0xff] }
 0x20b   : > { %2461 = vmatprep.subr.mxu1 %v1739_v21  ;;  %2373 = vmatpush2.msra.mxu0 %v1674_v22  ;;  %v1843_v21 = vld [vmem:[%s4301_s3 + $0xe68] sm:$0xff]  ;;  %v1778_v22 = vld [vmem:[%s4301_s3 + $0xc60] sm:$0xff] }
 0x20c   : > { %2462 = vmatpush2.msra.mxu1 %v1738_v23  ;;  %2374 = vmatprep.subr.mxu0 %v1673_v24  ;;  %v1842_v23 = vld [vmem:[%s4301_s3 + $0xe60] sm:$0xff]  ;;  %v1777_v24 = vld [vmem:[%s4301_s3 + $0xc58] sm:$0xff] }
 0x20d   : > { %2463 = vmatprep.subr.mxu1 %v1737_v25  ;;  %2375 = vmatpush2.msra.mxu0 %v1672_v26  ;;  %v1841_v25 = vld [vmem:[%s4301_s3 + $0xe58] sm:$0xff]  ;;  %v1776_v26 = vld [vmem:[%s4301_s3 + $0xc50] sm:$0xff] }
 0x20e   : > { %2464 = vmatpush2.msra.mxu1 %v1736_v27  ;;  %2376 = vmatprep.subr.mxu0 %v1671_v28  ;;  %v1840_v27 = vld [vmem:[%s4301_s3 + $0xe50] sm:$0xff]  ;;  %v1775_v28 = vld [vmem:[%s4301_s3 + $0xc48] sm:$0xff] }
 0x20f   : > { %2465 = vmatprep.subr.mxu1 %v1735_v29  ;;  %2377 = vmatpush2.msra.mxu0 %v1670_v30  ;;  %v1839_v29 = vld [vmem:[%s4301_s3 + $0xe48] sm:$0xff]  ;;  %v1774_v30 = vld [vmem:[%s4301_s3 + $0xc40] sm:$0xff] }
 0x210   : > { %2378 = vmatprep.mubr.f32.mxu0 %v1319_v31  ;;  %2466 = vmatpush2.msra.mxu1 %v1734_v32  ;;  %v1838_v31 = vld [vmem:[%s4301_s3 + $0xe40] sm:$0xff]  ;;  %v1773_v32 = vld [vmem:[%s4301_s3 + $0xc38] sm:$0xff] }
 0x211   : > { %2379 = vmatmul.mubr.f32.vlgmr.msra.gmra.mxu0 %v1318_v33  ;;  %2467 = vmatprep.mubr.f32.mxu1 %v1321_v34  ;;  %v1837_v33 = vld [vmem:[%s4301_s3 + $0xe38] sm:$0xff]  ;;  %v1772_v34 = vld [vmem:[%s4301_s3 + $0xc30] sm:$0xff] }
 0x212   : > { %2492 = vmatprep.subr.mxu0 %v1797_v35  ;;  %2581 = vmatprep.subr.mxu1 %v1861_v36  ;;  %v1836_v35 = vld [vmem:[%s4301_s3 + $0xe30] sm:$0xff]  ;;  %v1771_v36 = vld [vmem:[%s4301_s3 + $0xc28] sm:$0xff] }
 0x213   : > { %2468 = vmatmul.mubr.f32.vlgmr.msra.gmra.mxu1 %v1320_v37  ;;  %2493 = vmatpush1.msra.mxu0 %v1796_v38  ;;  %v1835_v37 = vld [vmem:[%s4301_s3 + $0xe28] sm:$0xff]  ;;  %v1770_v38 = vld [vmem:[%s4301_s3 + $0xc20] sm:$0xff] }
 0x214   : > { %2582 = vmatpush1.msra.mxu1 %v1860_v39  ;;  %2494 = vmatprep.subr.mxu0 %v1795_v40  ;;  %v1834_v39 = vld [vmem:[%s4301_s3 + $0xe20] sm:$0xff]  ;;  %v1769_v40 = vld [vmem:[%s4301_s3 + $0xc18] sm:$0xff] }
 0x215   : > { %2583 = vmatprep.subr.mxu1 %v1859_v41  ;;  %2384 = vmatprep.mubr.f32.mxu0 %v1337_v42  ;;  %v1833_v41 = vld [vmem:[%s4301_s3 + $0xe18] sm:$0xff]  ;;  %v1768_v42 = vld [vmem:[%s4301_s3 + $0xc10] sm:$0xff] }
 0x216   : > { %2495 = vmatpush1.msra.mxu0 %v1794_v43  ;;  %2584 = vmatpush1.msra.mxu1 %v1858_v44  ;;  %v1832_v43 = vld [vmem:[%s4301_s3 + $0xe10] sm:$0xff]  ;;  %v1767_v44 = vld [vmem:[%s4301_s3 + $0xc08] sm:$0xff] }
 0x217   : > { %2385 = vmatmul.mubr.f32.gmra.mxu0 %v1336_v45  ;;  %2496 = vmatprep.subr.mxu0 %v1793_v46  ;;  %v1831_v45 = vld [vmem:[%s4301_s3 + $0xe08] sm:$0xff]  ;;  %v1766_v46 = vld [vmem:[%s4301_s3 + $0xc00] sm:$0xff] }
 0x218   : > { %2585 = vmatprep.subr.mxu1 %v1857_v47  ;;  %2473 = vmatprep.mubr.f32.mxu1 %v1339_v48  ;;  %v1830_v47 = vld [vmem:[%s4301_s3 + $0xe00] sm:$0xff]  ;;  %v1829_v48 = vld [vmem:[%s4301_s3 + $0xdf8] sm:$0xff] }
 0x219   : > { %2497 = vmatpush1.msra.mxu0 %v1792_v49  ;;  %2586 = vmatpush1.msra.mxu1 %v1856_v50  ;;  %v1893_v49 = vld [vmem:[%s4301_s3 + $0xff8] sm:$0xff]  ;;  %v1828_v50 = vld [vmem:[%s4301_s3 + $0xdf0] sm:$0xff] }
 0x21a   : > { %2498 = vmatprep.subr.mxu0 %v1791_v51  ;;  %2474 = vmatmul.mubr.f32.gmra.mxu1 %v1338_v52  ;;  %v1892_v51 = vld [vmem:[%s4301_s3 + $0xff0] sm:$0xff]  ;;  %v1827_v52 = vld [vmem:[%s4301_s3 + $0xde8] sm:$0xff] }
 0x21b   : > { %2587 = vmatprep.subr.mxu1 %v1855_v53  ;;  %2390 = vmatprep.mubr.f32.mxu0 %v1355_v54  ;;  %v1891_v53 = vld [vmem:[%s4301_s3 + $0xfe8] sm:$0xff]  ;;  %v1826_v54 = vld [vmem:[%s4301_s3 + $0xde0] sm:$0xff] }
 0x21c   : > { %2499 = vmatpush1.msra.mxu0 %v1790_v55  ;;  %2588 = vmatpush1.msra.mxu1 %v1854_v56  ;;  %v1890_v55 = vld [vmem:[%s4301_s3 + $0xfe0] sm:$0xff]  ;;  %v1825_v56 = vld [vmem:[%s4301_s3 + $0xdd8] sm:$0xff] }
 0x21d   : > { %2391 = vmatmul.mubr.f32.gmra.mxu0 %v1354_v57  ;;  %2500 = vmatprep.subr.mxu0 %v1789_v58  ;;  %v1889_v57 = vld [vmem:[%s4301_s3 + $0xfd8] sm:$0xff]  ;;  %v1824_v58 = vld [vmem:[%s4301_s3 + $0xdd0] sm:$0xff] }
 0x21e   : > { %2589 = vmatprep.subr.mxu1 %v1853_v59  ;;  %2479 = vmatprep.mubr.f32.mxu1 %v1357_v60  ;;  %v1888_v59 = vld [vmem:[%s4301_s3 + $0xfd0] sm:$0xff]  ;;  %v1823_v60 = vld [vmem:[%s4301_s3 + $0xdc8] sm:$0xff] }
 0x21f   : > { %2501 = vmatpush1.msra.mxu0 %v1788_v61  ;;  %2590 = vmatpush1.msra.mxu1 %v1852_v62  ;;  %v1887_v61 = vld [vmem:[%s4301_s3 + $0xfc8] sm:$0xff]  ;;  %v1822_v62 = vld [vmem:[%s4301_s3 + $0xdc0] sm:$0xff] }
 0x220   : > { %2502 = vmatprep.subr.mxu0 %v1787_v63  ;;  %2480 = vmatmul.mubr.f32.gmra.mxu1 %v1356_v0  ;;  %v1886_v63 = vld [vmem:[%s4301_s3 + $0xfc0] sm:$0xff]  ;;  %v1821_v0 = vld [vmem:[%s4301_s3 + $0xdb8] sm:$0xff] }
 0x221   : > { %2591 = vmatprep.subr.mxu1 %v1851_v1  ;;  %2396 = vmatprep.mubr.f32.mxu0 %v1373_v2  ;;  %v1885_v1 = vld [vmem:[%s4301_s3 + $0xfb8] sm:$0xff]  ;;  %v1820_v2 = vld [vmem:[%s4301_s3 + $0xdb0] sm:$0xff] }
 0x222   : > { %2503 = vmatpush1.msra.mxu0 %v1786_v3  ;;  %2592 = vmatpush1.msra.mxu1 %v1850_v4  ;;  %v1884_v3 = vld [vmem:[%s4301_s3 + $0xfb0] sm:$0xff]  ;;  %v1819_v4 = vld [vmem:[%s4301_s3 + $0xda8] sm:$0xff] }
 0x223   : > { %2397 = vmatmul.mubr.f32.gmra.mxu0 %v1372_v5  ;;  %2504 = vmatprep.subr.mxu0 %v1785_v6  ;;  %v1883_v5 = vld [vmem:[%s4301_s3 + $0xfa8] sm:$0xff]  ;;  %v1818_v6 = vld [vmem:[%s4301_s3 + $0xda0] sm:$0xff] }
 0x224   : > { %2593 = vmatprep.subr.mxu1 %v1849_v7  ;;  %2485 = vmatprep.mubr.f32.mxu1 %v1375_v8  ;;  %v1882_v7 = vld [vmem:[%s4301_s3 + $0xfa0] sm:$0xff]  ;;  %v1817_v8 = vld [vmem:[%s4301_s3 + $0xd98] sm:$0xff] }
 0x225   : > { %2505 = vmatpush1.msra.mxu0 %v1784_v9  ;;  %2594 = vmatpush1.msra.mxu1 %v1848_v10  ;;  %v1881_v9 = vld [vmem:[%s4301_s3 + $0xf98] sm:$0xff]  ;;  %v1816_v10 = vld [vmem:[%s4301_s3 + $0xd90] sm:$0xff] }
 0x226   : > { %2506 = vmatprep.subr.mxu0 %v1783_v11  ;;  %2486 = vmatmul.mubr.f32.gmra.mxu1 %v1374_v12  ;;  %v1880_v11 = vld [vmem:[%s4301_s3 + $0xf90] sm:$0xff]  ;;  %v1815_v12 = vld [vmem:[%s4301_s3 + $0xd88] sm:$0xff] }
 0x227   : > { %2595 = vmatprep.subr.mxu1 %v1847_v13  ;;  %2507 = vmatpush1.msra.mxu0 %v1782_v14  ;;  %v1879_v13 = vld [vmem:[%s4301_s3 + $0xf88] sm:$0xff]  ;;  %v1814_v14 = vld [vmem:[%s4301_s3 + $0xd80] sm:$0xff] }
 0x228   : > { %2596 = vmatpush1.msra.mxu1 %v1846_v15  ;;  %2508 = vmatprep.subr.mxu0 %v1781_v16  ;;  %v1878_v15 = vld [vmem:[%s4301_s3 + $0xf80] sm:$0xff]  ;;  %v1813_v16 = vld [vmem:[%s4301_s3 + $0xd78] sm:$0xff] }
 0x229   : > { %2597 = vmatprep.subr.mxu1 %v1845_v17  ;;  %2509 = vmatpush1.msra.mxu0 %v1780_v18  ;;  %v1877_v17 = vld [vmem:[%s4301_s3 + $0xf78] sm:$0xff]  ;;  %v1812_v18 = vld [vmem:[%s4301_s3 + $0xd70] sm:$0xff] }
 0x22a   : > { %2598 = vmatpush1.msra.mxu1 %v1844_v19  ;;  %2510 = vmatprep.subr.mxu0 %v1779_v20  ;;  %v1876_v19 = vld [vmem:[%s4301_s3 + $0xf70] sm:$0xff]  ;;  %v1811_v20 = vld [vmem:[%s4301_s3 + $0xd68] sm:$0xff] }
 0x22b   : > { %2599 = vmatprep.subr.mxu1 %v1843_v21  ;;  %2511 = vmatpush1.msra.mxu0 %v1778_v22  ;;  %v1875_v21 = vld [vmem:[%s4301_s3 + $0xf68] sm:$0xff]  ;;  %v1810_v22 = vld [vmem:[%s4301_s3 + $0xd60] sm:$0xff] }
 0x22c   : > { %2600 = vmatpush1.msra.mxu1 %v1842_v23  ;;  %2512 = vmatprep.subr.mxu0 %v1777_v24  ;;  %v1874_v23 = vld [vmem:[%s4301_s3 + $0xf60] sm:$0xff]  ;;  %v1809_v24 = vld [vmem:[%s4301_s3 + $0xd58] sm:$0xff] }
 0x22d   : > { %2601 = vmatprep.subr.mxu1 %v1841_v25  ;;  %2513 = vmatpush1.msra.mxu0 %v1776_v26  ;;  %v1873_v25 = vld [vmem:[%s4301_s3 + $0xf58] sm:$0xff]  ;;  %v1808_v26 = vld [vmem:[%s4301_s3 + $0xd50] sm:$0xff] }
 0x22e   : > { %2602 = vmatpush1.msra.mxu1 %v1840_v27  ;;  %2514 = vmatprep.subr.mxu0 %v1775_v28  ;;  %v1872_v27 = vld [vmem:[%s4301_s3 + $0xf50] sm:$0xff]  ;;  %v1807_v28 = vld [vmem:[%s4301_s3 + $0xd48] sm:$0xff] }
 0x22f   : > { %2603 = vmatprep.subr.mxu1 %v1839_v29  ;;  %2515 = vmatpush1.msra.mxu0 %v1774_v30  ;;  %v1871_v29 = vld [vmem:[%s4301_s3 + $0xf48] sm:$0xff]  ;;  %v1806_v30 = vld [vmem:[%s4301_s3 + $0xd40] sm:$0xff] }
 0x230   : > { %2604 = vmatpush1.msra.mxu1 %v1838_v31  ;;  %2516 = vmatprep.subr.mxu0 %v1773_v32  ;;  %v1870_v31 = vld [vmem:[%s4301_s3 + $0xf40] sm:$0xff]  ;;  %v1805_v32 = vld [vmem:[%s4301_s3 + $0xd38] sm:$0xff] }
 0x231   : > { %2605 = vmatprep.subr.mxu1 %v1837_v33  ;;  %2517 = vmatpush1.msra.mxu0 %v1772_v34  ;;  %v1869_v33 = vld [vmem:[%s4301_s3 + $0xf38] sm:$0xff]  ;;  %v1804_v34 = vld [vmem:[%s4301_s3 + $0xd30] sm:$0xff] }
 0x232   : > { %2606 = vmatpush1.msra.mxu1 %v1836_v35  ;;  %2518 = vmatprep.subr.mxu0 %v1771_v36  ;;  %v1868_v35 = vld [vmem:[%s4301_s3 + $0xf30] sm:$0xff]  ;;  %v1803_v36 = vld [vmem:[%s4301_s3 + $0xd28] sm:$0xff] }
 0x233   : > { %2607 = vmatprep.subr.mxu1 %v1835_v37  ;;  %2519 = vmatpush1.msra.mxu0 %v1770_v38  ;;  %v1867_v37 = vld [vmem:[%s4301_s3 + $0xf28] sm:$0xff]  ;;  %v1802_v38 = vld [vmem:[%s4301_s3 + $0xd20] sm:$0xff] }
 0x234   : > { %2608 = vmatpush1.msra.mxu1 %v1834_v39  ;;  %2520 = vmatprep.subr.mxu0 %v1769_v40  ;;  %v1866_v39 = vld [vmem:[%s4301_s3 + $0xf20] sm:$0xff]  ;;  %v1801_v40 = vld [vmem:[%s4301_s3 + $0xd18] sm:$0xff] }
 0x235   : > { %2609 = vmatprep.subr.mxu1 %v1833_v41  ;;  %2521 = vmatpush1.msra.mxu0 %v1768_v42  ;;  %v1865_v41 = vld [vmem:[%s4301_s3 + $0xf18] sm:$0xff]  ;;  %v1800_v42 = vld [vmem:[%s4301_s3 + $0xd10] sm:$0xff] }
 0x236   : > { %2610 = vmatpush1.msra.mxu1 %v1832_v43  ;;  %2522 = vmatprep.subr.mxu0 %v1767_v44  ;;  %v1864_v43 = vld [vmem:[%s4301_s3 + $0xf10] sm:$0xff]  ;;  %v1799_v44 = vld [vmem:[%s4301_s3 + $0xd08] sm:$0xff] }
 0x237   : > { %2611 = vmatprep.subr.mxu1 %v1831_v45  ;;  %2523 = vmatpush1.msra.mxu0 %v1766_v46  ;;  %v1863_v45 = vld [vmem:[%s4301_s3 + $0xf08] sm:$0xff]  ;;  %v1798_v46 = vld [vmem:[%s4301_s3 + $0xd00] sm:$0xff] }
 0x238   : > { %2612 = vmatpush1.msra.mxu1 %v1830_v47  ;;  %2524 = vmatprep.subr.mxu0 %v1829_v48  ;;  %v1323_v47 = vld [vmem:[%s5171_s0 + $0x68] sm:$0xff]  ;;  %v1862_v48 = vld [vmem:[%s4301_s3 + $0xf00] sm:$0xff] }
 0x239   : > { %2613 = vmatprep.subr.mxu1 %v1893_v49  ;;  %2525 = vmatpush2.msra.mxu0 %v1828_v50  ;;  %v1322_v49 = vld [vmem:[%s5171_s0 + $0x60] sm:$0xff]  ;;  %v1325_v50 = vld [vmem:[%s5171_s0 + $0x78] sm:$0xff] }
 0x23a   : > { %2614 = vmatpush2.msra.mxu1 %v1892_v51  ;;  %2526 = vmatprep.subr.mxu0 %v1827_v52  ;;  %v1925_v51 = vld [vmem:[%s4301_s3 + $0x10f8] sm:$0xff]  ;;  %v1324_v52 = vld [vmem:[%s5171_s0 + $0x70] sm:$0xff] }
 0x23b   : > { %2615 = vmatprep.subr.mxu1 %v1891_v53  ;;  %2527 = vmatpush2.msra.mxu0 %v1826_v54  ;;  %v1924_v53 = vld [vmem:[%s4301_s3 + $0x10f0] sm:$0xff]  ;;  %v1923_v54 = vld [vmem:[%s4301_s3 + $0x10e8] sm:$0xff] }
 0x23c   : > { %2616 = vmatpush2.msra.mxu1 %v1890_v55  ;;  %2528 = vmatprep.subr.mxu0 %v1825_v56  ;;  %v1341_v55 = vld [vmem:[%s5171_s0 + $0xf8] sm:$0xff]  ;;  %v1922_v56 = vld [vmem:[%s4301_s3 + $0x10e0] sm:$0xff] }
 0x23d   : > { %2617 = vmatprep.subr.mxu1 %v1889_v57  ;;  %2529 = vmatpush2.msra.mxu0 %v1824_v58  ;;  %v1340_v57 = vld [vmem:[%s5171_s0 + $0xf0] sm:$0xff]  ;;  %v1921_v58 = vld [vmem:[%s4301_s3 + $0x10d8] sm:$0xff] }
 0x23e   : > { %2618 = vmatpush2.msra.mxu1 %v1888_v59  ;;  %2530 = vmatprep.subr.mxu0 %v1823_v60  ;;  %v1343_v59 = vld [vmem:[%s5171_s0 + $0x108] sm:$0xff]  ;;  %v1920_v60 = vld [vmem:[%s4301_s3 + $0x10d0] sm:$0xff] }
 0x23f   : > { %2619 = vmatprep.subr.mxu1 %v1887_v61  ;;  %2531 = vmatpush2.msra.mxu0 %v1822_v62  ;;  %v1919_v61 = vld [vmem:[%s4301_s3 + $0x10c8] sm:$0xff]  ;;  %v1342_v62 = vld [vmem:[%s5171_s0 + $0x100] sm:$0xff] }
 0x240   : > { %2620 = vmatpush2.msra.mxu1 %v1886_v63  ;;  %2532 = vmatprep.subr.mxu0 %v1821_v0  ;;  %v1359_v63 = vld [vmem:[%s5171_s0 + $0x188] sm:$0xff]  ;;  %v1918_v0 = vld [vmem:[%s4301_s3 + $0x10c0] sm:$0xff] }
 0x241   : > { %2621 = vmatprep.subr.mxu1 %v1885_v1  ;;  %2533 = vmatpush2.msra.mxu0 %v1820_v2  ;;  %v1358_v1 = vld [vmem:[%s5171_s0 + $0x180] sm:$0xff]  ;;  %v1917_v2 = vld [vmem:[%s4301_s3 + $0x10b8] sm:$0xff] }
 0x242   : > { %2622 = vmatpush2.msra.mxu1 %v1884_v3  ;;  %2534 = vmatprep.subr.mxu0 %v1819_v4  ;;  %v1361_v3 = vld [vmem:[%s5171_s0 + $0x198] sm:$0xff]  ;;  %v1916_v4 = vld [vmem:[%s4301_s3 + $0x10b0] sm:$0xff] }
 0x243   : > { %2623 = vmatprep.subr.mxu1 %v1883_v5  ;;  %2535 = vmatpush2.msra.mxu0 %v1818_v6  ;;  %v1915_v5 = vld [vmem:[%s4301_s3 + $0x10a8] sm:$0xff]  ;;  %v1360_v6 = vld [vmem:[%s5171_s0 + $0x190] sm:$0xff] }
 0x244   : > { %2624 = vmatpush2.msra.mxu1 %v1882_v7  ;;  %2536 = vmatprep.subr.mxu0 %v1817_v8  ;;  %v1377_v7 = vld [vmem:[%s5171_s0 + $0x218] sm:$0xff]  ;;  %v1914_v8 = vld [vmem:[%s4301_s3 + $0x10a0] sm:$0xff] }
 0x245   : > { %2625 = vmatprep.subr.mxu1 %v1881_v9  ;;  %2537 = vmatpush2.msra.mxu0 %v1816_v10  ;;  %v1376_v9 = vld [vmem:[%s5171_s0 + $0x210] sm:$0xff]  ;;  %v1913_v10 = vld [vmem:[%s4301_s3 + $0x1098] sm:$0xff] }
 0x246   : > { %2626 = vmatpush2.msra.mxu1 %v1880_v11  ;;  %2538 = vmatprep.subr.mxu0 %v1815_v12  ;;  %v1379_v11 = vld [vmem:[%s5171_s0 + $0x228] sm:$0xff]  ;;  %v1912_v12 = vld [vmem:[%s4301_s3 + $0x1090] sm:$0xff] }
 0x247   : > { %2627 = vmatprep.subr.mxu1 %v1879_v13  ;;  %2539 = vmatpush2.msra.mxu0 %v1814_v14  ;;  %v1911_v13 = vld [vmem:[%s4301_s3 + $0x1088] sm:$0xff]  ;;  %v1378_v14 = vld [vmem:[%s5171_s0 + $0x220] sm:$0xff] }
 0x248   : > { %2628 = vmatpush2.msra.mxu1 %v1878_v15  ;;  %2540 = vmatprep.subr.mxu0 %v1813_v16  ;;  %v1910_v15 = vld [vmem:[%s4301_s3 + $0x1080] sm:$0xff]  ;;  %v1909_v16 = vld [vmem:[%s4301_s3 + $0x1078] sm:$0xff] }
 0x249   : > { %2629 = vmatprep.subr.mxu1 %v1877_v17  ;;  %2541 = vmatpush2.msra.mxu0 %v1812_v18  ;;  %v1908_v17 = vld [vmem:[%s4301_s3 + $0x1070] sm:$0xff]  ;;  %v1907_v18 = vld [vmem:[%s4301_s3 + $0x1068] sm:$0xff] }
 0x24a   : > { %2630 = vmatpush2.msra.mxu1 %v1876_v19  ;;  %2542 = vmatprep.subr.mxu0 %v1811_v20  ;;  %v1906_v19 = vld [vmem:[%s4301_s3 + $0x1060] sm:$0xff]  ;;  %v1905_v20 = vld [vmem:[%s4301_s3 + $0x1058] sm:$0xff] }
 0x24b   : > { %2631 = vmatprep.subr.mxu1 %v1875_v21  ;;  %2543 = vmatpush2.msra.mxu0 %v1810_v22  ;;  %v1904_v21 = vld [vmem:[%s4301_s3 + $0x1050] sm:$0xff]  ;;  %v1903_v22 = vld [vmem:[%s4301_s3 + $0x1048] sm:$0xff] }
 0x24c   : > { %2632 = vmatpush2.msra.mxu1 %v1874_v23  ;;  %2544 = vmatprep.subr.mxu0 %v1809_v24  ;;  %v1902_v23 = vld [vmem:[%s4301_s3 + $0x1040] sm:$0xff]  ;;  %v1901_v24 = vld [vmem:[%s4301_s3 + $0x1038] sm:$0xff] }
 0x24d   : > { %2633 = vmatprep.subr.mxu1 %v1873_v25  ;;  %2545 = vmatpush2.msra.mxu0 %v1808_v26  ;;  %v1900_v25 = vld [vmem:[%s4301_s3 + $0x1030] sm:$0xff]  ;;  %v1899_v26 = vld [vmem:[%s4301_s3 + $0x1028] sm:$0xff] }
 0x24e   : > { %2634 = vmatpush2.msra.mxu1 %v1872_v27  ;;  %2546 = vmatprep.subr.mxu0 %v1807_v28  ;;  %v1898_v27 = vld [vmem:[%s4301_s3 + $0x1020] sm:$0xff]  ;;  %v1897_v28 = vld [vmem:[%s4301_s3 + $0x1018] sm:$0xff] }
 0x24f   : > { %2635 = vmatprep.subr.mxu1 %v1871_v29  ;;  %2547 = vmatpush2.msra.mxu0 %v1806_v30  ;;  %v1896_v29 = vld [vmem:[%s4301_s3 + $0x1010] sm:$0xff]  ;;  %v1895_v30 = vld [vmem:[%s4301_s3 + $0x1008] sm:$0xff] }
 0x250   : > { %2636 = vmatpush2.msra.mxu1 %v1870_v31  ;;  %2548 = vmatprep.subr.mxu0 %v1805_v32  ;;  %v1894_v31 = vld [vmem:[%s4301_s3 + $0x1000] sm:$0xff]  ;;  %v1957_v32 = vld [vmem:[%s4301_s3 + $0x11f8] sm:$0xff] }
 0x251   : > { %2637 = vmatprep.subr.mxu1 %v1869_v33  ;;  %2549 = vmatpush2.msra.mxu0 %v1804_v34  ;;  %v1956_v33 = vld [vmem:[%s4301_s3 + $0x11f0] sm:$0xff]  ;;  %v1955_v34 = vld [vmem:[%s4301_s3 + $0x11e8] sm:$0xff] }
 0x252   : > { %2638 = vmatpush2.msra.mxu1 %v1868_v35  ;;  %2550 = vmatprep.subr.mxu0 %v1803_v36  ;;  %v1954_v35 = vld [vmem:[%s4301_s3 + $0x11e0] sm:$0xff]  ;;  %v1953_v36 = vld [vmem:[%s4301_s3 + $0x11d8] sm:$0xff] }
 0x253   : > { %2639 = vmatprep.subr.mxu1 %v1867_v37  ;;  %2551 = vmatpush2.msra.mxu0 %v1802_v38  ;;  %v1952_v37 = vld [vmem:[%s4301_s3 + $0x11d0] sm:$0xff]  ;;  %v1951_v38 = vld [vmem:[%s4301_s3 + $0x11c8] sm:$0xff] }
 0x254   : > { %2640 = vmatpush2.msra.mxu1 %v1866_v39  ;;  %2552 = vmatprep.subr.mxu0 %v1801_v40  ;;  %v1950_v39 = vld [vmem:[%s4301_s3 + $0x11c0] sm:$0xff]  ;;  %v1949_v40 = vld [vmem:[%s4301_s3 + $0x11b8] sm:$0xff] }
 0x255   : > { %2641 = vmatprep.subr.mxu1 %v1865_v41  ;;  %2553 = vmatpush2.msra.mxu0 %v1800_v42  ;;  %v1948_v41 = vld [vmem:[%s4301_s3 + $0x11b0] sm:$0xff]  ;;  %v1947_v42 = vld [vmem:[%s4301_s3 + $0x11a8] sm:$0xff] }
 0x256   : > { %2642 = vmatpush2.msra.mxu1 %v1864_v43  ;;  %2554 = vmatprep.subr.mxu0 %v1799_v44  ;;  %v1946_v43 = vld [vmem:[%s4301_s3 + $0x11a0] sm:$0xff]  ;;  %v1945_v44 = vld [vmem:[%s4301_s3 + $0x1198] sm:$0xff] }
 0x257   : > { %2643 = vmatprep.subr.mxu1 %v1863_v45  ;;  %2555 = vmatpush2.msra.mxu0 %v1798_v46  ;;  %v1944_v45 = vld [vmem:[%s4301_s3 + $0x1190] sm:$0xff]  ;;  %v1943_v46 = vld [vmem:[%s4301_s3 + $0x1188] sm:$0xff] }
 0x258   : > { %2556 = vmatprep.mubr.f32.mxu0 %v1323_v47  ;;  %2644 = vmatpush2.msra.mxu1 %v1862_v48  ;;  %v1942_v47 = vld [vmem:[%s4301_s3 + $0x1180] sm:$0xff]  ;;  %v1941_v48 = vld [vmem:[%s4301_s3 + $0x1178] sm:$0xff] }
 0x259   : > { %2557 = vmatmul.mubr.f32.vlgmr.msra.gmra.mxu0 %v1322_v49  ;;  %2645 = vmatprep.mubr.f32.mxu1 %v1325_v50  ;;  %v1940_v49 = vld [vmem:[%s4301_s3 + $0x1170] sm:$0xff]  ;;  %v1939_v50 = vld [vmem:[%s4301_s3 + $0x1168] sm:$0xff] }
 0x25a   : > { %2670 = vmatprep.subr.mxu0 %v1925_v51  ;;  %2961 = vmatprep.subr.mxu1 %v1925_v51  ;;  %v1938_v51 = vld [vmem:[%s4301_s3 + $0x1160] sm:$0xff] }
 0x25b   : > { %2646 = vmatmul.mubr.f32.vlgmr.msra.gmra.mxu1 %v1324_v52  ;;  %2671 = vmatpush1.msra.mxu0 %v1924_v53  ;;  %v1937_v52 = vld [vmem:[%s4301_s3 + $0x1158] sm:$0xff] }
 0x25c   : > { %2993 = vmatpush1.msra.mxu1 %v1924_v53  ;;  %2672 = vmatprep.subr.mxu0 %v1923_v54  ;;  %v1936_v53 = vld [vmem:[%s4301_s3 + $0x1150] sm:$0xff] }
 0x25d   : > { %2962 = vmatprep.subr.mxu1 %v1923_v54  ;;  %2562 = vmatprep.mubr.f32.mxu0 %v1341_v55  ;;  %v1935_v54 = vld [vmem:[%s4301_s3 + $0x1148] sm:$0xff]  ;;  %v1934_v55 = vld [vmem:[%s4301_s3 + $0x1140] sm:$0xff] }
 0x25e   : > { %2673 = vmatpush1.msra.mxu0 %v1922_v56  ;;  %2994 = vmatpush1.msra.mxu1 %v1922_v56  ;;  %v1933_v56 = vld [vmem:[%s4301_s3 + $0x1138] sm:$0xff] }
 0x25f   : > { %2563 = vmatmul.mubr.f32.gmra.mxu0 %v1340_v57  ;;  %2674 = vmatprep.subr.mxu0 %v1921_v58  ;;  %v1932_v57 = vld [vmem:[%s4301_s3 + $0x1130] sm:$0xff] }
 0x260   : > { %2963 = vmatprep.subr.mxu1 %v1921_v58  ;;  %2651 = vmatprep.mubr.f32.mxu1 %v1343_v59  ;;  %v1931_v58 = vld [vmem:[%s4301_s3 + $0x1128] sm:$0xff]  ;;  %v1930_v59 = vld [vmem:[%s4301_s3 + $0x1120] sm:$0xff] }
 0x261   : > { %2675 = vmatpush1.msra.mxu0 %v1920_v60  ;;  %2995 = vmatpush1.msra.mxu1 %v1920_v60  ;;  %v1929_v60 = vld [vmem:[%s4301_s3 + $0x1118] sm:$0xff] }
 0x262   : > { %2676 = vmatprep.subr.mxu0 %v1919_v61  ;;  %2652 = vmatmul.mubr.f32.gmra.mxu1 %v1342_v62  ;;  %v1927_v62 = vld [vmem:[%s4301_s3 + $0x1108] sm:$0xff] }
 0x263   : > { %2964 = vmatprep.subr.mxu1 %v1919_v61  ;;  %2568 = vmatprep.mubr.f32.mxu0 %v1359_v63  ;;  %v1928_v61 = vld [vmem:[%s4301_s3 + $0x1110] sm:$0xff]  ;;  %v1926_v63 = vld [vmem:[%s4301_s3 + $0x1100] sm:$0xff] }
 0x264   : > { %2677 = vmatpush1.msra.mxu0 %v1918_v0  ;;  %2996 = vmatpush1.msra.mxu1 %v1918_v0  ;;  %v1327_v0 = vld [vmem:[%s5171_s0 + $0x88] sm:$0xff] }
 0x265   : > { %2569 = vmatmul.mubr.f32.gmra.mxu0 %v1358_v1  ;;  %2678 = vmatprep.subr.mxu0 %v1917_v2  ;;  %v1363_v1 = vld [vmem:[%s5171_s0 + $0x1a8] sm:$0xff] }
 0x266   : > { %2965 = vmatprep.subr.mxu1 %v1917_v2  ;;  %2657 = vmatprep.mubr.f32.mxu1 %v1361_v3  ;;  %v1326_v2 = vld [vmem:[%s5171_s0 + $0x80] sm:$0xff] }
 0x267   : > { %2679 = vmatpush1.msra.mxu0 %v1916_v4  ;;  %2997 = vmatpush1.msra.mxu1 %v1916_v4  ;;  %v1362_v3 = vld [vmem:[%s5171_s0 + $0x1a0] sm:$0xff]  ;;  %v1345_v4 = vld [vmem:[%s5171_s0 + $0x118] sm:$0xff] }
 0x268   : > { %2680 = vmatprep.subr.mxu0 %v1915_v5  ;;  %2658 = vmatmul.mubr.f32.gmra.mxu1 %v1360_v6  ;;  %v1344_v6 = vld [vmem:[%s5171_s0 + $0x110] sm:$0xff] }
 0x269   : > { %2966 = vmatprep.subr.mxu1 %v1915_v5  ;;  %2574 = vmatprep.mubr.f32.mxu0 %v1377_v7  ;;  %v1381_v5 = vld [vmem:[%s5171_s0 + $0x238] sm:$0xff]  ;;  %v1380_v7 = vld [vmem:[%s5171_s0 + $0x230] sm:$0xff] }
 0x26a   : > { %2681 = vmatpush1.msra.mxu0 %v1914_v8  ;;  %2998 = vmatpush1.msra.mxu1 %v1914_v8  ;;  %v2024_v8 = vpop.f32.mrf.mxu0 }
 0x26b   : > { %2575 = vmatmul.mubr.f32.gmra.mxu0 %v1376_v9  ;;  %2682 = vmatprep.subr.mxu0 %v1913_v10  ;;  %v2113_v9 = vpop.f32.mrf.mxu1 }
 0x26c   : > { %2967 = vmatprep.subr.mxu1 %v1913_v10  ;;  %2663 = vmatprep.mubr.f32.mxu1 %v1379_v11  ;;  %v2026_v10 = vpop.f32.mrf.mxu0 }
 0x26d   : > { %2683 = vmatpush1.msra.mxu0 %v1912_v12  ;;  %2999 = vmatpush1.msra.mxu1 %v1912_v12  ;;  %v2115_v11 = vpop.f32.mrf.mxu1 }
 0x26e   : > { %2684 = vmatprep.subr.mxu0 %v1911_v13  ;;  %2664 = vmatmul.mubr.f32.gmra.mxu1 %v1378_v14 }
 0x26f   : > { %2968 = vmatprep.subr.mxu1 %v1911_v13  ;;  %2685 = vmatpush1.msra.mxu0 %v1910_v15 }
 0x270   : > { %3000 = vmatpush1.msra.mxu1 %v1910_v15  ;;  %2686 = vmatprep.subr.mxu0 %v1909_v16 }
 0x271   : > { %2969 = vmatprep.subr.mxu1 %v1909_v16  ;;  %2687 = vmatpush1.msra.mxu0 %v1908_v17 }
 0x272   : > { %3001 = vmatpush1.msra.mxu1 %v1908_v17  ;;  %2688 = vmatprep.subr.mxu0 %v1907_v18 }
 0x273   : > { %2970 = vmatprep.subr.mxu1 %v1907_v18  ;;  %2689 = vmatpush1.msra.mxu0 %v1906_v19 }
 0x274   : > { %3002 = vmatpush1.msra.mxu1 %v1906_v19  ;;  %2690 = vmatprep.subr.mxu0 %v1905_v20 }
 0x275   : > { %2971 = vmatprep.subr.mxu1 %v1905_v20  ;;  %2691 = vmatpush1.msra.mxu0 %v1904_v21 }
 0x276   : > { %3003 = vmatpush1.msra.mxu1 %v1904_v21  ;;  %2692 = vmatprep.subr.mxu0 %v1903_v22  ;;  %v2030_v12 = vpop.f32.mrf.mxu0 }
 0x277   : > { %2972 = vmatprep.subr.mxu1 %v1903_v22  ;;  %2693 = vmatpush1.msra.mxu0 %v1902_v23  ;;  %v2119_v13 = vpop.f32.mrf.mxu1 }
 0x278   : > { %3004 = vmatpush1.msra.mxu1 %v1902_v23  ;;  %2694 = vmatprep.subr.mxu0 %v1901_v24  ;;  %v2032_v14 = vpop.f32.mrf.mxu0 }
 0x279   : > { %2973 = vmatprep.subr.mxu1 %v1901_v24  ;;  %2695 = vmatpush1.msra.mxu0 %v1900_v25  ;;  %v2121_v15 = vpop.f32.mrf.mxu1 }
 0x27a   : > { %3005 = vmatpush1.msra.mxu1 %v1900_v25  ;;  %2696 = vmatprep.subr.mxu0 %v1899_v26 }
 0x27b   : > { %2974 = vmatprep.subr.mxu1 %v1899_v26  ;;  %2697 = vmatpush1.msra.mxu0 %v1898_v27 }
 0x27c   : > { %3006 = vmatpush1.msra.mxu1 %v1898_v27  ;;  %2698 = vmatprep.subr.mxu0 %v1897_v28  ;;  %v2036_v16 = vpop.f32.mrf.mxu0 }
 0x27d   : > { %2975 = vmatprep.subr.mxu1 %v1897_v28  ;;  %2699 = vmatpush1.msra.mxu0 %v1896_v29  ;;  %v2125_v17 = vpop.f32.mrf.mxu1 }
 0x27e   : > { %3007 = vmatpush1.msra.mxu1 %v1896_v29  ;;  %2700 = vmatprep.subr.mxu0 %v1895_v30  ;;  %v2038_v18 = vpop.f32.mrf.mxu0 }
 0x27f   : > { %2976 = vmatprep.subr.mxu1 %v1895_v30  ;;  %2701 = vmatpush1.msra.mxu0 %v1894_v31  ;;  %v2127_v19 = vpop.f32.mrf.mxu1 }
 0x280   : > { %3008 = vmatpush1.msra.mxu1 %v1894_v31  ;;  %2702 = vmatprep.subr.mxu0 %v1957_v32 }
 0x281   : > { %2977 = vmatprep.subr.mxu1 %v1957_v32  ;;  %2703 = vmatpush2.msra.mxu0 %v1956_v33 }
 0x282   : > { %3009 = vmatpush2.msra.mxu1 %v1956_v33  ;;  %2704 = vmatprep.subr.mxu0 %v1955_v34  ;;  %v2042_v20 = vpop.f32.mrf.mxu0 }
 0x283   : > { %2978 = vmatprep.subr.mxu1 %v1955_v34  ;;  %2705 = vmatpush2.msra.mxu0 %v1954_v35  ;;  %v2131_v21 = vpop.f32.mrf.mxu1 }
 0x284   : > { %3010 = vmatpush2.msra.mxu1 %v1954_v35  ;;  %2706 = vmatprep.subr.mxu0 %v1953_v36  ;;  %v2044_v22 = vpop.f32.mrf.mxu0 }
 0x285   : > { %2979 = vmatprep.subr.mxu1 %v1953_v36  ;;  %2707 = vmatpush2.msra.mxu0 %v1952_v37  ;;  %v2133_v23 = vpop.f32.mrf.mxu1 }
 0x286   : > { %3011 = vmatpush2.msra.mxu1 %v1952_v37  ;;  %2708 = vmatprep.subr.mxu0 %v1951_v38 }
 0x287   : > { %2980 = vmatprep.subr.mxu1 %v1951_v38  ;;  %2709 = vmatpush2.msra.mxu0 %v1950_v39 }
 0x288   : > { %3012 = vmatpush2.msra.mxu1 %v1950_v39  ;;  %2710 = vmatprep.subr.mxu0 %v1949_v40 }
 0x289   : > { %2981 = vmatprep.subr.mxu1 %v1949_v40  ;;  %2711 = vmatpush2.msra.mxu0 %v1948_v41  ;;  %v2202_v24 = vpop.f32.mrf.mxu0 }
 0x28a   : > { %3013 = vmatpush2.msra.mxu1 %v1948_v41  ;;  %2712 = vmatprep.subr.mxu0 %v1947_v42 }
 0x28b   : > { %2982 = vmatprep.subr.mxu1 %v1947_v42  ;;  %2713 = vmatpush2.msra.mxu0 %v1946_v43  ;;  %v2291_v25 = vpop.f32.mrf.mxu1  ;;  %v2204_v26 = vpop.f32.mrf.mxu0 }
 0x28c   : > { %3014 = vmatpush2.msra.mxu1 %v1946_v43  ;;  %2714 = vmatprep.subr.mxu0 %v1945_v44 }
 0x28d   : > { %2983 = vmatprep.subr.mxu1 %v1945_v44  ;;  %2715 = vmatpush2.msra.mxu0 %v1944_v45  ;;  %v2293_v27 = vpop.f32.mrf.mxu1 }
 0x28e   : > { %3015 = vmatpush2.msra.mxu1 %v1944_v45  ;;  %2716 = vmatprep.subr.mxu0 %v1943_v46 }
 0x28f   : > { %2984 = vmatprep.subr.mxu1 %v1943_v46  ;;  %2717 = vmatpush2.msra.mxu0 %v1942_v47  ;;  %v2208_v28 = vpop.f32.mrf.mxu0 }
 0x290   : > { %3016 = vmatpush2.msra.mxu1 %v1942_v47  ;;  %2718 = vmatprep.subr.mxu0 %v1941_v48 }
 0x291   : > { %2985 = vmatprep.subr.mxu1 %v1941_v48  ;;  %2719 = vmatpush2.msra.mxu0 %v1940_v49  ;;  %v2210_v30 = vpop.f32.mrf.mxu0 }
 0x292   : > { %3017 = vmatpush2.msra.mxu1 %v1940_v49  ;;  %2720 = vmatprep.subr.mxu0 %v1939_v50  ;;  %v2297_v29 = vpop.f32.mrf.mxu1 }
 0x293   : > { %2986 = vmatprep.subr.mxu1 %v1939_v50  ;;  %2721 = vmatpush2.msra.mxu0 %v1938_v51 }
 0x294   : > { %3018 = vmatpush2.msra.mxu1 %v1938_v51  ;;  %2722 = vmatprep.subr.mxu0 %v1937_v52  ;;  %v2299_v31 = vpop.f32.mrf.mxu1 }
 0x295   : > { %2987 = vmatprep.subr.mxu1 %v1937_v52  ;;  %2723 = vmatpush2.msra.mxu0 %v1936_v53  ;;  %v2214_v32 = vpop.f32.mrf.mxu0 }
 0x296   : > { %3019 = vmatpush2.msra.mxu1 %v1936_v53  ;;  %2724 = vmatprep.subr.mxu0 %v1935_v54 }
 0x297   : > { %2988 = vmatprep.subr.mxu1 %v1935_v54  ;;  %2725 = vmatpush2.msra.mxu0 %v1934_v55  ;;  %v2216_v34 = vpop.f32.mrf.mxu0 }
 0x298   : > { %3020 = vmatpush2.msra.mxu1 %v1934_v55  ;;  %2726 = vmatprep.subr.mxu0 %v1933_v56  ;;  %v2303_v33 = vpop.f32.mrf.mxu1 }
 0x299   : > { %2989 = vmatprep.subr.mxu1 %v1933_v56  ;;  %2727 = vmatpush2.msra.mxu0 %v1932_v57 }
 0x29a   : > { %3021 = vmatpush2.msra.mxu1 %v1932_v57  ;;  %2728 = vmatprep.subr.mxu0 %v1931_v58  ;;  %v2305_v35 = vpop.f32.mrf.mxu1 }
 0x29b   : > { %2990 = vmatprep.subr.mxu1 %v1931_v58  ;;  %2729 = vmatpush2.msra.mxu0 %v1930_v59  ;;  %v2220_v36 = vpop.f32.mrf.mxu0 }
 0x29c   : > { %3022 = vmatpush2.msra.mxu1 %v1930_v59  ;;  %2730 = vmatprep.subr.mxu0 %v1929_v60 }
 0x29d   : > { %2991 = vmatprep.subr.mxu1 %v1929_v60  ;;  %2731 = vmatpush2.msra.mxu0 %v1928_v61  ;;  %v2222_v38 = vpop.f32.mrf.mxu0 }
 0x29e   : > { %3023 = vmatpush2.msra.mxu1 %v1928_v61  ;;  %2732 = vmatprep.subr.mxu0 %v1927_v62  ;;  %v2309_v37 = vpop.f32.mrf.mxu1 }
 0x29f   : > { %2992 = vmatprep.subr.mxu1 %v1927_v62  ;;  %2733 = vmatpush2.msra.mxu0 %v1926_v63 }
 0x2a0   : > { %3024 = vmatpush2.msra.mxu1 %v1926_v63  ;;  %2734 = vmatprep.mubr.f32.mxu0 %v1327_v0  ;;  %v2311_v39 = vpop.f32.mrf.mxu1  ;;  %v2114_v0 = vadd.f32 %v2113_v9, %v2024_v8  ;;  %v2134_v8 = vadd.f32 %v2133_v23, %v2044_v22 }
 0x2a1   : > { %2746 = vmatprep.mubr.f32.mxu1 %v1363_v1  ;;  %2735 = vmatmul.mubr.f32.vlgmr.msra.gmra.mxu0 %v1326_v2  ;;  %v2116_v1 = vadd.f32 %v2115_v11, %v2026_v10  ;;  %v2126_v2 = vadd.f32 %v2125_v17, %v2036_v16 }
 0x2a2   : > { %2747 = vmatmul.mubr.f32.vlgmr.msra.gmra.mxu1 %v1362_v3  ;;  %2740 = vmatprep.mubr.f32.mxu0 %v1345_v4  ;;  %v2120_v3 = vadd.f32 %v2119_v13, %v2030_v12  ;;  %v2203_v4 = vadd.f32 %v2202_v24, %v2114_v0  ;;  %v2223_v13 = vadd.f32 %v2222_v38, %v2134_v8 }
 0x2a3   : > { %2752 = vmatprep.mubr.f32.mxu1 %v1381_v5  ;;  %v2128_v5 = vadd.f32 %v2127_v19, %v2038_v18 }
 0x2a4   : > { %v2292_v11 = vadd.f32 %v2291_v25, %v2203_v4 }
 0x2a5   : > { %2741 = vmatmul.mubr.f32.gmra.mxu0 %v1344_v6  ;;  %v2132_v6 = vadd.f32 %v2131_v21, %v2042_v20  ;;  %v2217_v9 = vadd.f32 %v2216_v34, %v2128_v5 }
 0x2a6   : > { %2753 = vmatmul.mubr.f32.gmra.mxu1 %v1380_v7  ;;  %v2205_v7 = vadd.f32 %v2204_v26, %v2116_v1 }
 0x2a7   : > { %v2221_v10 = vadd.f32 %v2220_v36, %v2132_v6  ;;  %v2306_v20 = vadd.f32 %v2305_v35, %v2217_v9 }
 0x2a8   : > { %v2294_v17 = vadd.f32 %v2293_v27, %v2205_v7 }
 0x2a9   : > { %v2310_v21 = vadd.f32 %v2309_v37, %v2221_v10 }
 0x2d1   : > { %v2380_v40 = vpop.f32.mrf.mxu0 }
 0x2d2   : > { %v2381_v19 = vadd.f32 %v2380_v40, %v2292_v11 }
 0x2d3   : > { %v2469_v41 = vpop.f32.mrf.mxu1  ;;  %v2382_v42 = vpop.f32.mrf.mxu0 }
 0x2d4   : > { %v2383_v26 = vadd.f32 %v2382_v42, %v2294_v17  ;;  %v2470_v25 = vadd.f32 %v2469_v41, %v2381_v19 }
 0x2d5   : > { %v2471_v43 = vpop.f32.mrf.mxu1 }
 0x2d6   : > { %v2472_v27 = vadd.f32 %v2471_v43, %v2383_v26 }
 0x2d7   : > { %v2386_v44 = vpop.f32.mrf.mxu0 }
 0x2d9   : > { %v2388_v46 = vpop.f32.mrf.mxu0 }
 0x2da   : > { %v2475_v45 = vpop.f32.mrf.mxu1 }
 0x2dc   : > { %v5089_v47 = vpop.f32.mrf.mxu1 }
 0x2dd   : > { %5175 = vst [vmem:[#allocation4_spill] sm:$0xff] %v5089_v47  ;;  %v2392_v48 = vpop.f32.mrf.mxu0  ;;  %v2215_v47 = vadd.f32 %v2214_v32, %v2126_v2 }
 0x2df   : > { %v2394_v50 = vpop.f32.mrf.mxu0  ;;  %v2304_v12 = vadd.f32 %v2303_v33, %v2215_v47 }
 0x2e0   : > { %v2481_v49 = vpop.f32.mrf.mxu1 }
 0x2e1   : > { %v2393_v32 = vadd.f32 %v2392_v48, %v2304_v12 }
 0x2e2   : > { %v2483_v51 = vpop.f32.mrf.mxu1 }
 0x2e3   : > { %v2398_v52 = vpop.f32.mrf.mxu0  ;;  %v2482_v33 = vadd.f32 %v2481_v49, %v2393_v32 }
 0x2e4   : > { %v2399_v22 = vadd.f32 %v2398_v52, %v2310_v21 }
 0x2e5   : > { %v2400_v54 = vpop.f32.mrf.mxu0 }
 0x2e6   : > { %v2487_v53 = vpop.f32.mrf.mxu1 }
 0x2e7   : > { %v2488_v40 = vadd.f32 %v2487_v53, %v2399_v22 }
 0x2e8   : > { %v2489_v55 = vpop.f32.mrf.mxu1 }
 0x319   : > { %v2558_v56 = vpop.f32.mrf.mxu0 }
 0x31a   : > { %v2559_v38 = vadd.f32 %v2558_v56, %v2470_v25 }
 0x31b   : > { %v5091_v57 = vpop.f32.mrf.mxu1  ;;  %v2560_v58 = vpop.f32.mrf.mxu0 }
 0x31c   : > { %5176 = vst [vmem:[#allocation5_spill] sm:$0xff] %v5091_v57  ;;  %v2561_v35 = vadd.f32 %v2560_v58, %v2472_v27 }
 0x31d   : > { %v5093_v59 = vpop.f32.mrf.mxu1 }
 0x31e   : > { %5177 = vst [vmem:[#allocation6_spill] sm:$0xff] %v5093_v59 }
 0x31f   : > { %v2564_v60 = vpop.f32.mrf.mxu0 }
 0x321   : > { %v2566_v62 = vpop.f32.mrf.mxu0 }
 0x322   : > { %v5095_v61 = vpop.f32.mrf.mxu1 }
 0x323   : > { %5178 = vst [vmem:[#allocation7_spill] sm:$0xff] %v5095_v61  ;;  %v2122_v61 = vadd.f32 %v2121_v15, %v2032_v14  ;;  %v2312_v14 = vadd.f32 %v2311_v39, %v2223_v13  ;;  %v2395_v15 = vadd.f32 %v2394_v50, %v2306_v20 }
 0x324   : > { %v5097_v63 = vpop.f32.mrf.mxu1 }
 0x325   : > { %5179 = vst [vmem:[#allocation8_spill] sm:$0xff] %v5097_v63  ;;  %v2570_v57 = vpop.f32.mrf.mxu0  ;;  %v2209_v63 = vadd.f32 %v2208_v28, %v2120_v3  ;;  %v2211_v16 = vadd.f32 %v2210_v30, %v2122_v61  ;;  %v2401_v34 = vadd.f32 %v2400_v54, %v2312_v14  ;;  %v5182_v54 = vld [vmem:[#allocation6_spill] sm:$0xff] }
 0x326   : > { %v2571_v37 = vadd.f32 %v2570_v57, %v2482_v33 }
 0x327   : > { %v2572_v0 = vpop.f32.mrf.mxu0  ;;  %v2298_v18 = vadd.f32 %v2297_v29, %v2209_v63  ;;  %v2300_v1 = vadd.f32 %v2299_v31, %v2211_v16  ;;  %v2484_v29 = vadd.f32 %v2483_v51, %v2395_v15  ;;  %v5180_v31 = vld [vmem:[#allocation4_spill] sm:$0xff]  ;;  %v2490_v48 = vadd.f32 %v2489_v55, %v2401_v34 }
 0x328   : > { %v2659_v59 = vpop.f32.mrf.mxu1 }
 0x329   : > { %v2387_v2 = vadd.f32 %v2386_v44, %v2298_v18  ;;  %v2389_v30 = vadd.f32 %v2388_v46, %v2300_v1  ;;  %v2573_v50 = vadd.f32 %v2572_v0, %v2484_v29  ;;  %v5181_v46 = vld [vmem:[#allocation5_spill] sm:$0xff]  ;;  %v2660_v56 = vadd.f32 %v2659_v59, %v2571_v37 }
 0x32a   : > { %v2661_v24 = vpop.f32.mrf.mxu1  ;;  %v2648_v43 = vadd.f32 %v5181_v46, %v2559_v38  ;;  %v5183_v57 = vld [vmem:[#allocation7_spill] sm:$0xff] }
 0x32b   : > { %v2576_v23 = vpop.f32.mrf.mxu0  ;;  %v2476_v36 = vadd.f32 %v2475_v45, %v2387_v2  ;;  %v2478_v44 = vadd.f32 %v5180_v31, %v2389_v30  ;;  %v2650_v45 = vadd.f32 %v5182_v54, %v2561_v35  ;;  %v2662_v4 = vadd.f32 %v2661_v24, %v2573_v50 }
 0x32c   : > { %v2577_v52 = vadd.f32 %v2576_v23, %v2488_v40  ;;  %v5184_v8 = vld [vmem:[#allocation8_spill] sm:$0xff] }
 0x32d   : > { %v2578_v42 = vpop.f32.mrf.mxu0  ;;  %v2565_v39 = vadd.f32 %v2564_v60, %v2476_v36  ;;  %v2567_v49 = vadd.f32 %v2566_v62, %v2478_v44 }
 0x32e   : > { %v2665_v28 = vpop.f32.mrf.mxu1  ;;  %v2579_v51 = vadd.f32 %v2578_v42, %v2490_v48 }
 0x32f   : > { %v2654_v63 = vadd.f32 %v5183_v57, %v2565_v39  ;;  %v2666_v60 = vadd.f32 %v2665_v28, %v2577_v52  ;;  %v2656_v62 = vadd.f32 %v5184_v8, %v2567_v49 }
 0x330   : > { %v2667_v47 = vpop.f32.mrf.mxu1 }
 0x331   : > { %v2668_v59 = vadd.f32 %v2667_v47, %v2579_v51 }
 0x361   : > { %v2736_v61 = vpop.f32.mrf.mxu0 }
 0x362   : > { %v2748_v41 = vpop.f32.mrf.mxu1  ;;  %v5103_v3 = vadd.f32 %v2736_v61, %v2648_v43 }
 0x363   : > { %v2738_v53 = vpop.f32.mrf.mxu0  ;;  %v5105_v55 = vadd.f32 %v2748_v41, %v2660_v56 }
 0x364   : > { %v2750_v58 = vpop.f32.mrf.mxu1  ;;  %v5107_v5 = vadd.f32 %v2738_v53, %v2650_v45  ;;  %v2779_v12 = vmul.f32 %v5103_v3, %v5103_v3 }
 0x365   : > { %v2742_v6 = vpop.f32.mrf.mxu0  ;;  %v5112_v10 = vadd.f32 %v2750_v58, %v2662_v4  ;;  %v2783_v18 = vmul.f32 %v5105_v55, %v5105_v55 }
 0x366   : > { %v2754_v7 = vpop.f32.mrf.mxu1  ;;  %v5110_v9 = vadd.f32 %v2742_v6, %v2654_v63  ;;  %v2780_v19 = vmul.f32 %v5107_v5, %v5107_v5 }
 0x367   : > { %v5114_v11 = vadd.f32 %v2754_v7, %v2666_v60  ;;  %v2744_v16 = vpop.f32.mrf.mxu0  ;;  %v2784_v2 = vmul.f32 %v5112_v10, %v5112_v10 }
 0x368   : > { %v2756_v17 = vpop.f32.mrf.mxu1  ;;  %v2759_v13 = vadd.f32 %v5110_v9, %v5103_v3  ;;  %v2781_v0 = vmul.f32 %v5110_v9, %v5110_v9  ;;  %v5122_v24 = vadd.f32 %v2744_v16, %v2656_v62 }
 0x369   : > { %v5128_v20 = vadd.f32 %v2756_v17, %v2668_v59  ;;  %v2785_v14 = vmul.f32 %v5114_v11, %v5114_v11 }
 0x36a   : > { %v2787_v21 = vadd.f32 %v2781_v0, %v2779_v12  ;;  %v2760_v26 = vadd.f32 %v2759_v13, %v5105_v55  ;;  %v2768_v32 = vadd.f32 %v5122_v24, %v5107_v5  ;;  %v2782_v1 = vmul.f32 %v5122_v24, %v5122_v24 }
 0x36b   : > { %v2786_v25 = vmul.f32 %v5128_v20, %v5128_v20 }
 0x36c   : > { %v2761_v15 = vadd.f32 %v2760_v26, %v5114_v11  ;;  %v2788_v22 = vadd.f32 %v2787_v21, %v2783_v18  ;;  %v2796_v23 = vadd.f32 %v2782_v1, %v2780_v19  ;;  %v2769_v28 = vadd.f32 %v2768_v32, %v5112_v10 }
 0x36e   : > { %v2762_v30 = vrot.slane %v2761_v15, 4  ;;  %v2789_v27 = vadd.f32 %v2788_v22, %v2785_v14  ;;  %v2770_v33 = vadd.f32 %v2769_v28, %v5128_v20  ;;  %v2797_v34 = vadd.f32 %v2796_v23, %v2784_v2 }
 0x370   : > { %v2763_v36 = vadd.f32 %v2762_v30, %v2761_v15  ;;  %v2790_v38 = vrot.slane %v2789_v27, 4  ;;  %v2771_v29 = vrot.slane %v2770_v33, 4  ;;  %v2798_v40 = vadd.f32 %v2797_v34, %v2786_v25 }
 0x372   : > { %v2764_v35 = vrot.slane %v2763_v36, 2  ;;  %v2791_v37 = vadd.f32 %v2790_v38, %v2789_v27  ;;  %v2772_v42 = vadd.f32 %v2771_v29, %v2770_v33  ;;  %v2799_v47 = vrot.slane %v2798_v40, 4 }
 0x374   : > { %v2765_v31 = vadd.f32 %v2764_v35, %v2763_v36  ;;  %v2792_v44 = vrot.slane %v2791_v37, 2  ;;  %v2773_v39 = vrot.slane %v2772_v42, 2  ;;  %v2800_v48 = vadd.f32 %v2799_v47, %v2798_v40 }
 0x376   : > { %v2766_v50 = vrot.slane %v2765_v31, 1  ;;  %v2793_v52 = vadd.f32 %v2792_v44, %v2791_v37  ;;  %v2774_v61 = vadd.f32 %v2773_v39, %v2772_v42  ;;  %v2801_v41 = vrot.slane %v2800_v48, 2 }
 0x378   : > { %v2767_v46 = vadd.f32 %v2766_v50, %v2765_v31  ;;  %v2794_v43 = vrot.slane %v2793_v52, 1  ;;  %v2775_v49 = vrot.slane %v2774_v61, 1  ;;  %v2802_v54 = vadd.f32 %v2801_v41, %v2800_v48 }
 0x37a   : > { %v2777_v45 = vmul.f32 0.03125, %v2767_v46  ;;  %v2795_v56 = vadd.f32 %v2794_v43, %v2793_v52  ;;  %v2776_v51 = vadd.f32 %v2775_v49, %v2774_v61  ;;  %v2803_v53 = vrot.slane %v2802_v54, 1 }
 0x37c   : > { %v2805_v58 = vmul.f32 0.03125, %v2795_v56  ;;  %v2807_v57 = vmul.f32 %v2777_v45, %v2777_v45  ;;  %v2778_v63 = vmul.f32 0.03125, %v2776_v51  ;;  %v2804_v4 = vadd.f32 %v2803_v53, %v2802_v54 }
 0x37d   : > { %v2817_v12 = vsub.f32 %v5103_v3, %v2777_v45  ;;  %v2819_v13 = vsub.f32 %v5110_v9, %v2777_v45  ;;  %v2821_v0 = vsub.f32 %v5105_v55, %v2777_v45  ;;  %v2823_v18 = vsub.f32 %v5114_v11, %v2777_v45 }
 0x37e   : > { %v2809_v60 = vsub.f32 %v2805_v58, %v2807_v57  ;;  %v2806_v6 = vmul.f32 0.03125, %v2804_v4  ;;  %v2808_v7 = vmul.f32 %v2778_v63, %v2778_v63  ;;  %v2818_v2 = vsub.f32 %v5107_v5, %v2778_v63 }
 0x37f   : > { %v2820_v14 = vsub.f32 %v5122_v24, %v2778_v63  ;;  %v2822_v15 = vsub.f32 %v5112_v10, %v2778_v63  ;;  %v2824_v22 = vsub.f32 %v5128_v20, %v2778_v63 }
 0x380   : > { %v2811_v8 = vmax.f32 %v2809_v60, 0.0  ;;  %v2810_v62 = vsub.f32 %v2806_v6, %v2808_v7 }
 0x382   : > { %v2813_v59 = vadd.f32 1e-05, %v2811_v8  ;;  %v2812_v16 = vmax.f32 %v2810_v62, 0.0 }
 0x384   : > { %3051 = vrsqrt.f32 %v2813_v59  ;;  %v2814_v17 = vadd.f32 1e-05, %v2812_v16 }
 0x386   : > { %3053 = vrsqrt.f32 %v2814_v17 }
 0x391   : > { %v3052_v19 = vpop.eup %3051 }
 0x392   : > { %v2825_v21 = vmul.f32 %v3052_v19, %v2817_v12  ;;  %v2827_v26 = vmul.f32 %v3052_v19, %v2819_v13  ;;  %v2829_v32 = vmul.f32 %v3052_v19, %v2821_v0  ;;  %v2831_v1 = vmul.f32 %v3052_v19, %v2823_v18 }
 0x393   : > { %v3054_v3 = vpop.eup %3053 }
 0x394   : > { %v2833_v23 = vmax.f32 %v2825_v21, 0.0  ;;  %v2835_v9 = vmax.f32 %v2827_v26, 0.0  ;;  %v2837_v28 = vmax.f32 %v2829_v32, 0.0  ;;  %v2839_v55 = vmax.f32 %v2831_v1, 0.0 }
 0x395   : > { %v2826_v25 = vmul.f32 %v3054_v3, %v2818_v2  ;;  %v2828_v11 = vmul.f32 %v3054_v3, %v2820_v14  ;;  %v2830_v30 = vmul.f32 %v3054_v3, %v2822_v15  ;;  %v2832_v27 = vmul.f32 %v3054_v3, %v2824_v22 }
 0x396   : > { %2841 = vst [vmem:[%s1307_s9] sm:$0xff] %v2833_v23  ;;  %2843 = vst [vmem:[%s1307_s9 + $0x10] sm:$0xff] %v2835_v9  ;;  %2855 = sbr.rel (!%p3124_p5) target bundleno = 931 (0x3a3), region = 55 }
 0x397   : > { %2845 = vst [vmem:[%s1307_s9 + $0x20] sm:$0xff] %v2837_v28  ;;  %2847 = vst [vmem:[%s1307_s9 + $0x30] sm:$0xff] %v2839_v55  ;;  %v2834_v5 = vmax.f32 %v2826_v25, 0.0  ;;  %v2836_v24 = vmax.f32 %v2828_v11, 0.0  ;;  %v2838_v33 = vmax.f32 %v2830_v30, 0.0  ;;  %v2840_v10 = vmax.f32 %v2832_v27, 0.0 }
 0x399   : > { %2842 = vst [vmem:[%s1307_s9 + $0x8] sm:$0xff] %v2834_v5  ;;  %2844 = vst [vmem:[%s1307_s9 + $0x18] sm:$0xff] %v2836_v24 }
 0x39a   : > { %2846 = vst [vmem:[%s1307_s9 + $0x28] sm:$0xff] %v2838_v33  ;;  %2848 = vst [vmem:[%s1307_s9 + $0x38] sm:$0xff] %v2840_v10 }
 0x39d   : > { %v2871_v20 = vld [vmem:[%s1307_s9] sm:$0xff]  ;;  %v2875_v36 = vld [vmem:[%s1307_s9 + $0x10] sm:$0xff] }
 0x39e   : > { %v2879_v29 = vld [vmem:[%s1307_s9 + $0x20] sm:$0xff]  ;;  %2872 = vst [vmem:[%s2858_s20] sm:$0xff] %v2871_v20  ;;  %2876 = vst [vmem:[%s2858_s20 + $0x20] sm:$0xff] %v2875_v36  ;;  %v2883_v35 = vld [vmem:[%s1307_s9 + $0x30] sm:$0xff] }
 0x39f   : > { %2880 = vst [vmem:[%s2858_s20 + $0x40] sm:$0xff] %v2879_v29  ;;  %2884 = vst [vmem:[%s2858_s20 + $0x60] sm:$0xff] %v2883_v35 }
 0x3a0   : > { %v2873_v34 = vld [vmem:[%s1307_s9 + $0x8] sm:$0xff]  ;;  %v2877_v38 = vld [vmem:[%s1307_s9 + $0x18] sm:$0xff] }
 0x3a1   : > { %v2881_v40 = vld [vmem:[%s1307_s9 + $0x28] sm:$0xff]  ;;  %2874 = vst [vmem:[%s2858_s20 + $0x8] sm:$0xff] %v2873_v34  ;;  %2878 = vst [vmem:[%s2858_s20 + $0x28] sm:$0xff] %v2877_v38  ;;  %v2885_v37 = vld [vmem:[%s1307_s9 + $0x38] sm:$0xff] }
 0x3a2   : > { %2882 = vst [vmem:[%s2858_s20 + $0x48] sm:$0xff] %v2881_v40  ;;  %2886 = vst [vmem:[%s2858_s20 + $0x68] sm:$0xff] %v2885_v37 }
 0x3a3 PF: > { %p9_p10 = scmp.ge.s32.totalorder %s3111_s13, 4   ;;  %s5185_s9 = smov %s3073_s10 }
 0x3a4   : > { %s5186_s10 = smov %s3122_s16  ;;  %s5187_s11 = smov %s3111_s13 }
 0x3a5   :  { %11 = sbr.rel (!%p9_p10) target bundleno = 2 (0x2), region = 109 }

</bundles_post_ra>
